<compile_context>
chip_gen: v7x
topology: tpu7x:2x2x1
jax: 0.10.0
libtpu: 0.0.40
codegen_flags: <defaults>
</compile_context>

<pallas_src>
import functools

import jax
import jax.numpy as jnp
from jax.experimental import pallas as pl
from jax.experimental.pallas import tpu as pltpu


def _per_image_vmem_bytes(hp, wp, h1n, w1n, h2, w2, h3, w3):
    """Rough f32 VMEM footprint (bytes) of the per-image activations."""
    f32 = 4
    return f32 * (
        2 * (h1n + 2) * (w1n + 2) * 3          # double-buffered input block
        + h1n * w1n * (10 + 27)                # conv1 output + im2col patches
        + hp * (2 * wp - 1) * 10               # width-pool scratch
        + h2 * w2 * (16 + 90)                  # conv2 output + patches
        + h3 * w3 * (32 + 144 + 2 * 15)        # conv3/conv4 activations
    )


def _pick_batch_block(n, per_img_bytes, budget_bytes=16 << 20):
    """Largest divisor of n in {8,4,2,1} whose activations fit the budget."""
    for cand in (8, 4, 2, 1):
        if n % cand == 0 and (cand == 1 or cand * per_img_bytes <= budget_bytes):
            return cand
    return 1


def _pnet_kernel(x_ref, w1_ref, b1_ref, w2_ref, b2_ref, w3_ref, b3_ref,
                 w4_ref, b4_ref, o_ref, wm_ref, *, dims):
    (bb, hp, wp, h1n, w1n, h2, w2, h3, w3) = dims

    def conv3x3(x, w_ref, b_ref, hout, wout, cin, relu=True):
        # Full im2col: one (bb*hout*wout, 9*cin) x (9*cin, cout) MXU matmul.
        patches = jnp.concatenate(
            [x[:, kh:kh + hout, kw:kw + wout, :]
             for kh in range(3) for kw in range(3)], axis=-1)
        lhs = patches.reshape(bb * hout * wout, 9 * cin)
        y = jnp.dot(lhs, w_ref[...], preferred_element_type=jnp.float32)
        y = y + b_ref[...]                              # (1, cout) broadcast
        if relu:
            y = jnp.maximum(y, 0.0)
        return y.reshape(bb, hout, wout, w_ref.shape[1])

    # ---- conv1 + ReLU (only the rows/cols the pool actually reads) ---------
    y1 = conv3x3(x_ref[...], w1_ref, b1_ref, h1n, w1n, 3)    # (bb,h1n,w1n,10)

    # ---- MaxPool2d(kernel=3, stride=2), floor mode --------------------------
    # Height: even/odd row split via a major-dim-only reshape (h1n == 2*(hp+1)),
    # then two vectorized maxes (no unrolled row loop).
    r = y1.reshape(bb, hp + 1, 2, w1n, 10)
    even = jax.lax.slice_in_dim(r, 0, 1, axis=2).reshape(bb, hp + 1, w1n, 10)
    odd = jax.lax.slice_in_dim(r, 1, 2, axis=2).reshape(bb, hp + 1, w1n, 10)
    hm = jnp.maximum(jnp.maximum(even[:, 0:hp], odd[:, 0:hp]),
                     even[:, 1:hp + 1])                      # (bb,hp,w1n,10)
    # Width: stride-1 window max (unit-stride slices), then stride-2 column
    # selection done as a strided read from a VMEM scratch ref.
    wc = 2 * wp - 1
    wm = jnp.maximum(jnp.maximum(hm[:, :, 0:wc, :], hm[:, :, 1:wc + 1, :]),
                     hm[:, :, 2:wc + 2, :])                  # (bb,hp,wc,10)
    wm_ref[...] = wm.reshape(bb * hp, wc, 10)
    pooled = wm_ref[:, pl.ds(0, wp, stride=2), :].reshape(bb, hp, wp, 10)

    # ---- conv2 + ReLU, conv3 + ReLU -----------------------------------------
    y2 = conv3x3(pooled, w2_ref, b2_ref, h2, w2, 10)         # (bb,h2,w2,16)
    y3 = conv3x3(y2, w3_ref, b3_ref, h3, w3, 16)             # (bb,h3,w3,32)

    # ---- conv4 (1x1), emitted directly as NCHW (lane-dense spatial dim) -----
    y3f = y3.reshape(bb, h3 * w3, 32)
    w4b = jnp.broadcast_to(w4_ref[...][None], (bb, 15, 32))
    y4 = jax.lax.dot_general(w4b, y3f, (((2,), (2,)), ((0,), (0,))),
                             preferred_element_type=jnp.float32)  # (bb,15,h3*w3)
    o_ref[...] = (y4 + b4_ref[...][None]).astype(o_ref.dtype)


def pnet_forward(x_nchw, params):
    w1, b1, w2, b2, w3, b3, w4, b4 = params
    n, c, h, w = x_nchw.shape
    assert c == 3

    hp, wp = (h - 3) // 2 + 1, (w - 3) // 2 + 1       # after 3x3 / stride-2 pool
    h2, w2s = hp - 2, wp - 2                          # after conv2
    h3, w3s = h2 - 2, w2s - 2                         # after conv3 / conv4
    h1n, w1n = 2 * hp + 2, 2 * wp + 1                 # conv1 rows/cols the pool needs

    # NCHW -> NHWC, conv1 pad=1, then trim/pad so the kernel sees exactly
    # (h1n + 2, w1n + 2) spatial extent (any extra bottom rows are zeros and
    # never enter a pooling window).
    x = jnp.transpose(x_nchw, (0, 2, 3, 1)).astype(jnp.float32)
    pad_h = (h1n + 2) - (h + 2)                       # 0 or 1
    xp = jnp.pad(x, ((0, 0), (1, 1 + pad_h), (1, 1), (0, 0)))[:, :, :w1n + 2, :]

    # Pack weights for im2col matmuls: HWIO (3,3,Cin,Cout) -> (9*Cin, Cout),
    # index order (kh, kw, ci).  conv4 is pre-transposed for NCHW output.
    w1p = w1.reshape(27, 10)
    w2p = w2.reshape(90, 16)
    w3p = w3.reshape(144, 32)
    w4t = w4.reshape(32, 15).T                        # (15, 32)
    b4t = b4.reshape(15, 1)

    per_img = _per_image_vmem_bytes(hp, wp, h1n, w1n, h2, w2s, h3, w3s)
    bb = _pick_batch_block(n, per_img)
    dims = (bb, hp, wp, h1n, w1n, h2, w2s, h3, w3s)
    kernel = functools.partial(_pnet_kernel, dims=dims)

    def const_spec(a):
        zeros = (0,) * a.ndim
        return pl.BlockSpec(a.shape, lambda i, _z=zeros: _z)

    out_flat = pl.pallas_call(
        kernel,
        out_shape=jax.ShapeDtypeStruct((n, 15, h3 * w3s), jnp.float32),
        grid=(n // bb,),
        in_specs=[
            pl.BlockSpec((bb, h1n + 2, w1n + 2, 3), lambda i: (i, 0, 0, 0)),
            const_spec(w1p), const_spec(b1),
            const_spec(w2p), const_spec(b2),
            const_spec(w3p), const_spec(b3),
            const_spec(w4t), const_spec(b4t),
        ],
        out_specs=pl.BlockSpec((bb, 15, h3 * w3s), lambda i: (i, 0, 0)),
        scratch_shapes=[pltpu.VMEM((bb * hp, 2 * wp - 1, 10), jnp.float32)],
        compiler_params=pltpu.CompilerParams(
            dimension_semantics=("parallel",)),
    )(xp, w1p, b1, w2p, b2, w3p, b3, w4t, b4t)

    # (N, 15, H3*W3) -> (N, 15, H3, W3): already NCHW, reshape only.
    return out_flat.reshape(n, 15, h3, w3s)


def pnet_reference(x_nchw, params):
    """Pure-JAX reference (matches PyTorch semantics) for validation."""
    w1, b1, w2, b2, w3, b3, w4, b4 = params
    x = jnp.transpose(x_nchw, (0, 2, 3, 1)).astype(jnp.float32)
    dn = ('NHWC', 'HWIO', 'NHWC')

    def conv(x, w, pad):
        return jax.lax.conv_general_dilated(x, w, (1, 1), pad,
                                            dimension_numbers=dn)

    y = jax.nn.relu(conv(x, w1, [(1, 1), (1, 1)]) + b1)
    y = jax.lax.reduce_window(y, -jnp.inf, jax.lax.max,
                              (1, 3, 3, 1), (1, 2, 2, 1), 'VALID')
    y = jax.nn.relu(conv(y, w2, 'VALID') + b2)
    y = jax.nn.relu(conv(y, w3, 'VALID') + b3)
    y = conv(y, w4, 'VALID') + b4
    return jnp.transpose(y, (0, 3, 1, 2))


if __name__ == "__main__":
    key = jax.random.PRNGKey(0)
    ks = jax.random.split(key, 9)
    # Deterministic synthetic parameters (HWIO layout), shapes from PNet.__init__
    w1 = jax.random.normal(ks[0], (3, 3, 3, 10), jnp.float32) * 0.1
    b1 = jax.random.normal(ks[1], (1, 10), jnp.float32) * 0.1
    w2 = jax.random.normal(ks[2], (3, 3, 10, 16), jnp.float32) * 0.1
    b2 = jax.random.normal(ks[3], (1, 16), jnp.float32) * 0.1
    w3 = jax.random.normal(ks[4], (3, 3, 16, 32), jnp.float32) * 0.1
    b3 = jax.random.normal(ks[5], (1, 32), jnp.float32) * 0.1
    w4 = jax.random.normal(ks[6], (1, 1, 32, 15), jnp.float32) * 0.1
    b4 = jax.random.normal(ks[7], (1, 15), jnp.float32) * 0.1
    params = (w1, b1, w2, b2, w3, b3, w4, b4)

    x = jax.random.normal(ks[8], (2, 3, 16, 16), jnp.float32)   # NCHW input

    out = jax.block_until_ready(pnet_forward(x, params))
    ref = jax.block_until_ready(pnet_reference(x, params))

    assert out.shape == (2, 15, 3, 3), out.shape
    max_err = float(jnp.max(jnp.abs(out - ref)))
    assert jnp.allclose(out, ref, atol=2e-2, rtol=2e-2), max_err
    print("KERNEL_OK")
</pallas_src>

<mosaic_0001>
module attributes {stable_mosaic.version = 11 : i64} {
  func.func @_pnet_kernel(%arg0: i32, %arg1: memref<2x18x17x3xf32, #tpu.memory_space<vmem>>, %arg2: memref<27x10xf32, #tpu.memory_space<vmem>>, %arg3: memref<1x10xf32, #tpu.memory_space<vmem>>, %arg4: memref<90x16xf32, #tpu.memory_space<vmem>>, %arg5: memref<1x16xf32, #tpu.memory_space<vmem>>, %arg6: memref<144x32xf32, #tpu.memory_space<vmem>>, %arg7: memref<1x32xf32, #tpu.memory_space<vmem>>, %arg8: memref<15x32xf32, #tpu.memory_space<vmem>>, %arg9: memref<15x1xf32, #tpu.memory_space<vmem>>, %arg10: memref<2x15x9xf32, #tpu.memory_space<vmem>>, %arg11: memref<14x13x10xf32, #tpu.memory_space<vmem>>) attributes {dimension_semantics = [#tpu.dimension_semantics<parallel>], iteration_bounds = array<i64: 1>, scalar_prefetch = 0 : i64, scratch_operands = 1 : i64, tpu.core_type = #tpu.core_type<tc>, window_params = [{transform_indices = @transform_0, window_bounds = array<i64: 2, 18, 17, 3>}, {pipeline_mode = #tpu.pipeline_mode<synchronous>, transform_indices = @transform_1, window_bounds = array<i64: 27, 10>}, {pipeline_mode = #tpu.pipeline_mode<synchronous>, transform_indices = @transform_2, window_bounds = array<i64: 1, 10>}, {pipeline_mode = #tpu.pipeline_mode<synchronous>, transform_indices = @transform_3, window_bounds = array<i64: 90, 16>}, {pipeline_mode = #tpu.pipeline_mode<synchronous>, transform_indices = @transform_4, window_bounds = array<i64: 1, 16>}, {pipeline_mode = #tpu.pipeline_mode<synchronous>, transform_indices = @transform_5, window_bounds = array<i64: 144, 32>}, {pipeline_mode = #tpu.pipeline_mode<synchronous>, transform_indices = @transform_6, window_bounds = array<i64: 1, 32>}, {pipeline_mode = #tpu.pipeline_mode<synchronous>, transform_indices = @transform_7, window_bounds = array<i64: 15, 32>}, {pipeline_mode = #tpu.pipeline_mode<synchronous>, transform_indices = @transform_8, window_bounds = array<i64: 15, 1>}, {transform_indices = @transform_9, window_bounds = array<i64: 2, 15, 9>}]} {
    %c0 = arith.constant 0 : index
    %c0_0 = arith.constant 0 : index
    %c0_1 = arith.constant 0 : index
    %c0_2 = arith.constant 0 : index
    %0 = vector.load %arg1[%c0, %c0_0, %c0_1, %c0_2] : memref<2x18x17x3xf32, #tpu.memory_space<vmem>>, vector<2x18x17x3xf32>
    %1 = vector.extract_strided_slice %0 {offsets = [0, 0, 0, 0], sizes = [2, 16, 15, 3], strides = [1, 1, 1, 1]} : vector<2x18x17x3xf32> to vector<2x16x15x3xf32>
    %2 = vector.extract_strided_slice %0 {offsets = [0, 0, 1, 0], sizes = [2, 16, 15, 3], strides = [1, 1, 1, 1]} : vector<2x18x17x3xf32> to vector<2x16x15x3xf32>
    %3 = vector.extract_strided_slice %0 {offsets = [0, 0, 2, 0], sizes = [2, 16, 15, 3], strides = [1, 1, 1, 1]} : vector<2x18x17x3xf32> to vector<2x16x15x3xf32>
    %4 = vector.extract_strided_slice %0 {offsets = [0, 1, 0, 0], sizes = [2, 16, 15, 3], strides = [1, 1, 1, 1]} : vector<2x18x17x3xf32> to vector<2x16x15x3xf32>
    %5 = vector.extract_strided_slice %0 {offsets = [0, 1, 1, 0], sizes = [2, 16, 15, 3], strides = [1, 1, 1, 1]} : vector<2x18x17x3xf32> to vector<2x16x15x3xf32>
    %6 = vector.extract_strided_slice %0 {offsets = [0, 1, 2, 0], sizes = [2, 16, 15, 3], strides = [1, 1, 1, 1]} : vector<2x18x17x3xf32> to vector<2x16x15x3xf32>
    %7 = vector.extract_strided_slice %0 {offsets = [0, 2, 0, 0], sizes = [2, 16, 15, 3], strides = [1, 1, 1, 1]} : vector<2x18x17x3xf32> to vector<2x16x15x3xf32>
    %8 = vector.extract_strided_slice %0 {offsets = [0, 2, 1, 0], sizes = [2, 16, 15, 3], strides = [1, 1, 1, 1]} : vector<2x18x17x3xf32> to vector<2x16x15x3xf32>
    %9 = vector.extract_strided_slice %0 {offsets = [0, 2, 2, 0], sizes = [2, 16, 15, 3], strides = [1, 1, 1, 1]} : vector<2x18x17x3xf32> to vector<2x16x15x3xf32>
    %10 = tpu.concatenate %1, %2, %3, %4, %5, %6, %7, %8, %9 in 3 : vector<2x16x15x3xf32>, vector<2x16x15x3xf32>, vector<2x16x15x3xf32>, vector<2x16x15x3xf32>, vector<2x16x15x3xf32>, vector<2x16x15x3xf32>, vector<2x16x15x3xf32>, vector<2x16x15x3xf32>, vector<2x16x15x3xf32> -> vector<2x16x15x27xf32>
    %11 = vector.shape_cast %10 : vector<2x16x15x27xf32> to vector<480x27xf32>
    %c0_3 = arith.constant 0 : index
    %c0_4 = arith.constant 0 : index
    %12 = vector.load %arg2[%c0_3, %c0_4] : memref<27x10xf32, #tpu.memory_space<vmem>>, vector<27x10xf32>
    %cst = arith.constant dense<0.000000e+00> : vector<480x10xf32>
    %13 = tpu.matmul %11, %12, %cst {dimension_numbers = #tpu.dot_dimension_numbers<[1], [0], [0], [1], [0, 0, 1, 1], [], []>} : vector<480x27xf32>, vector<27x10xf32>, vector<480x10xf32> -> vector<480x10xf32>
    %c0_5 = arith.constant 0 : index
    %c0_6 = arith.constant 0 : index
    %14 = vector.load %arg3[%c0_5, %c0_6] : memref<1x10xf32, #tpu.memory_space<vmem>>, vector<1x10xf32>
    %15 = vector.broadcast %14 : vector<1x10xf32> to vector<480x10xf32>
    %16 = arith.addf %13, %15 : vector<480x10xf32>
    %cst_7 = arith.constant 0.000000e+00 : f32
    %17 = vector.broadcast %cst_7 : f32 to vector<480x10xf32>
    %18 = arith.maximumf %16, %17 : vector<480x10xf32>
    %19 = vector.shape_cast %18 : vector<480x10xf32> to vector<2x16x15x10xf32>
    %20 = vector.shape_cast %19 : vector<2x16x15x10xf32> to vector<2x8x2x15x10xf32>
    %21 = vector.extract_strided_slice %20 {offsets = [0, 0, 0, 0, 0], sizes = [2, 8, 1, 15, 10], strides = [1, 1, 1, 1, 1]} : vector<2x8x2x15x10xf32> to vector<2x8x1x15x10xf32>
    %22 = vector.shape_cast %21 : vector<2x8x1x15x10xf32> to vector<2x8x15x10xf32>
    %23 = vector.extract_strided_slice %20 {offsets = [0, 0, 1, 0, 0], sizes = [2, 8, 1, 15, 10], strides = [1, 1, 1, 1, 1]} : vector<2x8x2x15x10xf32> to vector<2x8x1x15x10xf32>
    %24 = vector.shape_cast %23 : vector<2x8x1x15x10xf32> to vector<2x8x15x10xf32>
    %25 = vector.extract_strided_slice %22 {offsets = [0, 0, 0, 0], sizes = [2, 7, 15, 10], strides = [1, 1, 1, 1]} : vector<2x8x15x10xf32> to vector<2x7x15x10xf32>
    %26 = vector.extract_strided_slice %24 {offsets = [0, 0, 0, 0], sizes = [2, 7, 15, 10], strides = [1, 1, 1, 1]} : vector<2x8x15x10xf32> to vector<2x7x15x10xf32>
    %27 = arith.maximumf %25, %26 : vector<2x7x15x10xf32>
    %28 = vector.extract_strided_slice %22 {offsets = [0, 1, 0, 0], sizes = [2, 7, 15, 10], strides = [1, 1, 1, 1]} : vector<2x8x15x10xf32> to vector<2x7x15x10xf32>
    %29 = arith.maximumf %27, %28 : vector<2x7x15x10xf32>
    %30 = vector.extract_strided_slice %29 {offsets = [0, 0, 0, 0], sizes = [2, 7, 13, 10], strides = [1, 1, 1, 1]} : vector<2x7x15x10xf32> to vector<2x7x13x10xf32>
    %31 = vector.extract_strided_slice %29 {offsets = [0, 0, 1, 0], sizes = [2, 7, 13, 10], strides = [1, 1, 1, 1]} : vector<2x7x15x10xf32> to vector<2x7x13x10xf32>
    %32 = arith.maximumf %30, %31 : vector<2x7x13x10xf32>
    %33 = vector.extract_strided_slice %29 {offsets = [0, 0, 2, 0], sizes = [2, 7, 13, 10], strides = [1, 1, 1, 1]} : vector<2x7x15x10xf32> to vector<2x7x13x10xf32>
    %34 = arith.maximumf %32, %33 : vector<2x7x13x10xf32>
    %35 = vector.shape_cast %34 : vector<2x7x13x10xf32> to vector<14x13x10xf32>
    %c0_8 = arith.constant 0 : index
    %c0_9 = arith.constant 0 : index
    %c0_10 = arith.constant 0 : index
    %36 = vector.load %arg11[%c0_8, %c0_9, %c0_10] : memref<14x13x10xf32, #tpu.memory_space<vmem>>, vector<14x13x10xf32>
    tpu.vector_store %arg11[%c0_8, %c0_9, %c0_10], %35 {strides = array<i32>} : memref<14x13x10xf32, #tpu.memory_space<vmem>>, vector<14x13x10xf32>,
    %c0_11 = arith.constant 0 : index
    %c0_12 = arith.constant 0 : index
    %c0_13 = arith.constant 0 : index
    %37 = tpu.strided_load %arg11[%c0_11, %c0_12, %c0_13] {strides = array<i32: 1, 2, 1>} : memref<14x13x10xf32, #tpu.memory_space<vmem>>, vector<14x7x10xf32>
    %38 = vector.shape_cast %37 : vector<14x7x10xf32> to vector<2x7x7x10xf32>
    %39 = vector.extract_strided_slice %38 {offsets = [0, 0, 0, 0], sizes = [2, 5, 5, 10], strides = [1, 1, 1, 1]} : vector<2x7x7x10xf32> to vector<2x5x5x10xf32>
    %40 = vector.extract_strided_slice %38 {offsets = [0, 0, 1, 0], sizes = [2, 5, 5, 10], strides = [1, 1, 1, 1]} : vector<2x7x7x10xf32> to vector<2x5x5x10xf32>
    %41 = vector.extract_strided_slice %38 {offsets = [0, 0, 2, 0], sizes = [2, 5, 5, 10], strides = [1, 1, 1, 1]} : vector<2x7x7x10xf32> to vector<2x5x5x10xf32>
    %42 = vector.extract_strided_slice %38 {offsets = [0, 1, 0, 0], sizes = [2, 5, 5, 10], strides = [1, 1, 1, 1]} : vector<2x7x7x10xf32> to vector<2x5x5x10xf32>
    %43 = vector.extract_strided_slice %38 {offsets = [0, 1, 1, 0], sizes = [2, 5, 5, 10], strides = [1, 1, 1, 1]} : vector<2x7x7x10xf32> to vector<2x5x5x10xf32>
    %44 = vector.extract_strided_slice %38 {offsets = [0, 1, 2, 0], sizes = [2, 5, 5, 10], strides = [1, 1, 1, 1]} : vector<2x7x7x10xf32> to vector<2x5x5x10xf32>
    %45 = vector.extract_strided_slice %38 {offsets = [0, 2, 0, 0], sizes = [2, 5, 5, 10], strides = [1, 1, 1, 1]} : vector<2x7x7x10xf32> to vector<2x5x5x10xf32>
    %46 = vector.extract_strided_slice %38 {offsets = [0, 2, 1, 0], sizes = [2, 5, 5, 10], strides = [1, 1, 1, 1]} : vector<2x7x7x10xf32> to vector<2x5x5x10xf32>
    %47 = vector.extract_strided_slice %38 {offsets = [0, 2, 2, 0], sizes = [2, 5, 5, 10], strides = [1, 1, 1, 1]} : vector<2x7x7x10xf32> to vector<2x5x5x10xf32>
    %48 = tpu.concatenate %39, %40, %41, %42, %43, %44, %45, %46, %47 in 3 : vector<2x5x5x10xf32>, vector<2x5x5x10xf32>, vector<2x5x5x10xf32>, vector<2x5x5x10xf32>, vector<2x5x5x10xf32>, vector<2x5x5x10xf32>, vector<2x5x5x10xf32>, vector<2x5x5x10xf32>, vector<2x5x5x10xf32> -> vector<2x5x5x90xf32>
    %49 = vector.shape_cast %48 : vector<2x5x5x90xf32> to vector<50x90xf32>
    %c0_14 = arith.constant 0 : index
    %c0_15 = arith.constant 0 : index
    %50 = vector.load %arg4[%c0_14, %c0_15] : memref<90x16xf32, #tpu.memory_space<vmem>>, vector<90x16xf32>
    %cst_16 = arith.constant dense<0.000000e+00> : vector<50x16xf32>
    %51 = tpu.matmul %49, %50, %cst_16 {dimension_numbers = #tpu.dot_dimension_numbers<[1], [0], [0], [1], [0, 0, 1, 1], [], []>} : vector<50x90xf32>, vector<90x16xf32>, vector<50x16xf32> -> vector<50x16xf32>
    %c0_17 = arith.constant 0 : index
    %c0_18 = arith.constant 0 : index
    %52 = vector.load %arg5[%c0_17, %c0_18] : memref<1x16xf32, #tpu.memory_space<vmem>>, vector<1x16xf32>
    %53 = vector.broadcast %52 : vector<1x16xf32> to vector<50x16xf32>
    %54 = arith.addf %51, %53 : vector<50x16xf32>
    %cst_19 = arith.constant 0.000000e+00 : f32
    %55 = vector.broadcast %cst_19 : f32 to vector<50x16xf32>
    %56 = arith.maximumf %54, %55 : vector<50x16xf32>
    %57 = vector.shape_cast %56 : vector<50x16xf32> to vector<2x5x5x16xf32>
    %58 = vector.extract_strided_slice %57 {offsets = [0, 0, 0, 0], sizes = [2, 3, 3, 16], strides = [1, 1, 1, 1]} : vector<2x5x5x16xf32> to vector<2x3x3x16xf32>
    %59 = vector.extract_strided_slice %57 {offsets = [0, 0, 1, 0], sizes = [2, 3, 3, 16], strides = [1, 1, 1, 1]} : vector<2x5x5x16xf32> to vector<2x3x3x16xf32>
    %60 = vector.extract_strided_slice %57 {offsets = [0, 0, 2, 0], sizes = [2, 3, 3, 16], strides = [1, 1, 1, 1]} : vector<2x5x5x16xf32> to vector<2x3x3x16xf32>
    %61 = vector.extract_strided_slice %57 {offsets = [0, 1, 0, 0], sizes = [2, 3, 3, 16], strides = [1, 1, 1, 1]} : vector<2x5x5x16xf32> to vector<2x3x3x16xf32>
    %62 = vector.extract_strided_slice %57 {offsets = [0, 1, 1, 0], sizes = [2, 3, 3, 16], strides = [1, 1, 1, 1]} : vector<2x5x5x16xf32> to vector<2x3x3x16xf32>
    %63 = vector.extract_strided_slice %57 {offsets = [0, 1, 2, 0], sizes = [2, 3, 3, 16], strides = [1, 1, 1, 1]} : vector<2x5x5x16xf32> to vector<2x3x3x16xf32>
    %64 = vector.extract_strided_slice %57 {offsets = [0, 2, 0, 0], sizes = [2, 3, 3, 16], strides = [1, 1, 1, 1]} : vector<2x5x5x16xf32> to vector<2x3x3x16xf32>
    %65 = vector.extract_strided_slice %57 {offsets = [0, 2, 1, 0], sizes = [2, 3, 3, 16], strides = [1, 1, 1, 1]} : vector<2x5x5x16xf32> to vector<2x3x3x16xf32>
    %66 = vector.extract_strided_slice %57 {offsets = [0, 2, 2, 0], sizes = [2, 3, 3, 16], strides = [1, 1, 1, 1]} : vector<2x5x5x16xf32> to vector<2x3x3x16xf32>
    %67 = tpu.concatenate %58, %59, %60, %61, %62, %63, %64, %65, %66 in 3 : vector<2x3x3x16xf32>, vector<2x3x3x16xf32>, vector<2x3x3x16xf32>, vector<2x3x3x16xf32>, vector<2x3x3x16xf32>, vector<2x3x3x16xf32>, vector<2x3x3x16xf32>, vector<2x3x3x16xf32>, vector<2x3x3x16xf32> -> vector<2x3x3x144xf32>
    %68 = vector.shape_cast %67 : vector<2x3x3x144xf32> to vector<18x144xf32>
    %c0_20 = arith.constant 0 : index
    %c0_21 = arith.constant 0 : index
    %69 = vector.load %arg6[%c0_20, %c0_21] : memref<144x32xf32, #tpu.memory_space<vmem>>, vector<144x32xf32>
    %cst_22 = arith.constant dense<0.000000e+00> : vector<18x32xf32>
    %70 = tpu.matmul %68, %69, %cst_22 {dimension_numbers = #tpu.dot_dimension_numbers<[1], [0], [0], [1], [0, 0, 1, 1], [], []>} : vector<18x144xf32>, vector<144x32xf32>, vector<18x32xf32> -> vector<18x32xf32>
    %c0_23 = arith.constant 0 : index
    %c0_24 = arith.constant 0 : index
    %71 = vector.load %arg7[%c0_23, %c0_24] : memref<1x32xf32, #tpu.memory_space<vmem>>, vector<1x32xf32>
    %72 = vector.broadcast %71 : vector<1x32xf32> to vector<18x32xf32>
    %73 = arith.addf %70, %72 : vector<18x32xf32>
    %cst_25 = arith.constant 0.000000e+00 : f32
    %74 = vector.broadcast %cst_25 : f32 to vector<18x32xf32>
    %75 = arith.maximumf %73, %74 : vector<18x32xf32>
    %76 = vector.shape_cast %75 : vector<18x32xf32> to vector<2x3x3x32xf32>
    %77 = vector.shape_cast %76 : vector<2x3x3x32xf32> to vector<2x9x32xf32>
    %c0_26 = arith.constant 0 : index
    %c0_27 = arith.constant 0 : index
    %78 = vector.load %arg8[%c0_26, %c0_27] : memref<15x32xf32, #tpu.memory_space<vmem>>, vector<15x32xf32>
    %79 = vector.shape_cast %78 : vector<15x32xf32> to vector<1x15x32xf32>
    %80 = vector.shape_cast %79 : vector<1x15x32xf32> to vector<1x15x32xf32>
    %81 = vector.broadcast %80 : vector<1x15x32xf32> to vector<2x15x32xf32>
    %cst_28 = arith.constant dense<0.000000e+00> : vector<2x15x9xf32>
    %82 = tpu.matmul %81, %77, %cst_28 {dimension_numbers = #tpu.dot_dimension_numbers<[2], [2], [1], [1], [0, 0, 0, 1, 1, 1], [0], [0]>} : vector<2x15x32xf32>, vector<2x9x32xf32>, vector<2x15x9xf32> -> vector<2x15x9xf32>
    %c0_29 = arith.constant 0 : index
    %c0_30 = arith.constant 0 : index
    %83 = vector.load %arg9[%c0_29, %c0_30] : memref<15x1xf32, #tpu.memory_space<vmem>>, vector<15x1xf32>
    %84 = vector.shape_cast %83 : vector<15x1xf32> to vector<1x15x1xf32>
    %85 = vector.broadcast %84 : vector<1x15x1xf32> to vector<2x15x9xf32>
    %86 = arith.addf %82, %85 : vector<2x15x9xf32>
    %c0_31 = arith.constant 0 : index
    %c0_32 = arith.constant 0 : index
    %c0_33 = arith.constant 0 : index
    %87 = vector.load %arg10[%c0_31, %c0_32, %c0_33] : memref<2x15x9xf32, #tpu.memory_space<vmem>>, vector<2x15x9xf32>
    tpu.vector_store %arg10[%c0_31, %c0_32, %c0_33], %86 {strides = array<i32>} : memref<2x15x9xf32, #tpu.memory_space<vmem>>, vector<2x15x9xf32>,
    return
  }
  func.func @transform_0(%arg0: i32) -> (i32, i32, i32, i32) {
    %c0_i32 = arith.constant 0 : i32
    %c0_i32_0 = arith.constant 0 : i32
    %c0_i32_1 = arith.constant 0 : i32
    %c0_i32_2 = arith.constant 0 : i32
    return %arg0, %c0_i32, %c0_i32_0, %c0_i32_1 : i32, i32, i32, i32
  }
  func.func @transform_1(%arg0: i32) -> (i32, i32) {
    %c0_i32 = arith.constant 0 : i32
    %c0_i32_0 = arith.constant 0 : i32
    %c0_i32_1 = arith.constant 0 : i32
    return %c0_i32, %c0_i32_0 : i32, i32
  }
  func.func @transform_2(%arg0: i32) -> (i32, i32) {
    %c0_i32 = arith.constant 0 : i32
    %c0_i32_0 = arith.constant 0 : i32
    %c0_i32_1 = arith.constant 0 : i32
    return %c0_i32, %c0_i32_0 : i32, i32
  }
  func.func @transform_3(%arg0: i32) -> (i32, i32) {
    %c0_i32 = arith.constant 0 : i32
    %c0_i32_0 = arith.constant 0 : i32
    %c0_i32_1 = arith.constant 0 : i32
    return %c0_i32, %c0_i32_0 : i32, i32
  }
  func.func @transform_4(%arg0: i32) -> (i32, i32) {
    %c0_i32 = arith.constant 0 : i32
    %c0_i32_0 = arith.constant 0 : i32
    %c0_i32_1 = arith.constant 0 : i32
    return %c0_i32, %c0_i32_0 : i32, i32
  }
  func.func @transform_5(%arg0: i32) -> (i32, i32) {
    %c0_i32 = arith.constant 0 : i32
    %c0_i32_0 = arith.constant 0 : i32
    %c0_i32_1 = arith.constant 0 : i32
    return %c0_i32, %c0_i32_0 : i32, i32
  }
  func.func @transform_6(%arg0: i32) -> (i32, i32) {
    %c0_i32 = arith.constant 0 : i32
    %c0_i32_0 = arith.constant 0 : i32
    %c0_i32_1 = arith.constant 0 : i32
    return %c0_i32, %c0_i32_0 : i32, i32
  }
  func.func @transform_7(%arg0: i32) -> (i32, i32) {
    %c0_i32 = arith.constant 0 : i32
    %c0_i32_0 = arith.constant 0 : i32
    %c0_i32_1 = arith.constant 0 : i32
    return %c0_i32, %c0_i32_0 : i32, i32
  }
  func.func @transform_8(%arg0: i32) -> (i32, i32) {
    %c0_i32 = arith.constant 0 : i32
    %c0_i32_0 = arith.constant 0 : i32
    %c0_i32_1 = arith.constant 0 : i32
    return %c0_i32, %c0_i32_0 : i32, i32
  }
  func.func @transform_9(%arg0: i32) -> (i32, i32, i32) {
    %c0_i32 = arith.constant 0 : i32
    %c0_i32_0 = arith.constant 0 : i32
    %c0_i32_1 = arith.constant 0 : i32
    return %arg0, %c0_i32, %c0_i32_0 : i32, i32, i32
  }
}

</mosaic_0001>

<bundles_post_ra>
// kernel: tpu_custom_call.1
= control target key start
LH: loop header
LB: loop body
LE: loop exit
PB: predicated region body
PF: predicated region fallthrough
CT: control target
= control target key end

     0   :  { %vm525_vm0 = vcmask 1045504   ;;  %vm204_vm1 = vcmask 1046528   ;;  %s18666_s19 = smov 3   ;;  %s18667_s20 = smov 6   ;;  %vm8834_vm2 = vcmask 1042432   ;;  %vm18674_vm3 = vmmov 1   ;;  %s28513_s0 = inlined_call_operand.vmem [shape: f32[2,18,17,3], index: 0, kind: input, shape index: {}]   ;;  %s28514_s1 = inlined_call_operand.vmem [shape: f32[27,10], index: 1, kind: input, shape index: {}]   ;;  %s28515_s2 = inlined_call_operand.vmem [shape: f32[1,10], index: 2, kind: input, shape index: {}]   ;;  %s28516_s3 = inlined_call_operand.vmem [shape: f32[90,16], index: 3, kind: input, shape index: {}]   ;;  %s28517_s4 = inlined_call_operand.vmem [shape: f32[1,16], index: 4, kind: input, shape index: {}]   ;;  %s28518_s5 = inlined_call_operand.vmem [shape: f32[144,32], index: 5, kind: input, shape index: {}]   ;;  %s28519_s7 = inlined_call_operand.vmem [shape: f32[15,32], index: 7, kind: input, shape index: {}]   ;;  %s28520_s8 = inlined_call_operand.vmem [shape: f32[15,1], index: 8, kind: input, shape index: {}]   ;;  %s28521_s6 = inlined_call_operand.vmem [shape: f32[1,32], index: 6, kind: input, shape index: {}]   ;;  %s28522_s9 = inlined_call_operand.vmem [shape: f32[2,15,9], index: 9, kind: output, shape index: {}]  }
   0x1   :  { %v18747_v0 = vld [vmem:[%s28513_s0 + $0x8] sm:$0xff]  ;;  %v18752_v1 = vld [vmem:[%s28513_s0] sm:$0xff]  ;;  %v18757_v2 = vld [vmem:[%s28513_s0 + $0x18] sm:$0xff]  ;;  %s18668_s21 = smov 9   ;;  %s18669_s26 = smov 12   ;;  %vm2074_vm5 = vcmask 23552  }
   0x2   :  { %v206_v3 = vrot.slane %v18747_v0, 1  ;;  %v526_v4 = vrot.slane %v18752_v1, 2  ;;  %v527_v5 = vrot.slane %v18747_v0, 2  ;;  %v205_v6 = vrot.slane %v18752_v1, 1  ;;  %v18766_v7 = vld [vmem:[%s28513_s0 + $0x20] sm:$0xff]  ;;  %v18793_v19 = vld [vmem:[%s28513_s0 + $0x30] sm:$0xff]  ;;  %vm18495_vm4 = vmpackc.low %vm8834_vm2, %vm18674_vm3 }
   0x3   :  { %v208_v8 = vrot.slane %v18757_v2, 1  ;;  %v209_v9 = vrot.slane %v18766_v7, 1  ;;  %v34_v10 = vld [vmem:[%s28513_s0 + $0x10] sm:$0x1]  ;;  %v531_v16 = vrot.slane %v18757_v2, 2  ;;  %v532_v17 = vrot.slane %v18766_v7, 2 }
   0x4   :  { %303 = vrot.lane.b32.xlu0 %v206_v3, %s18666_s19  ;;  %v528_v11 = vsel %vm525_vm0, %v526_v4, %v527_v5  ;;  %v207_v12 = vsel %vm204_vm1, %v205_v6, %v206_v3  ;;  %v529_v13 = vrot.slane %v34_v10, 2  ;;  %v18798_v20 = vld [vmem:[%s28513_s0 + $0x38] sm:$0xff]  ;;  %v211_v21 = vrot.slane %v18793_v19, 1  ;;  %v37_v23 = vld [vmem:[%s28513_s0 + $0x28] sm:$0x1]  ;;  %s18670_s29 = smov 15  }
   0x5   :  { %686 = vrot.lane.b32.xlu1 %v528_v11, %s18667_s20  ;;  %v210_v14 = vsel %vm204_vm1, %v208_v8, %v209_v9  ;;  %v533_v18 = vsel %vm525_vm0, %v531_v16, %v532_v17  ;;  %v212_v22 = vrot.slane %v18798_v20, 1  ;;  %v534_v24 = vrot.slane %v37_v23, 2  ;;  %s18671_s30 = smov 18   ;;  %s18672_s10 = smov 21   ;;  %v18831_v30 = vld [vmem:[%s28513_s0 + $0x48] sm:$0xff]  ;;  %v18836_v31 = vld [vmem:[%s28513_s0 + $0x50] sm:$0xff] }
   0x6   :  { %v530_v15 = vsel %vm525_vm0, %v527_v5, %v529_v13  ;;  %v536_v27 = vrot.slane %v18793_v19, 2  ;;  %v537_v28 = vrot.slane %v18798_v20, 2  ;;  %v214_v32 = vrot.slane %v18831_v30, 1  ;;  %v40_v34 = vld [vmem:[%s28513_s0 + $0x40] sm:$0x1]  ;;  %s18673_s17 = smov 24  }
   0x7   :  { %v213_v25 = vsel %vm204_vm1, %v211_v21, %v212_v22  ;;  %v535_v26 = vsel %vm525_vm0, %v532_v17, %v534_v24  ;;  %v215_v33 = vrot.slane %v18836_v31, 1  ;;  %v539_v35 = vrot.slane %v40_v34, 2  ;;  %v5762_v38 = vld [vmem:[%s28514_s1] sm:$0xff]  ;;  %v5763_v39 = vld [vmem:[%s28514_s1 + $0x8] sm:$0xff]  ;;  %v5764_v43 = vld [vmem:[%s28514_s1 + $0x10] sm:$0xff]  ;;  %s18678_s23 = smov 30  }
   0x8   :  { %301 = vrot.lane.b32.xlu0 %v207_v12, %s18666_s19  ;;  %v538_v29 = vsel %vm525_vm0, %v536_v27, %v537_v28  ;;  %v541_v40 = vrot.slane %v18831_v30, 2  ;;  %v542_v41 = vrot.slane %v18836_v31, 2  ;;  %v18490_v42 = vpack.c.bf16 %v5763_v39, %v5762_v38  ;;  %v5765_v44 = vld [vmem:[%s28514_s1 + $0x18] sm:$0x7]  ;;  %v44_v47 = vld [vmem:[%s28513_s0 + $0x60] sm:$0xff]  ;;  %v45_v50 = vld [vmem:[%s28513_s0 + $0x68] sm:$0xff] }
   0x9   :  { %305 = vrot.lane.b32.xlu1 %v210_v14, %s18666_s19  ;;  %v216_v36 = vsel %vm204_vm1, %v214_v32, %v215_v33  ;;  %v540_v37 = vsel %vm525_vm0, %v537_v28, %v539_v35  ;;  %v18494_v46 = vpack.c.bf16 %v5765_v44, %v5764_v43  ;;  %v43_v48 = vld [vmem:[%s28513_s0 + $0x58] sm:$0x1]  ;;  %v217_v52 = vrot.slane %v44_v47, 1  ;;  %v18915_v59 = vld [vmem:[%s28513_s0 + $0x80] sm:$0xff]  ;;  %v46_v62 = vld [vmem:[%s28513_s0 + $0x70] sm:$0x1] }
   0xa   :  { %18491 = vmatprep.subr.bf16.mxu0 %v18490_v42  ;;  %18558 = vmatprep.subr.bf16.mxu1 %v18490_v42  ;;  %v543_v45 = vsel %vm525_vm0, %v541_v40, %v542_v41  ;;  %v544_v49 = vrot.slane %v43_v48, 2  ;;  %v218_v53 = vrot.slane %v45_v50, 1  ;;  %v546_v55 = vrot.slane %v44_v47, 2  ;;  %v47_v58 = vld [vmem:[%s28513_s0 + $0x78] sm:$0xff]  ;;  %v50_v24 = vld [vmem:[%s28513_s0 + $0x90] sm:$0xff]  ;;  %s18679_s24 = smov 40  }
   0xb   :  { %18493 = vmatpush3.bf16.msra.mxu0 %v18490_v42  ;;  %18560 = vmatpush3.bf16.msra.mxu1 %v18490_v42  ;;  %v547_v56 = vrot.slane %v45_v50, 2  ;;  %v220_v60 = vrot.slane %v47_v58, 1  ;;  %v221_v61 = vrot.slane %v18915_v59, 1  ;;  %v549_v63 = vrot.slane %v46_v62, 2  ;;  %v18973_v27 = vld [vmem:[%s28513_s0 + $0x98] sm:$0xff]  ;;  %s18680_s25 = smov 50  }
   0xc   :  { %688 = vrot.lane.b32.xlu0 %v530_v15, %s18667_s20  ;;  %18496 = vmatprep.subr.msk.bf16.mxu0 %vm18495_vm4, %v18494_v46  ;;  %v545_v51 = vsel %vm525_vm0, %v542_v41, %v544_v49  ;;  %v219_v54 = vsel %vm204_vm1, %v217_v52, %v218_v53  ;;  %v551_v11 = vrot.slane %v47_v58, 2  ;;  %v552_v12 = vrot.slane %v18915_v59, 2  ;;  %v49_v34 = vld [vmem:[%s28513_s0 + $0x88] sm:$0x1]  ;;  %s18681_s27 = smov 60   ;;  %s18682_s28 = smov 70  }
   0xd   :  { %882 = vrot.lane.b32.xlu1 %v18757_v2, %s18668_s21  ;;  %18559 = vmatprep.subr.msk.bf16.mxu1 %vm18495_vm4, %v18494_v46  ;;  %v548_v57 = vsel %vm525_vm0, %v546_v55, %v547_v56  ;;  %v222_v4 = vsel %vm204_vm1, %v220_v60, %v221_v61  ;;  %v550_v6 = vsel %vm525_vm0, %v547_v56, %v549_v63  ;;  %v18978_v32 = vrot.slane %v18973_v27, 1  ;;  %s18683_s12 = smov 80   ;;  %s18692_s16 = smov 112  }
   0xe   :  { %v553_v15 = vsel %vm525_vm0, %v551_v11, %v552_v12  ;;  %v18675_v40 = vmov 1966171168   ;;  %v2662_v42 = vlaneseq  ;;  %vm2139_vm6 = vcmask 48128  }
   0xf   :  { %18499 = vmatpush3.bf16.msk.msra.mxu0 %vm18495_vm4, %v18494_v46  ;;  %18561 = vmatpush3.bf16.msk.msra.mxu1 %vm18495_vm4, %v18494_v46  ;;  %v2660_v41 = vunpack.c.l.s4 %v18675_v40  ;;  %vm2204_vm7 = vcmask 72704   ;;  %vm2269_vm8 = vcmask 97280   ;;  %vm2334_vm9 = vcmask 121856  }
  0x10   :  { %690 = vrot.lane.b32.xlu0 %v533_v18, %s18667_s20  ;;  %v2663_v48 = vshrl.u32 %v2662_v42, 7  ;;  %vm2399_vm10 = vcmask 146432   ;;  %vm2464_vm11 = vcmask 171008   ;;  %vm2529_vm12 = vcmask 195584  }
  0x11   :  { %884 = vrot.lane.b32.xlu1 %v18766_v7, %s18668_s21  ;;  %vm8713_vm13 = vcmask 220160   ;;  %vm14765_vm14 = vcmask 80896   ;;  %vm14767_vm15 = vcmask 77824   ;;  %vm15114_vm2 = vcmask 162816  }
  0x12   :  { %vm18685_vm4 = vmmov 0  }
  0x14   :  { %1080 = vrot.lane.b32.xlu0 %v210_v14, %s18669_s26 }
  0x15   :  { %886 = vrot.lane.b32.xlu1 %v18793_v19, %s18668_s21 }
  0x18   :  { %1082 = vrot.lane.b32.xlu0 %v209_v9, %s18669_s26 }
  0x19   :  { %1284 = vrot.lane.b32.xlu1 %v533_v18, %s18670_s29 }
  0x1c   :  { %307 = vrot.lane.b32.xlu0 %v209_v9, %s18666_s19 }
  0x1d   :  { %1084 = vrot.lane.b32.xlu1 %v213_v25, %s18669_s26 }
  0x20   :  { %1286 = vrot.lane.b32.xlu0 %v535_v26, %s18670_s29 }
  0x21   :  { %1480 = vrot.lane.b32.xlu1 %v18793_v19, %s18671_s30 }
  0x24   :  { %692 = vrot.lane.b32.xlu0 %v535_v26, %s18667_s20 }
  0x25   :  { %1288 = vrot.lane.b32.xlu1 %v538_v29, %s18670_s29 }
  0x28   :  { %1482 = vrot.lane.b32.xlu0 %v18798_v20, %s18671_s30 }
  0x29   :  { %1678 = vrot.lane.b32.xlu1 %v213_v25, %s18672_s10 }
  0x2c   :  { %309 = vrot.lane.b32.xlu0 %v213_v25, %s18666_s19 }
  0x2d   :  { %888 = vrot.lane.b32.xlu1 %v18798_v20, %s18668_s21 }
  0x30   :  { %1484 = vrot.lane.b32.xlu0 %v18831_v30, %s18671_s30 }
  0x31   :  { %1680 = vrot.lane.b32.xlu1 %v212_v22, %s18672_s10 }
  0x34   :  { %1882 = vrot.lane.b32.xlu0 %v538_v29, %s18673_s17 }
  0x35   :  { %694 = vrot.lane.b32.xlu1 %v538_v29, %s18667_s20  ;;  %v223_v29 = vrot.slane %v50_v24, 1 }
  0x38   :  { %1086 = vrot.lane.b32.xlu0 %v212_v22, %s18669_s26 }
  0x39   :  { %1682 = vrot.lane.b32.xlu1 %v216_v36, %s18672_s10 }
  0x3c   :  { %1884 = vrot.lane.b32.xlu0 %v540_v37, %s18673_s17 }
  0x3d   :  { %311 = vrot.lane.b32.xlu1 %v212_v22, %s18666_s19 }
  0x40   :  { %890 = vrot.lane.b32.xlu0 %v18831_v30, %s18668_s21 }
  0x41   :  { %1290 = vrot.lane.b32.xlu1 %v540_v37, %s18670_s29 }
  0x44   :  { %1886 = vrot.lane.b32.xlu0 %v543_v45, %s18673_s17 }
  0x45   :  { %313 = vrot.lane.b32.xlu1 %v216_v36, %s18666_s19 }
  0x48   :  { %696 = vrot.lane.b32.xlu0 %v540_v37, %s18667_s20  ;;  %v554_v37 = vrot.slane %v49_v34, 2 }
  0x49   :  { %1088 = vrot.lane.b32.xlu1 %v216_v36, %s18669_s26  ;;  %v225_v36 = vsel %vm204_vm1, %v223_v29, %v18978_v32 }
  0x4a   :  { %v555_v43 = vsel %vm525_vm0, %v552_v12, %v554_v37 }
  0x4c   :  { %1486 = vrot.lane.b32.xlu0 %v18836_v31, %s18671_s30 }
  0x4d   :  { %698 = vrot.lane.b32.xlu1 %v543_v45, %s18667_s20 }
  0x50   :  { %892 = vrot.lane.b32.xlu0 %v18836_v31, %s18668_s21 }
  0x51   :  { %1292 = vrot.lane.b32.xlu1 %v543_v45, %s18670_s29 }
  0x54   :  { %1684 = vrot.lane.b32.xlu0 %v215_v33, %s18672_s10 }
  0x55   :  { %894 = vrot.lane.b32.xlu1 %v44_v47, %s18668_s21 }
  0x58   :  { %1090 = vrot.lane.b32.xlu0 %v215_v33, %s18669_s26 }
  0x59   :  { %1488 = vrot.lane.b32.xlu1 %v44_v47, %s18671_s30  ;;  %v2661_v47 = vunpack.c.0.s8 %v2660_v41 }
  0x5b   :  { %v19011_v56 = vsub.s32 %v2661_v47, %v2663_v48 }
  0x5c   :  { %1888 = vrot.lane.b32.xlu0 %v545_v51, %s18673_s17 }
  0x5d   :  { %315 = vrot.lane.b32.xlu1 %v215_v33, %s18666_s19 }
  0x60   :  { %1092 = vrot.lane.b32.xlu0 %v219_v54, %s18669_s26 }
  0x61   :  { %1294 = vrot.lane.b32.xlu1 %v545_v51, %s18670_s29 }
  0x64   :  { %1686 = vrot.lane.b32.xlu0 %v219_v54, %s18672_s10 }
  0x65   :  { %700 = vrot.lane.b32.xlu1 %v545_v51, %s18667_s20 }
  0x68   :  { %1296 = vrot.lane.b32.xlu0 %v548_v57, %s18670_s29 }
  0x69   :  { %1490 = vrot.lane.b32.xlu1 %v45_v50, %s18671_s30 }
  0x6c   :  { %1890 = vrot.lane.b32.xlu0 %v548_v57, %s18673_s17 }
  0x6d   :  { %317 = vrot.lane.b32.xlu1 %v219_v54, %s18666_s19 }
  0x70   :  { %896 = vrot.lane.b32.xlu0 %v45_v50, %s18668_s21  ;;  %v556_v50 = vrot.slane %v50_v24, 2 }
  0x71   :  { %1492 = vrot.lane.b32.xlu1 %v47_v58, %s18671_s30 }
  0x74   :  { %1688 = vrot.lane.b32.xlu0 %v218_v53, %s18672_s10 }
  0x75   :  { %702 = vrot.lane.b32.xlu1 %v548_v57, %s18667_s20 }
  0x76   :  { %v18925_v3 = vpop.permute.xlu0 %303 }
  0x77   :  { %v18928_v5 = vpop.permute.xlu1 %686 }
  0x78   :  { %1094 = vrot.lane.b32.xlu0 %v218_v53, %s18669_s26 }
  0x79   :  { %1690 = vrot.lane.b32.xlu1 %v222_v4, %s18672_s10 }
  0x7a   :  { %v302_v8 = vpop.permute.xlu0 %301 }
  0x7b   :  { %v18933_v9 = vpop.permute.xlu1 %305  ;;  %v2075_v44 = vsel %vm2074_vm5, %v18752_v1, %v302_v8  ;;  %v557_v1 = vrot.slane %v18973_v27, 2 }
  0x7c   :  { %1892 = vrot.lane.b32.xlu0 %v550_v6, %s18673_s17  ;;  %v2140_v49 = vsel %vm2139_vm6, %v2075_v44, %v18928_v5  ;;  %v2077_v37 = vsel %vm2074_vm5, %v18757_v2, %v18933_v9 }
  0x7d   :  { %319 = vrot.lane.b32.xlu1 %v218_v53, %s18666_s19 }
  0x7e   :  { %v18937_v10 = vpop.permute.xlu0 %688 }
  0x7f   :  { %v883_v13 = vpop.permute.xlu1 %882 }
  0x80   :  { %321 = vrot.lane.b32.xlu0 %v222_v4, %s18666_s19  ;;  %v2205_v51 = vsel %vm2204_vm7, %v2140_v49, %v883_v13 }
  0x81   :  { %898 = vrot.lane.b32.xlu1 %v47_v58, %s18668_s21  ;;  %v558_v58 = vsel %vm525_vm0, %v556_v50, %v557_v1 }
  0x82   :  { %v18942_v14 = vpop.permute.xlu0 %690 }
  0x83   :  { %v18945_v16 = vpop.permute.xlu1 %884  ;;  %v2142_v44 = vsel %vm2139_vm6, %v2077_v37, %v18942_v14  ;;  %v19077_v14 = vld [vmem:[%s28513_s0 + $0xb0] sm:$0xff] }
  0x84   :  { %1298 = vrot.lane.b32.xlu0 %v550_v6, %s18670_s29 }
  0x85   :  { %1894 = vrot.lane.b32.xlu1 %v553_v15, %s18673_s17 }
  0x86   :  { %v1081_v17 = vpop.permute.xlu0 %1080 }
  0x87   :  { %v18949_v18 = vpop.permute.xlu1 %886  ;;  %v2270_v53 = vsel %vm2269_vm8, %v2205_v51, %v1081_v17 }
  0x88   :  { %704 = vrot.lane.b32.xlu0 %v550_v6, %s18667_s20  ;;  %v2207_v47 = vsel %vm2204_vm7, %v2142_v44, %v18949_v18  ;;  %v562_v44 = vrot.slane %v19077_v14, 2 }
  0x89   :  { %706 = vrot.lane.b32.xlu1 %v553_v15, %s18667_s20 }
  0x8a   :  { %v18953_v21 = vpop.permute.xlu0 %1082 }
  0x8b   :  { %v1285_v22 = vpop.permute.xlu1 %1284 }
  0x8c   :  { %1096 = vrot.lane.b32.xlu0 %v222_v4, %s18669_s26  ;;  %v2335_v55 = vsel %vm2334_vm9, %v2270_v53, %v1285_v22 }
  0x8d   :  { %1494 = vrot.lane.b32.xlu1 %v18915_v59, %s18671_s30 }
  0x8e   :  { %v18958_v23 = vpop.permute.xlu0 %307 }
  0x8f   :  { %v18963_v25 = vpop.permute.xlu1 %1084 }
  0x90   :  { %900 = vrot.lane.b32.xlu0 %v18915_v59, %s18668_s21  ;;  %v2272_v53 = vsel %vm2269_vm8, %v2207_v47, %v18963_v25 }
  0x91   :  { %902 = vrot.lane.b32.xlu1 %v50_v24, %s18668_s21 }
  0x92   :  { %v18968_v26 = vpop.permute.xlu0 %1286 }
  0x93   :  { %v1481_v28 = vpop.permute.xlu1 %1480 }
  0x94   :  { %1300 = vrot.lane.b32.xlu0 %v553_v15, %s18670_s29  ;;  %v2400_v57 = vsel %vm2399_vm10, %v2335_v55, %v1481_v28 }
  0x95   :  { %1692 = vrot.lane.b32.xlu1 %v221_v61, %s18672_s10 }
  0x96   :  { %v18980_v33 = vpop.permute.xlu0 %692 }
  0x97   :  { %v18985_v35 = vpop.permute.xlu1 %1288 }
  0x98   :  { %323 = vrot.lane.b32.xlu0 %v221_v61, %s18666_s19 }
  0x99   :  { %1098 = vrot.lane.b32.xlu1 %v221_v61, %s18669_s26  ;;  %v2076_v61 = vsel %vm2074_vm5, %v18747_v0, %v18925_v3 }
  0x9a   :  { %v1483_v38 = vpop.permute.xlu0 %1482  ;;  %v2141_v4 = vsel %vm2139_vm6, %v2076_v61, %v18937_v10 }
  0x9b   :  { %v1679_v39 = vpop.permute.xlu1 %1678  ;;  %v2206_v8 = vsel %vm2204_vm7, %v2141_v4, %v18945_v16 }
  0x9c   :  { %1100 = vrot.lane.b32.xlu0 %v225_v36, %s18669_s26  ;;  %v2465_v59 = vsel %vm2464_vm11, %v2400_v57, %v1679_v39  ;;  %v2271_v0 = vsel %vm2269_vm8, %v2206_v8, %v18953_v21  ;;  %v2337_v57 = vsel %vm2334_vm9, %v2272_v53, %v18985_v35 }
  0x9d   :  { %1496 = vrot.lane.b32.xlu1 %v50_v24, %s18671_s30  ;;  %v2336_v10 = vsel %vm2334_vm9, %v2271_v0, %v18968_v26 }
  0x9e   :  { %v18996_v45 = vpop.permute.xlu0 %309  ;;  %v2401_v15 = vsel %vm2399_vm10, %v2336_v10, %v1483_v38 }
  0x9f   :  { %v18998_v46 = vpop.permute.xlu1 %888 }
  0xa0   :  { %1896 = vrot.lane.b32.xlu0 %v555_v43, %s18673_s17 }
  0xa1   :  { %325 = vrot.lane.b32.xlu1 %v225_v36, %s18666_s19 }
  0xa2   :  { %v19006_v52 = vpop.permute.xlu0 %1484 }
  0xa3   :  { %v1681_v54 = vpop.permute.xlu1 %1680 }
  0xa4   :  { %708 = vrot.lane.b32.xlu0 %v555_v43, %s18667_s20  ;;  %v2466_v21 = vsel %vm2464_vm11, %v2401_v15, %v1681_v54 }
  0xa5   :  { %1302 = vrot.lane.b32.xlu1 %v555_v43, %s18670_s29 }
  0xa6   :  { %v1883_v60 = vpop.permute.xlu0 %1882 }
  0xa7   :  { %v2530_v62 = vsel %vm2529_vm12, %v2465_v59, %v1883_v60  ;;  %v19023_v63 = vpop.permute.xlu1 %694 }
  0xa8   :  { %v2658_v5 = vcombine.high %v2530_v62, %v2530_v62  ;;  %v2665_v6 = vrot.slane %v2530_v62, %v19011_v56  ;;  %1304 = vrot.lane.b32.xlu0 %v558_v58, %s18670_s29  ;;  %v2402_v62 = vsel %vm2399_vm10, %v2337_v57, %v19006_v52 }
  0xa9   :  { %1694 = vrot.lane.b32.xlu1 %v225_v36, %s18672_s10  ;;  %v19051_v36 = vld [vmem:[%s28513_s0 + $0xa8] sm:$0xff] }
  0xaa   :  { %v2672_v3 = vrot.slane %v2658_v5, %v19011_v56  ;;  %v2673_v11 = vcombine.high %v2665_v6, %v2665_v6  ;;  %v19035_v12 = vpop.permute.xlu0 %1086  ;;  %v2681_v22 = vrot.slane %v2665_v6, %v19011_v56  ;;  %v226_v61 = vrot.slane %v19051_v36, 1 }
  0xab   :  { %v1683_v13 = vpop.permute.xlu1 %1682  ;;  %v19095_v5 = vrot.slane %v19077_v14, 1 }
  0xac   :  { %v2674_v17 = vcombine.high %v2672_v3, %v2672_v3  ;;  %v2695_v16 = vrot.slane %v2673_v11, %v19011_v56  ;;  %710 = vrot.lane.b32.xlu0 %v558_v58, %s18667_s20  ;;  %v2688_v24 = vrot.slane %v2672_v3, %v19011_v56  ;;  %v2467_v35 = vsel %vm2464_vm11, %v2402_v62, %v1683_v13 }
  0xad   :  { %904 = vrot.lane.b32.xlu1 %v18973_v27, %s18668_s21  ;;  %v2078_v62 = vsel %vm2074_vm5, %v18766_v7, %v18958_v23 }
  0xae   :  { %v2702_v28 = vrot.slane %v2674_v17, %v19011_v56  ;;  %v5773_v26 = vcombine.low %v2681_v22, %v2695_v16  ;;  %v18097_v29 = vcombine.high %v2681_v22, %v2695_v16  ;;  %v1885_v34 = vpop.permute.xlu0 %1884  ;;  %v52_v17 = vld [vmem:[%s28513_s0 + $0xa0] sm:$0x1]  ;;  %v228_v16 = vsel %vm204_vm1, %v226_v61, %v19095_v5 }
  0xaf   :  { %v2531_v38 = vsel %vm2529_vm12, %v2466_v21, %v1885_v34  ;;  %v19057_v39 = vpop.permute.xlu1 %311 }
  0xb0   :  { %v5775_v40 = vcombine.low %v2688_v24, %v2702_v28  ;;  %v18098_v41 = vcombine.high %v2688_v24, %v2702_v28  ;;  %v2707_v42 = vcombine.high %v2531_v38, %v2531_v38  ;;  %v2714_v43 = vrot.slane %v2531_v38, %v19011_v56  ;;  %1498 = vrot.lane.b32.xlu0 %v18973_v27, %s18671_s30 }
  0xb1   :  { %1500 = vrot.lane.b32.xlu1 %v19051_v36, %s18671_s30  ;;  %v5783_v2 = vrot.slane %v5773_v26, %v19011_v56  ;;  %v5790_v9 = vrot.slane %v18097_v29, %v19011_v56  ;;  %v559_v28 = vrot.slane %v52_v17, 2 }
  0xb2   :  { %v2721_v48 = vrot.slane %v2707_v42, %v19011_v56  ;;  %v2722_v49 = vcombine.high %v2714_v43, %v2714_v43  ;;  %v19071_v50 = vpop.permute.xlu0 %890  ;;  %v5797_v51 = vrot.slane %v5775_v40, %v19011_v56  ;;  %v5804_v55 = vrot.slane %v18098_v41, %v19011_v56 }
  0xb3   :  { %v19081_v54 = vpop.permute.xlu1 %1290  ;;  %v5805_v18 = vcombine.low %v5783_v2, %v5790_v9  ;;  %v2730_v25 = vrot.slane %v2714_v43, %v19011_v56  ;;  %v560_v42 = vsel %vm525_vm0, %v557_v1, %v559_v28  ;;  %v561_v43 = vrot.slane %v19051_v36, 2 }
  0xb4   :  { %v2723_v59 = vcombine.high %v2721_v48, %v2721_v48  ;;  %v2744_v60 = vrot.slane %v2722_v49, %v19011_v56  ;;  %1898 = vrot.lane.b32.xlu0 %v558_v58, %s18673_s17  ;;  %v5806_v4 = vcombine.low %v5797_v51, %v5804_v55  ;;  %v2737_v6 = vrot.slane %v2721_v48, %v19011_v56 }
  0xb5   :  { %906 = vrot.lane.b32.xlu1 %v19051_v36, %s18668_s21  ;;  %v5813_v0 = vrot.slane %v5805_v18, %v19011_v56  ;;  %v563_v27 = vsel %vm525_vm0, %v561_v43, %v562_v44 }
  0xb6   :  { %v2751_v58 = vrot.slane %v2723_v59, %v19011_v56  ;;  %v1887_v8 = vpop.permute.xlu0 %1886  ;;  %v5822_v3 = vcombine.low %v2730_v25, %v2744_v60  ;;  %v18099_v52 = vcombine.high %v2730_v25, %v2744_v60  ;;  %v5820_v15 = vrot.slane %v5806_v4, %v19011_v56 }
  0xb7   :  { %v2532_v11 = vsel %vm2529_vm12, %v2467_v35, %v1887_v8  ;;  %v19102_v10 = vpop.permute.xlu1 %313  ;;  %v2753_v21 = vcombine.high %v2737_v6, %v2737_v6  ;;  %v2143_v25 = vsel %vm2139_vm6, %v2078_v62, %v18980_v33 }
  0xb8   :  { %1102 = vrot.lane.b32.xlu0 %v18978_v32, %s18669_s26  ;;  %v2762_v13 = vrot.slane %v2532_v11, %v19011_v56  ;;  %v5821_v22 = vcombine.low %v5813_v0, %v5820_v15  ;;  %v5824_v26 = vcombine.low %v2737_v6, %v2751_v58  ;;  %v5832_v29 = vrot.slane %v5822_v3, %v19011_v56 }
  0xb9   :  { %1696 = vrot.lane.b32.xlu1 %v18978_v32, %s18672_s10  ;;  %v5839_v34 = vrot.slane %v18099_v52, %v19011_v56  ;;  %v2755_v1 = vcombine.high %v2532_v11, %v2532_v11  ;;  %v2208_v4 = vsel %vm2204_vm7, %v2143_v25, %v18998_v46 }
  0xba   :  { %v19115_v24 = vpop.permute.xlu0 %696  ;;  %v2778_v37 = vrot.slane %v2762_v13, %v19011_v56  ;;  %18341 = vmatprep.mubr.msk.f32.mxu0 %vm8713_vm13, %v5821_v22  ;;  %v5846_v2 = vrot.slane %v5824_v26, %v19011_v56  ;;  %v2770_v36 = vcombine.high %v2762_v13, %v2762_v13  ;;  %v2273_v6 = vsel %vm2269_vm8, %v2208_v4, %v19035_v12  ;;  %v19193_v26 = vld [vmem:[%s28513_s0 + $0xc8] sm:$0xff] }
  0xbb   :  { %v19121_v38 = vpop.permute.xlu1 %1088  ;;  %v5854_v9 = vcombine.low %v5832_v29, %v5839_v34  ;;  %v2769_v59 = vrot.slane %v2755_v1, %v19011_v56  ;;  %v2338_v23 = vsel %vm2334_vm9, %v2273_v6, %v19081_v54 }
  0xbc   :  { %1698 = vrot.lane.b32.xlu0 %v228_v16, %s18672_s10  ;;  %v5825_v40 = vcombine.low %v2753_v21, %v2778_v37  ;;  %v2792_v60 = vrot.slane %v2770_v36, %v19011_v56  ;;  %v2800_v33 = vcombine.high %v2778_v37, %v2778_v37 }
  0xbd   :  { %327 = vrot.lane.b32.xlu1 %v18978_v32, %s18666_s19  ;;  %v5862_v53 = vrot.slane %v5854_v9, %v19011_v56  ;;  %v2771_v58 = vcombine.high %v2769_v59, %v2769_v59  ;;  %v2785_v8 = vrot.slane %v2769_v59, %v19011_v56 }
  0xbe   :  { %v1487_v41 = vpop.permute.xlu0 %1486  ;;  %v5853_v47 = vrot.slane %v5825_v40, %v19011_v56  ;;  %v2802_v0 = vcombine.high %v2792_v60, %v2792_v60  ;;  %v5871_v22 = vcombine.low %v2792_v60, %v2800_v33 }
  0xbf   :  { %v19133_v48 = vpop.permute.xlu1 %698  ;;  %v2403_v3 = vsel %vm2399_vm10, %v2338_v23, %v1487_v41  ;;  %v2799_v12 = vrot.slane %v2771_v58, %v19011_v56  ;;  %v2801_v11 = vcombine.high %v2785_v8, %v2785_v8 }
  0xc0   :  { %1104 = vrot.lane.b32.xlu0 %v228_v16, %s18669_s26  ;;  %v5855_v49 = vcombine.low %v5846_v2, %v5853_v47  ;;  %v5872_v15 = vcombine.low %v2802_v0, %v2785_v8  ;;  %v5881_v2 = vrot.slane %v5871_v22, %v19011_v56 }
  0xc1   :  { %1306 = vrot.lane.b32.xlu1 %v560_v42, %s18670_s29  ;;  %v5873_v29 = vcombine.low %v2799_v12, %v2801_v11  ;;  %v2803_v37 = vcombine.high %v2799_v12, %v2799_v12  ;;  %v567_v11 = vrot.slane %v19193_v26, 2 }
  0xc2   :  { %v19137_v32 = vpop.permute.xlu0 %892  ;;  %v5869_v55 = vrot.slane %v5855_v49, %v19011_v56  ;;  %v5888_v34 = vrot.slane %v5872_v15, %v19011_v56  ;;  %v19208_v49 = vrot.slane %v19193_v26, 1 }
  0xc3   :  { %v19142_v51 = vpop.permute.xlu1 %1292 }
  0xc4   :  { %1900 = vrot.lane.b32.xlu0 %v560_v42, %s18673_s17  ;;  %v5870_v18 = vcombine.low %v5862_v53, %v5869_v55  ;;  %v5895_v53 = vrot.slane %v5873_v29, %v19011_v56  ;;  %v5903_v59 = vcombine.low %v5881_v2, %v5888_v34 }
  0xc5   :  { %1902 = vrot.lane.b32.xlu1 %v563_v27, %s18673_s17 }
  0xc6   :  { %v1685_v57 = vpop.permute.xlu0 %1684  ;;  %18342 = vmatmul.mubr.msk.f32.vlgmr.msra.gmra.mrb[0].mxu0 %vm8713_vm13, %v5870_v18  ;;  %v5911_v0 = vrot.slane %v5903_v59, %v19011_v56 }
  0xc7   :  { %v19151_v61 = vpop.permute.xlu1 %894  ;;  %v2468_v46 = vsel %vm2464_vm11, %v2403_v3, %v1685_v57 }
  0xc8   :  { %329 = vrot.lane.b32.xlu0 %v228_v16, %s18666_s19  ;;  %v19185_v16 = vld [vmem:[%s28513_s0 + $0xc0] sm:$0xff] }
  0xc9   :  { %712 = vrot.lane.b32.xlu1 %v560_v42, %s18667_s20  ;;  %v55_v42 = vld [vmem:[%s28513_s0 + $0xb8] sm:$0x1]  ;;  %v229_v47 = vrot.slane %v19185_v16, 1  ;;  %v566_v12 = vrot.slane %v19185_v16, 2 }
  0xca   :  { %v19162_v35 = vpop.permute.xlu0 %1090  ;;  %v564_v36 = vrot.slane %v55_v42, 2 }
  0xcb   :  { %v1489_v7 = vpop.permute.xlu1 %1488  ;;  %v231_v25 = vsel %vm204_vm1, %v229_v47, %v19208_v49 }
  0xcc   :  { %1308 = vrot.lane.b32.xlu0 %v563_v27, %s18670_s29 }
  0xcd   :  { %1502 = vrot.lane.b32.xlu1 %v19077_v14, %s18671_s30 }
  0xce   :  { %v1889_v52 = vpop.permute.xlu0 %1888 }
  0xcf   :  { %v2533_v17 = vsel %vm2529_vm12, %v2468_v46, %v1889_v52  ;;  %v19176_v13 = vpop.permute.xlu1 %315 }
  0xd0   :  { %v2811_v54 = vrot.slane %v2533_v17, %v19011_v56  ;;  %714 = vrot.lane.b32.xlu0 %v563_v27, %s18667_s20  ;;  %v2804_v40 = vcombine.high %v2533_v17, %v2533_v17  ;;  %v2079_v27 = vsel %vm2074_vm5, %v18793_v19, %v18996_v45 }
  0xd1   :  { %908 = vrot.lane.b32.xlu1 %v19077_v14, %s18668_s21  ;;  %v2144_v60 = vsel %vm2139_vm6, %v2079_v27, %v19023_v63  ;;  %v565_v63 = vsel %vm525_vm0, %v562_v44, %v564_v36  ;;  %v2080_v36 = vsel %vm2074_vm5, %v18798_v20, %v19057_v39 }
  0xd2   :  { %v2827_v21 = vrot.slane %v2811_v54, %v19011_v56  ;;  %v19188_v28 = vpop.permute.xlu0 %1092  ;;  %v2819_v43 = vcombine.high %v2811_v54, %v2811_v54  ;;  %v2818_v55 = vrot.slane %v2804_v40, %v19011_v56  ;;  %v2209_v19 = vsel %vm2204_vm7, %v2144_v60, %v19071_v50 }
  0xd3   :  { %v19196_v41 = vpop.permute.xlu1 %1294  ;;  %v2274_v4 = vsel %vm2269_vm8, %v2209_v19, %v19121_v38 }
  0xd4   :  { %1504 = vrot.lane.b32.xlu0 %v19185_v16, %s18671_s30  ;;  %v5874_v9 = vcombine.low %v2803_v37, %v2827_v21  ;;  %v2841_v62 = vrot.slane %v2819_v43, %v19011_v56  ;;  %v2820_v58 = vcombine.high %v2818_v55, %v2818_v55  ;;  %v2834_v8 = vrot.slane %v2818_v55, %v19011_v56 }
  0xd5   :  { %1700 = vrot.lane.b32.xlu1 %v19095_v5, %s18672_s10  ;;  %v2339_v33 = vsel %vm2334_vm9, %v2274_v4, %v19142_v51  ;;  %v2849_v44 = vcombine.high %v2827_v21, %v2827_v21  ;;  %v568_v37 = vsel %vm525_vm0, %v566_v12, %v567_v11 }
  0xd6   :  { %v1687_v1 = vpop.permute.xlu0 %1686  ;;  %v5902_v18 = vrot.slane %v5874_v9, %v19011_v56  ;;  %v2851_v3 = vcombine.high %v2841_v62, %v2841_v62  ;;  %v2404_v38 = vsel %vm2399_vm10, %v2339_v33, %v1489_v7  ;;  %v2848_v15 = vrot.slane %v2820_v58, %v19011_v56  ;;  %v19312_v33 = vld [vmem:[%s28513_s0 + $0xe0] sm:$0xff] }
  0xd7   :  { %v19216_v57 = vpop.permute.xlu1 %700  ;;  %v2469_v46 = vsel %vm2464_vm11, %v2404_v38, %v1687_v1  ;;  %v2850_v17 = vcombine.high %v2834_v8, %v2834_v8 }
  0xd8   :  { %910 = vrot.lane.b32.xlu0 %v19185_v16, %s18668_s21  ;;  %v5904_v45 = vcombine.low %v5895_v53, %v5902_v18  ;;  %v5921_v7 = vcombine.low %v2851_v3, %v2834_v8  ;;  %v5920_v16 = vcombine.low %v2841_v62, %v2849_v44  ;;  %v2145_v62 = vsel %vm2139_vm6, %v2080_v36, %v19115_v24 }
  0xd9   :  { %1106 = vrot.lane.b32.xlu1 %v19095_v5, %s18669_s26  ;;  %v5922_v40 = vcombine.low %v2848_v15, %v2850_v17  ;;  %v2210_v19 = vsel %vm2204_vm7, %v2145_v62, %v19137_v32 }
  0xda   :  { %v19231_v6 = vpop.permute.xlu0 %1296  ;;  %v5918_v23 = vrot.slane %v5904_v45, %v19011_v56  ;;  %v5937_v43 = vrot.slane %v5921_v7, %v19011_v56  ;;  %v5930_v47 = vrot.slane %v5920_v16, %v19011_v56  ;;  %v2275_v39 = vsel %vm2269_vm8, %v2210_v19, %v19162_v35 }
  0xdb   :  { %v1491_v50 = vpop.permute.xlu1 %1490  ;;  %v5944_v55 = vrot.slane %v5922_v40, %v19011_v56  ;;  %v2340_v58 = vsel %vm2334_vm9, %v2275_v39, %v19196_v41  ;;  %v19307_v41 = vld [vmem:[%s28513_s0 + $0xd8] sm:$0xff]  ;;  %v58_v40 = vld [vmem:[%s28513_s0 + $0xd0] sm:$0x1] }
  0xdc   :  { %1702 = vrot.lane.b32.xlu0 %v231_v25, %s18672_s10  ;;  %v5919_v14 = vcombine.low %v5911_v0, %v5918_v23  ;;  %v5952_v60 = vcombine.low %v5930_v47, %v5937_v43  ;;  %v2405_v32 = vsel %vm2399_vm10, %v2340_v58, %v1491_v50  ;;  %v2081_v50 = vsel %vm2074_vm5, %v18831_v30, %v19102_v10 }
  0xdd   :  { %1904 = vrot.lane.b32.xlu1 %v565_v63, %s18673_s17  ;;  %v232_v30 = vrot.slane %v19307_v41, 1  ;;  %v19329_v10 = vrot.slane %v19312_v33, 1 }
  0xde   :  { %v1891_v52 = vpop.permute.xlu0 %1890  ;;  %18344 = vmatprep.mubr.msk.f32.mxu0 %vm8713_vm13, %v5919_v14  ;;  %v5960_v24 = vrot.slane %v5952_v60, %v19011_v56 }
  0xdf   :  { %v2534_v51 = vsel %vm2529_vm12, %v2469_v46, %v1891_v52  ;;  %v19250_v54 = vpop.permute.xlu1 %317  ;;  %v2146_v52 = vsel %vm2139_vm6, %v2081_v50, %v19133_v48  ;;  %v234_v43 = vsel %vm204_vm1, %v232_v30, %v19329_v10 }
  0xe0   :  { %v2852_v22 = vcombine.high %v2534_v51, %v2534_v51  ;;  %v2859_v21 = vrot.slane %v2534_v51, %v19011_v56  ;;  %331 = vrot.lane.b32.xlu0 %v19095_v5, %s18666_s19  ;;  %v2211_v12 = vsel %vm2204_vm7, %v2146_v52, %v19151_v61 }
  0xe1   :  { %1108 = vrot.lane.b32.xlu1 %v231_v25, %s18669_s26  ;;  %v2276_v48 = vsel %vm2269_vm8, %v2211_v12, %v19188_v28 }
  0xe2   :  { %v2867_v29 = vcombine.high %v2859_v21, %v2859_v21  ;;  %v19256_v34 = vpop.permute.xlu0 %896  ;;  %v2866_v2 = vrot.slane %v2852_v22, %v19011_v56  ;;  %v19266_v9 = vrot.slane %v2859_v21, %v19011_v56  ;;  %v2341_v28 = vsel %vm2334_vm9, %v2276_v48, %v19231_v6 }
  0xe3   :  { %v19261_v42 = vpop.permute.xlu1 %1492 }
  0xe4   :  { %v19269_v5 = vrot.slane %v2867_v29, %v19011_v56  ;;  %1310 = vrot.lane.b32.xlu0 %v565_v63, %s18670_s29  ;;  %v2868_v18 = vcombine.high %v2866_v2, %v2866_v2  ;;  %v2882_v8 = vrot.slane %v2866_v2, %v19011_v56 }
  0xe5   :  { %1906 = vrot.lane.b32.xlu1 %v568_v37, %s18673_s17 }
  0xe6   :  { %v5923_v27 = vcombine.low %v19266_v9, %v19269_v5  ;;  %v1689_v1 = vpop.permute.xlu0 %1688  ;;  %v18100_v15 = vcombine.high %v19266_v9, %v19269_v5  ;;  %v2406_v9 = vsel %vm2399_vm10, %v2341_v28, %v19261_v42 }
  0xe7   :  { %v19279_v53 = vpop.permute.xlu1 %702  ;;  %v2470_v35 = vsel %vm2464_vm11, %v2405_v32, %v1689_v1 }
  0xe8   :  { %v5951_v59 = vrot.slane %v5923_v27, %v19011_v56  ;;  %333 = vrot.lane.b32.xlu0 %v231_v25, %s18666_s19  ;;  %v2896_v25 = vrot.slane %v2868_v18, %v19011_v56  ;;  %v5979_v2 = vrot.slane %v18100_v15, %v19011_v56 }
  0xe9   :  { %716 = vrot.lane.b32.xlu1 %v565_v63, %s18667_s20 }
  0xea   :  { %v5953_v45 = vcombine.low %v5944_v55, %v5951_v59  ;;  %v19289_v20 = vpop.permute.xlu0 %1094  ;;  %v5970_v14 = vcombine.low %v2882_v8, %v2896_v25  ;;  %v18101_v22 = vcombine.high %v2882_v8, %v2896_v25  ;;  %v569_v55 = vrot.slane %v58_v40, 2 }
  0xeb   :  { %v1691_v4 = vpop.permute.xlu1 %1690 }
  0xec   :  { %1312 = vrot.lane.b32.xlu0 %v568_v37, %s18670_s29  ;;  %v5967_v63 = vrot.slane %v5953_v45, %v19011_v56  ;;  %v5986_v16 = vrot.slane %v5970_v14, %v19011_v56  ;;  %v2471_v1 = vsel %vm2464_vm11, %v2406_v9, %v1691_v4  ;;  %v5993_v18 = vrot.slane %v18101_v22, %v19011_v56 }
  0xed   :  { %1506 = vrot.lane.b32.xlu1 %v19193_v26, %s18671_s30 }
  0xee   :  { %v1893_v0 = vpop.permute.xlu0 %1892  ;;  %v5968_v23 = vcombine.low %v5960_v24, %v5967_v63  ;;  %v6001_v59 = vcombine.low %v5979_v2, %v5986_v16  ;;  %v570_v63 = vsel %vm525_vm0, %v567_v11, %v569_v55 }
  0xef   :  { %v2535_v3 = vsel %vm2529_vm12, %v2470_v35, %v1893_v0  ;;  %v19318_v38 = vpop.permute.xlu1 %319  ;;  %v571_v0 = vrot.slane %v19307_v41, 2 }
  0xf0   :  { %v2901_v44 = vcombine.high %v2535_v3, %v2535_v3  ;;  %v2908_v46 = vrot.slane %v2535_v3, %v19011_v56  ;;  %718 = vrot.lane.b32.xlu0 %v568_v37, %s18667_s20  ;;  %18345 = vmatmul.mubr.msk.f32.gmra.mrb[2].mxu0 %vm8713_vm13, %v5968_v23  ;;  %v6009_v8 = vrot.slane %v6001_v59, %v19011_v56 }
  0xf1   :  { %912 = vrot.lane.b32.xlu1 %v19193_v26, %s18668_s21  ;;  %v572_v26 = vrot.slane %v19312_v33, 2 }
  0xf2   :  { %v2915_v17 = vrot.slane %v2901_v44, %v19011_v56  ;;  %v2916_v51 = vcombine.high %v2908_v46, %v2908_v46  ;;  %v19336_v7 = vpop.permute.xlu0 %321  ;;  %v2924_v37 = vrot.slane %v2908_v46, %v19011_v56 }
  0xf3   :  { %v19340_v21 = vpop.permute.xlu1 %898 }
  0xf4   :  { %v2917_v29 = vcombine.high %v2915_v17, %v2915_v17  ;;  %v2938_v61 = vrot.slane %v2916_v51, %v19011_v56  ;;  %1508 = vrot.lane.b32.xlu0 %v19307_v41, %s18671_s30  ;;  %v2931_v6 = vrot.slane %v2915_v17, %v19011_v56  ;;  %v573_v17 = vsel %vm525_vm0, %v571_v0, %v572_v26 }
  0xf5   :  { %1704 = vrot.lane.b32.xlu1 %v19208_v49, %s18672_s10 }
  0xf6   :  { %v2945_v5 = vrot.slane %v2917_v29, %v19011_v56  ;;  %v5972_v47 = vcombine.low %v2924_v37, %v2938_v61  ;;  %v19360_v27 = vpop.permute.xlu0 %1298  ;;  %v18102_v4 = vcombine.high %v2924_v37, %v2938_v61  ;;  %v2947_v32 = vcombine.high %v2931_v6, %v2931_v6 }
  0xf7   :  { %v1895_v36 = vpop.permute.xlu1 %1894 }
  0xf8   :  { %v6000_v60 = vrot.slane %v5972_v47, %v19011_v56  ;;  %v2536_v62 = vsel %vm2529_vm12, %v2471_v1, %v1895_v36  ;;  %337 = vrot.lane.b32.xlu0 %v234_v43, %s18666_s19  ;;  %v6019_v42 = vcombine.low %v2931_v6, %v2945_v5  ;;  %v6028_v46 = vrot.slane %v18102_v4, %v19011_v56  ;;  %v19424_v5 = vld [vmem:[%s28513_s0 + $0xf8] sm:$0xff] }
  0xf9   :  { %v2956_v19 = vrot.slane %v2536_v62, %v19011_v56  ;;  %914 = vrot.lane.b32.xlu1 %v19307_v41, %s18668_s21  ;;  %v2949_v16 = vcombine.high %v2536_v62, %v2536_v62  ;;  %v2082_v47 = vsel %vm2074_vm5, %v18836_v31, %v19176_v13 }
  0xfa   :  { %v6002_v45 = vcombine.low %v5993_v18, %v6000_v60  ;;  %v19371_v39 = vpop.permute.xlu0 %704  ;;  %v6035_v23 = vrot.slane %v6019_v42, %v19011_v56  ;;  %v2147_v36 = vsel %vm2139_vm6, %v2082_v47, %v19216_v57  ;;  %v19439_v60 = vrot.slane %v19424_v5, 1  ;;  %v18592_v47 = vld [vmem:[%s28513_s0 + $0x60] sm:$0xff] }
  0xfb   :  { %v2964_v58 = vcombine.high %v2956_v19, %v2956_v19  ;;  %v2972_v25 = vrot.slane %v2956_v19, %v19011_v56  ;;  %v19374_v24 = vpop.permute.xlu1 %706  ;;  %v2963_v28 = vrot.slane %v2949_v16, %v19011_v56  ;;  %v2212_v55 = vsel %vm2204_vm7, %v2147_v36, %v19256_v34 }
  0xfc   :  { %1110 = vrot.lane.b32.xlu0 %v19208_v49, %s18669_s26  ;;  %v6016_v35 = vrot.slane %v6002_v45, %v19011_v56  ;;  %v6050_v41 = vcombine.low %v6028_v46, %v6035_v23  ;;  %v2277_v31 = vsel %vm2269_vm8, %v2212_v55, %v19289_v20  ;;  %v61_v46 = vld [vmem:[%s28513_s0 + $0xe8] sm:$0x1] }
  0xfd   :  { %v2986_v50 = vrot.slane %v2964_v58, %v19011_v56  ;;  %v2994_v3 = vcombine.high %v2972_v25, %v2972_v25  ;;  %1706 = vrot.lane.b32.xlu1 %v234_v43, %s18672_s10  ;;  %v6020_v11 = vcombine.low %v2947_v32, %v2972_v25  ;;  %v2965_v1 = vcombine.high %v2963_v28, %v2963_v28 }
  0xfe   :  { %v19388_v14 = vpop.permute.xlu0 %1096  ;;  %v6017_v44 = vcombine.low %v6009_v8, %v6016_v35  ;;  %v6058_v29 = vrot.slane %v6050_v41, %v19011_v56  ;;  %v2979_v6 = vrot.slane %v2963_v28, %v19011_v56  ;;  %v2342_v57 = vsel %vm2334_vm9, %v2277_v31, %v19360_v27 }
  0xff   :  { %v6021_v52 = vcombine.low %v2986_v50, %v2994_v3  ;;  %v1495_v30 = vpop.permute.xlu1 %1494  ;;  %v6042_v12 = vrot.slane %v6020_v11, %v19011_v56  ;;  %v2996_v13 = vcombine.high %v2986_v50, %v2986_v50  ;;  %v2993_v42 = vrot.slane %v2965_v1, %v19011_v56 }
 0x100   :  { %1908 = vrot.lane.b32.xlu0 %v570_v63, %s18673_s17  ;;  %18347 = vmatprep.mubr.msk.f32.mxu0 %vm8713_vm13, %v6017_v44  ;;  %v2995_v19 = vcombine.high %v2979_v6, %v2979_v6  ;;  %v2407_v34 = vsel %vm2399_vm10, %v2342_v57, %v1495_v30  ;;  %v577_v50 = vrot.slane %v19424_v5, 2  ;;  %v2083_v1 = vsel %vm2074_vm5, %v18592_v47, %v19250_v54 }
 0x101   :  { %v6049_v15 = vrot.slane %v6021_v52, %v19011_v56  ;;  %335 = vrot.lane.b32.xlu1 %v19208_v49, %s18666_s19  ;;  %v6067_v58 = vcombine.low %v2996_v13, %v2979_v6  ;;  %v2997_v11 = vcombine.high %v2993_v42, %v2993_v42 }
 0x102   :  { %v19400_v51 = vpop.permute.xlu0 %900 }
 0x103   :  { %v6051_v48 = vcombine.low %v6042_v12, %v6049_v15  ;;  %v19402_v22 = vpop.permute.xlu1 %902  ;;  %v6077_v3 = vrot.slane %v6067_v58, %v19011_v56 }
 0x104   :  { %722 = vrot.lane.b32.xlu0 %v573_v17, %s18667_s20 }
 0x105   :  { %1112 = vrot.lane.b32.xlu1 %v234_v43, %s18669_s26  ;;  %v6065_v37 = vrot.slane %v6051_v48, %v19011_v56  ;;  %v62_v43 = vld [vmem:[%s28513_s0 + $0xf0] sm:$0xff] }
 0x106   :  { %v19408_v61 = vpop.permute.xlu0 %1300  ;;  %v235_v59 = vrot.slane %v62_v43, 1  ;;  %v576_v23 = vrot.slane %v62_v43, 2 }
 0x107   :  { %v1693_v49 = vpop.permute.xlu1 %1692  ;;  %v6066_v40 = vcombine.low %v6058_v29, %v6065_v37  ;;  %v574_v29 = vrot.slane %v61_v46, 2 }
 0x108   :  { %1314 = vrot.lane.b32.xlu0 %v570_v63, %s18670_s29  ;;  %v2472_v45 = vsel %vm2464_vm11, %v2407_v34, %v1693_v49  ;;  %v19455_v20 = vsel %vm204_vm1, %v235_v59, %v19439_v60  ;;  %v19485_v16 = vsel %vm525_vm0, %v576_v23, %v577_v50  ;;  %v2148_v59 = vsel %vm2139_vm6, %v2083_v1, %v19279_v53  ;;  %v18593_v1 = vld [vmem:[%s28513_s0 + $0x68] sm:$0xff] }
 0x109   :  { %1910 = vrot.lane.b32.xlu1 %v573_v17, %s18673_s17  ;;  %18348 = vmatmul.mubr.msk.f32.gmra.mrb[4].mxu0 %vm8713_vm13, %v6066_v40  ;;  %v575_v55 = vsel %vm525_vm0, %v572_v26, %v574_v29 }
 0x10a   :  { %v19414_v2 = vpop.permute.xlu0 %323 }
 0x10b   :  { %v19419_v9 = vpop.permute.xlu1 %1098 }
 0x10c   :  { %720 = vrot.lane.b32.xlu0 %v570_v63, %s18667_s20  ;;  %v6068_v63 = vcombine.low %v2993_v42, %v2995_v19 }
 0x10d   :  { %918 = vrot.lane.b32.xlu1 %v62_v43, %s18668_s21 }
 0x10e   :  { %v19436_v18 = vpop.permute.xlu0 %1100  ;;  %v6084_v52 = vrot.slane %v6068_v63, %v19011_v56 }
 0x10f   :  { %v19443_v62 = vpop.permute.xlu1 %1496 }
 0x110   :  { %1316 = vrot.lane.b32.xlu0 %v573_v17, %s18670_s29 }
 0x111   :  { %1510 = vrot.lane.b32.xlu1 %v19312_v33, %s18671_s30 }
 0x112   :  { %v1897_v4 = vpop.permute.xlu0 %1896 }
 0x113   :  { %v2537_v27 = vsel %vm2529_vm12, %v2472_v45, %v1897_v4  ;;  %v19458_v25 = vpop.permute.xlu1 %325 }
 0x114   :  { %v3005_v32 = vrot.slane %v2537_v27, %v19011_v56  ;;  %916 = vrot.lane.b32.xlu0 %v19312_v33, %s18668_s21  ;;  %v2998_v30 = vcombine.high %v2537_v27, %v2537_v27  ;;  %v2213_v33 = vsel %vm2204_vm7, %v2148_v59, %v19340_v21 }
 0x115   :  { %1116 = vrot.lane.b32.xlu1 %v19455_v20, %s18669_s26  ;;  %v2278_v53 = vsel %vm2269_vm8, %v2213_v33, %v19388_v14  ;;  %v19534_v14 = vld [vmem:[%s28513_s0 + $0x108] sm:$0xff] }
 0x116   :  { %v3013_v8 = vcombine.high %v3005_v32, %v3005_v32  ;;  %v3021_v35 = vrot.slane %v3005_v32, %v19011_v56  ;;  %v19466_v0 = vpop.permute.xlu0 %708  ;;  %v3012_v49 = vrot.slane %v2998_v30, %v19011_v56  ;;  %v2343_v34 = vsel %vm2334_vm9, %v2278_v53, %v19408_v61 }
 0x117   :  { %v19470_v44 = vpop.permute.xlu1 %1302  ;;  %v2408_v21 = vsel %vm2399_vm10, %v2343_v34, %v19443_v62  ;;  %v238_v30 = vrot.slane %v19534_v14, 1  ;;  %v581_v33 = vrot.slane %v19534_v14, 2 }
 0x118   :  { %v3035_v41 = vrot.slane %v3013_v8, %v19011_v56  ;;  %v3043_v12 = vcombine.high %v3021_v35, %v3021_v35  ;;  %1512 = vrot.lane.b32.xlu0 %v62_v43, %s18671_s30  ;;  %v6069_v15 = vcombine.low %v2997_v11, %v3021_v35  ;;  %v6099_v43 = vcombine.low %v6077_v3, %v6084_v52 }
 0x119   :  { %1708 = vrot.lane.b32.xlu1 %v19329_v10, %s18672_s10  ;;  %v3014_v13 = vcombine.high %v3012_v49, %v3012_v49  ;;  %v3028_v57 = vrot.slane %v3012_v49, %v19011_v56 }
 0x11a   :  { %v6070_v17 = vcombine.low %v3035_v41, %v3043_v12  ;;  %v19480_v48 = vpop.permute.xlu0 %1304  ;;  %v6091_v40 = vrot.slane %v6069_v15, %v19011_v56  ;;  %v6107_v54 = vrot.slane %v6099_v43, %v19011_v56  ;;  %v3045_v27 = vcombine.high %v3035_v41, %v3035_v41 }
 0x11b   :  { %v1695_v37 = vpop.permute.xlu1 %1694  ;;  %v3042_v4 = vrot.slane %v3014_v13, %v19011_v56  ;;  %v3044_v58 = vcombine.high %v3028_v57, %v3028_v57 }
 0x11c   :  { %v6098_v28 = vrot.slane %v6070_v17, %v19011_v56  ;;  %1114 = vrot.lane.b32.xlu0 %v19329_v10, %s18669_s26  ;;  %v2473_v61 = vsel %vm2464_vm11, %v2408_v21, %v1695_v37  ;;  %v6116_v62 = vcombine.low %v3045_v27, %v3028_v57 }
 0x11d   :  { %1320 = vrot.lane.b32.xlu1 %v19485_v16, %s18670_s29  ;;  %v6117_v35 = vcombine.low %v3042_v4, %v3044_v58 }
 0x11e   :  { %v6100_v6 = vcombine.low %v6091_v40, %v6098_v28  ;;  %v19499_v36 = vpop.permute.xlu0 %710  ;;  %v6126_v15 = vrot.slane %v6116_v62, %v19011_v56 }
 0x11f   :  { %v19506_v31 = vpop.permute.xlu1 %904  ;;  %v6133_v17 = vrot.slane %v6117_v35, %v19011_v56 }
 0x120   :  { %1710 = vrot.lane.b32.xlu0 %v19455_v20, %s18672_s10  ;;  %v6114_v42 = vrot.slane %v6100_v6, %v19011_v56  ;;  %v2084_v6 = vsel %vm2074_vm5, %v18593_v1, %v19318_v38 }
 0x121   :  { %1912 = vrot.lane.b32.xlu1 %v575_v55, %s18673_s17  ;;  %v2149_v38 = vsel %vm2139_vm6, %v2084_v6, %v19371_v39 }
 0x122   :  { %v19518_v26 = vpop.permute.xlu0 %1498  ;;  %v6115_v19 = vcombine.low %v6107_v54, %v6114_v42  ;;  %v6148_v54 = vcombine.low %v6126_v15, %v6133_v17  ;;  %v2214_v53 = vsel %vm2204_vm7, %v2149_v38, %v19400_v51 }
 0x123   :  { %v19522_v45 = vpop.permute.xlu1 %1500 }
 0x124   :  { %339 = vrot.lane.b32.xlu0 %v19329_v10, %s18666_s19  ;;  %18350 = vmatprep.mubr.msk.f32.mxu0 %vm8713_vm13, %v6115_v19  ;;  %v19543_v10 = vld [vmem:[%s28513_s0 + $0x110] sm:$0xff] }
 0x125   :  { %1318 = vrot.lane.b32.xlu1 %v575_v55, %s18670_s29  ;;  %v19555_v41 = vrot.slane %v19543_v10, 1 }
 0x126   :  { %v1899_v63 = vpop.permute.xlu0 %1898 }
 0x127   :  { %v2538_v32 = vsel %vm2529_vm12, %v2473_v61, %v1899_v63  ;;  %v19538_v8 = vpop.permute.xlu1 %906  ;;  %v19566_v47 = vsel %vm204_vm1, %v238_v30, %v19555_v41 }
 0x128   :  { %v3046_v23 = vcombine.high %v2538_v32, %v2538_v32  ;;  %v3053_v3 = vrot.slane %v2538_v32, %v19011_v56  ;;  %1516 = vrot.lane.b32.xlu0 %v19534_v14, %s18671_s30 }
 0x129   :  { %1914 = vrot.lane.b32.xlu1 %v19485_v16, %s18673_s17 }
 0x12a   :  { %v3060_v11 = vrot.slane %v3046_v23, %v19011_v56  ;;  %v3061_v46 = vcombine.high %v3053_v3, %v3053_v3  ;;  %v19551_v52 = vpop.permute.xlu0 %1102  ;;  %v3069_v29 = vrot.slane %v3053_v3, %v19011_v56 }
 0x12b   :  { %v1697_v12 = vpop.permute.xlu1 %1696 }
 0x12c   :  { %v3083_v37 = vrot.slane %v3061_v46, %v19011_v56  ;;  %341 = vrot.lane.b32.xlu0 %v19455_v20, %s18666_s19  ;;  %v3062_v49 = vcombine.high %v3060_v11, %v3060_v11  ;;  %v18594_v20 = vld [vmem:[%s28513_s0 + $0x78] sm:$0xff]  ;;  %v3076_v51 = vrot.slane %v3060_v11, %v19011_v56 }
 0x12d   :  { %724 = vrot.lane.b32.xlu1 %v575_v55, %s18667_s20  ;;  %v2085_v55 = vsel %vm2074_vm5, %v18594_v20, %v19336_v7  ;;  %v582_v7 = vrot.slane %v19543_v10, 2 }
 0x12e   :  { %v6118_v40 = vcombine.low %v3069_v29, %v3083_v37  ;;  %v18103_v28 = vcombine.high %v3069_v29, %v3083_v37  ;;  %v1699_v43 = vpop.permute.xlu0 %1698  ;;  %v2150_v42 = vsel %vm2139_vm6, %v2085_v55, %v19374_v24  ;;  %v3090_v34 = vrot.slane %v3062_v49, %v19011_v56  ;;  %v64_v49 = vld [vmem:[%s28513_s0 + $0x100] sm:$0x1] }
 0x12f   :  { %v19573_v59 = vpop.permute.xlu1 %327  ;;  %v2215_v19 = vsel %vm2204_vm7, %v2150_v42, %v19402_v22  ;;  %v2279_v24 = vsel %vm2269_vm8, %v2214_v53, %v19419_v9  ;;  %v6156_v22 = vrot.slane %v6148_v54, %v19011_v56  ;;  %v579_v42 = vrot.slane %v64_v49, 2 }
 0x130   :  { %v6140_v13 = vrot.slane %v6118_v40, %v19011_v56  ;;  %v6147_v57 = vrot.slane %v18103_v28, %v19011_v56  ;;  %1514 = vrot.lane.b32.xlu0 %v19424_v5, %s18671_s30  ;;  %v2280_v58 = vsel %vm2269_vm8, %v2215_v19, %v19436_v18  ;;  %v2344_v21 = vsel %vm2334_vm9, %v2279_v24, %v19470_v44 }
 0x131   :  { %1714 = vrot.lane.b32.xlu1 %v19566_v47, %s18672_s10  ;;  %v2345_v9 = vsel %vm2334_vm9, %v2280_v58, %v19480_v48  ;;  %v2409_v18 = vsel %vm2399_vm10, %v2344_v21, %v19518_v26  ;;  %v19621_v44 = vsel %vm525_vm0, %v581_v33, %v582_v7  ;;  %v6165_v63 = vcombine.low %v3076_v51, %v3090_v34 }
 0x132   :  { %v6149_v4 = vcombine.low %v6140_v13, %v6147_v57  ;;  %v19597_v39 = vpop.permute.xlu0 %1104  ;;  %v2474_v32 = vsel %vm2464_vm11, %v2409_v18, %v1697_v12  ;;  %v18104_v48 = vcombine.high %v3076_v51, %v3090_v34 }
 0x133   :  { %v19603_v27 = vpop.permute.xlu1 %1306  ;;  %v6175_v15 = vrot.slane %v6165_v63, %v19011_v56 }
 0x134   :  { %726 = vrot.lane.b32.xlu0 %v19485_v16, %s18667_s20  ;;  %v6163_v61 = vrot.slane %v6149_v4, %v19011_v56  ;;  %v2410_v16 = vsel %vm2399_vm10, %v2345_v9, %v19522_v45  ;;  %v6182_v40 = vrot.slane %v18104_v48, %v19011_v56 }
 0x135   :  { %920 = vrot.lane.b32.xlu1 %v19424_v5, %s18668_s21  ;;  %v2475_v23 = vsel %vm2464_vm11, %v2410_v16, %v1699_v43 }
 0x136   :  { %v1901_v62 = vpop.permute.xlu0 %1900  ;;  %v6164_v35 = vcombine.low %v6156_v22, %v6163_v61  ;;  %v6197_v22 = vcombine.low %v6175_v15, %v6182_v40 }
 0x137   :  { %v2539_v26 = vsel %vm2529_vm12, %v2474_v32, %v1901_v62  ;;  %v1903_v3 = vpop.permute.xlu1 %1902  ;;  %v580_v32 = vsel %vm525_vm0, %v577_v50, %v579_v42 }
 0x138   :  { %v3095_v11 = vcombine.high %v2539_v26, %v2539_v26  ;;  %v3102_v46 = vrot.slane %v2539_v26, %v19011_v56  ;;  %v2540_v30 = vsel %vm2529_vm12, %v2475_v23, %v1903_v3  ;;  %1712 = vrot.lane.b32.xlu0 %v19439_v60, %s18672_s10  ;;  %18351 = vmatmul.mubr.msk.f32.gmra.mrb[6].mxu0 %vm8713_vm13, %v6164_v35 }
 0x139   :  { %v3143_v45 = vcombine.high %v2540_v30, %v2540_v30  ;;  %v3150_v12 = vrot.slane %v2540_v30, %v19011_v56  ;;  %1918 = vrot.lane.b32.xlu1 %v19621_v44, %s18673_s17  ;;  %v6205_v5 = vrot.slane %v6197_v22, %v19011_v56 }
 0x13a   :  { %v3109_v17 = vrot.slane %v3095_v11, %v19011_v56  ;;  %v3110_v29 = vcombine.high %v3102_v46, %v3102_v46  ;;  %v19638_v37 = vpop.permute.xlu0 %329  ;;  %v3118_v55 = vrot.slane %v3102_v46, %v19011_v56 }
 0x13b   :  { %v19645_v28 = vrot.slane %v3143_v45, %v19011_v56  ;;  %v3158_v43 = vcombine.high %v3150_v12, %v3150_v12  ;;  %v3166_v1 = vrot.slane %v3150_v12, %v19011_v56  ;;  %v19648_v6 = vpop.permute.xlu1 %712 }
 0x13c   :  { %v3111_v20 = vcombine.high %v3109_v17, %v3109_v17  ;;  %v3125_v13 = vrot.slane %v3109_v17, %v19011_v56  ;;  %v3132_v57 = vrot.slane %v3110_v29, %v19011_v56  ;;  %343 = vrot.lane.b32.xlu0 %v19439_v60, %s18666_s19  ;;  %v18595_v17 = vld [vmem:[%s28513_s0 + $0x80] sm:$0xff] }
 0x13d   :  { %v3180_v54 = vrot.slane %v3158_v43, %v19011_v56  ;;  %v3188_v38 = vcombine.high %v3166_v1, %v3166_v1  ;;  %345 = vrot.lane.b32.xlu1 %v19566_v47, %s18666_s19  ;;  %v19663_v24 = vrot.slane %v19645_v28, %v19011_v56  ;;  %v2086_v29 = vsel %vm2074_vm5, %v18595_v17, %v19414_v2 }
 0x13e   :  { %v3139_v33 = vrot.slane %v3111_v20, %v19011_v56  ;;  %v6167_v53 = vcombine.low %v3118_v55, %v3132_v57  ;;  %v18105_v19 = vcombine.high %v3118_v55, %v3132_v57  ;;  %v3141_v34 = vcombine.high %v3125_v13, %v3125_v13  ;;  %v19659_v4 = vpop.permute.xlu0 %1308 }
 0x13f   :  { %v3190_v58 = vcombine.high %v3180_v54, %v3180_v54  ;;  %v6216_v21 = vcombine.low %v3180_v54, %v3188_v38  ;;  %v1503_v51 = vpop.permute.xlu1 %1502  ;;  %v2151_v40 = vsel %vm2139_vm6, %v2086_v29, %v19466_v0  ;;  %v3159_v2 = vcombine.high %v19645_v28, %v19645_v28 }
 0x140   :  { %v6189_v61 = vrot.slane %v6167_v53, %v19011_v56  ;;  %v6196_v9 = vrot.slane %v18105_v19, %v19011_v56  ;;  %v6214_v18 = vcombine.low %v3125_v13, %v3139_v33  ;;  %v6215_v16 = vcombine.low %v3141_v34, %v3166_v1  ;;  %922 = vrot.lane.b32.xlu0 %v19534_v14, %s18668_s21  ;;  %v18596_v33 = vld [vmem:[%s28513_s0 + $0x90] sm:$0xff] }
 0x141   :  { %v6217_v63 = vcombine.low %v3190_v58, %v19663_v24  ;;  %1118 = vrot.lane.b32.xlu1 %v19439_v60, %s18669_s26  ;;  %v6238_v26 = vrot.slane %v6216_v21, %v19011_v56  ;;  %v2216_v1 = vsel %vm2204_vm7, %v2151_v40, %v19506_v31  ;;  %v19720_v31 = vld [vmem:[%s28513_s0 + $0x120] sm:$0xff]  ;;  %v2087_v53 = vsel %vm2074_vm5, %v18596_v33, %v19458_v25 }
 0x142   :  { %v6198_v62 = vcombine.low %v6189_v61, %v6196_v9  ;;  %v6224_v35 = vrot.slane %v6214_v18, %v19011_v56  ;;  %v6231_v48 = vrot.slane %v6215_v16, %v19011_v56  ;;  %v19677_v23 = vpop.permute.xlu0 %714  ;;  %v2281_v55 = vsel %vm2269_vm8, %v2216_v1, %v19551_v52  ;;  %v19725_v52 = vld [vmem:[%s28513_s0 + $0x128] sm:$0xff] }
 0x143   :  { %v6245_v14 = vrot.slane %v6217_v63, %v19011_v56  ;;  %v19681_v3 = vpop.permute.xlu1 %908  ;;  %v2346_v0 = vsel %vm2334_vm9, %v2281_v55, %v19603_v27  ;;  %v3187_v27 = vrot.slane %v3159_v2, %v19011_v56  ;;  %v241_v38 = vrot.slane %v19720_v31, 1 }
 0x144   :  { %v6246_v11 = vcombine.low %v6224_v35, %v6231_v48  ;;  %1916 = vrot.lane.b32.xlu0 %v580_v32, %s18673_s17  ;;  %v6212_v60 = vrot.slane %v6198_v62, %v19011_v56  ;;  %v19735_v42 = vrot.slane %v19725_v52, 1  ;;  %v3189_v19 = vcombine.high %v19663_v24, %v19663_v24 }
 0x145   :  { %728 = vrot.lane.b32.xlu1 %v580_v32, %s18667_s20  ;;  %v6247_v50 = vcombine.low %v6238_v26, %v6245_v14  ;;  %v2152_v21 = vsel %vm2139_vm6, %v2087_v53, %v19499_v36  ;;  %v3191_v16 = vcombine.high %v3187_v27, %v3187_v27  ;;  %v586_v17 = vrot.slane %v19720_v31, 2 }
 0x146   :  { %v1505_v46 = vpop.permute.xlu0 %1504  ;;  %v6213_v30 = vcombine.low %v6205_v5, %v6212_v60  ;;  %v6254_v45 = vrot.slane %v6246_v11, %v19011_v56  ;;  %v2217_v22 = vsel %vm2204_vm7, %v2152_v21, %v19538_v8  ;;  %v19763_v36 = vsel %vm204_vm1, %v241_v38, %v19735_v42 }
 0x147   :  { %v1701_v12 = vpop.permute.xlu1 %1700  ;;  %v6261_v15 = vrot.slane %v6247_v50, %v19011_v56  ;;  %v2282_v18 = vsel %vm2269_vm8, %v2217_v22, %v19597_v39  ;;  %v67_v39 = vld [vmem:[%s28513_s0 + $0x118] sm:$0x1]  ;;  %v587_v55 = vrot.slane %v19725_v52, 2 }
 0x148   :  { %730 = vrot.lane.b32.xlu0 %v19621_v44, %s18667_s20  ;;  %18353 = vmatprep.mubr.msk.f32.mxu0 %vm8713_vm13, %v6213_v30  ;;  %v2347_v8 = vsel %vm2334_vm9, %v2282_v18, %v19659_v4 }
 0x149   :  { %1120 = vrot.lane.b32.xlu1 %v19566_v47, %s18669_s26  ;;  %v6262_v49 = vcombine.low %v6254_v45, %v6261_v15  ;;  %v2411_v47 = vsel %vm2399_vm10, %v2346_v0, %v1503_v51  ;;  %v2412_v62 = vsel %vm2399_vm10, %v2347_v8, %v1505_v46  ;;  %v584_v45 = vrot.slane %v67_v39, 2 }
 0x14a   :  { %v19701_v43 = vpop.permute.xlu0 %910  ;;  %v2476_v13 = vsel %vm2464_vm11, %v2411_v47, %v1701_v12 }
 0x14b   :  { %v19705_v20 = vpop.permute.xlu1 %1106  ;;  %18354 = vmatmul.mubr.msk.f32.gmra.mrb[8].mxu0 %vm8713_vm13, %v6262_v49 }
 0x14c   :  { %1322 = vrot.lane.b32.xlu0 %v580_v32, %s18670_s29 }
 0x14d   :  { %924 = vrot.lane.b32.xlu1 %v19543_v10, %s18668_s21 }
 0x14e   :  { %v1703_v28 = vpop.permute.xlu0 %1702 }
 0x14f   :  { %v1905_v57 = vpop.permute.xlu1 %1904  ;;  %v2477_v4 = vsel %vm2464_vm11, %v2412_v62, %v1703_v28 }
 0x150   :  { %v2541_v54 = vsel %vm2529_vm12, %v2476_v13, %v1905_v57  ;;  %926 = vrot.lane.b32.xlu0 %v19720_v31, %s18668_s21 }
 0x151   :  { %v3192_v34 = vcombine.high %v2541_v54, %v2541_v54  ;;  %v3199_v58 = vrot.slane %v2541_v54, %v19011_v56  ;;  %1324 = vrot.lane.b32.xlu1 %v19621_v44, %s18670_s29  ;;  %v6263_v44 = vcombine.low %v3187_v27, %v3189_v19  ;;  %v585_v27 = vsel %vm525_vm0, %v582_v7, %v584_v45  ;;  %v18597_v45 = vld [vmem:[%s28513_s0 + $0x98] sm:$0xff] }
 0x152   :  { %v19749_v51 = vpop.permute.xlu0 %331 }
 0x153   :  { %v3206_v61 = vrot.slane %v3192_v34, %v19011_v56  ;;  %v3207_v25 = vcombine.high %v3199_v58, %v3199_v58  ;;  %v3215_v9 = vrot.slane %v3199_v58, %v19011_v56  ;;  %v19755_v24 = vpop.permute.xlu1 %1108  ;;  %v6273_v12 = vrot.slane %v6263_v44, %v19011_v56 }
 0x154   :  { %1518 = vrot.lane.b32.xlu0 %v19543_v10, %s18671_s30  ;;  %v19810_v34 = vsel %vm525_vm0, %v586_v17, %v587_v55 }
 0x155   :  { %v3229_v63 = vrot.slane %v3207_v25, %v19011_v56  ;;  %v3237_v32 = vcombine.high %v3215_v9, %v3215_v9  ;;  %1122 = vrot.lane.b32.xlu1 %v19555_v41, %s18669_s26  ;;  %v3208_v35 = vcombine.high %v3206_v61, %v3206_v61  ;;  %v3222_v48 = vrot.slane %v3206_v61, %v19011_v56 }
 0x156   :  { %v6264_v26 = vcombine.low %v3191_v16, %v3215_v9  ;;  %v19775_v14 = vpop.permute.xlu0 %1310 }
 0x157   :  { %v3239_v11 = vcombine.high %v3229_v63, %v3229_v63  ;;  %v6265_v5 = vcombine.low %v3229_v63, %v3237_v32  ;;  %v1907_v60 = vpop.permute.xlu1 %1906  ;;  %v3236_v29 = vrot.slane %v3208_v35, %v19011_v56  ;;  %v3238_v49 = vcombine.high %v3222_v48, %v3222_v48 }
 0x158   :  { %v6280_v50 = vrot.slane %v6264_v26, %v19011_v56  ;;  %v2542_v30 = vsel %vm2529_vm12, %v2477_v4, %v1907_v60  ;;  %1124 = vrot.lane.b32.xlu0 %v19763_v36, %s18669_s26 }
 0x159   :  { %v6266_v46 = vcombine.low %v3239_v11, %v3222_v48  ;;  %v3240_v15 = vcombine.high %v2542_v30, %v2542_v30  ;;  %1520 = vrot.lane.b32.xlu1 %v19720_v31, %s18671_s30  ;;  %v3247_v40 = vrot.slane %v2542_v30, %v19011_v56  ;;  %v6287_v2 = vrot.slane %v6265_v5, %v19011_v56  ;;  %v19845_v5 = vld [vmem:[%s28513_s0 + $0x138] sm:$0xff]  ;;  %v19855_v30 = vld [vmem:[%s28513_s0 + $0x140] sm:$0xff] }
 0x15a   :  { %v19788_v1 = vpop.permute.xlu0 %333  ;;  %v6295_v47 = vcombine.low %v6273_v12, %v6280_v50  ;;  %v6312_v38 = vcombine.low %v3236_v29, %v3238_v49  ;;  %v244_v29 = vrot.slane %v19845_v5, 1  ;;  %v19874_v49 = vrot.slane %v19855_v30, 1 }
 0x15b   :  { %v6294_v0 = vrot.slane %v6266_v46, %v19011_v56  ;;  %v3254_v28 = vrot.slane %v3240_v15, %v19011_v56  ;;  %v19794_v13 = vpop.permute.xlu1 %716  ;;  %v3255_v57 = vcombine.high %v3247_v40, %v3247_v40  ;;  %v3263_v33 = vrot.slane %v3247_v40, %v19011_v56 }
 0x15c   :  { %1716 = vrot.lane.b32.xlu0 %v19555_v41, %s18672_s10  ;;  %v6303_v7 = vrot.slane %v6295_v47, %v19011_v56  ;;  %v6322_v18 = vrot.slane %v6312_v38, %v19011_v56  ;;  %v2088_v46 = vsel %vm2074_vm5, %v18597_v45, %v19573_v59  ;;  %v19888_v47 = vsel %vm204_vm1, %v244_v29, %v19874_v49 }
 0x15d   :  { %v3256_v31 = vcombine.high %v3254_v28, %v3254_v28  ;;  %347 = vrot.lane.b32.xlu1 %v19555_v41, %s18666_s19  ;;  %v6296_v54 = vcombine.low %v6287_v2, %v6294_v0  ;;  %v3277_v53 = vrot.slane %v3255_v57, %v19011_v56  ;;  %v19813_v58 = vrot.slane %v3254_v28, %v19011_v56 }
 0x15e   :  { %v19805_v19 = vpop.permute.xlu0 %1312  ;;  %v2153_v12 = vsel %vm2139_vm6, %v2088_v46, %v19648_v6 }
 0x15f   :  { %v19816_v10 = vrot.slane %v3256_v31, %v19011_v56  ;;  %v1507_v41 = vpop.permute.xlu1 %1506  ;;  %v6310_v21 = vrot.slane %v6296_v54, %v19011_v56  ;;  %v6313_v22 = vcombine.low %v3263_v33, %v3277_v53  ;;  %v18106_v61 = vcombine.high %v3263_v33, %v3277_v53 }
 0x160   :  { %1326 = vrot.lane.b32.xlu0 %v585_v27, %s18670_s29  ;;  %v2218_v15 = vsel %vm2204_vm7, %v2153_v12, %v19681_v3  ;;  %v591_v33 = vrot.slane %v19845_v5, 2  ;;  %v592_v53 = vrot.slane %v19855_v30, 2 }
 0x161   :  { %v6315_v25 = vcombine.low %v19813_v58, %v19816_v10  ;;  %1328 = vrot.lane.b32.xlu1 %v19810_v34, %s18670_s29  ;;  %v6311_v9 = vcombine.low %v6303_v7, %v6310_v21  ;;  %v6329_v16 = vrot.slane %v6313_v22, %v19011_v56  ;;  %v6336_v8 = vrot.slane %v18106_v61, %v19011_v56 }
 0x162   :  { %v19827_v44 = vpop.permute.xlu0 %718  ;;  %v2283_v59 = vsel %vm2269_vm8, %v2218_v15, %v19705_v20  ;;  %v70_v20 = vld [vmem:[%s28513_s0 + $0x130] sm:$0x1]  ;;  %v18107_v61 = vcombine.high %v19813_v58, %v19816_v10  ;;  %v19936_v58 = vsel %vm525_vm0, %v591_v33, %v592_v53 }
 0x163   :  { %v6343_v63 = vrot.slane %v6315_v25, %v19011_v56  ;;  %v19831_v32 = vpop.permute.xlu1 %912  ;;  %18356 = vmatprep.mubr.msk.f32.mxu0 %vm8713_vm13, %v6311_v9  ;;  %v6344_v39 = vcombine.low %v6322_v18, %v6329_v16  ;;  %v2348_v6 = vsel %vm2334_vm9, %v2283_v59, %v19775_v14 }
 0x164   :  { %1718 = vrot.lane.b32.xlu0 %v19763_v36, %s18672_s10  ;;  %v2413_v2 = vsel %vm2399_vm10, %v2348_v6, %v1507_v41 }
 0x165   :  { %v6345_v62 = vcombine.low %v6336_v8, %v6343_v63  ;;  %1920 = vrot.lane.b32.xlu1 %v585_v27, %s18673_s17  ;;  %v6352_v26 = vrot.slane %v6344_v39, %v19011_v56 }
 0x166   :  { %v1509_v35 = vpop.permute.xlu0 %1508 }
 0x167   :  { %v1705_v48 = vpop.permute.xlu1 %1704  ;;  %v6359_v4 = vrot.slane %v6345_v62, %v19011_v56 }
 0x168   :  { %732 = vrot.lane.b32.xlu0 %v585_v27, %s18667_s20  ;;  %v2478_v3 = vsel %vm2464_vm11, %v2413_v2, %v1705_v48 }
 0x169   :  { %1522 = vrot.lane.b32.xlu1 %v19725_v52, %s18671_s30  ;;  %v6360_v11 = vcombine.low %v6352_v26, %v6359_v4 }
 0x16a   :  { %v19847_v60 = vpop.permute.xlu0 %337 }
 0x16b   :  { %v19849_v50 = vpop.permute.xlu1 %914  ;;  %18357 = vmatmul.mubr.msk.f32.gmra.mrb[10].mxu0 %vm8713_vm13, %v6360_v11 }
 0x16c   :  { %1524 = vrot.lane.b32.xlu0 %v19845_v5, %s18671_s30 }
 0x16d   :  { %1922 = vrot.lane.b32.xlu1 %v19810_v34, %s18673_s17 }
 0x16e   :  { %v19870_v17 = vpop.permute.xlu0 %1110 }
 0x16f   :  { %v1707_v40 = vpop.permute.xlu1 %1706 }
 0x170   :  { %349 = vrot.lane.b32.xlu0 %v19763_v36, %s18666_s19  ;;  %v18598_v36 = vld [vmem:[%s28513_s0 + $0xa8] sm:$0xff] }
 0x171   :  { %928 = vrot.lane.b32.xlu1 %v19725_v52, %s18668_s21  ;;  %v2089_v14 = vsel %vm2074_vm5, %v18598_v36, %v19638_v37  ;;  %v589_v37 = vrot.slane %v70_v20, 2  ;;  %v6371_v52 = vrot.slane %v18107_v61, %v19011_v56 }
 0x172   :  { %v1909_v0 = vpop.permute.xlu0 %1908  ;;  %v2154_v31 = vsel %vm2139_vm6, %v2089_v14, %v19677_v23 }
 0x173   :  { %v2543_v28 = vsel %vm2529_vm12, %v2478_v3, %v1909_v0  ;;  %v19899_v57 = vpop.permute.xlu1 %335  ;;  %v2219_v38 = vsel %vm2204_vm7, %v2154_v31, %v19701_v43 }
 0x174   :  { %v3289_v27 = vcombine.high %v2543_v28, %v2543_v28  ;;  %v3296_v54 = vrot.slane %v2543_v28, %v19011_v56  ;;  %1720 = vrot.lane.b32.xlu0 %v19735_v42, %s18672_s10  ;;  %v2284_v23 = vsel %vm2269_vm8, %v2219_v38, %v19755_v24 }
 0x175   :  { %1722 = vrot.lane.b32.xlu1 %v19888_v47, %s18672_s10  ;;  %v2349_v22 = vsel %vm2334_vm9, %v2284_v23, %v19805_v19  ;;  %v590_v19 = vsel %vm525_vm0, %v587_v55, %v589_v37 }
 0x176   :  { %v3303_v41 = vrot.slane %v3289_v27, %v19011_v56  ;;  %v3304_v7 = vcombine.high %v3296_v54, %v3296_v54  ;;  %v19915_v21 = vpop.permute.xlu0 %722  ;;  %v3312_v9 = vrot.slane %v3296_v54, %v19011_v56  ;;  %v2414_v24 = vsel %vm2399_vm10, %v2349_v22, %v1509_v35 }
 0x177   :  { %v19919_v43 = vpop.permute.xlu1 %1112  ;;  %v2479_v39 = vsel %vm2464_vm11, %v2414_v24, %v1707_v40 }
 0x178   :  { %v3305_v25 = vcombine.high %v3303_v41, %v3303_v41  ;;  %v3326_v18 = vrot.slane %v3304_v7, %v19011_v56  ;;  %734 = vrot.lane.b32.xlu0 %v19810_v34, %s18667_s20  ;;  %v3319_v10 = vrot.slane %v3303_v41, %v19011_v56 }
 0x179   :  { %1126 = vrot.lane.b32.xlu1 %v19735_v42, %s18669_s26 }
 0x17a   :  { %v3333_v16 = vrot.slane %v3305_v25, %v19011_v56  ;;  %v6362_v8 = vcombine.low %v3312_v9, %v3326_v18  ;;  %v18108_v34 = vcombine.high %v3312_v9, %v3326_v18  ;;  %v19940_v63 = vpop.permute.xlu0 %1314  ;;  %v3335_v2 = vcombine.high %v3319_v10, %v3319_v10 }
 0x17b   :  { %v1911_v62 = vpop.permute.xlu1 %1910 }
 0x17c   :  { %v6364_v35 = vcombine.low %v3319_v10, %v3333_v16  ;;  %v6378_v55 = vrot.slane %v6362_v8, %v19011_v56  ;;  %v2544_v48 = vsel %vm2529_vm12, %v2479_v39, %v1911_v62  ;;  %1924 = vrot.lane.b32.xlu0 %v590_v19, %s18673_s17  ;;  %v6385_v11 = vrot.slane %v18108_v34, %v19011_v56  ;;  %v18599_v62 = vld [vmem:[%s28513_s0 + $0xb0] sm:$0xff] }
 0x17d   :  { %v3337_v26 = vcombine.high %v2544_v48, %v2544_v48  ;;  %v3344_v4 = vrot.slane %v2544_v48, %v19011_v56  ;;  %1926 = vrot.lane.b32.xlu1 %v19936_v58, %s18673_s17 }
 0x17e   :  { %v6392_v45 = vrot.slane %v6364_v35, %v19011_v56  ;;  %v6393_v46 = vcombine.low %v6371_v52, %v6378_v55  ;;  %v19952_v12 = vpop.permute.xlu0 %720 }
 0x17f   :  { %v3351_v15 = vrot.slane %v3337_v26, %v19011_v56  ;;  %v3352_v29 = vcombine.high %v3344_v4, %v3344_v4  ;;  %v3360_v59 = vrot.slane %v3344_v4, %v19011_v56  ;;  %v19956_v40 = vpop.permute.xlu1 %918 }
 0x180   :  { %v6394_v6 = vcombine.low %v6385_v11, %v6392_v45  ;;  %351 = vrot.lane.b32.xlu0 %v19735_v42, %s18666_s19  ;;  %v6401_v31 = vrot.slane %v6393_v46, %v19011_v56 }
 0x181   :  { %v3353_v3 = vcombine.high %v3351_v15, %v3351_v15  ;;  %v3367_v0 = vrot.slane %v3351_v15, %v19011_v56  ;;  %v3374_v20 = vrot.slane %v3352_v29, %v19011_v56  ;;  %v3382_v36 = vcombine.high %v3360_v59, %v3360_v59  ;;  %353 = vrot.lane.b32.xlu1 %v19888_v47, %s18666_s19  ;;  %v20028_v15 = vld [vmem:[%s28513_s0 + $0x158] sm:$0xff] }
 0x182   :  { %v6410_v14 = vcombine.low %v3335_v2, %v3360_v59  ;;  %v19964_v28 = vpop.permute.xlu0 %1316  ;;  %v6408_v27 = vrot.slane %v6394_v6, %v19011_v56  ;;  %v18600_v6 = vld [vmem:[%s28513_s0 + $0xc0] sm:$0xff] }
 0x183   :  { %v19969_v54 = vrot.slane %v3353_v3, %v19011_v56  ;;  %v3383_v42 = vcombine.high %v3367_v0, %v3367_v0  ;;  %v3384_v38 = vcombine.high %v3374_v20, %v3374_v20  ;;  %v6411_v37 = vcombine.low %v3374_v20, %v3382_v36  ;;  %v1511_v33 = vpop.permute.xlu1 %1510 }
 0x184   :  { %930 = vrot.lane.b32.xlu0 %v19845_v5, %s18668_s21  ;;  %v6409_v23 = vcombine.low %v6401_v31, %v6408_v27  ;;  %v6420_v22 = vrot.slane %v6410_v14, %v19011_v56  ;;  %v2091_v2 = vsel %vm2074_vm5, %v18600_v6, %v19788_v1  ;;  %v20050_v36 = vrot.slane %v20028_v15, 1 }
 0x185   :  { %v6412_v41 = vcombine.low %v3384_v38, %v3367_v0  ;;  %v6413_v7 = vcombine.low %v19969_v54, %v3383_v42  ;;  %v6427_v61 = vrot.slane %v6411_v37, %v19011_v56  ;;  %1330 = vrot.lane.b32.xlu1 %v590_v19, %s18670_s29 }
 0x186   :  { %18359 = vmatprep.mubr.msk.f32.mxu0 %vm8713_vm13, %v6409_v23  ;;  %v19978_v25 = vpop.permute.xlu0 %916 }
 0x187   :  { %v6434_v9 = vrot.slane %v6412_v41, %v19011_v56  ;;  %v6441_v18 = vrot.slane %v6413_v7, %v19011_v56  ;;  %v6442_v24 = vcombine.low %v6420_v22, %v6427_v61  ;;  %v19982_v5 = vpop.permute.xlu1 %1116 }
 0x188   :  { %736 = vrot.lane.b32.xlu0 %v590_v19, %s18667_s20  ;;  %v2090_v19 = vsel %vm2074_vm5, %v18599_v62, %v19749_v51  ;;  %v73_v51 = vld [vmem:[%s28513_s0 + $0x148] sm:$0x1] }
 0x189   :  { %738 = vrot.lane.b32.xlu1 %v19936_v58, %s18667_s20  ;;  %v6443_v10 = vcombine.low %v6434_v9, %v6441_v18  ;;  %v6450_v34 = vrot.slane %v6442_v24, %v19011_v56  ;;  %v2155_v35 = vsel %vm2139_vm6, %v2090_v19, %v19794_v13  ;;  %v594_v45 = vrot.slane %v73_v51, 2 }
 0x18a   :  { %v1513_v16 = vpop.permute.xlu0 %1512  ;;  %v2220_v48 = vsel %vm2204_vm7, %v2155_v35, %v19831_v32  ;;  %v20021_v32 = vld [vmem:[%s28513_s0 + $0x150] sm:$0xff]  ;;  %v3385_v51 = vcombine.high %v19969_v54, %v19969_v54 }
 0x18b   :  { %v1709_v8 = vpop.permute.xlu1 %1708  ;;  %v6457_v39 = vrot.slane %v6443_v10, %v19011_v56  ;;  %v2285_v26 = vsel %vm2269_vm8, %v2220_v48, %v19870_v17  ;;  %v20046_v0 = vsel %vm525_vm0, %v592_v53, %v594_v45  ;;  %v247_v20 = vrot.slane %v20021_v32, 1 }
 0x18c   :  { %1128 = vrot.lane.b32.xlu0 %v19888_v47, %s18669_s26  ;;  %v2350_v13 = vsel %vm2334_vm9, %v2285_v26, %v19940_v63  ;;  %v596_v10 = vrot.slane %v20021_v32, 2 }
 0x18d   :  { %1526 = vrot.lane.b32.xlu1 %v19855_v30, %s18671_s30  ;;  %v6458_v52 = vcombine.low %v6450_v34, %v6457_v39  ;;  %v2415_v4 = vsel %vm2399_vm10, %v2350_v13, %v1511_v33  ;;  %v20077_v37 = vsel %vm204_vm1, %v247_v20, %v20050_v36 }
 0x18e   :  { %v20000_v55 = vpop.permute.xlu0 %1114  ;;  %v2480_v17 = vsel %vm2464_vm11, %v2415_v4, %v1709_v8  ;;  %v76_v8 = vld [vmem:[%s28513_s0 + $0x160] sm:$0x1] }
 0x18f   :  { %v20004_v47 = vpop.permute.xlu1 %1320  ;;  %18360 = vmatmul.mubr.msk.f32.gmra.mrb[12].mxu0 %vm8713_vm13, %v6458_v52  ;;  %v599_v4 = vrot.slane %v76_v8, 2 }
 0x190   :  { %355 = vrot.lane.b32.xlu0 %v19874_v49, %s18666_s19 }
 0x191   :  { %932 = vrot.lane.b32.xlu1 %v19855_v30, %s18668_s21 }
 0x192   :  { %v1711_v11 = vpop.permute.xlu0 %1710 }
 0x193   :  { %v1913_v46 = vpop.permute.xlu1 %1912 }
 0x194   :  { %v2545_v63 = vsel %vm2529_vm12, %v2480_v17, %v1913_v46  ;;  %934 = vrot.lane.b32.xlu0 %v20021_v32, %s18668_s21  ;;  %v20125_v46 = vld [vmem:[%s28513_s0 + $0x168] sm:$0xff] }
 0x195   :  { %v3386_v29 = vcombine.high %v2545_v63, %v2545_v63  ;;  %v3393_v59 = vrot.slane %v2545_v63, %v19011_v56  ;;  %1332 = vrot.lane.b32.xlu1 %v19936_v58, %s18670_s29  ;;  %v2156_v58 = vsel %vm2139_vm6, %v2091_v2, %v19827_v44  ;;  %v20069_v44 = vld [vmem:[%s28515_s2] ss:$0 sm:$0xff]  ;;  %v250_v6 = vrot.slane %v20125_v46, 1  ;;  %v79_v2 = vld [vmem:[%s28513_s0 + $0x178] sm:$0x1] }
 0x196   :  { %v20041_v3 = vpop.permute.xlu0 %339  ;;  %v2221_v1 = vsel %vm2204_vm7, %v2156_v58, %v19849_v50 }
 0x197   :  { %v3400_v14 = vrot.slane %v3386_v29, %v19011_v56  ;;  %v3401_v31 = vcombine.high %v3393_v59, %v3393_v59  ;;  %v20055_v27 = vpop.permute.xlu1 %1318  ;;  %v2286_v30 = vsel %vm2269_vm8, %v2221_v1, %v19919_v43  ;;  %v3409_v53 = vrot.slane %v3393_v59, %v19011_v56 }
 0x198   :  { %1724 = vrot.lane.b32.xlu0 %v19874_v49, %s18672_s10  ;;  %v2351_v42 = vsel %vm2334_vm9, %v2286_v30, %v19964_v28 }
 0x199   :  { %740 = vrot.lane.b32.xlu1 %v20046_v0, %s18667_s20  ;;  %v18343_v50 = vpop.f32.mrb[0].mxu0  ;;  %v2416_v43 = vsel %vm2399_vm10, %v2351_v42, %v1513_v16  ;;  %v3402_v33 = vcombine.high %v3400_v14, %v3400_v14  ;;  %v3416_v23 = vrot.slane %v3400_v14, %v19011_v56  ;;  %v3423_v41 = vrot.slane %v3401_v31, %v19011_v56 }
 0x19a   :  { %v20073_v38 = vpop.permute.xlu0 %1516  ;;  %v8904_v7 = vpop.f32.mrb[1].mxu0  ;;  %v2481_v61 = vsel %vm2464_vm11, %v2416_v43, %v1711_v11  ;;  %v8910_v28 = vadd.f32 %v18343_v50, %v20069_v44  ;;  %v3431_v18 = vcombine.high %v3409_v53, %v3409_v53  ;;  %v597_v16 = vrot.slane %v20028_v15, 2  ;;  %v20114_v11 = vld [vmem:[%s28513_s0 + $0x170] sm:$0xff]  ;;  %v20156_v43 = vld [vmem:[%s28513_s0 + $0x180] sm:$0xff] }
 0x19b   :  { %v1915_v22 = vpop.permute.xlu1 %1914  ;;  %v8905_v9 = vadd.f32 %v20069_v44, %v8904_v7  ;;  %v3430_v19 = vrot.slane %v3402_v33, %v19011_v56  ;;  %v3432_v52 = vcombine.high %v3416_v23, %v3416_v23  ;;  %v3433_v35 = vcombine.high %v3423_v41, %v3423_v41 }
 0x19c   :  { %1130 = vrot.lane.b32.xlu0 %v19874_v49, %s18669_s26  ;;  %v2546_v24 = vsel %vm2529_vm12, %v2481_v61, %v1915_v22  ;;  %v20095_v34 = vmax.f32 %v8910_v28, 0.0  ;;  %v6460_v45 = vcombine.low %v3423_v41, %v3431_v18  ;;  %v20120_v54 = vsel %vm525_vm0, %v596_v10, %v597_v16 }
 0x19d   :  { %1132 = vrot.lane.b32.xlu1 %v20077_v37, %s18669_s26  ;;  %v3434_v39 = vcombine.high %v2546_v24, %v2546_v24  ;;  %v3441_v62 = vrot.slane %v2546_v24, %v19011_v56  ;;  %v20107_v13 = vmax.f32 %v8905_v9, 0.0  ;;  %v6461_v20 = vcombine.low %v3433_v35, %v3416_v23 }
 0x19e   :  { %v20098_v49 = vpop.permute.xlu0 %341  ;;  %v9366_v26 = vcombine.high %v20095_v34, %v20095_v34  ;;  %v6462_v58 = vcombine.low %v3430_v19, %v3432_v52  ;;  %v20139_v1 = vrot.slane %v20114_v11, 1  ;;  %v20150_v42 = vsel %vm525_vm0, %v597_v16, %v599_v4 }
 0x19f   :  { %v20101_v48 = vpop.permute.xlu1 %724  ;;  %v3448_v17 = vrot.slane %v3434_v39, %v19011_v56  ;;  %v3449_v29 = vcombine.high %v3441_v62, %v3441_v62  ;;  %v601_v50 = vrot.slane %v20125_v46, 2  ;;  %v6476_v33 = vrot.slane %v6460_v45, %v19011_v56 }
 0x1a0   :  { %1528 = vrot.lane.b32.xlu0 %v20021_v32, %s18671_s30  ;;  %v6459_v32 = vcombine.low %v3385_v51, %v3409_v53  ;;  %v20128_v63 = vrot.slane %v9366_v26, %v19011_v56  ;;  %v20145_v53 = vrot.slane %v20107_v13, %v19011_v56  ;;  %v602_v23 = vrot.slane %v20114_v11, 2 }
 0x1a1   :  { %1928 = vrot.lane.b32.xlu1 %v20046_v0, %s18673_s17  ;;  %v3450_v14 = vcombine.high %v3448_v17, %v3448_v17  ;;  %v604_v41 = vrot.slane %v79_v2, 2  ;;  %v1074_v7 = vrot.slane %v20156_v43, 1  ;;  %v3457_v28 = vrot.slane %v3441_v62, %v19011_v56 }
 0x1a2   :  { %v20130_v59 = vpop.permute.xlu0 %1514  ;;  %v9382_v30 = vcombine.high %v20128_v63, %v20128_v63  ;;  %v6469_v22 = vrot.slane %v6459_v32, %v19011_v56  ;;  %v3471_v9 = vrot.slane %v3449_v29, %v19011_v56  ;;  %v6483_v24 = vrot.slane %v6461_v20, %v19011_v56 }
 0x1a3   :  { %v20136_v31 = vpop.permute.xlu1 %1714  ;;  %v6490_v10 = vrot.slane %v6462_v58, %v19011_v56  ;;  %v3464_v16 = vrot.slane %v3448_v17, %v19011_v56  ;;  %v3478_v8 = vrot.slane %v3450_v14, %v19011_v56  ;;  %v20184_v62 = vrot.slane %v20145_v53, %v19011_v56 }
 0x1a4   :  { %936 = vrot.lane.b32.xlu0 %v20028_v15, %s18668_s21  ;;  %v20165_v61 = vrot.slane %v9382_v30, %v19011_v56  ;;  %v6508_v52 = vcombine.low %v3457_v28, %v3471_v9  ;;  %v18109_v35 = vcombine.high %v3457_v28, %v3471_v9  ;;  %v6491_v51 = vcombine.low %v6469_v22, %v6476_v33  ;;  %v20214_v28 = vld [vmem:[%s28513_s0 + $0x1b0] sm:$0xff]  ;;  %v18601_v9 = vld [vmem:[%s28513_s0 + $0xd8] sm:$0xff] }
 0x1a5   :  { %1334 = vrot.lane.b32.xlu1 %v20046_v0, %s18670_s29  ;;  %v20174_v0 = vld [vmem:[%s28513_s0 + $0x188] sm:$0xff]  ;;  %v6510_v26 = vcombine.low %v3464_v16, %v3478_v8  ;;  %v18110_v4 = vcombine.high %v3464_v16, %v3478_v8  ;;  %v20204_v20 = vsel %vm204_vm1, %v250_v6, %v20139_v1  ;;  %v6492_v30 = vcombine.low %v6483_v24, %v6490_v10  ;;  %v20230_v10 = vld [vmem:[%s28513_s0 + $0x1b8] sm:$0xff] }
 0x1a6   :  { %28740 = vst [vmem:[#allocation3_spill] sm:$0xff] %v20165_v61  ;;  %v20169_v18 = vpop.permute.xlu0 %726  ;;  %v9414_v19 = vcombine.high %v20165_v61, %v20165_v61  ;;  %v20193_v45 = vrot.slane %v20174_v0, 1  ;;  %v6518_v32 = vrot.slane %v6508_v52, %v19011_v56  ;;  %v6525_v29 = vrot.slane %v18109_v35, %v19011_v56  ;;  %28742 = vst [vmem:[#allocation5_spill] sm:$0xff] %v20230_v10 }
 0x1a7   :  { %v20180_v39 = vpop.permute.xlu1 %920  ;;  %v6532_v58 = vrot.slane %v6510_v26, %v19011_v56  ;;  %v6539_v14 = vrot.slane %v18110_v4, %v19011_v56  ;;  %v20209_v22 = vsel %vm525_vm0, %v601_v50, %v602_v23  ;;  %v2093_v6 = vsel %vm2074_vm5, %v18601_v9, %v19847_v60  ;;  %v20276_v9 = vld [vmem:[%s28513_s0 + $0x1a0] sm:$0xff] }
 0x1a8   :  { %1336 = vrot.lane.b32.xlu0 %v20120_v54, %s18670_s29  ;;  %28741 = vst [vmem:[#allocation4_spill] sm:$0xff] %v20193_v45  ;;  %v20196_v17 = vmax.f32 %v20184_v62, %v9414_v19  ;;  %v6540_v16 = vcombine.low %v6518_v32, %v6525_v29  ;;  %v20224_v24 = vsel %vm525_vm0, %v602_v23, %v604_v41  ;;  %v1274_v50 = vrot.slane %v20156_v43, 2  ;;  %v18602_v23 = vld [vmem:[%s28513_s0 + $0xc8] sm:$0xff] }
 0x1a9   :  { %1726 = vrot.lane.b32.xlu1 %v20077_v37, %s18672_s10  ;;  %v6499_v8 = vrot.slane %v6491_v51, %v19011_v56  ;;  %v6506_v19 = vrot.slane %v6492_v30, %v19011_v56  ;;  %v6541_v60 = vcombine.low %v6532_v58, %v6539_v14  ;;  %v2092_v41 = vsel %vm2074_vm5, %v18602_v23, %v19899_v57 }
 0x1aa   :  { %v20200_v2 = vpop.permute.xlu0 %1712  ;;  %v2158_v52 = vsel %vm2139_vm6, %v2093_v6, %v19915_v21  ;;  %v1275_v51 = vrot.slane %v20174_v0, 2  ;;  %v253_v26 = vrot.slane %v20214_v28, 1  ;;  %v28524_v57 = vrot.slane %v20230_v10, 1  ;;  %v82_v21 = vld [vmem:[%s28513_s0 + $0x190] sm:$0x1] }
 0x1ab   :  { %v1919_v33 = vpop.permute.xlu1 %1918  ;;  %v2223_v4 = vsel %vm2204_vm7, %v2158_v52, %v19956_v40  ;;  %v6507_v32 = vcombine.low %v6499_v8, %v6506_v19  ;;  %v6548_v14 = vrot.slane %v6540_v16, %v19011_v56  ;;  %v6555_v30 = vrot.slane %v6541_v60, %v19011_v56  ;;  %v20292_v8 = vld [vmem:[%s28513_s0 + $0x1d0] sm:$0xff]  ;;  %v88_v52 = vld [vmem:[%s28513_s0 + $0x1c0] sm:$0x1] }
 0x1ac   :  { %357 = vrot.lane.b32.xlu0 %v20077_v37, %s18666_s19  ;;  %v20238_v37 = vsel %vm204_vm1, %v1074_v7, %v20193_v45  ;;  %v2157_v7 = vsel %vm2139_vm6, %v2092_v41, %v19952_v12  ;;  %v2288_v58 = vsel %vm2269_vm8, %v2223_v4, %v19982_v5  ;;  %v20270_v12 = vld [vmem:[%s28513_s0 + $0x198] sm:$0xff]  ;;  %v606_v40 = vrot.slane %v20214_v28, 2  ;;  %v20287_v28 = vld [vmem:[%s28513_s0 + $0x1c8] sm:$0xff]  ;;  %28744 = vst [vmem:[#allocation7_spill] sm:$0xff] %v20292_v8 }
 0x1ad   :  { %1134 = vrot.lane.b32.xlu1 %v20050_v36, %s18669_s26  ;;  %28743 = vst [vmem:[#allocation6_spill] sm:$0xff] %v20270_v12  ;;  %v2353_v5 = vsel %vm2334_vm9, %v2288_v58, %v20004_v47  ;;  %18362 = vmatprep.mubr.msk.f32.mxu0 %vm8713_vm13, %v6507_v32  ;;  %v1672_v6 = vrot.slane %v20270_v12, 1  ;;  %v607_v16 = vrot.slane %v20230_v10, 2  ;;  %v2222_v47 = vsel %vm2204_vm7, %v2157_v7, %v19978_v25 }
 0x1ae   :  { %v20247_v35 = vpop.permute.xlu0 %343  ;;  %v2418_v19 = vsel %vm2399_vm10, %v2353_v5, %v20073_v38  ;;  %v6556_v60 = vcombine.low %v6548_v14, %v6555_v30  ;;  %v1277_v41 = vrot.slane %v82_v21, 2  ;;  %v2287_v4 = vsel %vm2269_vm8, %v2222_v47, %v20000_v55 }
 0x1af   :  { %v20255_v29 = vpop.permute.xlu1 %345  ;;  %v9317_v25 = vcombine.high %v20107_v13, %v20107_v13  ;;  %v2483_v38 = vsel %vm2464_vm11, %v2418_v19, %v20136_v31  ;;  %v28523_v32 = vrot.slane %v20276_v9, 1  ;;  %v2352_v21 = vsel %vm2334_vm9, %v2287_v4, %v20055_v27 }
 0x1b0   :  { %1530 = vrot.lane.b32.xlu0 %v20028_v15, %s18671_s30  ;;  %v1872_v15 = vrot.slane %v20270_v12, 2  ;;  %v2548_v58 = vsel %vm2529_vm12, %v2483_v38, %v1919_v33  ;;  %18363 = vmatmul.mubr.msk.f32.gmra.mrb[14].mxu0 %vm8713_vm13, %v6556_v60  ;;  %v256_v55 = vrot.slane %v20287_v28, 1  ;;  %v20322_v13 = vrot.slane %v20292_v8, 1 }
 0x1b1   :  { %1532 = vrot.lane.b32.xlu1 %v20125_v46, %s18671_s30  ;;  %v9373_v31 = vrot.slane %v20095_v34, %v19011_v56  ;;  %v2417_v14 = vsel %vm2399_vm10, %v2352_v21, %v20130_v59  ;;  %v609_v30 = vrot.slane %v88_v52, 2  ;;  %v28525_v27 = vrot.slane %v20276_v9, 2 }
 0x1b2   :  { %v20300_v23 = vpop.permute.xlu0 %922  ;;  %28745 = vst [vmem:[#allocation8_spill] sm:$0xff] %v20322_v13  ;;  %v2482_v33 = vsel %vm2464_vm11, %v2417_v14, %v20200_v2  ;;  %v20334_v47 = vsel %vm525_vm0, %v1274_v50, %v1275_v51  ;;  %v20339_v34 = vsel %vm204_vm1, %v253_v26, %v28524_v57  ;;  %v20342_v59 = vsel %vm525_vm0, %v606_v40, %v607_v16 }
 0x1b3   :  { %v20311_v7 = vpop.permute.xlu1 %1118  ;;  %28746 = vst [vmem:[#allocation9_spill] sm:$0xff] %v20334_v47  ;;  %28747 = vst [vmem:[#allocation10_spill] sm:$0xff] %v20339_v34  ;;  %v9331_v19 = vrot.slane %v9317_v25, %v19011_v56  ;;  %v3538_v60 = vrot.slane %v2548_v58, %v19011_v56  ;;  %v20350_v4 = vsel %vm525_vm0, %v1275_v51, %v1277_v41  ;;  %v18603_v51 = vld [vmem:[%s28513_s0 + $0xe0] sm:$0xff] }
 0x1b4   :  { %1930 = vrot.lane.b32.xlu0 %v20120_v54, %s18673_s17  ;;  %28748 = vst [vmem:[#allocation11_spill] sm:$0xff] %v20342_v59  ;;  %28749 = vst [vmem:[#allocation12_spill] sm:$0xff] %v20350_v4  ;;  %v20358_v26 = vsel %vm204_vm1, %v1672_v6, %v28523_v32  ;;  %v20362_v40 = vsel %vm204_vm1, %v256_v55, %v20322_v13  ;;  %v2094_v41 = vsel %vm2074_vm5, %v18603_v51, %v20041_v3  ;;  %v18604_v55 = vld [vmem:[%s28513_s0 + $0xf0] sm:$0xff] }
 0x1b5   :  { %359 = vrot.lane.b32.xlu1 %v20050_v36, %s18666_s19  ;;  %28750 = vst [vmem:[#allocation13_spill] sm:$0xff] %v20358_v26  ;;  %28751 = vst [vmem:[#allocation14_spill] sm:$0xff] %v20362_v40  ;;  %v9381_v25 = vcombine.high %v9373_v31, %v9373_v31  ;;  %v20370_v21 = vsel %vm525_vm0, %v607_v16, %v609_v30  ;;  %v20378_v6 = vrot.slane %v9373_v31, %v19011_v56 }
 0x1b6   :  { %v1917_v5 = vpop.permute.xlu0 %1916  ;;  %28752 = vst [vmem:[#allocation15_spill] sm:$0xff] %v20370_v21  ;;  %v2095_v14 = vsel %vm2074_vm5, %v18604_v55, %v20098_v49  ;;  %v9333_v31 = vcombine.high %v9331_v19, %v9331_v19  ;;  %v3531_v30 = vcombine.high %v2548_v58, %v2548_v58  ;;  %v20401_v55 = vrot.slane %v20128_v63, %v19011_v56 }
 0x1b7   :  { %v2547_v2 = vsel %vm2529_vm12, %v2482_v33, %v1917_v5  ;;  %v20347_v52 = vpop.permute.xlu1 %728  ;;  %v3546_v5 = vcombine.high %v3538_v60, %v3538_v60  ;;  %v20407_v58 = vrot.slane %v9331_v19, %v19011_v56  ;;  %v20410_v57 = vrot.slane %v3538_v60, %v19011_v56 }
 0x1b8   :  { %v3483_v50 = vcombine.high %v2547_v2, %v2547_v2  ;;  %v3490_v38 = vrot.slane %v2547_v2, %v19011_v56  ;;  %742 = vrot.lane.b32.xlu0 %v20120_v54, %s18667_s20  ;;  %v20375_v54 = vsel %vm525_vm0, %v1872_v15, %v28525_v27  ;;  %v9332_v15 = vcombine.high %v20145_v53, %v20145_v53 }
 0x1b9   :  { %28753 = vst [vmem:[#allocation16_spill] sm:$0xff] %v20375_v54  ;;  %1338 = vrot.lane.b32.xlu1 %v20150_v42, %s18670_s29  ;;  %v20404_v53 = vrot.slane %v9381_v25, %v19011_v56  ;;  %v20421_v25 = vrot.slane %v9333_v31, %v19011_v56  ;;  %v3545_v19 = vrot.slane %v3531_v30, %v19011_v56 }
 0x1ba   :  { %v3497_v3 = vrot.slane %v3483_v50, %v19011_v56  ;;  %v3498_v33 = vcombine.high %v3490_v38, %v3490_v38  ;;  %v20388_v16 = vpop.permute.xlu0 %730  ;;  %v3506_v32 = vrot.slane %v3490_v38, %v19011_v56  ;;  %v20418_v63 = vrot.slane %v9332_v15, %v19011_v56 }
 0x1bb   :  { %v20392_v2 = vpop.permute.xlu1 %1120  ;;  %28754 = vst [vmem:[#allocation17_spill] sm:$0xff] %v20404_v53  ;;  %v3568_v60 = vrot.slane %v3546_v5, %v19011_v56  ;;  %v2159_v5 = vsel %vm2139_vm6, %v2094_v41, %v20101_v48  ;;  %v20468_v48 = vrot.slane %v3545_v19, %v19011_v56  ;;  %v3576_v15 = vcombine.high %v20410_v57, %v20410_v57 }
 0x1bc   :  { %v3499_v51 = vcombine.high %v3497_v3, %v3497_v3  ;;  %v3513_v49 = vrot.slane %v3497_v3, %v19011_v56  ;;  %v3520_v50 = vrot.slane %v3498_v33, %v19011_v56  ;;  %1728 = vrot.lane.b32.xlu0 %v20050_v36, %s18672_s10  ;;  %v20465_v30 = vsel %vm2204_vm7, %v2159_v5, %v20180_v39 }
 0x1bd   :  { %1730 = vrot.lane.b32.xlu1 %v20204_v20, %s18672_s10  ;;  %v3578_v41 = vcombine.high %v3568_v60, %v3568_v60  ;;  %v28759_v4 = vcombine.high %v20378_v6, %v20378_v6 }
 0x1be   :  { %v3527_v38 = vrot.slane %v3499_v51, %v19011_v56  ;;  %v3529_v3 = vcombine.high %v3513_v49, %v3513_v49  ;;  %v6557_v33 = vcombine.low %v3506_v32, %v3520_v50  ;;  %v18111_v27 = vcombine.high %v3506_v32, %v3520_v50  ;;  %v20415_v36 = vpop.permute.xlu0 %1322 }
 0x1bf   :  { %v20425_v13 = vpop.permute.xlu1 %924 }
 0x1c0   :  { %v6559_v51 = vcombine.low %v3513_v49, %v3527_v38  ;;  %v6560_v32 = vcombine.low %v3529_v3, %v20410_v57  ;;  %v6567_v50 = vrot.slane %v6557_v33, %v19011_v56  ;;  %v6574_v54 = vrot.slane %v18111_v27, %v19011_v56  ;;  %744 = vrot.lane.b32.xlu0 %v20150_v42, %s18667_s20  ;;  %v18605_v57 = vld [vmem:[%s28513_s0 + $0xf8] sm:$0xff] }
 0x1c1   :  { %938 = vrot.lane.b32.xlu1 %v20125_v46, %s18668_s21  ;;  %v3547_v46 = vcombine.high %v3545_v19, %v3545_v19  ;;  %v20481_v19 = vcombine.low %v3578_v41, %v20468_v48  ;;  %v20488_v5 = vsel %vm2074_vm5, %v18605_v57, %v20247_v35  ;;  %v20506_v57 = vcombine.low %v3568_v60, %v3576_v15 }
 0x1c2   :  { %v6581_v27 = vrot.slane %v6559_v51, %v19011_v56  ;;  %v6588_v38 = vrot.slane %v6560_v32, %v19011_v56  ;;  %v6589_v3 = vcombine.low %v6567_v50, %v6574_v54  ;;  %v20446_v33 = vpop.permute.xlu0 %926  ;;  %v20458_v54 = vsel %vm2139_vm6, %v2095_v14, %v20169_v18 }
 0x1c3   :  { %v20454_v49 = vpop.permute.xlu1 %1324  ;;  %v18346_v51 = vpop.f32.mrb[2].mxu0  ;;  %v20499_v41 = vrot.slane %v3547_v46, %v19011_v56  ;;  %v6623_v60 = vrot.slane %v20481_v19, %v19011_v56 }
 0x1c4   :  { %v8920_v32 = vadd.f32 %v18346_v51, %v20069_v44  ;;  %v8914_v50 = vpop.f32.mrb[3].mxu0  ;;  %1534 = vrot.lane.b32.xlu0 %v20114_v11, %s18671_s30  ;;  %v6590_v31 = vcombine.low %v6581_v27, %v6588_v38  ;;  %v6597_v27 = vrot.slane %v6589_v3, %v19011_v56 }
 0x1c5   :  { %v8915_v18 = vadd.f32 %v20069_v44, %v8914_v50  ;;  %1932 = vrot.lane.b32.xlu1 %v20150_v42, %s18673_s17 }
 0x1c6   :  { %v9204_v14 = vmax.f32 %v8920_v32, 0.0  ;;  %v20475_v51 = vpop.permute.xlu0 %1518  ;;  %v6604_v38 = vrot.slane %v6590_v31, %v19011_v56  ;;  %v20496_v31 = vld [vmem:[%s28513_s0 + $0x1a8] sm:$0x1] }
 0x1c7   :  { %v9203_v42 = vmax.f32 %v8915_v18, 0.0  ;;  %v20490_v32 = vpop.permute.xlu1 %1122 }
 0x1c8   :  { %v9464_v50 = vcombine.high %v9204_v14, %v9204_v14  ;;  %v9471_v39 = vrot.slane %v9204_v14, %v19011_v56  ;;  %1934 = vrot.lane.b32.xlu0 %v20209_v22, %s18673_s17  ;;  %v6605_v35 = vcombine.low %v6597_v27, %v6604_v38 }
 0x1c9   :  { %v9415_v3 = vcombine.high %v9203_v42, %v9203_v42  ;;  %v9422_v21 = vrot.slane %v9203_v42, %v19011_v56  ;;  %361 = vrot.lane.b32.xlu1 %v20204_v20, %s18666_s19 }
 0x1ca   :  { %v9478_v40 = vrot.slane %v9464_v50, %v19011_v56  ;;  %v9479_v26 = vcombine.high %v9471_v39, %v9471_v39  ;;  %v20511_v46 = vrot.slane %v9471_v39, %v19011_v56  ;;  %18365 = vmatprep.mubr.msk.f32.mxu0 %vm8713_vm13, %v6605_v35  ;;  %v20516_v14 = vpop.permute.xlu0 %1124 }
 0x1cb   :  { %v9429_v15 = vrot.slane %v9415_v3, %v19011_v56  ;;  %v9430_v38 = vcombine.high %v9422_v21, %v9422_v21  ;;  %v9438_v42 = vrot.slane %v9422_v21, %v19011_v56  ;;  %v20523_v50 = vpop.permute.xlu1 %1520 }
 0x1cc   :  { %28755 = vst [vmem:[#allocation18_spill] sm:$0xff] %v20511_v46  ;;  %v9480_v39 = vcombine.high %v9478_v40, %v9478_v40  ;;  %v20526_v18 = vrot.slane %v9478_v40, %v19011_v56  ;;  %v9501_v35 = vrot.slane %v9479_v26, %v19011_v56  ;;  %v9509_v59 = vcombine.high %v20511_v46, %v20511_v46 }
 0x1cd   :  { %940 = vrot.lane.b32.xlu0 %v20114_v11, %s18668_s21  ;;  %v9431_v3 = vcombine.high %v9429_v15, %v9429_v15  ;;  %v20536_v21 = vrot.slane %v9429_v15, %v19011_v56  ;;  %v9452_v27 = vrot.slane %v9430_v38, %v19011_v56  ;;  %1136 = vrot.lane.b32.xlu1 %v20204_v20, %s18669_s26 }
 0x1ce   :  { %28756 = vst [vmem:[#allocation19_spill] sm:$0xff] %v20526_v18  ;;  %v9508_v40 = vrot.slane %v9480_v39, %v19011_v56  ;;  %v20542_v26 = vcombine.high %v20526_v18, %v20526_v18  ;;  %v9511_v10 = vcombine.high %v9501_v35, %v9501_v35  ;;  %v20547_v11 = vmax.f32 %v28759_v4, %v9501_v35  ;;  %v1717_v19 = vpop.permute.xlu0 %1716 }
 0x1cf   :  { %28757 = vst [vmem:[#allocation20_spill] sm:$0xff] %v20536_v21  ;;  %v28760_v15 = vcombine.high %v20404_v53, %v20404_v53  ;;  %v9459_v46 = vrot.slane %v9431_v3, %v19011_v56  ;;  %v9460_v12 = vcombine.high %v9438_v42, %v9438_v42  ;;  %v20559_v34 = vpop.permute.xlu1 %347  ;;  %v28761_v20 = vcombine.high %v20401_v55, %v20401_v55 }
 0x1d0   :  { %28758 = vst [vmem:[#allocation21_spill] sm:$0xff] %v20542_v26  ;;  %v20562_v4 = vmax.f32 %v20401_v55, %v9511_v10  ;;  %v9462_v3 = vcombine.high %v9452_v27, %v9452_v27  ;;  %v20575_v53 = vcombine.high %v9508_v40, %v9508_v40  ;;  %v12540_v10 = vmax.f32 %v20418_v63, %v9438_v42  ;;  %v20581_v55 = vld [vmem:[%s28513_s0 + $0x1e8] sm:$0xff] }
 0x1d1   :  { %v20554_v38 = vmax.f32 %v28760_v15, %v9509_v59  ;;  %v20567_v35 = vmax.f32 %v28761_v20, %v9508_v40  ;;  %v12749_v59 = vmax.f32 %v20196_v17, %v20542_v26  ;;  %v9461_v15 = vcombine.high %v20536_v21, %v20536_v21  ;;  %1732 = vrot.lane.b32.xlu0 %v20139_v1, %s18672_s10 }
 0x1d2   :  { %v9463_v39 = vcombine.high %v9459_v46, %v9459_v46  ;;  %v28762_v17 = vcombine.high %v20184_v62, %v20184_v62  ;;  %v28763_v18 = vcombine.high %v20418_v63, %v20418_v63  ;;  %v28764_v42 = vcombine.high %v20407_v58, %v20407_v58  ;;  %746 = vrot.lane.b32.xlu1 %v20209_v22, %s18667_s20  ;;  %v20602_v47 = vpop.permute.xlu0 %1326 }
 0x1d3   :  { %v20605_v62 = vmax.f32 %v20407_v58, %v9462_v3  ;;  %v6616_v58 = vrot.slane %v20506_v57, %v19011_v56  ;;  %v28768_v3 = vcombine.high %v20468_v48, %v20468_v48  ;;  %v18606_v57 = vld [vmem:[%s28513_s0 + $0x108] sm:$0xff]  ;;  %v91_v48 = vld [vmem:[%s28513_s0 + $0x1d8] sm:$0x1]  ;;  %v28769_v21 = vrot.slane %v20292_v8, 2 }
 0x1d4   :  { %v20586_v20 = vmax.f32 %v28762_v17, %v9452_v27  ;;  %v20591_v61 = vmax.f32 %v28763_v18, %v9460_v12  ;;  %v20598_v45 = vmax.f32 %v28764_v42, %v9459_v46  ;;  %v28765_v12 = vcombine.high %v20421_v25, %v20421_v25  ;;  %v20618_v46 = vpop.permute.xlu1 %1328  ;;  %v20623_v17 = vld [vmem:[%s28513_s0 + $0x1e0] sm:$0xff] }
 0x1d5   :  { %v20613_v18 = vmax.f32 %v20378_v6, %v9463_v39  ;;  %v20616_v27 = vmax.f32 %v12540_v10, %v20575_v53  ;;  %28766 = vst [vmem:[#allocation22_spill] sm:$0xff] %v20623_v17  ;;  %1138 = vrot.lane.b32.xlu0 %v20139_v1, %s18669_s26  ;;  %v259_v6 = vrot.slane %v20623_v17, 1  ;;  %v20634_v39 = vrot.slane %v20581_v55, 1 }
 0x1d6   :  { %v20610_v63 = vmax.f32 %v28765_v12, %v9461_v15  ;;  %v2289_v15 = vsel %vm2269_vm8, %v20465_v30, %v20311_v7  ;;  %v20640_v10 = vcombine.low %v20499_v41, %v28768_v3  ;;  %v2097_v7 = vsel %vm2074_vm5, %v18606_v57, %v20255_v29  ;;  %1340 = vrot.lane.b32.xlu1 %v20209_v22, %s18670_s29  ;;  %v1719_v3 = vpop.permute.xlu0 %1718 }
 0x1d7   :  { %28767 = vst [vmem:[#allocation23_spill] sm:$0xff] %v20634_v39  ;;  %v2354_v30 = vsel %vm2334_vm9, %v2289_v15, %v20415_v36  ;;  %v20650_v42 = vmax.f32 %v12749_v59, %v20616_v27  ;;  %v20659_v40 = vcombine.low %v6616_v58, %v6623_v60  ;;  %v616_v29 = vrot.slane %v20623_v17, 2 }
 0x1d8   :  { %v2419_v12 = vsel %vm2399_vm10, %v2354_v30, %v20475_v51  ;;  %v2225_v59 = vsel %vm2204_vm7, %v20458_v54, %v20300_v23  ;;  %v1921_v57 = vpop.permute.xlu1 %1920  ;;  %v28770_v51 = vrot.slane %v20287_v28, 2  ;;  %v28771_v60 = vrot.slane %v20496_v31, 2 }
 0x1d9   :  { %v2484_v15 = vsel %vm2464_vm11, %v2419_v12, %v1717_v19  ;;  %v28772_v58 = vrot.slane %v20276_v9, 2  ;;  %v3579_v23 = vcombine.high %v20499_v41, %v20499_v41  ;;  %1936 = vrot.lane.b32.xlu0 %v20224_v24, %s18673_s17  ;;  %v20688_v54 = vsel %vm204_vm1, %v259_v6, %v20634_v39 }
 0x1da   :  { %v20672_v22 = vsel %vm525_vm0, %v28770_v51, %v28769_v21  ;;  %v2549_v36 = vsel %vm2529_vm12, %v2484_v15, %v1921_v57  ;;  %28774 = vst [vmem:[#allocation25_spill] sm:$0xff] %v20688_v54  ;;  %v614_v19 = vrot.slane %v91_v48, 2  ;;  %v2161_v31 = vsel %vm2139_vm6, %v20488_v5, %v20347_v52  ;;  %363 = vrot.lane.b32.xlu1 %v20139_v1, %s18666_s19  ;;  %v20702_v6 = vpop.permute.xlu0 %732 }
 0x1db   :  { %v20679_v30 = vsel %vm525_vm0, %v28772_v58, %v28771_v60  ;;  %v3580_v21 = vcombine.high %v2549_v36, %v2549_v36  ;;  %v3587_v12 = vrot.slane %v2549_v36, %v19011_v56  ;;  %v2162_v41 = vsel %vm2139_vm6, %v2097_v7, %v20388_v16  ;;  %v20714_v16 = vld [vmem:[%s28513_s0 + $0x200] sm:$0xff] }
 0x1dc   :  { %28773 = vst [vmem:[#allocation24_spill] sm:$0xff] %v20679_v30  ;;  %v2290_v57 = vsel %vm2269_vm8, %v2225_v59, %v20392_v2  ;;  %v28775_v5 = vrot.slane %v20581_v55, 2  ;;  %28777 = vst [vmem:[#allocation27_spill] sm:$0xff] %v20714_v16  ;;  %v2226_v2 = vsel %vm2204_vm7, %v2161_v31, %v20425_v13  ;;  %v20722_v59 = vpop.permute.xlu1 %1522  ;;  %v2227_v51 = vsel %vm2204_vm7, %v2162_v41, %v20446_v33  ;;  %v18349_v13 = vpop.f32.mrb[4].mxu0 }
 0x1dd   :  { %v3594_v1 = vrot.slane %v3580_v21, %v19011_v56  ;;  %v3595_v7 = vcombine.high %v3587_v12, %v3587_v12  ;;  %v20720_v36 = vrot.slane %v3587_v12, %v19011_v56  ;;  %v2355_v60 = vsel %vm2334_vm9, %v2290_v57, %v20454_v49  ;;  %942 = vrot.lane.b32.xlu0 %v20156_v43, %s18668_s21  ;;  %v8924_v41 = vpop.f32.mrb[5].mxu0 }
 0x1de   :  { %v20709_v48 = vsel %vm525_vm0, %v616_v29, %v28775_v5  ;;  %v20727_v29 = vld [vmem:[%s28513_s0 + $0x1f8] sm:$0xff]  ;;  %v28778_v58 = vrot.slane %v20292_v8, 2  ;;  %v20748_v49 = vrot.slane %v20714_v16, 1  ;;  %v2291_v57 = vsel %vm2269_vm8, %v2226_v2, %v20490_v32  ;;  %1342 = vrot.lane.b32.xlu1 %v20224_v24, %s18670_s29  ;;  %v18607_v32 = vld [vmem:[%s28513_s0 + $0x110] sm:$0xff] }
 0x1df   :  { %28776 = vst [vmem:[#allocation26_spill] sm:$0xff] %v20709_v48  ;;  %v3596_v12 = vcombine.high %v3594_v1, %v3594_v1  ;;  %v20742_v5 = vrot.slane %v3594_v1, %v19011_v56  ;;  %v20745_v33 = vrot.slane %v3595_v7, %v19011_v56  ;;  %v20753_v52 = vcombine.low %v3579_v23, %v20720_v36 }
 0x1e0   :  { %v20738_v31 = vsel %vm525_vm0, %v28778_v58, %v614_v19  ;;  %28780 = vst [vmem:[#allocation29_spill] sm:$0xff] %v20748_v49  ;;  %v8930_v19 = vadd.f32 %v18349_v13, %v20069_v44  ;;  %v8925_v1 = vadd.f32 %v20069_v44, %v8924_v41  ;;  %v20759_v58 = vpop.permute.xlu0 %1524  ;;  %v20763_v7 = vsel %vm2269_vm8, %v2227_v51, %v20516_v14  ;;  %v1923_v2 = vpop.permute.xlu1 %1922 }
 0x1e1   :  { %28779 = vst [vmem:[#allocation28_spill] sm:$0xff] %v20738_v31  ;;  %v2420_v21 = vsel %vm2399_vm10, %v2355_v60, %v20523_v50  ;;  %v20772_v23 = vsel %vm2074_vm5, %v18607_v32, %v20559_v34  ;;  %v3627_v44 = vcombine.high %v20745_v33, %v20745_v33  ;;  %v20778_v13 = vsel %vm2334_vm9, %v2291_v57, %v20602_v47 }
 0x1e2   :  { %v2485_v14 = vsel %vm2464_vm11, %v2420_v21, %v1719_v3  ;;  %v9206_v51 = vmax.f32 %v8930_v19, 0.0  ;;  %v9205_v50 = vmax.f32 %v8925_v1, 0.0  ;;  %1536 = vrot.lane.b32.xlu0 %v20156_v43, %s18671_s30  ;;  %v20784_v60 = vrot.slane %v3596_v12, %v19011_v56  ;;  %748 = vrot.lane.b32.xlu1 %v20224_v24, %s18667_s20 }
 0x1e3   :  { %v3626_v41 = vcombine.high %v20742_v5, %v20742_v5  ;;  %v2550_v32 = vsel %vm2529_vm12, %v2485_v14, %v1923_v2  ;;  %v20799_v12 = vcombine.low %v3627_v44, %v20742_v5 }
 0x1e4   :  { %v9562_v3 = vcombine.high %v9206_v51, %v9206_v51  ;;  %v9569_v21 = vrot.slane %v9206_v51, %v19011_v56  ;;  %v9513_v57 = vcombine.high %v9205_v50, %v9205_v50  ;;  %v20796_v43 = vpop.permute.xlu0 %349  ;;  %v9520_v19 = vrot.slane %v9205_v50, %v19011_v56  ;;  %v20805_v14 = vpop.permute.xlu1 %928 }
 0x1e5   :  { %v3628_v1 = vcombine.high %v2550_v32, %v2550_v32  ;;  %v20803_v2 = vrot.slane %v2550_v32, %v19011_v56 }
 0x1e6   :  { %v9576_v34 = vrot.slane %v9562_v3, %v19011_v56  ;;  %v9577_v51 = vcombine.high %v9569_v21, %v9569_v21  ;;  %v20809_v15 = vrot.slane %v9569_v21, %v19011_v56  ;;  %v9527_v24 = vrot.slane %v9513_v57, %v19011_v56  ;;  %1140 = vrot.lane.b32.xlu0 %v20238_v37, %s18669_s26 }
 0x1e7   :  { %v9528_v5 = vcombine.high %v9520_v19, %v9520_v19  ;;  %v9536_v44 = vrot.slane %v9520_v19, %v19011_v56  ;;  %v20816_v50 = vrot.slane %v3628_v1, %v19011_v56  ;;  %v3643_v32 = vcombine.high %v20803_v2, %v20803_v2  ;;  %1538 = vrot.lane.b32.xlu1 %v20174_v0, %s18671_s30 }
 0x1e8   :  { %28781 = vst [vmem:[#allocation30_spill] sm:$0xff] %v20809_v15  ;;  %v9578_v47 = vcombine.high %v9576_v34, %v9576_v34  ;;  %v20821_v3 = vrot.slane %v9576_v34, %v19011_v56  ;;  %v20824_v21 = vrot.slane %v9577_v51, %v19011_v56  ;;  %v20828_v57 = vcombine.high %v20809_v15, %v20809_v15  ;;  %v20832_v19 = vpop.permute.xlu0 %1720  ;;  %v20844_v48 = vpop.permute.xlu1 %1722 }
 0x1e9   :  { %v20836_v1 = vmax.f32 %v20547_v11, %v20809_v15  ;;  %v9529_v39 = vcombine.high %v9527_v24, %v9527_v24  ;;  %v20839_v34 = vrot.slane %v9527_v24, %v19011_v56  ;;  %v20842_v51 = vrot.slane %v9528_v5, %v19011_v56 }
 0x1ea   :  { %28782 = vst [vmem:[#allocation31_spill] sm:$0xff] %v20824_v21  ;;  %28783 = vst [vmem:[#allocation32_spill] sm:$0xff] %v20828_v57  ;;  %v20847_v16 = vrot.slane %v9578_v47, %v19011_v56  ;;  %v9608_v31 = vcombine.high %v20821_v3, %v20821_v3  ;;  %v20853_v54 = vmax.f32 %v20554_v38, %v20824_v21  ;;  %1734 = vrot.lane.b32.xlu0 %v20238_v37, %s18672_s10 }
 0x1eb   :  { %28784 = vst [vmem:[#allocation33_spill] sm:$0xff] %v20839_v34  ;;  %v20857_v11 = vmax.f32 %v20562_v4, %v20828_v57  ;;  %v20864_v47 = vrot.slane %v9529_v39, %v19011_v56  ;;  %v20866_v5 = vcombine.high %v9536_v44, %v9536_v44  ;;  %v20870_v15 = vcombine.high %v20839_v34, %v20839_v34 }
 0x1ec   :  { %28785 = vst [vmem:[#allocation34_spill] sm:$0xff] %v20847_v16  ;;  %v9610_v38 = vcombine.high %v20847_v16, %v20847_v16  ;;  %v20877_v37 = vmax.f32 %v20575_v53, %v9608_v31  ;;  %v12969_v24 = vmax.f32 %v20836_v1, %v20853_v54  ;;  %944 = vrot.lane.b32.xlu1 %v20174_v0, %s18668_s21  ;;  %v20883_v39 = vpop.permute.xlu0 %734  ;;  %v20896_v31 = vpop.permute.xlu1 %1126 }
 0x1ed   :  { %28786 = vst [vmem:[#allocation35_spill] sm:$0xff] %v20866_v5  ;;  %28787 = vst [vmem:[#allocation36_spill] sm:$0xff] %v20870_v15  ;;  %v12751_v57 = vmax.f32 %v20586_v20, %v9536_v44  ;;  %v20890_v17 = vmax.f32 %v20591_v61, %v20842_v51  ;;  %v20894_v53 = vmax.f32 %v20605_v62, %v20866_v5  ;;  %v28790_v61 = vld [vmem:[#allocation9_spill] sm:$0xff] }
 0x1ee   :  { %28788 = vst [vmem:[#allocation37_spill] sm:$0xff] %v20877_v37  ;;  %v20899_v4 = vmax.f32 %v12969_v24, %v20857_v11  ;;  %v20901_v0 = vmax.f32 %v9536_v44, %v9610_v38  ;;  %v20905_v30 = vmax.f32 %v20598_v45, %v20839_v34  ;;  %v20909_v20 = vmax.f32 %v20610_v63, %v20864_v47 }
 0x1ef   :  { %1344 = vrot.lane.b32.xlu0 %v28790_v61, %s18670_s29  ;;  %v20915_v62 = vmax.f32 %v20613_v18, %v20870_v15  ;;  %v12960_v24 = vmax.f32 %v20616_v27, %v12751_v57  ;;  %v12961_v44 = vmax.f32 %v12751_v57, %v20890_v17  ;;  %v6657_v45 = vcombine.low %v20784_v60, %v3626_v41  ;;  %v28791_v18 = vld [vmem:[#allocation4_spill] sm:$0xff]  ;;  %v20932_v27 = vld [vmem:[%s28513_s0 + $0x1f0] sm:$0x1] }
 0x1f0   :  { %28789 = vst [vmem:[#allocation38_spill] sm:$0xff] %v20901_v0  ;;  %v12965_v63 = vmax.f32 %v20905_v30, %v20909_v20  ;;  %v13141_v34 = vmax.f32 %v20650_v42, %v12751_v57  ;;  %v3644_v5 = vcombine.high %v20816_v50, %v20816_v50  ;;  %1736 = vrot.lane.b32.xlu1 %v28791_v18, %s18672_s10  ;;  %v1925_v15 = vpop.permute.xlu0 %1924  ;;  %v1927_v37 = vpop.permute.xlu1 %1926 }
 0x1f1   :  { %v28792_v60 = vrot.slane %v20753_v52, %v19011_v56  ;;  %v28793_v41 = vrot.slane %v20640_v10, %v19011_v56  ;;  %v13142_v57 = vmax.f32 %v12960_v24, %v20890_v17  ;;  %v20944_v0 = vmax.f32 %v12961_v44, %v20894_v53 }
 0x1f2   :  { %v20947_v16 = vmax.f32 %v12965_v63, %v20915_v62  ;;  %v3651_v26 = vrot.slane %v20803_v2, %v19011_v56  ;;  %v3665_v52 = vrot.slane %v3643_v32, %v19011_v56  ;;  %v20953_v10 = vrot.slane %v3644_v5, %v19011_v56 }
 0x1f3   :  { %v6639_v38 = vcombine.low %v28793_v41, %v28792_v60  ;;  %1938 = vrot.lane.b32.xlu0 %v28790_v61, %s18673_s17  ;;  %v2357_v24 = vsel %vm2334_vm9, %v20763_v7, %v20618_v46  ;;  %v2421_v44 = vsel %vm2399_vm10, %v20778_v13, %v20722_v59  ;;  %v20963_v63 = vcombine.low %v13141_v34, %v13142_v57  ;;  %v28795_v7 = vld [vmem:[#allocation10_spill] sm:$0xff] }
 0x1f4   :  { %v28794_v32 = vcombine.high %v20720_v36, %v20720_v36  ;;  %v2422_v61 = vsel %vm2399_vm10, %v2357_v24, %v20759_v58  ;;  %v3658_v60 = vrot.slane %v20816_v50, %v19011_v56  ;;  %v6658_v46 = vcombine.low %v3651_v26, %v3665_v52  ;;  %365 = vrot.lane.b32.xlu1 %v28795_v7, %s18666_s19  ;;  %v20976_v59 = vpop.permute.xlu0 %351  ;;  %v20982_v41 = vpop.permute.xlu1 %353 }
 0x1f5   :  { %v6672_v13 = vrot.slane %v20799_v12, %v19011_v56  ;;  %v6679_v34 = vrot.slane %v6657_v45, %v19011_v56  ;;  %v18112_v36 = vcombine.high %v3651_v26, %v3665_v52  ;;  %v2486_v57 = vsel %vm2464_vm11, %v2421_v44, %v20832_v19 }
 0x1f6   :  { %v6655_v5 = vcombine.low %v20745_v33, %v28794_v32  ;;  %v6653_v33 = vrot.slane %v6639_v38, %v19011_v56  ;;  %v6686_v58 = vrot.slane %v6658_v46, %v19011_v56  ;;  %v6705_v50 = vcombine.low %v3658_v60, %v20953_v10 }
 0x1f7   :  { %v2487_v24 = vsel %vm2464_vm11, %v2422_v61, %v20844_v48  ;;  %1142 = vrot.lane.b32.xlu0 %v28791_v18, %s18669_s26  ;;  %v20995_v26 = vsel %vm2139_vm6, %v20772_v23, %v20702_v6  ;;  %v28796_v12 = vrot.slane %v20659_v40, %v19011_v56  ;;  %v2551_v45 = vsel %vm2529_vm12, %v2486_v57, %v1925_v15  ;;  %v28797_v18 = vld [vmem:[#allocation6_spill] sm:$0xff] }
 0x1f8   :  { %v2552_v52 = vsel %vm2529_vm12, %v2487_v24, %v1927_v37  ;;  %v6665_v19 = vrot.slane %v6655_v5, %v19011_v56  ;;  %v6688_v44 = vcombine.low %v6679_v34, %v6686_v58  ;;  %v3677_v48 = vcombine.high %v2551_v45, %v2551_v45  ;;  %1540 = vrot.lane.b32.xlu1 %v28797_v18, %s18671_s30  ;;  %v21006_v61 = vpop.permute.xlu0 %930  ;;  %v21014_v37 = vpop.permute.xlu1 %1330 }
 0x1f9   :  { %v6654_v38 = vcombine.low %v28796_v12, %v6653_v33  ;;  %v3684_v32 = vrot.slane %v2551_v45, %v19011_v56  ;;  %v18113_v6 = vcombine.high %v3658_v60, %v20953_v10  ;;  %v21010_v40 = vrot.slane %v18112_v36, %v19011_v56  ;;  %v28798_v33 = vld [vmem:[#allocation12_spill] sm:$0xff] }
 0x1fa   :  { %v3725_v15 = vcombine.high %v2552_v52, %v2552_v52  ;;  %v3732_v23 = vrot.slane %v2552_v52, %v19011_v56  ;;  %v6721_v5 = vrot.slane %v6705_v50, %v19011_v56  ;;  %v3691_v46 = vrot.slane %v3677_v48, %v19011_v56 }
 0x1fb   :  { %18366 = vmatmul.mubr.msk.f32.gmra.mrb[16].mxu0 %vm8713_vm13, %v6654_v38  ;;  %v3692_v7 = vcombine.high %v3684_v32, %v3684_v32  ;;  %v6687_v34 = vcombine.low %v6665_v19, %v6672_v13  ;;  %1940 = vrot.lane.b32.xlu0 %v28798_v33, %s18673_s17  ;;  %v3700_v10 = vrot.slane %v3684_v32, %v19011_v56  ;;  %v28799_v38 = vld [vmem:[#allocation5_spill] sm:$0xff] }
 0x1fc   :  { %v3739_v60 = vrot.slane %v3725_v15, %v19011_v56  ;;  %v3740_v36 = vcombine.high %v3732_v23, %v3732_v23  ;;  %v3748_v58 = vrot.slane %v3732_v23, %v19011_v56  ;;  %v3693_v57 = vcombine.high %v3691_v46, %v3691_v46  ;;  %v21029_v45 = vpop.permute.xlu0 %736  ;;  %v21033_v18 = vpop.permute.xlu1 %738 }
 0x1fd   :  { %v3707_v24 = vrot.slane %v3691_v46, %v19011_v56  ;;  %v3714_v12 = vrot.slane %v3692_v7, %v19011_v56  ;;  %v6702_v50 = vrot.slane %v6688_v44, %v19011_v56  ;;  %v28800_v13 = vrot.slane %v28799_v38, 1  ;;  %v28801_v44 = vld [vmem:[#allocation11_spill] sm:$0xff] }
 0x1fe   :  { %v3741_v52 = vcombine.high %v3739_v60, %v3739_v60  ;;  %v3755_v19 = vrot.slane %v3739_v60, %v19011_v56  ;;  %v3762_v48 = vrot.slane %v3740_v36, %v19011_v56  ;;  %v3770_v32 = vcombine.high %v3748_v58, %v3748_v58 }
 0x1ff   :  { %367 = vrot.lane.b32.xlu1 %v28800_v13, %s18666_s19  ;;  %v3721_v15 = vrot.slane %v3693_v57, %v19011_v56  ;;  %v6707_v23 = vcombine.low %v3700_v10, %v3714_v12  ;;  %v18114_v46 = vcombine.high %v3700_v10, %v3714_v12  ;;  %v3723_v7 = vcombine.high %v3707_v24, %v3707_v24 }
 0x200   :  { %750 = vrot.lane.b32.xlu0 %v28801_v44, %s18667_s20  ;;  %v6728_v38 = vrot.slane %v18113_v6, %v19011_v56  ;;  %v6736_v13 = vcombine.low %v21010_v40, %v6721_v5  ;;  %v6756_v42 = vcombine.low %v3762_v48, %v3770_v32  ;;  %v6695_v60 = vrot.slane %v6687_v34, %v19011_v56  ;;  %v21047_v10 = vpop.permute.xlu0 %1128  ;;  %v21050_v5 = vpop.permute.xlu1 %1526 }
 0x201   :  { %v6735_v36 = vrot.slane %v6707_v23, %v19011_v56  ;;  %v6754_v2 = vcombine.low %v3707_v24, %v3721_v15  ;;  %v21043_v8 = vrot.slane %v3741_v52, %v19011_v56  ;;  %v6755_v57 = vcombine.low %v3723_v7, %v3748_v58  ;;  %v28802_v58 = vld [vmem:[#allocation13_spill] sm:$0xff] }
 0x202   :  { %v3771_v12 = vcombine.high %v3755_v19, %v3755_v19  ;;  %v3772_v44 = vcombine.high %v3762_v48, %v3762_v48  ;;  %v6784_v6 = vrot.slane %v6756_v42, %v19011_v56  ;;  %v6703_v40 = vcombine.low %v6695_v60, %v6702_v50 }
 0x203   :  { %1346 = vrot.lane.b32.xlu1 %v28798_v33, %s18670_s29  ;;  %v6737_v34 = vcombine.low %v6728_v38, %v6735_v36  ;;  %v6763_v32 = vrot.slane %v18114_v46, %v19011_v56  ;;  %v6770_v24 = vrot.slane %v6754_v2, %v19011_v56  ;;  %v6777_v52 = vrot.slane %v6755_v57, %v19011_v56  ;;  %v18608_v33 = vld [vmem:[%s28513_s0 + $0x120] sm:$0xff]  ;;  %v28806_v38 = vld [vmem:[#allocation14_spill] sm:$0xff] }
 0x204   :  { %1738 = vrot.lane.b32.xlu0 %v28802_v58, %s18672_s10  ;;  %v2099_v42 = vsel %vm2074_vm5, %v18608_v33, %v20796_v43  ;;  %v2228_v50 = vsel %vm2204_vm7, %v20995_v26, %v20805_v14  ;;  %18368 = vmatprep.mubr.msk.f32.mxu0 %vm8713_vm13, %v6703_v40  ;;  %v28803_v2 = vrot.slane %v20727_v29, 1  ;;  %v28804_v15 = vrot.slane %v20932_v27, 2  ;;  %v21085_v60 = vpop.permute.xlu0 %355  ;;  %v21094_v58 = vpop.permute.xlu1 %932 }
 0x205   :  { %v28805_v23 = vrot.slane %v20581_v55, 2  ;;  %v13515_v43 = vrot.slane %v20963_v63, %v19011_v56  ;;  %v2164_v14 = vsel %vm2139_vm6, %v2099_v42, %v20883_v39  ;;  %v6785_v26 = vcombine.low %v6763_v32, %v6770_v24  ;;  %v28807_v24 = vld [vmem:[#allocation15_spill] sm:$0xff] }
 0x206   :  { %v21070_v48 = vsel %vm204_vm1, %v28803_v2, %v20748_v49  ;;  %v6786_v7 = vcombine.low %v6777_v52, %v6784_v6  ;;  %v21087_v36 = vcombine.low %v3772_v44, %v3755_v19  ;;  %v21090_v27 = vcombine.low %v21043_v8, %v3771_v12  ;;  %v18610_v52 = vld [vmem:[%s28513_s0 + $0x138] sm:$0xff]  ;;  %v28808_v2 = vld [vmem:[#allocation3_spill] sm:$0xff] }
 0x207   :  { %v21077_v46 = vsel %vm525_vm0, %v28805_v23, %v28804_v15  ;;  %369 = vrot.lane.b32.xlu1 %v28806_v38, %s18666_s19  ;;  %v6744_v57 = vrot.slane %v6736_v13, %v19011_v56  ;;  %v6751_v40 = vrot.slane %v6737_v34, %v19011_v56  ;;  %v2293_v39 = vsel %vm2269_vm8, %v2228_v50, %v20896_v31  ;;  %v18609_v13 = vld [vmem:[%s28513_s0 + $0x128] sm:$0xff]  ;;  %v28809_v15 = vld [vmem:[#allocation19_spill] sm:$0xff] }
 0x208   :  { %v6793_v6 = vrot.slane %v6785_v26, %v19011_v56  ;;  %v6800_v32 = vrot.slane %v6786_v7, %v19011_v56  ;;  %752 = vrot.lane.b32.xlu0 %v28807_v24, %s18667_s20  ;;  %v21104_v19 = vcombine.high %v20824_v21, %v20824_v21  ;;  %v2100_v12 = vsel %vm2074_vm5, %v18609_v13, %v20976_v59  ;;  %v21128_v50 = vpop.permute.xlu0 %934 }
 0x209   :  { %v6752_v44 = vcombine.low %v6744_v57, %v6751_v40  ;;  %v21113_v31 = vcombine.high %v20842_v51, %v20842_v51  ;;  %v21117_v34 = vcombine.high %v20864_v47, %v20864_v47  ;;  %v2101_v33 = vsel %vm2074_vm5, %v18610_v52, %v20982_v41  ;;  %v28813_v40 = vld [vmem:[#allocation17_spill] sm:$0xff] }
 0x20a   :  { %v2229_v42 = vsel %vm2204_vm7, %v2164_v14, %v21006_v61  ;;  %v6801_v59 = vcombine.low %v6793_v6, %v6800_v32  ;;  %v28810_v23 = vmax.f32 %v28808_v2, %v28809_v15  ;;  %v21139_v61 = vpop.permute.xlu1 %1332  ;;  %v28814_v6 = vld [vmem:[#allocation18_spill] sm:$0xff]  ;;  %v2358_v13 = vsel %vm2334_vm9, %v2293_v39, %v21014_v37  ;;  %v28817_v37 = vld [vmem:[#allocation16_spill] sm:$0xff] }
 0x20b   :  { %946 = vrot.lane.b32.xlu1 %v20287_v28, %s18668_s21  ;;  %18369 = vmatmul.mubr.msk.f32.gmra.mrb[18].mxu0 %vm8713_vm13, %v6752_v44  ;;  %v28811_v28 = vld [vmem:[#allocation20_spill] sm:$0xff]  ;;  %v28815_v32 = vmax.f32 %v28813_v40, %v28814_v6  ;;  %v28816_v52 = vmax.f32 %v20853_v54, %v20857_v11  ;;  %v28820_v6 = vmax.f32 %v20909_v20, %v20915_v62  ;;  %v18352_v7 = vpop.f32.mrb[6].mxu0 }
 0x20c   :  { %v12762_v26 = vmax.f32 %v28810_v23, %v21104_v19  ;;  %v28812_v14 = vmax.f32 %v20421_v25, %v28811_v28  ;;  %18371 = vmatprep.mubr.msk.f32.mxu0 %vm8713_vm13, %v6801_v59  ;;  %1542 = vrot.lane.b32.xlu0 %v20276_v9, %s18671_s30  ;;  %v1725_v39 = vpop.permute.xlu0 %1724  ;;  %v28818_v59 = vmax.f32 %v20567_v35, %v20821_v3 }
 0x20d   :  { %v12758_v24 = vmax.f32 %v28815_v32, %v21117_v34 }
 0x20e   :  { %v12754_v57 = vmax.f32 %v28812_v14, %v21113_v31  ;;  %v12971_v44 = vmax.f32 %v20857_v11, %v12762_v26  ;;  %v13152_v25 = vmax.f32 %v28816_v52, %v12762_v26  ;;  %v28819_v26 = vmax.f32 %v20890_v17, %v20894_v53 }
 0x20f   :  { %v12967_v23 = vmax.f32 %v20915_v62, %v12758_v24  ;;  %v12968_v28 = vmax.f32 %v12758_v24, %v20836_v1  ;;  %1942 = vrot.lane.b32.xlu1 %v28817_v37, %s18673_s17  ;;  %v13148_v32 = vmax.f32 %v28820_v6, %v12758_v24  ;;  %v21178_v52 = vsel %vm2139_vm6, %v2100_v12, %v21029_v45  ;;  %v21180_v37 = vpop.permute.xlu1 %740  ;;  %v21198_v45 = vld [vmem:[%s28515_s2] ss:$0 sm:$0xff] }
 0x210   :  { %v12963_v2 = vmax.f32 %v20894_v53, %v12754_v57  ;;  %v12964_v15 = vmax.f32 %v12754_v57, %v20905_v30  ;;  %v21167_v14 = vmax.f32 %v12971_v44, %v28818_v59  ;;  %v13555_v11 = vcombine.low %v20899_v4, %v13152_v25  ;;  %28821 = vst [vmem:[#allocation9_spill] sm:$0xff] %v21198_v45  ;;  %v21215_v24 = vpop.permute.xlu0 %1130 }
 0x211   :  { %v13144_v40 = vmax.f32 %v28819_v26, %v12754_v57  ;;  %v13149_v4 = vmax.f32 %v12967_v23, %v20836_v1  ;;  %v21187_v17 = vsel %vm2139_vm6, %v2101_v33, %v21033_v18  ;;  %v21191_v53 = vsel %vm2269_vm8, %v2229_v42, %v21047_v10  ;;  %754 = vrot.lane.b32.xlu0 %v20672_v22, %s18667_s20  ;;  %v28822_v57 = vld [vmem:[#allocation7_spill] sm:$0xff] }
 0x212   :  { %v13145_v35 = vmax.f32 %v12963_v2, %v20905_v30  ;;  %v13146_v44 = vmax.f32 %v12964_v15, %v20909_v20  ;;  %v2423_v62 = vsel %vm2399_vm10, %v2358_v13, %v21050_v5  ;;  %v8940_v30 = vadd.f32 %v21198_v45, %v18352_v7  ;;  %v8934_v20 = vpop.f32.mrb[7].mxu0 }
 0x213   :  { %v8935_v1 = vadd.f32 %v21198_v45, %v8934_v20  ;;  %v13150_v18 = vmax.f32 %v12968_v28, %v20853_v54  ;;  %v13506_v10 = vcombine.low %v20944_v0, %v13144_v40  ;;  %v21207_v5 = vsel %vm2464_vm11, %v2423_v62, %v1725_v39  ;;  %948 = vrot.lane.b32.xlu1 %v28822_v57, %s18668_s21  ;;  %v21221_v2 = vpop.permute.xlu1 %1132 }
 0x214   :  { %v13507_v12 = vcombine.low %v13145_v35, %v13146_v44  ;;  %v9208_v33 = vmax.f32 %v8940_v30, 0.0  ;;  %v21210_v42 = vrot.slane %v13555_v11, %v19011_v56  ;;  %v13508_v7 = vcombine.low %v20947_v16, %v13148_v32  ;;  %v21249_v44 = vpop.permute.xlu0 %1528  ;;  %v28835_v16 = vld [vmem:[#allocation24_spill] sm:$0xff] }
 0x215   :  { %v9207_v13 = vmax.f32 %v8935_v1, 0.0  ;;  %v13522_v54 = vrot.slane %v13506_v10, %v19011_v56  ;;  %v13554_v25 = vcombine.low %v13149_v4, %v13150_v18  ;;  %1144 = vrot.lane.b32.xlu0 %v28806_v38, %s18669_s26  ;;  %v28824_v35 = vrot.slane %v20276_v9, 1  ;;  %v28825_v10 = vld [vmem:[#allocation22_spill] sm:$0xff] }
 0x216   :  { %v21219_v0 = vrot.slane %v13507_v12, %v19011_v56  ;;  %v9660_v15 = vcombine.high %v9208_v33, %v9208_v33  ;;  %v9667_v23 = vrot.slane %v9208_v33, %v19011_v56  ;;  %v21227_v28 = vrot.slane %v13508_v7, %v19011_v56  ;;  %v28832_v12 = vld [vmem:[#allocation37_spill] sm:$0xff] }
 0x217   :  { %v9611_v39 = vcombine.high %v9207_v13, %v9207_v13  ;;  %v9618_v59 = vrot.slane %v9207_v13, %v19011_v56  ;;  %v21235_v11 = vcombine.low %v13515_v43, %v13522_v54  ;;  %v21238_v26 = vrot.slane %v13554_v25, %v19011_v56  ;;  %1740 = vrot.lane.b32.xlu1 %v28824_v35, %s18672_s10  ;;  %v1929_v30 = vpop.permute.xlu1 %1928  ;;  %v28827_v25 = vld [vmem:[#allocation32_spill] sm:$0xff] }
 0x218   :  { %v9674_v40 = vrot.slane %v9660_v15, %v19011_v56  ;;  %v9675_v6 = vcombine.high %v9667_v23, %v9667_v23  ;;  %v21242_v32 = vrot.slane %v9667_v23, %v19011_v56  ;;  %v13538_v38 = vcombine.low %v21219_v0, %v21227_v28  ;;  %v28828_v23 = vld [vmem:[#allocation8_spill] sm:$0xff]  ;;  %v21286_v28 = vpop.permute.xlu0 %936 }
 0x219   :  { %v9625_v63 = vrot.slane %v9611_v39, %v19011_v56  ;;  %v9626_v43 = vcombine.high %v9618_v59, %v9618_v59  ;;  %v9634_v4 = vrot.slane %v9618_v59, %v19011_v56  ;;  %v13545_v62 = vrot.slane %v21235_v11, %v19011_v56  ;;  %950 = vrot.lane.b32.xlu0 %v28825_v10, %s18668_s21  ;;  %v28829_v59 = vld [vmem:[#allocation21_spill] sm:$0xff]  ;;  %v28830_v11 = vld [vmem:[#allocation34_spill] sm:$0xff] }
 0x21a   :  { %28823 = vst [vmem:[#allocation4_spill] sm:$0xff] %v21242_v32  ;;  %v9676_v20 = vcombine.high %v9674_v40, %v9674_v40  ;;  %v21256_v1 = vrot.slane %v9674_v40, %v19011_v56  ;;  %v21259_v18 = vrot.slane %v9675_v6, %v19011_v56  ;;  %v9705_v9 = vcombine.high %v21242_v32, %v21242_v32  ;;  %v28836_v32 = vld [vmem:[#allocation33_spill] sm:$0xff] }
 0x21b   :  { %v9627_v33 = vcombine.high %v9625_v63, %v9625_v63  ;;  %v21268_v7 = vrot.slane %v9625_v63, %v19011_v56  ;;  %v21271_v57 = vrot.slane %v9626_v43, %v19011_v56  ;;  %1146 = vrot.lane.b32.xlu1 %v28828_v23, %s18669_s26  ;;  %v28831_v40 = vmax.f32 %v28829_v59, %v28830_v11  ;;  %v21298_v43 = vpop.permute.xlu1 %1334 }
 0x21c   :  { %v21274_v13 = vrot.slane %v9676_v20, %v19011_v56  ;;  %v21278_v54 = vcombine.high %v21256_v1, %v21256_v1  ;;  %v9707_v0 = vcombine.high %v21259_v18, %v21259_v18  ;;  %v21289_v39 = vmax.f32 %v21104_v19, %v9705_v9  ;;  %v28833_v19 = vld [vmem:[#allocation38_spill] sm:$0xff]  ;;  %v21331_v49 = vpop.permute.xlu0 %1336 }
 0x21d   :  { %28826 = vst [vmem:[#allocation10_spill] sm:$0xff] %v21268_v7  ;;  %v12764_v6 = vmax.f32 %v28831_v40, %v21256_v1  ;;  %v21296_v35 = vrot.slane %v9627_v33, %v19011_v56  ;;  %v9656_v63 = vcombine.high %v9634_v4, %v9634_v4  ;;  %v9657_v59 = vcombine.high %v21268_v7, %v21268_v7  ;;  %v28834_v40 = vld [vmem:[#allocation35_spill] sm:$0xff] }
 0x21e   :  { %v21301_v20 = vmax.f32 %v20821_v3, %v9707_v0  ;;  %v12765_v15 = vmax.f32 %v28832_v12, %v21274_v13  ;;  %v21307_v9 = vmax.f32 %v28833_v19, %v21278_v54  ;;  %1348 = vrot.lane.b32.xlu0 %v20672_v22, %s18670_s29  ;;  %v9658_v33 = vcombine.high %v21271_v57, %v21271_v57  ;;  %v28838_v19 = vld [vmem:[#allocation30_spill] sm:$0xff] }
 0x21f   :  { %v9659_v3 = vcombine.high %v21296_v35, %v21296_v35  ;;  %v21319_v12 = vcombine.high %v21274_v13, %v21274_v13  ;;  %v12557_v0 = vmax.f32 %v20842_v51, %v9634_v4  ;;  %v21325_v41 = vmax.f32 %v21113_v31, %v9656_v63  ;;  %1944 = vrot.lane.b32.xlu1 %v28835_v16, %s18673_s17  ;;  %v28837_v51 = vld [vmem:[#allocation36_spill] sm:$0xff]  ;;  %v21344_v63 = vpop.permute.xlu1 %1726 }
 0x220   :  { %v12972_v11 = vmax.f32 %v12764_v6, %v12765_v15  ;;  %v21334_v21 = vmax.f32 %v28836_v32, %v9658_v33  ;;  %v21339_v6 = vmax.f32 %v21117_v34, %v9657_v59  ;;  %v12973_v32 = vmax.f32 %v12765_v15, %v21307_v9  ;;  %v18612_v34 = vld [vmem:[%s28513_s0 + $0x140] sm:$0xff]  ;;  %v21375_v4 = vpop.permute.xlu0 %357 }
 0x221   :  { %v21342_v31 = vmax.f32 %v28838_v19, %v9659_v3  ;;  %v21350_v16 = vmax.f32 %v12557_v0, %v21319_v12  ;;  %v13552_v33 = vrot.slane %v13538_v38, %v19011_v56  ;;  %v2102_v59 = vsel %vm2074_vm5, %v18612_v34, %v21085_v60  ;;  %v28839_v60 = vld [vmem:[#allocation25_spill] sm:$0xff]  ;;  %v18355_v34 = vpop.f32.mrb[8].mxu0 }
 0x222   :  { %v21347_v22 = vmax.f32 %v12972_v11, %v21307_v9  ;;  %371 = vrot.lane.b32.xlu0 %v28828_v23, %s18666_s19  ;;  %v2230_v3 = vsel %vm2204_vm7, %v21178_v52, %v21094_v58  ;;  %v13577_v0 = vcombine.low %v21238_v26, %v21210_v42  ;;  %v2553_v38 = vsel %vm2529_vm12, %v21207_v5, %v1929_v30  ;;  %v8944_v30 = vpop.f32.mrb[9].mxu0 }
 0x223   :  { %v21371_v23 = vmax.f32 %v12973_v32, %v21350_v16  ;;  %v13553_v11 = vcombine.low %v13545_v62, %v13552_v33  ;;  %v3774_v19 = vcombine.high %v2553_v38, %v2553_v38  ;;  %1148 = vrot.lane.b32.xlu1 %v28839_v60, %s18669_s26  ;;  %v28840_v58 = vrot.slane %v21167_v14, %v19011_v56  ;;  %v21385_v62 = vpop.permute.xlu1 %1134  ;;  %v28841_v14 = vld [vmem:[#allocation28_spill] sm:$0xff] }
 0x224   :  { %v13584_v5 = vrot.slane %v13577_v0, %v19011_v56  ;;  %v3773_v42 = vcombine.high %v21043_v8, %v21043_v8  ;;  %v3781_v26 = vrot.slane %v2553_v38, %v19011_v56  ;;  %v28842_v0 = vrot.slane %v21090_v27, %v19011_v56 }
 0x225   :  { %v13591_v52 = vrot.slane %v28840_v58, %v19011_v56  ;;  %14766 = vst.msk [vmem:[#allocation2] sm:$0xff] %vm14765_vm14, %v13553_v11  ;;  %v3788_v33 = vrot.slane %v3774_v19, %v19011_v56  ;;  %v28843_v8 = vrot.slane %v21087_v36, %v19011_v56  ;;  %v8950_v11 = vadd.f32 %v21198_v45, %v18355_v34 }
 0x226   :  { %1350 = vrot.lane.b32.xlu0 %v28841_v14, %s18670_s29  ;;  %v3789_v7 = vcombine.high %v3781_v26, %v3781_v26  ;;  %v3797_v32 = vrot.slane %v3781_v26, %v19011_v56  ;;  %v2231_v19 = vsel %vm2204_vm7, %v21187_v17, %v21128_v50  ;;  %v2359_v27 = vsel %vm2334_vm9, %v21191_v53, %v21139_v61 }
 0x227   :  { %v21399_v38 = vcombine.low %v28843_v8, %v28842_v0  ;;  %v13592_v15 = vcombine.low %v13584_v5, %v13591_v52  ;;  %v2167_v36 = vsel %vm2139_vm6, %v2102_v59, %v21180_v37  ;;  %1544 = vrot.lane.b32.xlu1 %v28825_v10, %s18671_s30  ;;  %v21414_v52 = vpop.permute.xlu0 %1530  ;;  %v9210_v0 = vmax.f32 %v8950_v11, 0.0  ;;  %v21428_v10 = vpop.permute.xlu1 %1532 }
 0x228   :  { %v21419_v34 = vrot.slane %v3789_v7, %v19011_v56  ;;  %v3819_v50 = vcombine.high %v3797_v32, %v3797_v32  ;;  %v6804_v17 = vcombine.low %v3773_v42, %v3797_v32  ;;  %v2295_v61 = vsel %vm2269_vm8, %v2230_v3, %v21215_v24 }
 0x229   :  { %14768 = vst.msk [vmem:[#allocation2 + $0x8] sm:$0x1f] %vm14767_vm15, %v13592_v15  ;;  %v21425_v37 = vsel %vm2269_vm8, %v2231_v19, %v21221_v2  ;;  %v8945_v53 = vadd.f32 %v21198_v45, %v8944_v30  ;;  %v2424_v59 = vsel %vm2399_vm10, %v2359_v27, %v21249_v44  ;;  %v3790_v15 = vcombine.high %v3788_v33, %v3788_v33 }
 0x22a   :  { %756 = vrot.lane.b32.xlu0 %v28841_v14, %s18667_s20  ;;  %v6805_v24 = vcombine.low %v21419_v34, %v3819_v50  ;;  %v9758_v3 = vcombine.high %v9210_v0, %v9210_v0  ;;  %v21439_v2 = vsel %vm2204_vm7, %v2167_v36, %v21286_v28  ;;  %v21443_v42 = vsel %vm2334_vm9, %v2295_v61, %v21298_v43  ;;  %v28845_v14 = vld [vmem:[#allocation26_spill] sm:$0xff] }
 0x22b   :  { %v9765_v30 = vrot.slane %v9210_v0, %v19011_v56  ;;  %v9209_v32 = vmax.f32 %v8945_v53, 0.0  ;;  %1352 = vrot.lane.b32.xlu1 %v28845_v14, %s18670_s29  ;;  %v1931_v8 = vpop.permute.xlu0 %1930  ;;  %v6826_v44 = vrot.slane %v6804_v17, %v19011_v56  ;;  %v2489_v19 = vsel %vm2464_vm11, %v2424_v59, %v21344_v63  ;;  %v21457_v0 = vpop.permute.xlu1 %359 }
 0x22c   :  { %v6833_v11 = vrot.slane %v6805_v24, %v19011_v56  ;;  %v9772_v28 = vrot.slane %v9758_v3, %v19011_v56  ;;  %v3804_v27 = vrot.slane %v3788_v33, %v19011_v56  ;;  %v3818_v17 = vrot.slane %v3790_v15, %v19011_v56 }
 0x22d   :  { %v9773_v43 = vcombine.high %v9765_v30, %v9765_v30  ;;  %v21455_v36 = vrot.slane %v9765_v30, %v19011_v56  ;;  %v9709_v50 = vcombine.high %v9209_v32, %v9209_v32  ;;  %v28847_v24 = vmax.f32 %v28827_v25, %v21259_v18 }
 0x22e   :  { %1546 = vrot.lane.b32.xlu0 %v20581_v55, %s18671_s30  ;;  %v6835_v61 = vcombine.low %v6826_v44, %v6833_v11  ;;  %v9774_v53 = vcombine.high %v9772_v28, %v9772_v28  ;;  %v21463_v63 = vrot.slane %v9772_v28, %v19011_v56  ;;  %v9716_v15 = vrot.slane %v9209_v32, %v19011_v56 }
 0x22f   :  { %v21466_v59 = vrot.slane %v9773_v43, %v19011_v56  ;;  %v21470_v33 = vcombine.high %v21455_v36, %v21455_v36  ;;  %v21476_v3 = vmax.f32 %v28847_v24, %v21455_v36  ;;  %1742 = vrot.lane.b32.xlu1 %v28839_v60, %s18672_s10  ;;  %v21481_v30 = vpop.permute.xlu0 %742  ;;  %v9723_v18 = vrot.slane %v9709_v50, %v19011_v56  ;;  %v21497_v58 = vpop.permute.xlu1 %1338 }
 0x230   :  { %28848 = vst [vmem:[#allocation12_spill] sm:$0xff] %v21481_v30  ;;  %v21484_v44 = vrot.slane %v9774_v53, %v19011_v56  ;;  %v9804_v11 = vcombine.high %v21463_v63, %v21463_v63  ;;  %v3820_v25 = vcombine.high %v3804_v27, %v3804_v27  ;;  %v9724_v24 = vcombine.high %v9716_v15, %v9716_v15 }
 0x231   :  { %28846 = vst [vmem:[#allocation6_spill] sm:$0xff] %v21466_v59  ;;  %v21493_v32 = vmax.f32 %v21289_v39, %v21466_v59  ;;  %v12778_v43 = vmax.f32 %v21301_v20, %v21470_v33  ;;  %v9725_v39 = vcombine.high %v9723_v18, %v9723_v18  ;;  %v9732_v20 = vrot.slane %v9716_v15, %v19011_v56 }
 0x232   :  { %373 = vrot.lane.b32.xlu0 %v28839_v60, %s18666_s19  ;;  %v9806_v53 = vcombine.high %v21484_v44, %v21484_v44  ;;  %v21506_v26 = vmax.f32 %v21319_v12, %v9804_v11  ;;  %v21512_v7 = vrot.slane %v9723_v18, %v19011_v56  ;;  %v21515_v60 = vrot.slane %v9724_v24, %v19011_v56 }
 0x233   :  { %28849 = vst [vmem:[#allocation5_spill] sm:$0xff] %v21493_v32  ;;  %v12984_v28 = vmax.f32 %v21476_v3, %v21493_v32  ;;  %952 = vrot.lane.b32.xlu1 %v20581_v55, %s18668_s21  ;;  %v1729_v30 = vpop.permute.xlu0 %1728  ;;  %v3821_v12 = vcombine.high %v21419_v34, %v21419_v34  ;;  %v21522_v11 = vrot.slane %v9725_v39, %v19011_v56  ;;  %v1731_v32 = vpop.permute.xlu1 %1730 }
 0x234   :  { %v6849_v50 = vrot.slane %v6835_v61, %v19011_v56  ;;  %v2554_v15 = vsel %vm2529_vm12, %v2489_v19, %v1931_v8  ;;  %v21528_v18 = vcombine.high %v9732_v20, %v9732_v20  ;;  %v21532_v24 = vcombine.high %v21512_v7, %v21512_v7 }
 0x235   :  { %28850 = vst [vmem:[#allocation11_spill] sm:$0xff] %v21522_v11  ;;  %v21526_v5 = vmax.f32 %v12984_v28, %v12778_v43  ;;  %v21534_v55 = vmax.f32 %v9732_v20, %v9806_v53  ;;  %v28851_v34 = vmax.f32 %v28834_v40, %v21271_v57  ;;  %v21543_v8 = vmax.f32 %v21325_v41, %v21515_v60 }
 0x236   :  { %1548 = vrot.lane.b32.xlu0 %v20727_v29, %s18671_s30  ;;  %v28852_v19 = vmax.f32 %v28837_v51, %v21296_v35  ;;  %v21553_v43 = vmax.f32 %v21339_v6, %v21522_v11  ;;  %v6852_v53 = vcombine.low %v3818_v17, %v3820_v25  ;;  %v21557_v39 = vmax.f32 %v21334_v21, %v21528_v18  ;;  %v28854_v35 = vld [vmem:[#allocation23_spill] sm:$0xff] }
 0x237   :  { %v12768_v61 = vmax.f32 %v28851_v34, %v9732_v20  ;;  %v21561_v57 = vmax.f32 %v21342_v31, %v21532_v24  ;;  %v28853_v41 = vrot.slane %v21399_v38, %v19011_v56  ;;  %1744 = vrot.lane.b32.xlu1 %v28854_v35, %s18672_s10  ;;  %v21568_v51 = vpop.permute.xlu0 %744  ;;  %v28856_v31 = vmax.f32 %v21307_v9, %v21350_v16 }
 0x238   :  { %v21549_v28 = vmax.f32 %v28852_v19, %v21512_v7  ;;  %28855 = vst [vmem:[#allocation13_spill] sm:$0xff] %v21568_v51  ;;  %v6851_v20 = vcombine.low %v3821_v12, %v3804_v27  ;;  %v3822_v34 = vcombine.high %v2554_v15, %v2554_v15  ;;  %v21582_v19 = vpop.permute.xlu1 %938  ;;  %v28858_v27 = vcombine.low %v21347_v22, %v21371_v23 }
 0x239   :  { %v6850_v40 = vcombine.low %v28853_v41, %v6849_v50  ;;  %v12975_v6 = vmax.f32 %v21350_v16, %v12768_v61  ;;  %v12976_v17 = vmax.f32 %v12768_v61, %v21543_v8  ;;  %v13156_v25 = vmax.f32 %v28856_v31, %v12768_v61  ;;  %28857 = vst [vmem:[#allocation14_spill] sm:$0xff] %v21582_v19 }
 0x23a   :  { %v12980_v21 = vmax.f32 %v21549_v28, %v21553_v43  ;;  %v3829_v16 = vrot.slane %v2554_v15, %v19011_v56  ;;  %1946 = vrot.lane.b32.xlu0 %v28845_v14, %s18673_s17  ;;  %v21598_v12 = vrot.slane %v28858_v27, %v19011_v56  ;;  %v2361_v61 = vsel %vm2334_vm9, %v21425_v37, %v21331_v49 }
 0x23b   :  { %18372 = vmatmul.mubr.msk.f32.gmra.mrb[20].mxu0 %vm8713_vm13, %v6850_v40  ;;  %v13157_v41 = vmax.f32 %v12975_v6, %v21543_v8  ;;  %v21586_v51 = vmax.f32 %v12976_v17, %v21557_v39  ;;  %v18613_v40 = vld [vmem:[%s28513_s0 + $0x150] sm:$0xff]  ;;  %v3836_v6 = vrot.slane %v3822_v34, %v19011_v56  ;;  %758 = vrot.lane.b32.xlu1 %v28845_v14, %s18667_s20  ;;  %v21613_v22 = vpop.permute.xlu0 %1534 }
 0x23c   :  { %v21589_v9 = vmax.f32 %v12980_v21, %v21561_v57  ;;  %v21608_v15 = vsel %vm2074_vm5, %v18613_v40, %v21375_v4  ;;  %v2297_v23 = vsel %vm2269_vm8, %v21439_v2, %v21385_v62  ;;  %v2425_v37 = vsel %vm2399_vm10, %v21443_v42, %v21414_v52  ;;  %v1933_v34 = vpop.permute.xlu1 %1932 }
 0x23d   :  { %v13594_v49 = vcombine.low %v13156_v25, %v13157_v41  ;;  %v3837_v17 = vcombine.high %v3829_v16, %v3829_v16  ;;  %v6861_v4 = vrot.slane %v6851_v20, %v19011_v56  ;;  %v6868_v21 = vrot.slane %v6852_v53, %v19011_v56 }
 0x23e   :  { %v2426_v31 = vsel %vm2399_vm10, %v2361_v61, %v21428_v10  ;;  %v2490_v14 = vsel %vm2464_vm11, %v2425_v37, %v1729_v30  ;;  %v3845_v62 = vrot.slane %v3829_v16, %v19011_v56  ;;  %1150 = vrot.lane.b32.xlu0 %v28854_v35, %s18669_s26  ;;  %v3838_v53 = vcombine.high %v3836_v6, %v3836_v6 }
 0x23f   :  { %v21627_v27 = vrot.slane %v13594_v49, %v19011_v56  ;;  %v3859_v2 = vrot.slane %v3837_v17, %v19011_v56  ;;  %v2555_v52 = vsel %vm2529_vm12, %v2490_v14, %v1933_v34  ;;  %1746 = vrot.lane.b32.xlu1 %v21070_v48, %s18672_s10  ;;  %v1935_v25 = vpop.permute.xlu0 %1934  ;;  %v2491_v61 = vsel %vm2464_vm11, %v2426_v31, %v1731_v32 }
 0x240   :  { %v3871_v10 = vcombine.high %v2555_v52, %v2555_v52  ;;  %v3878_v30 = vrot.slane %v2555_v52, %v19011_v56  ;;  %v6883_v37 = vcombine.low %v6861_v4, %v6868_v21  ;;  %v2556_v17 = vsel %vm2529_vm12, %v2491_v61, %v1935_v25  ;;  %v21644_v14 = vpop.permute.xlu1 %361 }
 0x241   :  { %v13625_v20 = vcombine.low %v21598_v12, %v21627_v27  ;;  %v6853_v41 = vcombine.low %v3845_v62, %v3859_v2  ;;  %v18115_v16 = vcombine.high %v3845_v62, %v3859_v2  ;;  %28859 = vst [vmem:[#allocation15_spill] sm:$0xff] %v21644_v14  ;;  %v13664_v34 = vrot.slane %v21526_v5, %v19011_v56  ;;  %v18614_v12 = vld [vmem:[%s28513_s0 + $0x158] sm:$0xff]  ;;  %v18358_v27 = vpop.f32.mrb[10].mxu0 }
 0x242   :  { %v3885_v40 = vrot.slane %v3871_v10, %v19011_v56  ;;  %v3886_v49 = vcombine.high %v3878_v30, %v3878_v30  ;;  %v21655_v32 = vsel %vm2074_vm5, %v18614_v12, %v21457_v0  ;;  %1948 = vrot.lane.b32.xlu0 %v21077_v46, %s18673_s17  ;;  %v3866_v4 = vrot.slane %v3838_v53, %v19011_v56 }
 0x243   :  { %v6875_v52 = vrot.slane %v6853_v41, %v19011_v56  ;;  %v6882_v50 = vrot.slane %v18115_v16, %v19011_v56  ;;  %v2362_v5 = vsel %vm2334_vm9, %v2297_v23, %v21497_v58  ;;  %v3894_v31 = vrot.slane %v3878_v30, %v19011_v56  ;;  %375 = vrot.lane.b32.xlu1 %v28854_v35, %s18666_s19  ;;  %v21665_v62 = vpop.permute.xlu0 %940  ;;  %v8954_v41 = vpop.f32.mrb[11].mxu0 }
 0x244   :  { %v3887_v21 = vcombine.high %v3885_v40, %v3885_v40  ;;  %28860 = vst [vmem:[#allocation3_spill] sm:$0xff] %v21665_v62  ;;  %v3901_v0 = vrot.slane %v3885_v40, %v19011_v56  ;;  %v3908_v10 = vrot.slane %v3886_v49, %v19011_v56  ;;  %v3919_v25 = vcombine.high %v2556_v17, %v2556_v17  ;;  %v21673_v16 = vpop.permute.xlu1 %1136  ;;  %v18615_v49 = vld [vmem:[%s28513_s0 + $0x1f8] sm:$0xff] }
 0x245   :  { %v6884_v2 = vcombine.low %v6875_v52, %v6882_v50  ;;  %v3852_v53 = vrot.slane %v3836_v6, %v19011_v56  ;;  %v6891_v23 = vrot.slane %v6883_v37, %v19011_v56  ;;  %v3926_v30 = vrot.slane %v2556_v17, %v19011_v56  ;;  %28861 = vst [vmem:[#allocation19_spill] sm:$0xff] %v21673_v16  ;;  %v28873_v16 = vld [vmem:[#allocation4_spill] sm:$0xff] }
 0x246   :  { %v3915_v58 = vrot.slane %v3887_v21, %v19011_v56  ;;  %v6902_v35 = vcombine.low %v3894_v31, %v3908_v10  ;;  %v18117_v61 = vcombine.high %v3894_v31, %v3908_v10  ;;  %v3933_v40 = vrot.slane %v3919_v25, %v19011_v56  ;;  %954 = vrot.lane.b32.xlu0 %v18615_v49, %s18668_s21 }
 0x247   :  { %v6898_v50 = vrot.slane %v6884_v2, %v19011_v56  ;;  %v6900_v6 = vcombine.low %v3852_v53, %v3866_v4  ;;  %v3934_v52 = vcombine.high %v3926_v30, %v3926_v30  ;;  %v3942_v37 = vrot.slane %v3926_v30, %v19011_v56  ;;  %1354 = vrot.lane.b32.xlu1 %v21077_v46, %s18670_s29  ;;  %v21685_v12 = vpop.permute.xlu0 %1732 }
 0x248   :  { %v8960_v17 = vadd.f32 %v21198_v45, %v18358_v27  ;;  %v18116_v21 = vcombine.high %v3852_v53, %v3866_v4  ;;  %v6949_v31 = vcombine.low %v3901_v0, %v3915_v58  ;;  %v3917_v10 = vcombine.high %v3901_v0, %v3901_v0  ;;  %v21696_v27 = vpop.permute.xlu1 %746 }
 0x249   :  { %v6899_v2 = vcombine.low %v6891_v23, %v6898_v50  ;;  %v21688_v25 = vrot.slane %v6902_v35, %v19011_v56  ;;  %v21691_v49 = vrot.slane %v18117_v61, %v19011_v56  ;;  %v3935_v38 = vcombine.high %v3933_v40, %v3933_v40  ;;  %28862 = vst [vmem:[#allocation20_spill] sm:$0xff] %v21696_v27 }
 0x24a   :  { %v21694_v30 = vrot.slane %v3933_v40, %v19011_v56  ;;  %v21699_v42 = vrot.slane %v13664_v34, %v19011_v56  ;;  %v21703_v4 = vsel %vm2399_vm10, %v2362_v5, %v21613_v22  ;;  %v21707_v0 = vrot.slane %v3934_v52, %v19011_v56 }
 0x24b   :  { %18374 = vmatprep.mubr.msk.f32.mxu0 %vm8713_vm13, %v6899_v2  ;;  %v9212_v53 = vmax.f32 %v8960_v17, 0.0  ;;  %v21710_v58 = vrot.slane %v13625_v20, %v19011_v56  ;;  %v21713_v23 = vrot.slane %v6900_v6, %v19011_v56  ;;  %v3964_v35 = vcombine.high %v3942_v37, %v3942_v37  ;;  %377 = vrot.lane.b32.xlu1 %v21070_v48, %s18666_s19  ;;  %v21721_v22 = vpop.permute.xlu0 %1138 }
 0x24c   :  { %v28863_v34 = vcombine.high %v21466_v59, %v21466_v59  ;;  %28864 = vst [vmem:[#allocation17_spill] sm:$0xff] %v21721_v22  ;;  %v21724_v5 = vrot.slane %v18116_v21, %v19011_v56  ;;  %v21727_v20 = vrot.slane %v6949_v31, %v19011_v56  ;;  %v21733_v52 = vrot.slane %v3935_v38, %v19011_v56  ;;  %v21739_v2 = vpop.permute.xlu1 %1340  ;;  %v28872_v22 = vld [vmem:[#allocation31_spill] sm:$0xff] }
 0x24d   :  { %v9856_v50 = vcombine.high %v9212_v53, %v9212_v53  ;;  %v9863_v40 = vrot.slane %v9212_v53, %v19011_v56  ;;  %v21737_v17 = vcombine.low %v3917_v10, %v3942_v37  ;;  %28865 = vst [vmem:[#allocation18_spill] sm:$0xff] %v21739_v2  ;;  %v21748_v6 = vcombine.low %v21707_v0, %v3964_v35  ;;  %v28870_v2 = vld [vmem:[#allocation10_spill] sm:$0xff] }
 0x24e   :  { %v12569_v61 = vmax.f32 %v21256_v1, %v28863_v34  ;;  %v8955_v38 = vadd.f32 %v21198_v45, %v8954_v41  ;;  %v9756_v37 = vcombine.high %v21515_v60, %v21515_v60  ;;  %v9757_v10 = vcombine.high %v21522_v11, %v21522_v11 }
 0x24f   :  { %v9870_v31 = vrot.slane %v9856_v50, %v19011_v56  ;;  %v9871_v34 = vcombine.high %v9863_v40, %v9863_v40  ;;  %v21745_v53 = vrot.slane %v9863_v40, %v19011_v56  ;;  %1152 = vrot.lane.b32.xlu1 %v21070_v48, %s18669_s26  ;;  %v21757_v1 = vpop.permute.xlu0 %1936  ;;  %v28871_v48 = vmax.f32 %v20864_v47, %v28870_v2 }
 0x250   :  { %v9211_v45 = vmax.f32 %v8955_v38, 0.0  ;;  %v28874_v62 = vmax.f32 %v28872_v22, %v28873_v16  ;;  %v21777_v14 = vpop.permute.xlu1 %363  ;;  %v28881_v21 = vmax.f32 %v21274_v13, %v21463_v63 }
 0x251   :  { %28866 = vst [vmem:[#allocation16_spill] sm:$0xff] %v21745_v53  ;;  %v9872_v50 = vcombine.high %v9870_v31, %v9870_v31  ;;  %v21760_v40 = vrot.slane %v9870_v31, %v19011_v56  ;;  %v21763_v35 = vrot.slane %v9871_v34, %v19011_v56  ;;  %v21767_v41 = vcombine.high %v21745_v53, %v21745_v53 }
 0x252   :  { %v12771_v27 = vmax.f32 %v28871_v48, %v9756_v37  ;;  %v12775_v31 = vmax.f32 %v28874_v62, %v9757_v10  ;;  %28875 = vst [vmem:[#allocation8_spill] sm:$0xff] %v21777_v14  ;;  %v28879_v62 = vmax.f32 %v21278_v54, %v21484_v44  ;;  %v9807_v22 = vcombine.high %v9211_v45, %v9211_v45 }
 0x253   :  { %28867 = vst [vmem:[#allocation7_spill] sm:$0xff] %v21760_v40  ;;  %28868 = vst [vmem:[#allocation22_spill] sm:$0xff] %v21763_v35  ;;  %v21780_v34 = vrot.slane %v9872_v50, %v19011_v56  ;;  %v21784_v19 = vcombine.high %v21760_v40, %v21760_v40  ;;  %v21788_v38 = vcombine.high %v21763_v35, %v21763_v35  ;;  %v21798_v48 = vpop.permute.xlu0 %942 }
 0x254   :  { %28869 = vst [vmem:[#allocation32_spill] sm:$0xff] %v21767_v41  ;;  %v12779_v2 = vmax.f32 %v12569_v61, %v21767_v41  ;;  %v12781_v16 = vmax.f32 %v28879_v62, %v21760_v40  ;;  %v9814_v50 = vrot.slane %v9211_v45, %v19011_v56  ;;  %28880 = vst [vmem:[#allocation38_spill] sm:$0xff] %v21798_v48  ;;  %v21817_v13 = vpop.permute.xlu1 %1342 }
 0x255   :  { %28876 = vst [vmem:[#allocation21_spill] sm:$0xff] %v21780_v34  ;;  %28877 = vst [vmem:[#allocation34_spill] sm:$0xff] %v21784_v19  ;;  %v12780_v53 = vmax.f32 %v28881_v21, %v21788_v38  ;;  %v12782_v47 = vmax.f32 %v21506_v26, %v21780_v34  ;;  %v21808_v61 = vmax.f32 %v21534_v55, %v21784_v19 }
 0x256   :  { %28878 = vst [vmem:[#allocation37_spill] sm:$0xff] %v21788_v38  ;;  %v21812_v54 = vcombine.high %v21780_v34, %v21780_v34  ;;  %v9821_v45 = vrot.slane %v9807_v22, %v19011_v56  ;;  %v9822_v44 = vcombine.high %v9814_v50, %v9814_v50  ;;  %v9830_v62 = vrot.slane %v9814_v50, %v19011_v56 }
 0x257   :  { %v12978_v59 = vmax.f32 %v21557_v39, %v12771_v27  ;;  %v12985_v63 = vmax.f32 %v12779_v2, %v12780_v53  ;;  %v12986_v21 = vmax.f32 %v12780_v53, %v12781_v16  ;;  %v12987_v26 = vmax.f32 %v12781_v16, %v12782_v47  ;;  %v21826_v40 = vpop.permute.xlu0 %1536 }
 0x258   :  { %v12979_v14 = vmax.f32 %v12771_v27, %v21549_v28  ;;  %v9823_v55 = vcombine.high %v9821_v45, %v9821_v45  ;;  %v21821_v48 = vrot.slane %v9821_v45, %v19011_v56  ;;  %v21824_v19 = vrot.slane %v9822_v44, %v19011_v56  ;;  %v21839_v35 = vpop.permute.xlu1 %748 }
 0x259   :  { %v9852_v22 = vcombine.high %v9830_v62, %v9830_v62  ;;  %v13167_v50 = vmax.f32 %v12985_v63, %v12781_v16  ;;  %v13168_v34 = vmax.f32 %v12986_v21, %v12782_v47  ;;  %v12574_v38 = vmax.f32 %v21515_v60, %v9830_v62 }
 0x25a   :  { %28882 = vst [vmem:[#allocation35_spill] sm:$0xff] %v21821_v48  ;;  %28883 = vst [vmem:[#allocation24_spill] sm:$0xff] %v21824_v19  ;;  %v12982_v2 = vmax.f32 %v21561_v57, %v12775_v31  ;;  %v21831_v53 = vrot.slane %v9823_v55, %v19011_v56  ;;  %v9853_v41 = vcombine.high %v21821_v48, %v21821_v48 }
 0x25b   :  { %v9854_v45 = vcombine.high %v21824_v19, %v21824_v19  ;;  %v13681_v16 = vcombine.low %v13167_v50, %v13168_v34  ;;  %v21841_v63 = vmax.f32 %v9756_v37, %v9852_v22  ;;  %v21846_v62 = vmax.f32 %v12574_v38, %v21812_v54  ;;  %v21857_v34 = vpop.permute.xlu0 %1140 }
 0x25c   :  { %v9855_v21 = vcombine.high %v21831_v53, %v21831_v53  ;;  %v21855_v19 = vmax.f32 %v9757_v10, %v9853_v41  ;;  %v28884_v37 = vcombine.high %v21707_v0, %v21707_v0  ;;  %v12983_v38 = vmax.f32 %v12775_v31, %v21476_v3  ;;  %v21875_v0 = vpop.permute.xlu1 %1538 }
 0x25d   :  { %v21851_v55 = vmax.f32 %v21512_v7, %v9854_v45  ;;  %v12988_v50 = vmax.f32 %v12782_v47, %v21808_v61  ;;  %v28885_v10 = vmax.f32 %v21543_v8, %v21557_v39  ;;  %v13160_v60 = vmax.f32 %v12978_v59, %v21549_v28  ;;  %v28887_v7 = vld [vmem:[#allocation5_spill] sm:$0xff] }
 0x25e   :  { %v6952_v22 = vcombine.low %v28884_v37, %v21694_v30  ;;  %v21868_v45 = vmax.f32 %v21455_v36, %v9855_v21  ;;  %v13161_v44 = vmax.f32 %v12979_v14, %v21553_v43  ;;  %v28886_v37 = vmax.f32 %v21553_v43, %v21561_v57 }
 0x25f   :  { %v13159_v41 = vmax.f32 %v28885_v10, %v12771_v27  ;;  %v13164_v48 = vmax.f32 %v12982_v2, %v21476_v3  ;;  %v13165_v11 = vmax.f32 %v12983_v38, %v28887_v7  ;;  %v13169_v36 = vmax.f32 %v12987_v26, %v21808_v61  ;;  %v21887_v14 = vpop.permute.xlu0 %1734  ;;  %v28888_v27 = vld [vmem:[#allocation27_spill] sm:$0xff] }
 0x260   :  { %v13163_v47 = vmax.f32 %v28886_v37, %v12775_v31  ;;  %v6966_v8 = vrot.slane %v21737_v17, %v19011_v56  ;;  %v13170_v39 = vmax.f32 %v12988_v50, %v21846_v62  ;;  %v13596_v28 = vcombine.low %v13160_v60, %v13161_v44  ;;  %v21901_v60 = vpop.permute.xlu1 %944 }
 0x261   :  { %v13595_v59 = vcombine.low %v21586_v51, %v13159_v41  ;;  %v6973_v43 = vrot.slane %v21748_v6, %v19011_v56  ;;  %v13643_v3 = vcombine.low %v13164_v48, %v13165_v11  ;;  %v28889_v31 = vrot.slane %v28888_v27, 2 }
 0x262   :  { %v13642_v57 = vcombine.low %v21589_v9, %v13163_v47  ;;  %v28890_v26 = vrot.slane %v20727_v29, 2  ;;  %v13691_v17 = vrot.slane %v13681_v16, %v19011_v56  ;;  %v13624_v51 = vrot.slane %v13596_v28, %v19011_v56 }
 0x263   :  { %v13617_v21 = vrot.slane %v13595_v59, %v19011_v56  ;;  %v13682_v44 = vcombine.low %v13169_v36, %v13170_v39  ;;  %v6980_v9 = vrot.slane %v6952_v22, %v19011_v56  ;;  %v13657_v6 = vrot.slane %v13643_v3, %v19011_v56  ;;  %v21917_v7 = vpop.permute.xlu0 %1344 }
 0x264   :  { %v623_v2 = vsel %vm525_vm0, %v28890_v26, %v28889_v31  ;;  %v13650_v11 = vrot.slane %v13642_v57, %v19011_v56  ;;  %v6932_v29 = vcombine.low %v21713_v23, %v21724_v5  ;;  %v2492_v38 = vsel %vm2464_vm11, %v21703_v4, %v21685_v12  ;;  %v28892_v4 = vld [vmem:[#allocation12_spill] sm:$0xff]  ;;  %v21943_v57 = vld [vmem:[%s28513_s0 + $0x210] sm:$0xff] }
 0x265   :  { %1950 = vrot.lane.b32.xlu0 %v623_v2, %s18673_s17  ;;  %762 = vrot.lane.b32.xlu1 %v623_v2, %s18667_s20  ;;  %v13626_v48 = vcombine.low %v13617_v21, %v13624_v51  ;;  %v13698_v16 = vrot.slane %v13682_v44, %v19011_v56  ;;  %v28891_v22 = vcombine.low %v21688_v25, %v21691_v49  ;;  %v21929_v49 = vpop.permute.xlu1 %1736 }
 0x266   :  { %v6981_v10 = vcombine.low %v21727_v20, %v6966_v8  ;;  %v13665_v41 = vcombine.low %v13650_v11, %v13657_v6  ;;  %v6940_v23 = vrot.slane %v6932_v29, %v19011_v56  ;;  %v2557_v5 = vsel %vm2529_vm12, %v2492_v38, %v21757_v1  ;;  %v28894_v6 = vld [vmem:[#allocation13_spill] sm:$0xff] }
 0x267   :  { %v6947_v50 = vrot.slane %v28891_v22, %v19011_v56  ;;  %v13640_v37 = vrot.slane %v13626_v48, %v19011_v56  ;;  %v21924_v47 = vcombine.low %v13691_v17, %v13698_v16  ;;  %v3968_v12 = vcombine.high %v2557_v5, %v2557_v5  ;;  %v1939_v3 = vpop.permute.xlu0 %1938  ;;  %v28895_v16 = vld [vmem:[#allocation14_spill] sm:$0xff]  ;;  %v18617_v22 = vld [vmem:[%s28513_s0 + $0x168] sm:$0xff] }
 0x268   :  { %v3975_v25 = vrot.slane %v2557_v5, %v19011_v56  ;;  %v2168_v20 = vsel %vm2139_vm6, %v21608_v15, %v28892_v4  ;;  %v13672_v36 = vrot.slane %v13665_v41, %v19011_v56  ;;  %v6982_v1 = vcombine.low %v6973_v43, %v6980_v9  ;;  %v18361_v15 = vpop.f32.mrb[12].mxu0  ;;  %v18616_v9 = vld [vmem:[%s28513_s0 + $0x200] sm:$0xff]  ;;  %v97_v5 = vld [vmem:[%s28513_s0 + $0x208] sm:$0x1] }
 0x269   :  { %760 = vrot.lane.b32.xlu0 %v21077_v46, %s18667_s20  ;;  %v6948_v8 = vcombine.low %v6940_v23, %v6947_v50  ;;  %1356 = vrot.lane.b32.xlu1 %v623_v2, %s18670_s29  ;;  %v13641_v39 = vcombine.low %v21710_v58, %v13640_v37  ;;  %v3967_v46 = vcombine.high %v21733_v52, %v21733_v52  ;;  %v8964_v2 = vpop.f32.mrb[13].mxu0  ;;  %v21961_v11 = vpop.permute.xlu1 %365  ;;  %v28896_v50 = vld [vmem:[#allocation15_spill] sm:$0xff] }
 0x26a   :  { %v3982_v59 = vrot.slane %v3968_v12, %v19011_v56  ;;  %v3983_v28 = vcombine.high %v3975_v25, %v3975_v25  ;;  %v13680_v31 = vcombine.low %v13672_v36, %v21699_v42  ;;  %v3991_v43 = vrot.slane %v3975_v25, %v19011_v56  ;;  %v28897_v41 = vld [vmem:[#allocation3_spill] sm:$0xff] }
 0x26b   :  { %18375 = vmatmul.mubr.msk.f32.gmra.mrb[22].mxu0 %vm8713_vm13, %v6948_v8  ;;  %v6989_v58 = vrot.slane %v6981_v10, %v19011_v56  ;;  %v6996_v26 = vrot.slane %v6982_v1, %v19011_v56  ;;  %v28893_v17 = vcombine.high %v21694_v30, %v21694_v30  ;;  %14769 = vst.msk [vmem:[#allocation2 + $0x10] sm:$0xff] %vm14765_vm14, %v13641_v39  ;;  %v21981_v37 = vpop.permute.xlu0 %1142  ;;  %v28898_v36 = vld [vmem:[#allocation19_spill] sm:$0xff]  ;;  %v28899_v1 = vld [vmem:[#allocation17_spill] sm:$0xff] }
 0x26c   :  { %v3984_v51 = vcombine.high %v3982_v59, %v3982_v59  ;;  %v3998_v44 = vrot.slane %v3982_v59, %v19011_v56  ;;  %v4005_v42 = vrot.slane %v3983_v28, %v19011_v56  ;;  %v2169_v30 = vsel %vm2139_vm6, %v21655_v32, %v28894_v6  ;;  %14770 = vst.msk [vmem:[#allocation2 + $0x18] sm:$0x1f] %vm14767_vm15, %v13680_v31  ;;  %v28900_v31 = vld [vmem:[#allocation20_spill] sm:$0xff] }
 0x26d   :  { %v6998_v21 = vcombine.low %v21733_v52, %v28893_v17  ;;  %1550 = vrot.lane.b32.xlu0 %v18616_v9, %s18671_s30  ;;  %v4013_v52 = vcombine.high %v3991_v43, %v3991_v43  ;;  %v6999_v29 = vcombine.low %v3967_v46, %v3991_v43  ;;  %v6997_v48 = vcombine.low %v6989_v58, %v6996_v26  ;;  %v21992_v28 = vpop.permute.xlu1 %1540  ;;  %v28901_v58 = vld [vmem:[#allocation18_spill] sm:$0xff] }
 0x26e   :  { %958 = vrot.lane.b32.xlu1 %v21943_v57, %s18668_s21  ;;  %v2233_v38 = vsel %vm2204_vm7, %v2168_v20, %v28895_v16  ;;  %v2105_v10 = vsel %vm2074_vm5, %v18617_v22, %v28896_v50  ;;  %v2234_v32 = vsel %vm2204_vm7, %v2169_v30, %v28897_v41  ;;  %v4015_v23 = vcombine.high %v4005_v42, %v4005_v42 }
 0x26f   :  { %v4012_v12 = vrot.slane %v3984_v51, %v19011_v56  ;;  %v4014_v25 = vcombine.high %v3998_v44, %v3998_v44  ;;  %v7000_v4 = vcombine.low %v4005_v42, %v4013_v52  ;;  %v7015_v20 = vrot.slane %v6999_v29, %v19011_v56  ;;  %18377 = vmatprep.mubr.msk.f32.mxu0 %vm8713_vm13, %v6997_v48  ;;  %v22013_v30 = vpop.permute.xlu0 %1940  ;;  %v28902_v48 = vld [vmem:[#allocation9_spill] sm:$0xff] }
 0x270   :  { %v2298_v8 = vsel %vm2269_vm8, %v2233_v38, %v28898_v36  ;;  %v2299_v39 = vsel %vm2269_vm8, %v2234_v32, %v28899_v1  ;;  %v7008_v46 = vrot.slane %v6998_v21, %v19011_v56  ;;  %v7001_v59 = vcombine.low %v4015_v23, %v3998_v44  ;;  %v22007_v21 = vld [vmem:[%s28513_s0 + $0x218] sm:$0xff]  ;;  %v28903_v38 = vld [vmem:[#allocation29_spill] sm:$0xff] }
 0x271   :  { %956 = vrot.lane.b32.xlu0 %v18616_v9, %s18668_s21  ;;  %v21996_v43 = vsel %vm2139_vm6, %v2105_v10, %v28900_v31  ;;  %v2363_v26 = vsel %vm2334_vm9, %v2298_v8, %v28901_v58  ;;  %v2364_v17 = vsel %vm2334_vm9, %v2299_v39, %v21817_v13  ;;  %v624_v51 = vrot.slane %v97_v5, 2  ;;  %v22028_v41 = vpop.permute.xlu1 %367 }
 0x272   :  { %1552 = vrot.lane.b32.xlu1 %v21943_v57, %s18671_s30  ;;  %v7022_v44 = vrot.slane %v7000_v4, %v19011_v56  ;;  %v7029_v42 = vrot.slane %v7001_v59, %v19011_v56  ;;  %v7030_v9 = vcombine.low %v7008_v46, %v7015_v20  ;;  %v2428_v6 = vsel %vm2399_vm10, %v2363_v26, %v21826_v40 }
 0x273   :  { %v22015_v13 = vcombine.low %v4012_v12, %v4014_v25  ;;  %v2493_v52 = vsel %vm2464_vm11, %v2428_v6, %v21887_v14  ;;  %v265_v29 = vrot.slane %v21943_v57, 1  ;;  %v8970_v16 = vadd.f32 %v28902_v48, %v18361_v15  ;;  %v22040_v4 = vpop.permute.xlu0 %750 }
 0x274   :  { %v7031_v22 = vcombine.low %v7022_v44, %v7029_v42  ;;  %v22024_v50 = vrot.slane %v22007_v21, 1  ;;  %v2558_v40 = vsel %vm2529_vm12, %v2493_v52, %v1939_v3  ;;  %v8965_v10 = vadd.f32 %v28902_v48, %v8964_v2 }
 0x275   :  { %1748 = vrot.lane.b32.xlu0 %v28903_v38, %s18672_s10  ;;  %v2429_v14 = vsel %vm2399_vm10, %v2364_v17, %v21875_v0  ;;  %v9214_v15 = vmax.f32 %v8970_v16, 0.0  ;;  %v4016_v32 = vcombine.high %v2558_v40, %v2558_v40  ;;  %v4023_v23 = vrot.slane %v2558_v40, %v19011_v56  ;;  %v22051_v59 = vpop.permute.xlu1 %1346 }
 0x276   :  { %379 = vrot.lane.b32.xlu1 %v28903_v38, %s18666_s19  ;;  %v28904_v5 = vrot.slane %v28888_v27, 2  ;;  %v7038_v3 = vrot.slane %v7030_v9, %v19011_v56  ;;  %v7045_v2 = vrot.slane %v7031_v22, %v19011_v56  ;;  %v9213_v25 = vmax.f32 %v8965_v10, 0.0 }
 0x277   :  { %v9954_v20 = vcombine.high %v9214_v15, %v9214_v15  ;;  %v9961_v0 = vrot.slane %v9214_v15, %v19011_v56  ;;  %v4030_v36 = vrot.slane %v4016_v32, %v19011_v56  ;;  %v4031_v8 = vcombine.high %v4023_v23, %v4023_v23  ;;  %v22065_v6 = vpop.permute.xlu0 %1738 }
 0x278   :  { %v625_v12 = vsel %vm525_vm0, %v28904_v5, %v624_v51  ;;  %v7046_v1 = vcombine.low %v7038_v3, %v7045_v2  ;;  %v22048_v27 = vsel %vm204_vm1, %v265_v29, %v22024_v50  ;;  %v9905_v39 = vcombine.high %v9213_v25, %v9213_v25 }
 0x279   :  { %1154 = vrot.lane.b32.xlu0 %v28903_v38, %s18669_s26  ;;  %v9912_v46 = vrot.slane %v9213_v25, %v19011_v56  ;;  %v9968_v31 = vrot.slane %v9954_v20, %v19011_v56  ;;  %v9969_v58 = vcombine.high %v9961_v0, %v9961_v0  ;;  %v22056_v26 = vrot.slane %v9961_v0, %v19011_v56  ;;  %v28906_v38 = vld [vmem:[#allocation22_spill] sm:$0xff]  ;;  %v28910_v20 = vld [vmem:[#allocation37_spill] sm:$0xff] }
 0x27a   :  { %1358 = vrot.lane.b32.xlu1 %v625_v12, %s18670_s29  ;;  %v4032_v17 = vcombine.high %v4030_v36, %v4030_v36  ;;  %18378 = vmatmul.mubr.msk.f32.gmra.mrb[24].mxu0 %vm8713_vm13, %v7046_v1  ;;  %v4039_v51 = vrot.slane %v4023_v23, %v19011_v56  ;;  %v22061_v44 = vrot.slane %v4030_v36, %v19011_v56  ;;  %v22085_v23 = vpop.permute.xlu1 %369  ;;  %v28924_v36 = vld [vmem:[#allocation8_spill] sm:$0xff] }
 0x27b   :  { %v4053_v42 = vrot.slane %v4031_v8, %v19011_v56  ;;  %v9919_v9 = vrot.slane %v9905_v39, %v19011_v56  ;;  %v9970_v52 = vcombine.high %v9968_v31, %v9968_v31  ;;  %v22068_v29 = vrot.slane %v9968_v31, %v19011_v56  ;;  %28908 = vst [vmem:[#allocation36_spill] sm:$0xff] %v22085_v23  ;;  %v22104_v31 = vpop.permute.xlu0 %752 }
 0x27c   :  { %v22071_v48 = vrot.slane %v9969_v58, %v19011_v56  ;;  %v9999_v16 = vcombine.high %v22056_v26, %v22056_v26  ;;  %v28907_v22 = vmax.f32 %v21470_v33, %v28906_v38  ;;  %v22083_v10 = vrot.slane %v4032_v17, %v19011_v56  ;;  %v28909_v33 = vld [vmem:[#allocation32_spill] sm:$0xff]  ;;  %28912 = vst [vmem:[#allocation30_spill] sm:$0xff] %v22104_v31  ;;  %v28913_v17 = vld [vmem:[#allocation7_spill] sm:$0xff] }
 0x27d   :  { %28905 = vst [vmem:[#allocation33_spill] sm:$0xff] %v22068_v29  ;;  %1952 = vrot.lane.b32.xlu0 %v625_v12, %s18673_s17  ;;  %v7048_v15 = vcombine.low %v4039_v51, %v4053_v42  ;;  %v9920_v32 = vcombine.high %v9912_v46, %v9912_v46  ;;  %v22088_v5 = vrot.slane %v9970_v52, %v19011_v56 }
 0x27e   :  { %v22080_v40 = vmax.f32 %v28907_v22, %v22056_v26  ;;  %v10000_v3 = vcombine.high %v22068_v29, %v22068_v29  ;;  %v10001_v2 = vcombine.high %v22071_v48, %v22071_v48  ;;  %764 = vrot.lane.b32.xlu1 %v625_v12, %s18667_s20  ;;  %v22098_v0 = vmax.f32 %v28910_v20, %v9999_v16  ;;  %v28914_v12 = vld [vmem:[#allocation34_spill] sm:$0xff] }
 0x27f   :  { %v18118_v1 = vcombine.high %v4039_v51, %v4053_v42  ;;  %v7050_v39 = vcombine.low %v22061_v44, %v22083_v10  ;;  %v10002_v58 = vcombine.high %v22088_v5, %v22088_v5  ;;  %v28915_v22 = vld [vmem:[#allocation38_spill] sm:$0xff]  ;;  %v2494_v42 = vsel %vm2464_vm11, %v2429_v14, %v21929_v49 }
 0x280   :  { %v22109_v52 = vmax.f32 %v28913_v17, %v10001_v2  ;;  %v22114_v16 = vmax.f32 %v21812_v54, %v10000_v3  ;;  %v2235_v51 = vsel %vm2204_vm7, %v21996_v43, %v28915_v22  ;;  %v7057_v2 = vrot.slane %v22015_v13, %v19011_v56  ;;  %v22126_v17 = vpop.permute.xlu1 %946  ;;  %v22143_v22 = vpop.permute.xlu0 %1542 }
 0x281   :  { %1156 = vrot.lane.b32.xlu0 %v22048_v27, %s18669_s26  ;;  %v7064_v20 = vrot.slane %v7048_v15, %v19011_v56  ;;  %v9921_v8 = vcombine.high %v9919_v9, %v9919_v9  ;;  %v9928_v54 = vrot.slane %v9912_v46, %v19011_v56  ;;  %v22130_v3 = vrot.slane %v9919_v9, %v19011_v56 }
 0x282   :  { %v22133_v43 = vrot.slane %v9920_v32, %v19011_v56  ;;  %1554 = vrot.lane.b32.xlu1 %v22007_v21, %s18671_s30  ;;  %v22138_v49 = vrot.slane %v18118_v1, %v19011_v56  ;;  %v7078_v13 = vrot.slane %v7050_v39, %v19011_v56  ;;  %v626_v14 = vrot.slane %v21943_v57, 2  ;;  %v28917_v1 = vld [vmem:[#allocation24_spill] sm:$0xff] }
 0x283   :  { %v22146_v46 = vrot.slane %v9921_v8, %v19011_v56  ;;  %v22148_v9 = vcombine.high %v9928_v54, %v9928_v54  ;;  %v22152_v32 = vcombine.high %v22130_v3, %v22130_v3  ;;  %v22154_v38 = vmax.f32 %v9928_v54, %v10002_v58 }
 0x284   :  { %v28918_v39 = vmax.f32 %v21528_v18, %v28917_v1  ;;  %v22161_v57 = vmax.f32 %v21841_v63, %v22133_v43  ;;  %v28919_v8 = vmax.f32 %v21532_v24, %v21831_v53  ;;  %v28920_v58 = vrot.slane %v22007_v21, 2  ;;  %v1943_v18 = vpop.permute.xlu1 %1942 }
 0x285   :  { %28916 = vst [vmem:[#allocation25_spill] sm:$0xff] %v22146_v46  ;;  %1750 = vrot.lane.b32.xlu0 %v22048_v27, %s18672_s10  ;;  %v22182_v63 = vmax.f32 %v21855_v19, %v22146_v46  ;;  %v22186_v24 = vmax.f32 %v21868_v45, %v22152_v32  ;;  %v2559_v53 = vsel %vm2529_vm12, %v2494_v42, %v22013_v30  ;;  %v22202_v45 = vld [vmem:[%s28513_s0 + $0x228] sm:$0xff] }
 0x286   :  { %v12785_v25 = vmax.f32 %v28918_v39, %v9928_v54  ;;  %v22167_v15 = vmax.f32 %v28919_v8, %v22130_v3  ;;  %v22174_v29 = vsel %vm525_vm0, %v626_v14, %v28920_v58  ;;  %v22178_v54 = vmax.f32 %v21851_v55, %v22148_v9  ;;  %381 = vrot.lane.b32.xlu1 %v22048_v27, %s18666_s19  ;;  %v22204_v8 = vpop.permute.xlu0 %754  ;;  %v22227_v42 = vld [vmem:[%s28513_s0 + $0x288] sm:$0xff] }
 0x287   :  { %v28921_v55 = vmax.f32 %v21808_v61, %v21846_v62  ;;  %v4065_v19 = vcombine.high %v2559_v53, %v2559_v53  ;;  %28922 = vst [vmem:[#allocation28_spill] sm:$0xff] %v22204_v8  ;;  %v4072_v61 = vrot.slane %v2559_v53, %v19011_v56  ;;  %v7079_v30 = vcombine.low %v7057_v2, %v7064_v20 }
 0x288   :  { %v12990_v14 = vmax.f32 %v21846_v62, %v12785_v25  ;;  %v12991_v1 = vmax.f32 %v12785_v25, %v22161_v57  ;;  %v12995_v27 = vmax.f32 %v22167_v15, %v22182_v63  ;;  %v2300_v62 = vsel %vm2269_vm8, %v2235_v51, %v21857_v34  ;;  %v22229_v53 = vpop.permute.xlu1 %948 }
 0x289   :  { %v22197_v39 = vmax.f32 %v28921_v55, %v12785_v25  ;;  %1360 = vrot.lane.b32.xlu0 %v22174_v29, %s18670_s29  ;;  %v4079_v55 = vrot.slane %v4065_v19, %v19011_v56  ;;  %28923 = vst [vmem:[#allocation26_spill] sm:$0xff] %v22229_v53  ;;  %v7080_v34 = vcombine.low %v22138_v49, %v7078_v13  ;;  %v18618_v19 = vld [vmem:[%s28513_s0 + $0x170] sm:$0xff]  ;;  %v280_v31 = vrot.slane %v22227_v42, 1 }
 0x28a   :  { %v22216_v25 = vmax.f32 %v12990_v14, %v22161_v57  ;;  %v22219_v58 = vmax.f32 %v12991_v1, %v22178_v54  ;;  %v22233_v51 = vmax.f32 %v12995_v27, %v22186_v24  ;;  %v4080_v14 = vcombine.high %v4072_v61, %v4072_v61  ;;  %1556 = vrot.lane.b32.xlu1 %v22202_v45, %s18671_s30  ;;  %v22240_v1 = vld [vmem:[%s28513_s0 + $0x290] sm:$0xff]  ;;  %v22251_v27 = vpop.permute.xlu0 %1144 }
 0x28b   :  { %v2106_v2 = vsel %vm2074_vm5, %v18618_v19, %v28924_v36  ;;  %v2365_v20 = vsel %vm2334_vm9, %v2300_v62, %v21917_v7  ;;  %v4081_v13 = vcombine.high %v4079_v55, %v4079_v55  ;;  %28925 = vst [vmem:[#allocation23_spill] sm:$0xff] %v22251_v27  ;;  %v18119_v8 = vcombine.high %v22061_v44, %v22083_v10 }
 0x28c   :  { %v4088_v23 = vrot.slane %v4072_v61, %v19011_v56  ;;  %v4102_v53 = vrot.slane %v4080_v14, %v19011_v56  ;;  %v2430_v36 = vsel %vm2399_vm10, %v2365_v20, %v21992_v28  ;;  %v22261_v7 = vrot.slane %v4079_v55, %v19011_v56  ;;  %v22269_v44 = vpop.permute.xlu1 %1740 }
 0x28d   :  { %v4109_v62 = vrot.slane %v4081_v13, %v19011_v56  ;;  %1954 = vrot.lane.b32.xlu0 %v22174_v29, %s18673_s17  ;;  %v22267_v19 = vrot.slane %v22240_v1, 1  ;;  %v7087_v14 = vrot.slane %v7079_v30, %v19011_v56  ;;  %v7094_v49 = vrot.slane %v7080_v34, %v19011_v56 }
 0x28e   :  { %v7097_v10 = vcombine.low %v4088_v23, %v4102_v53  ;;  %v18120_v61 = vcombine.high %v4088_v23, %v4102_v53  ;;  %v2171_v28 = vsel %vm2139_vm6, %v2106_v2, %v21839_v35  ;;  %v2495_v20 = vsel %vm2464_vm11, %v2430_v36, %v22065_v6  ;;  %v100_v23 = vld [vmem:[%s28513_s0 + $0x220] sm:$0x1]  ;;  %v22285_v53 = vpop.permute.xlu0 %950  ;;  %v18364_v2 = vpop.f32.mrb[14].mxu0 }
 0x28f   :  { %28926 = vst [vmem:[#allocation10_spill] sm:$0xff] %v22267_v19  ;;  %v7099_v55 = vcombine.low %v22261_v7, %v4109_v62  ;;  %v22280_v13 = vsel %vm204_vm1, %v280_v31, %v22267_v19  ;;  %28928 = vst [vmem:[#allocation4_spill] sm:$0xff] %v22285_v53  ;;  %v7106_v30 = vrot.slane %v18119_v8, %v19011_v56  ;;  %v22300_v8 = vld [vmem:[%s28513_s0 + $0x230] sm:$0xff] }
 0x290   :  { %28927 = vst [vmem:[#allocation31_spill] sm:$0xff] %v22280_v13  ;;  %v7113_v34 = vrot.slane %v7097_v10, %v19011_v56  ;;  %401 = vrot.lane.b32.xlu1 %v22280_v13, %s18666_s19  ;;  %v7095_v35 = vcombine.low %v7087_v14, %v7094_v49  ;;  %v2560_v6 = vsel %vm2529_vm12, %v2495_v20, %v1943_v18  ;;  %v8974_v10 = vpop.f32.mrb[15].mxu0  ;;  %v22302_v49 = vpop.permute.xlu1 %1146  ;;  %v629_v14 = vrot.slane %v100_v23, 2 }
 0x291   :  { %v7120_v31 = vrot.slane %v18120_v61, %v19011_v56  ;;  %v7127_v36 = vrot.slane %v7099_v55, %v19011_v56  ;;  %960 = vrot.lane.b32.xlu0 %v22007_v21, %s18668_s21  ;;  %v4113_v62 = vcombine.high %v2560_v6, %v2560_v6  ;;  %v4120_v19 = vrot.slane %v2560_v6, %v19011_v56 }
 0x292   :  { %28929 = vst [vmem:[#allocation5_spill] sm:$0xff] %v22302_v49  ;;  %v2236_v18 = vsel %vm2204_vm7, %v2171_v28, %v21901_v60  ;;  %v7128_v61 = vcombine.low %v7106_v30, %v7113_v34  ;;  %18380 = vmatprep.mubr.msk.f32.mxu0 %vm8713_vm13, %v7095_v35  ;;  %v22309_v53 = vpop.permute.xlu0 %1348  ;;  %v268_v60 = vrot.slane %v22202_v45, 1  ;;  %v22319_v28 = vrot.slane %v22300_v8, 1 }
 0x293   :  { %v7129_v55 = vcombine.low %v7120_v31, %v7127_v36  ;;  %v4127_v20 = vrot.slane %v4113_v62, %v19011_v56  ;;  %v4128_v13 = vcombine.high %v4120_v19, %v4120_v19  ;;  %v4136_v6 = vrot.slane %v4120_v19, %v19011_v56  ;;  %28930 = vst [vmem:[#allocation27_spill] sm:$0xff] %v22309_v53 }
 0x294   :  { %v2301_v49 = vsel %vm2269_vm8, %v2236_v18, %v21981_v37  ;;  %1158 = vrot.lane.b32.xlu1 %v22024_v50, %s18669_s26  ;;  %28931 = vst [vmem:[#allocation12_spill] sm:$0xff] %v22319_v28  ;;  %v28932_v34 = vrot.slane %v22007_v21, 2  ;;  %v22330_v35 = vpop.permute.xlu1 %1944  ;;  %v4111_v31 = vcombine.high %v22261_v7, %v22261_v7  ;;  %v7136_v36 = vrot.slane %v7128_v61, %v19011_v56  ;;  %v22339_v18 = vld [vmem:[%s28515_s2] ss:$0 sm:$0xff]  ;;  %v18620_v7 = vld [vmem:[%s28513_s0 + $0x1b0] sm:$0xff] }
 0x295   :  { %1752 = vrot.lane.b32.xlu0 %v22024_v50, %s18672_s10  ;;  %v4129_v19 = vcombine.high %v4127_v20, %v4127_v20  ;;  %v4143_v23 = vrot.slane %v4127_v20, %v19011_v56  ;;  %v4150_v30 = vrot.slane %v4128_v13, %v19011_v56  ;;  %v7143_v62 = vrot.slane %v7129_v55, %v19011_v56 }
 0x296   :  { %v22328_v37 = vsel %vm525_vm0, %v28932_v34, %v629_v14  ;;  %28933 = vst [vmem:[#allocation13_spill] sm:$0xff] %v22339_v18  ;;  %v8980_v13 = vadd.f32 %v22339_v18, %v18364_v2  ;;  %v4158_v14 = vcombine.high %v4136_v6, %v4136_v6  ;;  %v22345_v27 = vpop.permute.xlu0 %371  ;;  %v22352_v61 = vsel %vm2074_vm5, %v18620_v7, %v21961_v11 }
 0x297   :  { %v22343_v21 = vrot.slane %v4129_v19, %v19011_v56  ;;  %v4159_v20 = vcombine.high %v4143_v23, %v4143_v23  ;;  %v4160_v34 = vcombine.high %v4150_v30, %v4150_v30  ;;  %28934 = vst [vmem:[#allocation14_spill] sm:$0xff] %v22345_v27  ;;  %v2366_v55 = vsel %vm2334_vm9, %v2301_v49, %v22051_v59 }
 0x298   :  { %1956 = vrot.lane.b32.xlu1 %v22328_v37, %s18673_s17  ;;  %v7144_v2 = vcombine.low %v7136_v36, %v7143_v62  ;;  %v9216_v19 = vmax.f32 %v8980_v13, 0.0  ;;  %v28935_v27 = vcombine.low %v22197_v39, %v22216_v25  ;;  %v22368_v11 = vsel %vm2399_vm10, %v2366_v55, %v22143_v22  ;;  %v22376_v49 = vpop.permute.xlu1 %1148  ;;  %v22386_v22 = vld [vmem:[%s28513_s0 + $0x278] sm:$0xff] }
 0x299   :  { %766 = vrot.lane.b32.xlu0 %v22174_v29, %s18667_s20  ;;  %v22370_v7 = vcombine.low %v4111_v31, %v4136_v6  ;;  %v22374_v59 = vsel %vm204_vm1, %v268_v60, %v22319_v28  ;;  %28937 = vst [vmem:[#allocation3_spill] sm:$0xff] %v22376_v49  ;;  %v9952_v29 = vcombine.high %v22133_v43, %v22133_v43  ;;  %28938 = vst [vmem:[#allocation19_spill] sm:$0xff] %v22386_v22 }
 0x29a   :  { %v22362_v53 = vrot.slane %v28935_v27, %v19011_v56  ;;  %28936 = vst [vmem:[#allocation15_spill] sm:$0xff] %v22374_v59  ;;  %18381 = vmatmul.mubr.msk.f32.gmra.mrb[26].mxu0 %vm8713_vm13, %v7144_v2  ;;  %v10052_v39 = vcombine.high %v9216_v19, %v9216_v19  ;;  %v10059_v25 = vrot.slane %v9216_v19, %v19011_v56  ;;  %v22397_v62 = vpop.permute.xlu0 %1350  ;;  %v28944_v2 = vld [vmem:[#allocation6_spill] sm:$0xff]  ;;  %v28945_v19 = vld [vmem:[#allocation16_spill] sm:$0xff]  ;;  %v22414_v28 = vrot.slane %v22386_v22, 1 }
 0x29b   :  { %v8975_v27 = vadd.f32 %v22339_v18, %v8974_v10  ;;  %v22388_v6 = vcombine.low %v4150_v30, %v4158_v14  ;;  %v22390_v60 = vcombine.low %v4160_v34, %v4143_v23  ;;  %v22393_v31 = vcombine.low %v22343_v21, %v4159_v20  ;;  %28939 = vst [vmem:[#allocation17_spill] sm:$0xff] %v22397_v62  ;;  %v28941_v23 = vld [vmem:[#allocation11_spill] sm:$0xff] }
 0x29c   :  { %v9953_v36 = vcombine.high %v22146_v46, %v22146_v46  ;;  %385 = vrot.lane.b32.xlu1 %v22374_v59, %s18666_s19  ;;  %v10066_v10 = vrot.slane %v10052_v39, %v19011_v56  ;;  %v10067_v13 = vcombine.high %v10059_v25, %v10059_v25  ;;  %v22403_v55 = vrot.slane %v10059_v25, %v19011_v56  ;;  %v28942_v14 = vld [vmem:[#allocation35_spill] sm:$0xff]  ;;  %v22417_v62 = vpop.permute.xlu1 %1544 }
 0x29d   :  { %v9215_v30 = vmax.f32 %v8975_v27, 0.0  ;;  %1754 = vrot.lane.b32.xlu0 %v22374_v59, %s18672_s10  ;;  %v28943_v20 = vmax.f32 %v28941_v23, %v28942_v14  ;;  %v28946_v18 = vmax.f32 %v28944_v2, %v28945_v19  ;;  %28947 = vst [vmem:[#allocation18_spill] sm:$0xff] %v22414_v28  ;;  %28948 = vst [vmem:[#allocation9_spill] sm:$0xff] %v22417_v62 }
 0x29e   :  { %28940 = vst [vmem:[#allocation20_spill] sm:$0xff] %v22403_v55  ;;  %v10068_v25 = vcombine.high %v10066_v10, %v10066_v10  ;;  %v22420_v27 = vrot.slane %v10066_v10, %v19011_v56  ;;  %v22423_v59 = vrot.slane %v10067_v13, %v19011_v56  ;;  %v22427_v23 = vcombine.high %v22403_v55, %v22403_v55  ;;  %v22435_v39 = vpop.permute.xlu0 %756 }
 0x29f   :  { %v12788_v34 = vmax.f32 %v28943_v20, %v9952_v29  ;;  %v12792_v49 = vmax.f32 %v28946_v18, %v9953_v36  ;;  %v28952_v18 = vmax.f32 %v28909_v33, %v22071_v48  ;;  %v10003_v20 = vcombine.high %v9215_v30, %v9215_v30  ;;  %28953 = vst [vmem:[#allocation37_spill] sm:$0xff] %v22435_v39 }
 0x2a0   :  { %28949 = vst [vmem:[#allocation29_spill] sm:$0xff] %v22420_v27  ;;  %28950 = vst [vmem:[#allocation22_spill] sm:$0xff] %v22423_v59  ;;  %v10010_v2 = vrot.slane %v9215_v30, %v19011_v56  ;;  %v22438_v10 = vrot.slane %v10068_v25, %v19011_v56  ;;  %v22442_v13 = vcombine.high %v22420_v27, %v22420_v27 }
 0x2a1   :  { %28951 = vst [vmem:[#allocation32_spill] sm:$0xff] %v22427_v23  ;;  %v12794_v14 = vmax.f32 %v28952_v18, %v22403_v55  ;;  %v12993_v19 = vmax.f32 %v22178_v54, %v12788_v34  ;;  %v22446_v62 = vmax.f32 %v22098_v0, %v22423_v59  ;;  %v22450_v48 = vmax.f32 %v22109_v52, %v22427_v23  ;;  %v22462_v0 = vpop.permute.xlu1 %1352 }
 0x2a2   :  { %28954 = vst [vmem:[#allocation7_spill] sm:$0xff] %v22438_v10  ;;  %28955 = vst [vmem:[#allocation34_spill] sm:$0xff] %v22442_v13  ;;  %383 = vrot.lane.b32.xlu0 %v22024_v50, %s18666_s19  ;;  %v28956_v33 = vmax.f32 %v28914_v12, %v22088_v5  ;;  %v10017_v25 = vrot.slane %v10003_v20, %v19011_v56  ;;  %v10018_v18 = vcombine.high %v10010_v2, %v10010_v2 }
 0x2a3   :  { %v10026_v55 = vrot.slane %v10010_v2, %v19011_v56  ;;  %28957 = vst [vmem:[#allocation38_spill] sm:$0xff] %v22462_v0  ;;  %v22466_v52 = vmax.f32 %v22114_v16, %v22438_v10  ;;  %v22470_v50 = vmax.f32 %v22154_v38, %v22442_v13  ;;  %v12998_v23 = vmax.f32 %v12794_v14, %v22446_v62 }
 0x2a4   :  { %v22458_v30 = vmax.f32 %v28956_v33, %v22420_v27  ;;  %v10019_v12 = vcombine.high %v10017_v25, %v10017_v25  ;;  %v22476_v20 = vrot.slane %v10017_v25, %v19011_v56  ;;  %v22479_v2 = vrot.slane %v10018_v18, %v19011_v56  ;;  %v22481_v27 = vpop.permute.xlu0 %1546 }
 0x2a5   :  { %v10048_v33 = vcombine.high %v10026_v55, %v10026_v55  ;;  %v22486_v38 = vmax.f32 %v12998_v23, %v22450_v48  ;;  %v22490_v14 = vcombine.high %v22438_v10, %v22438_v10  ;;  %v12591_v5 = vmax.f32 %v22133_v43, %v10026_v55  ;;  %v22504_v23 = vpop.permute.xlu1 %1742 }
 0x2a6   :  { %28958 = vst [vmem:[#allocation24_spill] sm:$0xff] %v22476_v20  ;;  %28959 = vst [vmem:[#allocation8_spill] sm:$0xff] %v22479_v2  ;;  %v13002_v16 = vmax.f32 %v22458_v30, %v22466_v52  ;;  %v22494_v25 = vrot.slane %v10019_v12, %v19011_v56  ;;  %v10049_v18 = vcombine.high %v22476_v20, %v22476_v20  ;;  %399 = vrot.lane.b32.xlu0 %v22414_v28, %s18666_s19 }
 0x2a7   :  { %v10050_v13 = vcombine.high %v22479_v2, %v22479_v2  ;;  %v22506_v10 = vmax.f32 %v9952_v29, %v10048_v33  ;;  %v22511_v55 = vmax.f32 %v12591_v5, %v22490_v14  ;;  %v12994_v12 = vmax.f32 %v12788_v34, %v22167_v15 }
 0x2a8   :  { %v10051_v39 = vcombine.high %v22494_v25, %v22494_v25  ;;  %v22521_v2 = vmax.f32 %v9953_v36, %v10049_v18  ;;  %v22523_v29 = vpop.permute.xlu0 %373  ;;  %v12997_v33 = vmax.f32 %v22186_v24, %v12792_v49  ;;  %v13003_v5 = vmax.f32 %v22466_v52, %v22470_v50 }
 0x2a9   :  { %v22517_v0 = vmax.f32 %v22130_v3, %v10050_v13  ;;  %v28961_v20 = vmax.f32 %v22161_v57, %v22178_v54  ;;  %v13175_v36 = vmax.f32 %v12993_v19, %v22167_v15  ;;  %v13176_v18 = vmax.f32 %v12994_v12, %v22182_v63 }
 0x2aa   :  { %28960 = vst [vmem:[#allocation11_spill] sm:$0xff] %v22521_v2  ;;  %v22534_v13 = vmax.f32 %v22056_v26, %v10051_v39  ;;  %v28962_v28 = vmax.f32 %v22182_v63, %v22186_v24  ;;  %962 = vrot.lane.b32.xlu0 %v22202_v45, %s18668_s21  ;;  %v22543_v2 = vpop.permute.xlu1 %952  ;;  %v13179_v43 = vmax.f32 %v12997_v33, %v22080_v40  ;;  %v28963_v19 = vrot.slane %v22227_v42, 2 }
 0x2ab   :  { %v13174_v3 = vmax.f32 %v28961_v20, %v12788_v34  ;;  %v22547_v57 = vmax.f32 %v13002_v16, %v22470_v50  ;;  %v22550_v26 = vmax.f32 %v13003_v5, %v22511_v55  ;;  %v7162_v54 = vrot.slane %v22388_v6, %v19011_v56 }
 0x2ac   :  { %v13178_v46 = vmax.f32 %v28962_v28, %v12792_v49  ;;  %v13730_v63 = vcombine.low %v13175_v36, %v13176_v18  ;;  %v28606_v28 = vrot.slane %v22240_v1, 2  ;;  %v22557_v49 = vpop.permute.xlu0 %1548  ;;  %v7155_v40 = vrot.slane %v22370_v7, %v19011_v56 }
 0x2ad   :  { %v13684_v15 = vcombine.low %v22219_v58, %v13174_v3  ;;  %v13752_v39 = vrot.slane %v13179_v43, %v19011_v56  ;;  %v13771_v58 = vcombine.low %v22547_v57, %v22550_v26  ;;  %v2496_v6 = vsel %vm2464_vm11, %v22368_v11, %v22269_v44 }
 0x2ae   :  { %v13731_v24 = vcombine.low %v22233_v51, %v13178_v46  ;;  %v13738_v46 = vrot.slane %v13730_v63, %v19011_v56  ;;  %v22575_v7 = vsel %vm525_vm0, %v28963_v19, %v28606_v28  ;;  %v7169_v20 = vrot.slane %v22390_v60, %v19011_v56  ;;  %v22586_v11 = vpop.permute.xlu1 %1744 }
 0x2af   :  { %v13712_v34 = vrot.slane %v13684_v15, %v19011_v56  ;;  %28964 = vst [vmem:[#allocation35_spill] sm:$0xff] %v22575_v7  ;;  %v7176_v16 = vrot.slane %v22393_v31, %v19011_v56  ;;  %786 = vrot.lane.b32.xlu1 %v22575_v7, %s18667_s20  ;;  %v2561_v44 = vsel %vm2529_vm12, %v2496_v6, %v22330_v35  ;;  %v631_v31 = vrot.slane %v22202_v45, 2  ;;  %v29003_v7 = vld [vmem:[#allocation32_spill] sm:$0xff] }
 0x2b0   :  { %v13745_v51 = vrot.slane %v13731_v24, %v19011_v56  ;;  %v7177_v42 = vcombine.low %v7155_v40, %v7162_v54  ;;  %v4162_v33 = vcombine.high %v2561_v44, %v2561_v44  ;;  %v4169_v5 = vrot.slane %v2561_v44, %v19011_v56  ;;  %v1947_v54 = vpop.permute.xlu0 %1946 }
 0x2b1   :  { %v13714_v43 = vcombine.low %v22362_v53, %v13712_v34  ;;  %v13767_v3 = vrot.slane %v13752_v39, %v19011_v56  ;;  %v632_v53 = vrot.slane %v22300_v8, 2  ;;  %v28965_v63 = vrot.slane %v21924_v47, %v19011_v56  ;;  %v112_v47 = vld [vmem:[%s28513_s0 + $0x280] sm:$0x1] }
 0x2b2   :  { %v13753_v12 = vcombine.low %v13738_v46, %v13745_v51  ;;  %v4176_v18 = vrot.slane %v4162_v33, %v19011_v56  ;;  %v4177_v35 = vcombine.high %v4169_v5, %v4169_v5  ;;  %v4185_v15 = vrot.slane %v4169_v5, %v19011_v56 }
 0x2b3   :  { %v13728_v60 = vrot.slane %v13714_v43, %v19011_v56  ;;  %1362 = vrot.lane.b32.xlu1 %v22328_v37, %s18670_s29  ;;  %v4161_v45 = vcombine.high %v22343_v21, %v22343_v21  ;;  %v22606_v40 = vsel %vm525_vm0, %v631_v31, %v632_v53  ;;  %v7178_v34 = vcombine.low %v7169_v20, %v7176_v16  ;;  %v22618_v16 = vpop.permute.xlu1 %758 }
 0x2b4   :  { %v13760_v36 = vrot.slane %v13753_v12, %v19011_v56  ;;  %v4178_v6 = vcombine.high %v4176_v18, %v4176_v18  ;;  %v4192_v46 = vrot.slane %v4176_v18, %v19011_v56  ;;  %v4199_v51 = vrot.slane %v4177_v35, %v19011_v56  ;;  %1958 = vrot.lane.b32.xlu0 %v22606_v40, %s18673_s17 }
 0x2b5   :  { %v13729_v24 = vcombine.low %v28965_v63, %v13728_v60  ;;  %v4207_v21 = vcombine.high %v4185_v15, %v4185_v15  ;;  %v7194_v19 = vcombine.low %v4161_v45, %v4185_v15  ;;  %v7185_v43 = vrot.slane %v7177_v42, %v19011_v56 }
 0x2b6   :  { %v13768_v39 = vcombine.low %v13760_v36, %v13767_v3  ;;  %v7192_v20 = vrot.slane %v7178_v34, %v19011_v56  ;;  %v4206_v44 = vrot.slane %v4178_v6, %v19011_v56  ;;  %v4208_v12 = vcombine.high %v4192_v46, %v4192_v46  ;;  %v18621_v36 = vld [vmem:[%s28513_s0 + $0x1b8] sm:$0xff]  ;;  %v28969_v6 = vld [vmem:[#allocation27_spill] sm:$0xff] }
 0x2b7   :  { %14771 = vst.msk [vmem:[#allocation2 + $0x20] sm:$0xff] %vm14765_vm14, %v13729_v24  ;;  %v4209_v33 = vcombine.high %v4199_v51, %v4199_v51  ;;  %v28605_v5 = vrot.slane %v22386_v22, 2  ;;  %v2172_v60 = vsel %vm2139_vm6, %v22352_v61, %v22040_v4  ;;  %v7195_v3 = vcombine.low %v4199_v51, %v4207_v21  ;;  %768 = vrot.lane.b32.xlu1 %v22328_v37, %s18667_s20  ;;  %v22637_v4 = vpop.permute.xlu0 %1150  ;;  %v28966_v37 = vld [vmem:[#allocation23_spill] sm:$0xff]  ;;  %v28968_v34 = vld [vmem:[#allocation30_spill] sm:$0xff] }
 0x2b8   :  { %14772 = vst.msk [vmem:[#allocation2 + $0x28] sm:$0x1f] %vm14767_vm15, %v13768_v39  ;;  %v7193_v42 = vcombine.low %v7185_v43, %v7192_v20  ;;  %v649_v31 = vrot.slane %v112_v47, 2  ;;  %v2108_v18 = vsel %vm2074_vm5, %v18621_v36, %v22028_v41  ;;  %v2237_v35 = vsel %vm2204_vm7, %v2172_v60, %v22126_v17  ;;  %770 = vrot.lane.b32.xlu0 %v22606_v40, %s18667_s20  ;;  %v22652_v17 = vld [vmem:[%s28513_s0 + $0x2a0] sm:$0xff]  ;;  %v28970_v21 = vld [vmem:[#allocation26_spill] sm:$0xff]  ;;  %v28971_v20 = vld [vmem:[#allocation9_spill] sm:$0xff] }
 0x2b9   :  { %v7196_v15 = vcombine.low %v4209_v33, %v4192_v46  ;;  %v7197_v63 = vcombine.low %v4206_v44, %v4208_v12  ;;  %v2302_v61 = vsel %vm2269_vm8, %v2237_v35, %v28966_v37  ;;  %v7204_v24 = vrot.slane %v7194_v19, %v19011_v56  ;;  %v22666_v12 = vpop.permute.xlu1 %1746  ;;  %v28972_v33 = vld [vmem:[#allocation5_spill] sm:$0xff] }
 0x2ba   :  { %v7211_v45 = vrot.slane %v7195_v3, %v19011_v56  ;;  %18383 = vmatprep.mubr.msk.f32.mxu0 %vm8713_vm13, %v7193_v42  ;;  %v22647_v41 = vsel %vm525_vm0, %v28605_v5, %v649_v31  ;;  %v2173_v39 = vsel %vm2139_vm6, %v2108_v18, %v28968_v34  ;;  %v2367_v46 = vsel %vm2334_vm9, %v2302_v61, %v28969_v6  ;;  %v28973_v31 = vld [vmem:[#allocation17_spill] sm:$0xff] }
 0x2bb   :  { %28967 = vst [vmem:[#allocation6_spill] sm:$0xff] %v22647_v41  ;;  %v7218_v51 = vrot.slane %v7196_v15, %v19011_v56  ;;  %v7225_v47 = vrot.slane %v7197_v63, %v19011_v56  ;;  %v2238_v19 = vsel %vm2204_vm7, %v2173_v39, %v28970_v21  ;;  %784 = vrot.lane.b32.xlu1 %v22647_v41, %s18667_s20  ;;  %v22682_v63 = vld [vmem:[%s28513_s0 + $0x2a8] sm:$0xff] }
 0x2bc   :  { %v7226_v43 = vcombine.low %v7204_v24, %v7211_v45  ;;  %v2432_v44 = vsel %vm2399_vm10, %v2367_v46, %v28971_v20  ;;  %v2303_v60 = vsel %vm2269_vm8, %v2238_v19, %v28972_v33  ;;  %982 = vrot.lane.b32.xlu0 %v22652_v17, %s18668_s21  ;;  %v1949_v24 = vpop.permute.xlu0 %1948  ;;  %v22697_v46 = vld [vmem:[%s28513_s0 + $0x240] sm:$0xff] }
 0x2bd   :  { %v2497_v3 = vsel %vm2464_vm11, %v2432_v44, %v22504_v23  ;;  %v7227_v42 = vcombine.low %v7218_v51, %v7225_v47  ;;  %v2368_v36 = vsel %vm2334_vm9, %v2303_v60, %v28973_v31  ;;  %v28974_v23 = vld [vmem:[#allocation15_spill] sm:$0xff]  ;;  %v283_v51 = vrot.slane %v22652_v17, 1  ;;  %v22704_v21 = vpop.permute.xlu1 %375 }
 0x2be   :  { %v2562_v18 = vsel %vm2529_vm12, %v2497_v3, %v1947_v54  ;;  %v7234_v35 = vrot.slane %v7226_v43, %v19011_v56  ;;  %v2433_v45 = vsel %vm2399_vm10, %v2368_v36, %v22481_v27  ;;  %v22701_v47 = vrot.slane %v22682_v63, 1 }
 0x2bf   :  { %v7241_v15 = vrot.slane %v7227_v42, %v19011_v56  ;;  %v4210_v37 = vcombine.high %v2562_v18, %v2562_v18  ;;  %v4217_v61 = vrot.slane %v2562_v18, %v19011_v56  ;;  %1160 = vrot.lane.b32.xlu1 %v28974_v23, %s18669_s26  ;;  %v2498_v34 = vsel %vm2464_vm11, %v2433_v45, %v22586_v11 }
 0x2c0   :  { %1558 = vrot.lane.b32.xlu0 %v22300_v8, %s18671_s30  ;;  %28975 = vst [vmem:[#allocation16_spill] sm:$0xff] %v22701_v47  ;;  %v2563_v27 = vsel %vm2529_vm12, %v2498_v34, %v1949_v24  ;;  %v22718_v42 = vsel %vm204_vm1, %v283_v51, %v22701_v47  ;;  %v22737_v34 = vcombine.high %v22423_v59, %v22423_v59 }
 0x2c1   :  { %v7242_v54 = vcombine.low %v7234_v35, %v7241_v15  ;;  %v4224_v39 = vrot.slane %v4210_v37, %v19011_v56  ;;  %v4225_v6 = vcombine.high %v4217_v61, %v4217_v61  ;;  %v4233_v19 = vrot.slane %v4217_v61, %v19011_v56  ;;  %28976 = vst [vmem:[#allocation23_spill] sm:$0xff] %v22718_v42  ;;  %v22724_v61 = vpop.permute.xlu1 %1354 }
 0x2c2   :  { %v4266_v20 = vrot.slane %v2563_v27, %v19011_v56  ;;  %v4259_v31 = vcombine.high %v2563_v27, %v2563_v27 }
 0x2c3   :  { %18384 = vmatmul.mubr.msk.f32.gmra.mrb[28].mxu0 %vm8713_vm13, %v7242_v54  ;;  %v4226_v11 = vcombine.high %v4224_v39, %v4224_v39  ;;  %v4247_v43 = vrot.slane %v4225_v6, %v19011_v56  ;;  %964 = vrot.lane.b32.xlu1 %v22300_v8, %s18668_s21  ;;  %v4240_v44 = vrot.slane %v4224_v39, %v19011_v56  ;;  %v22733_v54 = vld [vmem:[%s28513_s0 + $0x248] sm:$0xff]  ;;  %v18626_v8 = vld [vmem:[%s28513_s0 + $0x1f8] sm:$0xff] }
 0x2c4   :  { %966 = vrot.lane.b32.xlu0 %v22697_v46, %s18668_s21  ;;  %v4274_v37 = vcombine.high %v4266_v20, %v4266_v20  ;;  %v18622_v39 = vld [vmem:[%s28513_s0 + $0x1c8] sm:$0xff]  ;;  %v4273_v27 = vrot.slane %v4259_v31, %v19011_v56 }
 0x2c5   :  { %v4254_v33 = vrot.slane %v4226_v11, %v19011_v56  ;;  %v7243_v60 = vcombine.low %v4233_v19, %v4247_v43  ;;  %v18121_v3 = vcombine.high %v4233_v19, %v4247_v43  ;;  %v28977_v6 = vld [vmem:[#allocation36_spill] sm:$0xff]  ;;  %v28979_v43 = vld [vmem:[#allocation21_spill] sm:$0xff]  ;;  %v378_v5 = vpop.permute.xlu1 %377 }
 0x2c6   :  { %v2109_v51 = vsel %vm2074_vm5, %v18622_v39, %v28977_v6  ;;  %v28978_v11 = vld [vmem:[#allocation28_spill] sm:$0xff] }
 0x2c7   :  { %v7245_v36 = vcombine.low %v4240_v44, %v4254_v33  ;;  %v18122_v18 = vcombine.high %v4240_v44, %v4254_v33  ;;  %v7253_v35 = vrot.slane %v7243_v60, %v19011_v56  ;;  %v7260_v15 = vrot.slane %v18121_v3, %v19011_v56  ;;  %980 = vrot.lane.b32.xlu1 %v22240_v1, %s18668_s21  ;;  %v28980_v44 = vld [vmem:[#allocation33_spill] sm:$0xff] }
 0x2c8   :  { %1180 = vrot.lane.b32.xlu0 %v22718_v42, %s18669_s26  ;;  %v2174_v19 = vsel %vm2139_vm6, %v2109_v51, %v28978_v11  ;;  %v28981_v33 = vmax.f32 %v28979_v43, %v28980_v44  ;;  %v28985_v51 = vld [vmem:[#allocation4_spill] sm:$0xff]  ;;  %v4275_v44 = vcombine.high %v4273_v27, %v4273_v27 }
 0x2c9   :  { %v7267_v24 = vrot.slane %v7245_v36, %v19011_v56  ;;  %v7274_v23 = vrot.slane %v18122_v18, %v19011_v56  ;;  %v7275_v45 = vcombine.low %v7253_v35, %v7260_v15  ;;  %v271_v36 = vrot.slane %v22697_v46, 1  ;;  %v28983_v15 = vld [vmem:[#allocation12_spill] sm:$0xff] }
 0x2ca   :  { %v12797_v60 = vmax.f32 %v28981_v33, %v22737_v34  ;;  %v22755_v18 = vrot.slane %v22733_v54, 1  ;;  %v4296_v35 = vrot.slane %v4274_v37, %v19011_v56  ;;  %v2239_v11 = vsel %vm2204_vm7, %v2174_v19, %v28985_v51  ;;  %v18623_v37 = vld [vmem:[%s28513_s0 + $0x1d0] sm:$0xff] }
 0x2cb   :  { %v7276_v3 = vcombine.low %v7267_v24, %v7274_v23  ;;  %1364 = vrot.lane.b32.xlu1 %v22606_v40, %s18670_s29  ;;  %v7283_v31 = vrot.slane %v7275_v45, %v19011_v56  ;;  %v28984_v24 = vmax.f32 %v22446_v62, %v22450_v48  ;;  %v28986_v45 = vld [vmem:[#allocation14_spill] sm:$0xff]  ;;  %v4282_v33 = vrot.slane %v4266_v20, %v19011_v56 }
 0x2cc   :  { %28982 = vst [vmem:[#allocation30_spill] sm:$0xff] %v22755_v18  ;;  %1756 = vrot.lane.b32.xlu0 %v28983_v15, %s18672_s10  ;;  %v13000_v39 = vmax.f32 %v22450_v48, %v12797_v60  ;;  %v13001_v6 = vmax.f32 %v12797_v60, %v22458_v30  ;;  %v2110_v43 = vsel %vm2074_vm5, %v18623_v37, %v28986_v45  ;;  %v656_v20 = vrot.slane %v22652_v17, 2  ;;  %v28988_v17 = vld [vmem:[#allocation37_spill] sm:$0xff]  ;;  %v1153_v45 = vpop.permute.xlu1 %1152 }
 0x2cd   :  { %v13181_v40 = vmax.f32 %v28984_v24, %v12797_v60  ;;  %v7290_v23 = vrot.slane %v7276_v3, %v19011_v56  ;;  %v28987_v3 = vld [vmem:[#allocation3_spill] sm:$0xff]  ;;  %v22784_v24 = vsel %vm204_vm1, %v271_v36, %v22755_v18  ;;  %v28607_v51 = vrot.slane %v22682_v63, 2 }
 0x2ce   :  { %v13182_v28 = vmax.f32 %v13000_v39, %v22458_v30  ;;  %v13183_v62 = vmax.f32 %v13001_v6, %v22466_v52  ;;  %v2304_v19 = vsel %vm2269_vm8, %v2239_v11, %v28987_v3  ;;  %v7292_v30 = vcombine.low %v4282_v33, %v4296_v35  ;;  %v28989_v6 = vld [vmem:[#allocation38_spill] sm:$0xff] }
 0x2cf   :  { %v13769_v48 = vcombine.low %v22486_v38, %v13181_v40  ;;  %v7291_v60 = vcombine.low %v7283_v31, %v7290_v23  ;;  %387 = vrot.lane.b32.xlu1 %v28983_v15, %s18666_s19  ;;  %v18123_v52 = vcombine.high %v4282_v33, %v4296_v35  ;;  %v103_v38 = vld [vmem:[%s28513_s0 + $0x238] sm:$0x1]  ;;  %v22798_v36 = vrot.slane %v13771_v58, %v19011_v56  ;;  %v18624_v35 = vld [vmem:[%s28513_s0 + $0x1e0] sm:$0xff]  ;;  %v955_v23 = vpop.permute.xlu0 %954  ;;  %v18367_v33 = vpop.f32.mrb[16].mxu0 }
 0x2d0   :  { %1162 = vrot.lane.b32.xlu0 %v28983_v15, %s18669_s26  ;;  %v13770_v31 = vcombine.low %v13182_v28, %v13183_v62  ;;  %v2175_v39 = vsel %vm2139_vm6, %v2110_v43, %v28988_v17  ;;  %v2369_v15 = vsel %vm2334_vm9, %v2304_v19, %v28989_v6  ;;  %v2111_v28 = vsel %vm2074_vm5, %v18624_v35, %v22523_v29  ;;  %v28991_v43 = vld [vmem:[#allocation10_spill] sm:$0xff]  ;;  %v28992_v19 = vld [vmem:[#allocation13_spill] sm:$0xff] }
 0x2d1   :  { %18386 = vmatprep.mubr.msk.f32.mxu0 %vm8713_vm13, %v7291_v60  ;;  %v4303_v40 = vrot.slane %v4275_v44, %v19011_v56  ;;  %v22811_v57 = vrot.slane %v13769_v48, %v19011_v56  ;;  %v2240_v58 = vsel %vm2204_vm7, %v2175_v39, %v22543_v2  ;;  %v2434_v11 = vsel %vm2399_vm10, %v2369_v15, %v22557_v49 }
 0x2d2   :  { %v22814_v26 = vrot.slane %v13770_v31, %v19011_v56  ;;  %v22825_v29 = vsel %vm525_vm0, %v656_v20, %v28607_v51  ;;  %v634_v37 = vrot.slane %v103_v38, 2  ;;  %v22830_v44 = vrot.slane %v4273_v27, %v19011_v56  ;;  %v8984_v20 = vpop.f32.mrb[17].mxu0  ;;  %v18625_v38 = vld [vmem:[%s28513_s0 + $0x1e8] sm:$0xff] }
 0x2d3   :  { %1164 = vrot.lane.b32.xlu1 %v22784_v24, %s18669_s26  ;;  %28990 = vst [vmem:[#allocation27_spill] sm:$0xff] %v22825_v29  ;;  %v7302_v2 = vrot.slane %v7292_v30, %v19011_v56  ;;  %v7309_v49 = vrot.slane %v18123_v52, %v19011_v56  ;;  %v2176_v48 = vsel %vm2139_vm6, %v2111_v28, %v22618_v16  ;;  %v115_v30 = vld [vmem:[%s28513_s0 + $0x298] sm:$0x1]  ;;  %v636_v39 = vrot.slane %v22697_v46, 2 }
 0x2d4   :  { %1178 = vrot.lane.b32.xlu0 %v28991_v43, %s18669_s26  ;;  %v2305_v60 = vsel %vm2269_vm8, %v2240_v58, %v22637_v4  ;;  %v2499_v3 = vsel %vm2464_vm11, %v2434_v11, %v22666_v12  ;;  %v8990_v27 = vadd.f32 %v28992_v19, %v18367_v33  ;;  %v7294_v52 = vcombine.low %v22830_v44, %v4303_v40 }
 0x2d5   :  { %v22852_v16 = vsel %vm2074_vm5, %v18625_v38, %v22704_v21  ;;  %v2241_v4 = vsel %vm2204_vm7, %v2176_v48, %v955_v23  ;;  %v8985_v12 = vadd.f32 %v28992_v19, %v8984_v20  ;;  %v22861_v31 = vsel %vm525_vm0, %v632_v53, %v634_v37 }
 0x2d6   :  { %v9218_v17 = vmax.f32 %v8990_v27, 0.0  ;;  %v28608_v6 = vrot.slane %v22733_v54, 2  ;;  %v7324_v15 = vcombine.low %v7302_v2, %v7309_v49  ;;  %v22869_v21 = vsel %vm2334_vm9, %v2305_v60, %v22724_v61 }
 0x2d7   :  { %1384 = vrot.lane.b32.xlu1 %v22825_v29, %s18670_s29  ;;  %v1951_v35 = vpop.permute.xlu0 %1950  ;;  %v22875_v53 = vsel %vm2074_vm5, %v18626_v8, %v378_v5  ;;  %v654_v28 = vrot.slane %v115_v30, 2  ;;  %v9217_v11 = vmax.f32 %v8985_v12, 0.0  ;;  %v7316_v61 = vrot.slane %v7294_v52, %v19011_v56 }
 0x2d8   :  { %1560 = vrot.lane.b32.xlu0 %v22697_v46, %s18671_s30  ;;  %28993 = vst [vmem:[#allocation26_spill] sm:$0xff] %v22875_v53  ;;  %v2564_v40 = vsel %vm2529_vm12, %v2499_v3, %v1951_v35  ;;  %v10150_v23 = vcombine.high %v9218_v17, %v9218_v17  ;;  %v10157_v58 = vrot.slane %v9218_v17, %v19011_v56  ;;  %v22879_v46 = vpop.permute.xlu1 %762  ;;  %v28997_v20 = vrot.slane %v22240_v1, 2 }
 0x2d9   :  { %28994 = vst [vmem:[#allocation9_spill] sm:$0xff] %v22879_v46  ;;  %v4305_v37 = vcombine.high %v22830_v44, %v22830_v44  ;;  %v22885_v2 = vrot.slane %v2564_v40, %v19011_v56  ;;  %v22888_v5 = vsel %vm2269_vm8, %v2241_v4, %v1153_v45  ;;  %v22899_v60 = vsel %vm525_vm0, %v636_v39, %v28608_v6  ;;  %v22904_v44 = vld [vmem:[%s28513_s0 + $0x2b8] sm:$0xff]  ;;  %v22909_v45 = vld [vmem:[%s28513_s0 + $0x2c0] sm:$0xff] }
 0x2da   :  { %v10164_v49 = vrot.slane %v10150_v23, %v19011_v56  ;;  %v10165_v33 = vcombine.high %v10157_v58, %v10157_v58  ;;  %v22894_v48 = vrot.slane %v10157_v58, %v19011_v56  ;;  %28996 = vst [vmem:[#allocation17_spill] sm:$0xff] %v22909_v45  ;;  %v22922_v30 = vsel %vm525_vm0, %v28997_v20, %v654_v28  ;;  %v22931_v4 = vld [vmem:[%s28513_s0 + $0x260] sm:$0xff] }
 0x2db   :  { %1960 = vrot.lane.b32.xlu1 %v22861_v31, %s18673_s17  ;;  %v22915_v3 = vrot.slane %v22885_v2, %v19011_v56  ;;  %v22917_v27 = vpop.permute.xlu0 %760  ;;  %28998 = vst [vmem:[#allocation15_spill] sm:$0xff] %v22922_v30  ;;  %v22925_v52 = vrot.slane %v7324_v15, %v19011_v56  ;;  %v286_v38 = vrot.slane %v22904_v44, 1  ;;  %28999 = vst [vmem:[#allocation36_spill] sm:$0xff] %v22931_v4  ;;  %v22944_v15 = vld [vmem:[%s28513_s0 + $0x258] sm:$0xff]  ;;  %v22949_v23 = vrot.slane %v22909_v45, 1 }
 0x2dc   :  { %28995 = vst [vmem:[#allocation5_spill] sm:$0xff] %v22894_v48  ;;  %389 = vrot.lane.b32.xlu0 %v22784_v24, %s18666_s19  ;;  %v10166_v12 = vcombine.high %v10164_v49, %v10164_v49  ;;  %v22934_v17 = vrot.slane %v10164_v49, %v19011_v56  ;;  %v22937_v39 = vrot.slane %v10165_v33, %v19011_v56  ;;  %v22939_v35 = vpop.permute.xlu1 %1356 }
 0x2dd   :  { %v10101_v1 = vcombine.high %v9217_v11, %v9217_v11  ;;  %v4307_v8 = vcombine.high %v2564_v40, %v2564_v40  ;;  %v10195_v28 = vcombine.high %v22894_v48, %v22894_v48  ;;  %29001 = vst [vmem:[#allocation21_spill] sm:$0xff] %v22949_v23  ;;  %v7295_v49 = vcombine.low %v4305_v37, %v22915_v3 }
 0x2de   :  { %29000 = vst [vmem:[#allocation28_spill] sm:$0xff] %v22934_v17  ;;  %v22956_v33 = vrot.slane %v10166_v12, %v19011_v56  ;;  %v10197_v20 = vcombine.high %v22937_v39, %v22937_v39  ;;  %v22961_v40 = vrot.slane %v22931_v4, 1  ;;  %v10196_v51 = vcombine.high %v22934_v17, %v22934_v17 }
 0x2df   :  { %403 = vrot.lane.b32.xlu1 %v28991_v43, %s18666_s19  ;;  %v10108_v6 = vrot.slane %v9217_v11, %v19011_v56  ;;  %v22968_v62 = vpop.permute.xlu0 %1550  ;;  %v7323_v58 = vrot.slane %v7295_v49, %v19011_v56  ;;  %v10115_v22 = vrot.slane %v10101_v1, %v19011_v56  ;;  %v22983_v11 = vld [vmem:[%s28513_s0 + $0x250] sm:$0x1]  ;;  %v4321_v37 = vrot.slane %v4307_v8, %v19011_v56  ;;  %v29008_v8 = vld [vmem:[#allocation34_spill] sm:$0xff] }
 0x2e0   :  { %29002 = vst [vmem:[#allocation33_spill] sm:$0xff] %v22961_v40  ;;  %772 = vrot.lane.b32.xlu0 %v22861_v31, %s18667_s20  ;;  %v22978_v53 = vpop.permute.xlu1 %958  ;;  %29005 = vst [vmem:[#allocation4_spill] sm:$0xff] %v22983_v11  ;;  %v4322_v49 = vcombine.high %v22885_v2, %v22885_v2  ;;  %v10198_v43 = vcombine.high %v22956_v33, %v22956_v33  ;;  %v22991_v12 = vmax.f32 %v22737_v34, %v10195_v28  ;;  %v29006_v1 = vld [vmem:[#allocation29_spill] sm:$0xff] }
 0x2e1   :  { %29004 = vst [vmem:[#allocation12_spill] sm:$0xff] %v22978_v53  ;;  %v7325_v41 = vcombine.low %v7316_v61, %v7323_v58  ;;  %v22996_v53 = vmax.f32 %v29006_v1, %v10197_v20  ;;  %v23003_v2 = vmax.f32 %v22490_v14, %v10196_v51  ;;  %v10116_v18 = vcombine.high %v10108_v6, %v10108_v6  ;;  %v18370_v61 = vpop.f32.mrb[18].mxu0 }
 0x2e2   :  { %v10117_v58 = vcombine.high %v10115_v22, %v10115_v22  ;;  %v10124_v20 = vrot.slane %v10108_v6, %v19011_v56  ;;  %v23016_v1 = vrot.slane %v10115_v22, %v19011_v56  ;;  %v8994_v51 = vpop.f32.mrb[19].mxu0  ;;  %v4323_v47 = vcombine.high %v4321_v37, %v4321_v37 }
 0x2e3   :  { %1366 = vrot.lane.b32.xlu1 %v22861_v31, %s18670_s29  ;;  %v23007_v34 = vpop.permute.xlu0 %956  ;;  %v23011_v31 = vsel %vm204_vm1, %v286_v38, %v22949_v23  ;;  %v4344_v17 = vrot.slane %v4322_v49, %v19011_v56  ;;  %v23023_v38 = vrot.slane %v10116_v18, %v19011_v56  ;;  %v7339_v23 = vrot.slane %v7325_v41, %v19011_v56  ;;  %v29010_v49 = vld [vmem:[#allocation8_spill] sm:$0xff] }
 0x2e4   :  { %1368 = vrot.lane.b32.xlu0 %v22899_v60, %s18670_s29  ;;  %v23018_v14 = vpop.permute.xlu1 %1552  ;;  %v23027_v28 = vrot.slane %v10117_v58, %v19011_v56  ;;  %v23029_v6 = vcombine.high %v10124_v20, %v10124_v20  ;;  %v23033_v22 = vcombine.high %v23016_v1, %v23016_v1  ;;  %v23035_v46 = vmax.f32 %v10124_v20, %v10198_v43 }
 0x2e5   :  { %v29011_v18 = vmax.f32 %v22148_v9, %v29010_v49  ;;  %v23044_v41 = vmax.f32 %v22506_v10, %v23023_v38  ;;  %v29012_v58 = vmax.f32 %v22152_v32, %v22494_v25  ;;  %v7340_v43 = vcombine.low %v22925_v52, %v7339_v23  ;;  %v29013_v10 = vld [vmem:[#allocation11_spill] sm:$0xff] }
 0x2e6   :  { %29009 = vst [vmem:[#allocation14_spill] sm:$0xff] %v23027_v28  ;;  %v4337_v59 = vrot.slane %v4321_v37, %v19011_v56  ;;  %v23058_v9 = vmax.f32 %v22517_v0, %v23029_v6  ;;  %v12808_v32 = vmax.f32 %v22534_v13, %v23033_v22  ;;  %v4352_v49 = vcombine.high %v22915_v3, %v22915_v3 }
 0x2e7   :  { %1382 = vrot.lane.b32.xlu1 %v22922_v30, %s18670_s29  ;;  %v12802_v4 = vmax.f32 %v29011_v18, %v10124_v20  ;;  %v23050_v11 = vmax.f32 %v29012_v58, %v23016_v1  ;;  %v1749_v48 = vpop.permute.xlu0 %1748  ;;  %v23062_v20 = vmax.f32 %v29013_v10, %v23027_v28  ;;  %v29015_v0 = vmax.f32 %v22470_v50, %v22511_v55 }
 0x2e8   :  { %1580 = vrot.lane.b32.xlu0 %v22904_v44, %s18671_s30  ;;  %v23066_v25 = vpop.permute.xlu1 %379  ;;  %18387 = vmatmul.mubr.msk.f32.gmra.mrb[30].mxu0 %vm8713_vm13, %v7340_v43  ;;  %v4354_v18 = vcombine.high %v4344_v17, %v4344_v17  ;;  %v10149_v58 = vcombine.high %v23027_v28, %v23027_v28  ;;  %v4353_v13 = vcombine.high %v4337_v59, %v4337_v59 }
 0x2e9   :  { %29014 = vst [vmem:[#allocation3_spill] sm:$0xff] %v23066_v25  ;;  %v13005_v52 = vmax.f32 %v22511_v55, %v12802_v4  ;;  %v13006_v23 = vmax.f32 %v12802_v4, %v23044_v41  ;;  %v13186_v37 = vmax.f32 %v29015_v0, %v12802_v4  ;;  %v13010_v3 = vmax.f32 %v23050_v11, %v23062_v20 }
 0x2ea   :  { %v29018_v4 = vrot.slane %v22944_v15, 1  ;;  %v29019_v0 = vrot.slane %v22909_v45, 2 }
 0x2eb   :  { %1758 = vrot.lane.b32.xlu1 %v22784_v24, %s18672_s10  ;;  %v13187_v10 = vmax.f32 %v13005_v52, %v23044_v41  ;;  %v23086_v50 = vmax.f32 %v13006_v23, %v23058_v9  ;;  %v23090_v55 = vpop.permute.xlu0 %1154  ;;  %v29020_v24 = vrot.slane %v22904_v44, 2  ;;  %v4351_v23 = vrot.slane %v4323_v47, %v19011_v56 }
 0x2ec   :  { %405 = vrot.lane.b32.xlu0 %v22718_v42, %s18666_s19  ;;  %29017 = vst [vmem:[#allocation38_spill] sm:$0xff] %v23090_v55  ;;  %v23096_v43 = vsel %vm204_vm1, %v29018_v4, %v22961_v40  ;;  %v23106_v25 = vmax.f32 %v13010_v3, %v12808_v32  ;;  %v23108_v42 = vpop.permute.xlu1 %1358  ;;  %v9000_v55 = vadd.f32 %v28992_v19, %v18370_v61  ;;  %v29022_v61 = vld [vmem:[#allocation20_spill] sm:$0xff] }
 0x2ed   :  { %29016 = vst [vmem:[#allocation37_spill] sm:$0xff] %v23086_v50  ;;  %v23103_v52 = vsel %vm525_vm0, %v29020_v24, %v29019_v0  ;;  %v23111_v50 = vcombine.low %v4344_v17, %v4352_v49  ;;  %v29021_v4 = vcombine.low %v22811_v57, %v22814_v26  ;;  %v13772_v45 = vcombine.low %v13186_v37, %v13187_v10 }
 0x2ee   :  { %v23119_v0 = vcombine.high %v23023_v38, %v23023_v38  ;;  %v7342_v47 = vcombine.low %v4354_v18, %v4337_v59  ;;  %v2435_v32 = vsel %vm2399_vm10, %v22869_v21, %v22968_v62  ;;  %v9220_v17 = vmax.f32 %v9000_v55, 0.0  ;;  %v29023_v18 = vld [vmem:[#allocation25_spill] sm:$0xff]  ;;  %v29024_v62 = vld [vmem:[#allocation24_spill] sm:$0xff] }
 0x2ef   :  { %v13809_v40 = vrot.slane %v29021_v4, %v19011_v56  ;;  %774 = vrot.lane.b32.xlu1 %v22899_v60, %s18667_s20  ;;  %v23127_v49 = vmax.f32 %v29022_v61, %v10149_v58  ;;  %v13800_v57 = vrot.slane %v13772_v45, %v19011_v56  ;;  %v2500_v26 = vsel %vm2464_vm11, %v2435_v32, %v1749_v48  ;;  %v1953_v37 = vpop.permute.xlu0 %1952 }
 0x2f0   :  { %788 = vrot.lane.b32.xlu0 %v22922_v30, %s18667_s20  ;;  %v8995_v59 = vadd.f32 %v28992_v19, %v8994_v51  ;;  %v29025_v21 = vmax.f32 %v29023_v18, %v29024_v62  ;;  %v7343_v10 = vcombine.low %v4351_v23, %v4353_v13  ;;  %v2565_v58 = vsel %vm2529_vm12, %v2500_v26, %v1953_v37  ;;  %v23142_v24 = vpop.permute.xlu1 %764 }
 0x2f1   :  { %v10248_v55 = vcombine.high %v9220_v17, %v9220_v17  ;;  %v10255_v45 = vrot.slane %v9220_v17, %v19011_v56  ;;  %29026 = vst [vmem:[#allocation13_spill] sm:$0xff] %v23142_v24  ;;  %v7351_v48 = vrot.slane %v23111_v50, %v19011_v56  ;;  %v13802_v4 = vcombine.low %v22798_v36, %v13800_v57 }
 0x2f2   :  { %v23138_v3 = vmax.f32 %v29025_v21, %v23119_v0  ;;  %v4356_v19 = vcombine.high %v2565_v58, %v2565_v58  ;;  %v4363_v51 = vrot.slane %v2565_v58, %v19011_v56  ;;  %v7358_v32 = vrot.slane %v7342_v47, %v19011_v56 }
 0x2f3   :  { %968 = vrot.lane.b32.xlu1 %v22733_v54, %s18668_s21  ;;  %v10262_v13 = vrot.slane %v10248_v55, %v19011_v56  ;;  %v10263_v61 = vcombine.high %v10255_v45, %v10255_v45  ;;  %v23153_v17 = vrot.slane %v10255_v45, %v19011_v56  ;;  %v2177_v50 = vsel %vm2139_vm6, %v22852_v16, %v22917_v27  ;;  %v23164_v57 = vpop.permute.xlu0 %1156 }
 0x2f4   :  { %v13816_v36 = vrot.slane %v13802_v4, %v19011_v56  ;;  %1562 = vrot.lane.b32.xlu0 %v22733_v54, %s18671_s30  ;;  %v23162_v47 = vrot.slane %v4363_v51, %v19011_v56  ;;  %v9219_v26 = vmax.f32 %v8995_v59, 0.0  ;;  %v4355_v37 = vcombine.high %v4351_v23, %v4351_v23  ;;  %v23172_v16 = vpop.permute.xlu1 %1554 }
 0x2f5   :  { %29027 = vst [vmem:[#allocation32_spill] sm:$0xff] %v23153_v17  ;;  %v10264_v18 = vcombine.high %v10262_v13, %v10262_v13  ;;  %v23167_v62 = vrot.slane %v10262_v13, %v19011_v56  ;;  %v23170_v21 = vrot.slane %v10263_v61, %v19011_v56  ;;  %v23176_v58 = vsel %vm2204_vm7, %v2177_v50, %v23007_v34 }
 0x2f6   :  { %v13817_v27 = vcombine.low %v13809_v40, %v13816_v36  ;;  %v2371_v55 = vsel %vm2334_vm9, %v22888_v5, %v22939_v35  ;;  %v23182_v23 = vrot.slane %v4356_v19, %v19011_v56  ;;  %v4371_v59 = vcombine.high %v4363_v51, %v4363_v51 }
 0x2f7   :  { %1564 = vrot.lane.b32.xlu1 %v22944_v15, %s18671_s30  ;;  %v7344_v45 = vcombine.low %v4355_v37, %v23162_v47  ;;  %v23188_v4 = vrot.slane %v10264_v18, %v19011_v56  ;;  %v23192_v40 = vcombine.high %v23153_v17, %v23153_v17  ;;  %v23197_v5 = vsel %vm2399_vm10, %v2371_v55, %v23018_v14  ;;  %v23206_v51 = vpop.permute.xlu0 %1750 }
 0x2f8   :  { %14773 = vst.msk [vmem:[#allocation2 + $0x30] sm:$0xff] %vm14765_vm14, %v13817_v27  ;;  %v7365_v35 = vrot.slane %v7343_v10, %v19011_v56  ;;  %1578 = vrot.lane.b32.xlu0 %v22682_v63, %s18671_s30  ;;  %v23204_v34 = vcombine.high %v23167_v62, %v23167_v62  ;;  %v10199_v19 = vcombine.high %v9219_v26, %v9219_v26  ;;  %v23220_v36 = vpop.permute.xlu1 %381 }
 0x2f9   :  { %v7372_v13 = vrot.slane %v7344_v45, %v19011_v56  ;;  %v29028_v61 = vmax.f32 %v29003_v7, %v22937_v39  ;;  %v23217_v10 = vmax.f32 %v22991_v12, %v23170_v21  ;;  %v10206_v50 = vrot.slane %v9219_v26, %v19011_v56  ;;  %29029 = vst [vmem:[#allocation29_spill] sm:$0xff] %v23220_v36 }
 0x2fa   :  { %v4372_v37 = vcombine.high %v23182_v23, %v23182_v23  ;;  %v23226_v18 = vmax.f32 %v22996_v53, %v23192_v40  ;;  %v29030_v7 = vmax.f32 %v29008_v8, %v22956_v33  ;;  %v23234_v27 = vcombine.low %v7351_v48, %v7358_v32 }
 0x2fb   :  { %v23213_v14 = vmax.f32 %v29028_v61, %v23153_v17  ;;  %v23238_v12 = vrot.slane %v23182_v23, %v19011_v56  ;;  %v23241_v26 = vrot.slane %v4371_v59, %v19011_v56  ;;  %1778 = vrot.lane.b32.xlu1 %v23011_v31, %s18672_s10  ;;  %v23247_v53 = vmax.f32 %v23003_v2, %v23188_v4  ;;  %v23262_v23 = vpop.permute.xlu0 %1360 }
 0x2fc   :  { %v23232_v39 = vmax.f32 %v29030_v7, %v23167_v62  ;;  %v23251_v33 = vmax.f32 %v23035_v46, %v23204_v34  ;;  %v23253_v8 = vcombine.low %v7365_v35, %v7372_v13  ;;  %v10213_v55 = vrot.slane %v10199_v19, %v19011_v56  ;;  %1962 = vrot.lane.b32.xlu0 %v22899_v60, %s18673_s17  ;;  %v23271_v35 = vpop.permute.xlu1 %1556 }
 0x2fd   :  { %v13013_v48 = vmax.f32 %v23213_v14, %v23217_v10  ;;  %v10214_v46 = vcombine.high %v10206_v50, %v10206_v50  ;;  %v10222_v59 = vrot.slane %v10206_v50, %v19011_v56  ;;  %v23269_v45 = vcombine.high %v23188_v4, %v23188_v4 }
 0x2fe   :  { %v13017_v2 = vmax.f32 %v23232_v39, %v23247_v53  ;;  %v10215_v19 = vcombine.high %v10213_v55, %v10213_v55  ;;  %v23277_v60 = vrot.slane %v10213_v55, %v19011_v56  ;;  %v13008_v61 = vmax.f32 %v23058_v9, %v23138_v3 }
 0x2ff   :  { %v23274_v13 = vmax.f32 %v13013_v48, %v23226_v18  ;;  %v23282_v7 = vrot.slane %v10214_v46, %v19011_v56  ;;  %v10244_v50 = vcombine.high %v10222_v59, %v10222_v59  ;;  %v12608_v32 = vmax.f32 %v23023_v38, %v10222_v59  ;;  %790 = vrot.lane.b32.xlu1 %v22825_v29, %s18667_s20  ;;  %v1955_v38 = vpop.permute.xlu0 %1954 }
 0x300   :  { %29031 = vst [vmem:[#allocation34_spill] sm:$0xff] %v23277_v60  ;;  %v13009_v30 = vmax.f32 %v23138_v3, %v23050_v11  ;;  %v23290_v48 = vrot.slane %v10215_v19, %v19011_v56  ;;  %v23294_v55 = vcombine.high %v23277_v60, %v23277_v60  ;;  %v13018_v36 = vmax.f32 %v23247_v53, %v23251_v33 }
 0x301   :  { %970 = vrot.lane.b32.xlu0 %v22944_v15, %s18668_s21  ;;  %v10246_v59 = vcombine.high %v23282_v7, %v23282_v7  ;;  %v23307_v29 = vmax.f32 %v23119_v0, %v10244_v50  ;;  %v23310_v24 = vmax.f32 %v12608_v32, %v23269_v45  ;;  %v29034_v19 = vmax.f32 %v23044_v41, %v23058_v9 }
 0x302   :  { %29032 = vst [vmem:[#allocation8_spill] sm:$0xff] %v23290_v48  ;;  %v23314_v46 = vcombine.high %v23290_v48, %v23290_v48  ;;  %v12809_v28 = vmax.f32 %v23127_v49, %v23294_v55  ;;  %v13190_v50 = vmax.f32 %v13008_v61, %v23050_v11  ;;  %v23333_v60 = vpop.permute.xlu1 %401  ;;  %v29036_v49 = vld [vmem:[#allocation22_spill] sm:$0xff]  ;;  %v29037_v48 = vld [vmem:[#allocation5_spill] sm:$0xff]  ;;  %v13840_v61 = vrot.slane %v23106_v25, %v19011_v56 }
 0x303   :  { %29033 = vst [vmem:[#allocation11_spill] sm:$0xff] %v23307_v29  ;;  %v13189_v17 = vmax.f32 %v29034_v19, %v23138_v3  ;;  %v23325_v0 = vmax.f32 %v23016_v1, %v10246_v59  ;;  %v13191_v29 = vmax.f32 %v13009_v30, %v23062_v20  ;;  %984 = vrot.lane.b32.xlu1 %v22682_v63, %s18668_s21  ;;  %29035 = vst [vmem:[#allocation20_spill] sm:$0xff] %v23333_v60  ;;  %v29039_v59 = vld [vmem:[#allocation37_spill] sm:$0xff]  ;;  %v29040_v30 = vld [vmem:[#allocation30_spill] sm:$0xff]  ;;  %v23348_v20 = vpop.permute.xlu0 %960 }
 0x304   :  { %v29038_v41 = vmax.f32 %v29036_v49, %v29037_v48  ;;  %v23340_v1 = vmax.f32 %v13017_v2, %v23251_v33  ;;  %v23343_v3 = vmax.f32 %v13018_v36, %v23310_v24  ;;  %v4401_v48 = vcombine.high %v23162_v47, %v23162_v47 }
 0x305   :  { %v13818_v11 = vcombine.low %v29039_v59, %v13189_v17  ;;  %1166 = vrot.lane.b32.xlu0 %v29040_v30, %s18669_s26  ;;  %v4403_v2 = vcombine.high %v23241_v26, %v23241_v26  ;;  %v13819_v19 = vcombine.low %v13190_v50, %v13191_v29  ;;  %v4400_v36 = vrot.slane %v4372_v37, %v19011_v56 }
 0x306   :  { %v12810_v9 = vmax.f32 %v29038_v41, %v23314_v46  ;;  %v7381_v25 = vrot.slane %v23234_v27, %v19011_v56  ;;  %v7388_v29 = vrot.slane %v23253_v8, %v19011_v56  ;;  %v23368_v47 = vpop.permute.xlu1 %1158 }
 0x307   :  { %v13826_v59 = vrot.slane %v13818_v11, %v19011_v56  ;;  %v13833_v32 = vrot.slane %v13819_v19, %v19011_v56  ;;  %1760 = vrot.lane.b32.xlu1 %v29040_v30, %s18672_s10  ;;  %29041 = vst [vmem:[#allocation25_spill] sm:$0xff] %v23368_v47  ;;  %v1753_v27 = vpop.permute.xlu0 %1752  ;;  %v7391_v11 = vcombine.low %v4403_v2, %v23238_v12  ;;  %v29042_v47 = vld [vmem:[#allocation38_spill] sm:$0xff]  ;;  %v29044_v2 = vld [vmem:[#allocation36_spill] sm:$0xff] }
 0x308   :  { %v13011_v49 = vmax.f32 %v12809_v28, %v12810_v9  ;;  %v13012_v17 = vmax.f32 %v12810_v9, %v23213_v14  ;;  %v4402_v28 = vcombine.high %v23238_v12, %v23238_v12  ;;  %v2501_v9 = vsel %vm2464_vm11, %v23197_v5, %v23206_v51 }
 0x309   :  { %1762 = vrot.lane.b32.xlu0 %v23096_v43, %s18672_s10  ;;  %v13841_v8 = vcombine.low %v13826_v59, %v13833_v32  ;;  %v7389_v19 = vcombine.low %v7381_v25, %v7388_v29  ;;  %v2566_v41 = vsel %vm2529_vm12, %v2501_v9, %v1955_v38  ;;  %v13855_v5 = vrot.slane %v13840_v61, %v19011_v56  ;;  %v29043_v38 = vld [vmem:[#allocation16_spill] sm:$0xff]  ;;  %v118_v29 = vld [vmem:[%s28513_s0 + $0x2b0] sm:$0x1] }
 0x30a   :  { %v13193_v37 = vmax.f32 %v13011_v49, %v23213_v14  ;;  %v13194_v50 = vmax.f32 %v13012_v17, %v23217_v10  ;;  %v2307_v14 = vsel %vm2269_vm8, %v23176_v58, %v29042_v47  ;;  %v4404_v17 = vcombine.high %v2566_v41, %v2566_v41  ;;  %v1957_v32 = vpop.permute.xlu1 %1956 }
 0x30b   :  { %v4411_v60 = vrot.slane %v2566_v41, %v19011_v56  ;;  %v2372_v51 = vsel %vm2334_vm9, %v2307_v14, %v23108_v42  ;;  %v13848_v12 = vrot.slane %v13841_v8, %v19011_v56  ;;  %18389 = vmatprep.mubr.msk.f32.mxu0 %vm8713_vm13, %v7389_v19  ;;  %1776 = vrot.lane.b32.xlu1 %v29043_v38, %s18672_s10  ;;  %v28638_v58 = vrot.slane %v29044_v2, 2  ;;  %v23401_v42 = vpop.permute.xlu0 %766  ;;  %v29045_v19 = vld [vmem:[#allocation9_spill] sm:$0xff]  ;;  %v29046_v14 = vld [vmem:[#allocation26_spill] sm:$0xff] }
 0x30c   :  { %v23384_v49 = vcombine.low %v13193_v37, %v13194_v50  ;;  %v7390_v59 = vcombine.low %v23241_v26, %v4401_v48  ;;  %v2437_v41 = vsel %vm2399_vm10, %v2372_v51, %v23172_v16  ;;  %v4418_v61 = vrot.slane %v4404_v17, %v19011_v56  ;;  %v29050_v51 = vld [vmem:[#allocation12_spill] sm:$0xff] }
 0x30d   :  { %v4419_v25 = vcombine.high %v4411_v60, %v4411_v60  ;;  %1982 = vrot.lane.b32.xlu0 %v23103_v52, %s18673_s17  ;;  %v7392_v47 = vcombine.low %v4400_v36, %v4402_v28  ;;  %v7407_v37 = vrot.slane %v7391_v11, %v19011_v56  ;;  %v13856_v50 = vcombine.low %v13848_v12, %v13855_v5  ;;  %v29047_v28 = vld [vmem:[#allocation4_spill] sm:$0xff] }
 0x30e   :  { %v2502_v26 = vsel %vm2464_vm11, %v2437_v41, %v1753_v27  ;;  %v4420_v48 = vcombine.high %v4418_v61, %v4418_v61  ;;  %v23409_v16 = vrot.slane %v4411_v60, %v19011_v56  ;;  %v2178_v17 = vsel %vm2139_vm6, %v29046_v14, %v29045_v19  ;;  %v18373_v19 = vpop.f32.mrb[20].mxu0 }
 0x30f   :  { %v23412_v9 = vrot.slane %v4419_v25, %v19011_v56  ;;  %v2567_v8 = vsel %vm2529_vm12, %v2502_v26, %v1957_v32  ;;  %14774 = vst.msk [vmem:[#allocation2 + $0x38] sm:$0x1f] %vm14767_vm15, %v13856_v50  ;;  %391 = vrot.lane.b32.xlu1 %v29040_v30, %s18666_s19  ;;  %v29048_v27 = vrot.slane %v29047_v28, 2  ;;  %v29049_v60 = vrot.slane %v22733_v54, 2  ;;  %v23436_v30 = vpop.permute.xlu0 %1754 }
 0x310   :  { %v4460_v36 = vrot.slane %v2567_v8, %v19011_v56  ;;  %v659_v5 = vrot.slane %v118_v29, 2  ;;  %v2243_v12 = vsel %vm2204_vm7, %v2178_v17, %v29050_v51  ;;  %v7400_v32 = vrot.slane %v7390_v59, %v19011_v56 }
 0x311   :  { %v23427_v11 = vsel %vm525_vm0, %v29049_v60, %v29048_v27  ;;  %v7393_v41 = vcombine.low %v23409_v16, %v23412_v9  ;;  %407 = vrot.lane.b32.xlu0 %v29043_v38, %s18666_s19  ;;  %v29051_v54 = vrot.slane %v22944_v15, 2  ;;  %v2308_v29 = vsel %vm2269_vm8, %v2243_v12, %v23164_v57  ;;  %v9004_v15 = vpop.f32.mrb[21].mxu0 }
 0x312   :  { %v4448_v59 = vrot.slane %v4420_v48, %v19011_v56  ;;  %v4453_v50 = vcombine.high %v2567_v8, %v2567_v8  ;;  %v4468_v26 = vcombine.high %v4460_v36, %v4460_v36  ;;  %v7414_v14 = vrot.slane %v7392_v47, %v19011_v56 }
 0x313   :  { %v23443_v25 = vsel %vm525_vm0, %v29051_v54, %v28638_v58  ;;  %v7421_v17 = vrot.slane %v7393_v41, %v19011_v56  ;;  %v7422_v28 = vcombine.low %v7400_v32, %v7407_v37  ;;  %v10295_v27 = vcombine.high %v23170_v21, %v23170_v21  ;;  %409 = vrot.lane.b32.xlu1 %v23011_v31, %s18666_s19  ;;  %v29079_v58 = vld [vmem:[#allocation29_spill] sm:$0xff] }
 0x314   :  { %v2373_v60 = vsel %vm2334_vm9, %v2308_v29, %v23262_v23  ;;  %v4434_v51 = vrot.slane %v4418_v61, %v19011_v56  ;;  %v23458_v57 = vrot.slane %v4468_v26, %v19011_v56  ;;  %v29052_v47 = vrot.slane %v22682_v63, 2  ;;  %v23477_v12 = vpop.permute.xlu0 %383  ;;  %v23482_v63 = vld [vmem:[%s28515_s2] ss:$0 sm:$0xff]  ;;  %v29055_v26 = vld [vmem:[#allocation28_spill] sm:$0xff] }
 0x315   :  { %v29053_v37 = vcombine.low %v23340_v1, %v23343_v3  ;;  %v7423_v23 = vcombine.low %v7414_v14, %v7421_v17  ;;  %v23473_v61 = vsel %vm2399_vm10, %v2373_v60, %v23271_v35  ;;  %986 = vrot.lane.b32.xlu0 %v22904_v44, %s18668_s21  ;;  %v23486_v32 = vrot.slane %v4453_v50, %v19011_v56  ;;  %v29054_v29 = vld [vmem:[#allocation7_spill] sm:$0xff] }
 0x316   :  { %v23463_v48 = vsel %vm525_vm0, %v29052_v47, %v659_v5  ;;  %v9010_v5 = vadd.f32 %v23482_v63, %v18373_v19  ;;  %v7440_v1 = vcombine.low %v4434_v51, %v4448_v59  ;;  %v18125_v3 = vcombine.high %v4434_v51, %v4448_v59 }
 0x317   :  { %v23469_v8 = vrot.slane %v29053_v37, %v19011_v56  ;;  %v23489_v35 = vrot.slane %v4460_v36, %v19011_v56  ;;  %v7430_v41 = vrot.slane %v7422_v28, %v19011_v56  ;;  %v7437_v44 = vrot.slane %v7423_v23, %v19011_v56  ;;  %1168 = vrot.lane.b32.xlu1 %v23096_v43, %s18669_s26 }
 0x318   :  { %v9222_v54 = vmax.f32 %v9010_v5, 0.0  ;;  %v29056_v14 = vmax.f32 %v29054_v29, %v29055_v26  ;;  %v13867_v19 = vrot.slane %v23384_v49, %v19011_v56  ;;  %v18124_v59 = vcombine.high %v23409_v16, %v23412_v9 }
 0x319   :  { %v7442_v36 = vcombine.low %v23489_v35, %v23458_v57  ;;  %v9005_v50 = vadd.f32 %v23482_v63, %v9004_v15  ;;  %1182 = vrot.lane.b32.xlu0 %v29043_v38, %s18669_s26  ;;  %v7438_v28 = vcombine.low %v7430_v41, %v7437_v44  ;;  %v23510_v47 = vrot.slane %v7440_v1, %v19011_v56  ;;  %v23519_v38 = vpop.permute.xlu0 %399  ;;  %v23531_v44 = vpop.permute.xlu1 %385 }
 0x31a   :  { %v12814_v17 = vmax.f32 %v29056_v14, %v10295_v27  ;;  %v10346_v60 = vcombine.high %v9222_v54, %v9222_v54  ;;  %v10353_v51 = vrot.slane %v9222_v54, %v19011_v56  ;;  %v23513_v16 = vrot.slane %v18125_v3, %v19011_v56 }
 0x31b   :  { %v4469_v9 = vcombine.high %v23486_v32, %v23486_v32  ;;  %18390 = vmatmul.mubr.msk.f32.gmra.mrb[32].mxu0 %vm8713_vm13, %v7438_v28  ;;  %v29058_v1 = vmax.f32 %v23217_v10, %v23226_v18  ;;  %v7470_v41 = vrot.slane %v7442_v36, %v19011_v56  ;;  %1370 = vrot.lane.b32.xlu1 %v23427_v11, %s18670_s29  ;;  %v9221_v26 = vmax.f32 %v9005_v50, 0.0 }
 0x31c   :  { %v13015_v49 = vmax.f32 %v23226_v18, %v12814_v17  ;;  %v13016_v15 = vmax.f32 %v12814_v17, %v23232_v39  ;;  %v10360_v37 = vrot.slane %v10346_v60, %v19011_v56  ;;  %v10361_v23 = vcombine.high %v10353_v51, %v10353_v51 }
 0x31d   :  { %v23523_v5 = vrot.slane %v10353_v51, %v19011_v56  ;;  %v13196_v3 = vmax.f32 %v29058_v1, %v12814_v17  ;;  %1964 = vrot.lane.b32.xlu0 %v23427_v11, %s18673_s17  ;;  %v10297_v36 = vcombine.high %v9221_v26, %v9221_v26  ;;  %v7472_v1 = vcombine.low %v23513_v16, %v7470_v41 }
 0x31e   :  { %v13197_v54 = vmax.f32 %v13015_v49, %v23232_v39  ;;  %v13198_v29 = vmax.f32 %v13016_v15, %v23247_v53  ;;  %v10362_v14 = vcombine.high %v10360_v37, %v10360_v37  ;;  %v23538_v28 = vrot.slane %v10360_v37, %v19011_v56 }
 0x31f   :  { %29057 = vst [vmem:[#allocation24_spill] sm:$0xff] %v23523_v5  ;;  %v23541_v10 = vrot.slane %v10361_v23, %v19011_v56  ;;  %v10391_v18 = vcombine.high %v23523_v5, %v23523_v5  ;;  %v13858_v39 = vcombine.low %v23274_v13, %v13196_v3  ;;  %1966 = vrot.lane.b32.xlu1 %v23443_v25, %s18673_s17 }
 0x320   :  { %v13859_v53 = vcombine.low %v13197_v54, %v13198_v29  ;;  %v23549_v50 = vrot.slane %v10362_v14, %v19011_v56  ;;  %v10392_v60 = vcombine.high %v23538_v28, %v23538_v28  ;;  %v10304_v16 = vrot.slane %v9221_v26, %v19011_v56 }
 0x321   :  { %v10393_v51 = vcombine.high %v23541_v10, %v23541_v10  ;;  %v23559_v15 = vmax.f32 %v10295_v27, %v10391_v18  ;;  %v13874_v37 = vrot.slane %v13858_v39, %v19011_v56  ;;  %1980 = vrot.lane.b32.xlu0 %v23463_v48, %s18673_s17  ;;  %v23576_v27 = vpop.permute.xlu0 %962  ;;  %v23578_v14 = vpop.permute.xlu1 %786  ;;  %v7449_v41 = vrot.slane %v18124_v59, %v19011_v56 }
 0x322   :  { %v13881_v23 = vrot.slane %v13859_v53, %v19011_v56  ;;  %v23572_v29 = vmax.f32 %v23269_v45, %v10392_v60  ;;  %v2503_v45 = vsel %vm2464_vm11, %v23473_v61, %v23436_v30  ;;  %v4483_v53 = vrot.slane %v23486_v32, %v19011_v56 }
 0x323   :  { %v23567_v3 = vmax.f32 %v23167_v62, %v10393_v51  ;;  %v13889_v18 = vcombine.low %v13867_v19, %v13874_v37  ;;  %v10311_v62 = vrot.slane %v10297_v36, %v19011_v56  ;;  %v10394_v60 = vcombine.high %v23549_v50, %v23549_v50  ;;  %393 = vrot.lane.b32.xlu1 %v23096_v43, %s18666_s19 }
 0x324   :  { %v13890_v39 = vcombine.low %v13881_v23, %v23469_v8  ;;  %v10312_v26 = vcombine.high %v10304_v16, %v10304_v16  ;;  %v7471_v59 = vcombine.low %v7449_v41, %v23510_v47  ;;  %v4497_v51 = vrot.slane %v4469_v9, %v19011_v56 }
 0x325   :  { %v13897_v19 = vrot.slane %v13889_v18, %v19011_v56  ;;  %v10313_v36 = vcombine.high %v10311_v62, %v10311_v62  ;;  %v10320_v30 = vrot.slane %v10304_v16, %v19011_v56  ;;  %v23599_v61 = vrot.slane %v10311_v62, %v19011_v56  ;;  %776 = vrot.lane.b32.xlu0 %v23427_v11, %s18667_s20  ;;  %v23609_v23 = vpop.permute.xlu1 %1362 }
 0x326   :  { %v13904_v8 = vrot.slane %v13890_v39, %v19011_v56  ;;  %v23604_v37 = vrot.slane %v10312_v26, %v19011_v56  ;;  %v7486_v47 = vrot.slane %v7472_v1, %v19011_v56  ;;  %v29059_v11 = vmax.f32 %v23029_v6, %v23282_v7  ;;  %v1959_v62 = vpop.permute.xlu0 %1958 }
 0x327   :  { %v23607_v43 = vrot.slane %v10313_v36, %v19011_v56  ;;  %v23612_v9 = vcombine.high %v10320_v30, %v10320_v30  ;;  %v10343_v18 = vcombine.high %v23599_v61, %v23599_v61  ;;  %v23616_v39 = vmax.f32 %v10320_v30, %v10394_v60  ;;  %v29061_v60 = vld [vmem:[#allocation8_spill] sm:$0xff]  ;;  %792 = vrot.lane.b32.xlu1 %v23463_v48, %s18667_s20 }
 0x328   :  { %v13905_v32 = vcombine.low %v13897_v19, %v13904_v8  ;;  %v12819_v16 = vmax.f32 %v29059_v11, %v10320_v30  ;;  %v29060_v19 = vld [vmem:[#allocation11_spill] sm:$0xff]  ;;  %v29062_v26 = vmax.f32 %v23033_v22, %v29061_v60  ;;  %v29064_v22 = vld [vmem:[#allocation32_spill] sm:$0xff] }
 0x329   :  { %v10345_v41 = vcombine.high %v23607_v43, %v23607_v43  ;;  %v12820_v8 = vmax.f32 %v29060_v19, %v23604_v37  ;;  %v23635_v6 = vmax.f32 %v23314_v46, %v10343_v18  ;;  %v12821_v7 = vmax.f32 %v23325_v0, %v23612_v9  ;;  %794 = vrot.lane.b32.xlu0 %v23103_v52, %s18667_s20  ;;  %v23651_v46 = vpop.permute.xlu1 %768 }
 0x32a   :  { %14775 = vst.msk [vmem:[#allocation2 + $0x40] sm:$0xff] %vm14765_vm14, %v13905_v32  ;;  %v12823_v36 = vmax.f32 %v29062_v26, %v23599_v61  ;;  %v13020_v30 = vmax.f32 %v23310_v24, %v12819_v16  ;;  %v29063_v32 = vmax.f32 %v23251_v33, %v23310_v24  ;;  %v23649_v26 = vsel %vm2529_vm12, %v2503_v45, %v1959_v62  ;;  %v23656_v33 = vpop.permute.xlu0 %770 }
 0x32b   :  { %v23646_v19 = vmax.f32 %v29064_v22, %v10345_v41  ;;  %v13021_v60 = vmax.f32 %v12819_v16, %v12820_v8  ;;  %v7479_v0 = vrot.slane %v7471_v59, %v19011_v56  ;;  %v7489_v18 = vcombine.low %v4483_v53, %v4497_v51  ;;  %1184 = vrot.lane.b32.xlu1 %v23011_v31, %s18669_s26  ;;  %v29066_v22 = vld [vmem:[#allocation34_spill] sm:$0xff] }
 0x32c   :  { %v13201_v11 = vmax.f32 %v29063_v32, %v12819_v16  ;;  %v13022_v17 = vmax.f32 %v12820_v8, %v12821_v7  ;;  %v13202_v13 = vmax.f32 %v13020_v30, %v12820_v8  ;;  %v4508_v24 = vrot.slane %v23649_v26, %v19011_v56 }
 0x32d   :  { %v13203_v32 = vmax.f32 %v13021_v60, %v12821_v7  ;;  %v7487_v16 = vcombine.low %v7479_v0, %v7486_v47  ;;  %v18126_v45 = vcombine.high %v23489_v35, %v23458_v57  ;;  %1372 = vrot.lane.b32.xlu0 %v23443_v25, %s18670_s29  ;;  %v4499_v51 = vcombine.high %v4483_v53, %v4483_v53  ;;  %v23666_v8 = vpop.permute.xlu1 %784 }
 0x32e   :  { %v13906_v62 = vcombine.low %v13201_v11, %v13202_v13  ;;  %v4516_v41 = vcombine.high %v4508_v24, %v4508_v24  ;;  %v4524_v59 = vrot.slane %v4508_v24, %v19011_v56  ;;  %v23670_v30 = vcombine.high %v23604_v37, %v23604_v37  ;;  %v23676_v35 = vpop.permute.xlu0 %982  ;;  %v29065_v11 = vld [vmem:[#allocation14_spill] sm:$0xff] }
 0x32f   :  { %18392 = vmatprep.mubr.msk.f32.mxu0 %vm8713_vm13, %v7487_v16  ;;  %v7505_v31 = vrot.slane %v7489_v18, %v19011_v56  ;;  %1386 = vrot.lane.b32.xlu1 %v23463_v48, %s18670_s29  ;;  %v7498_v53 = vrot.slane %v18126_v45, %v19011_v56  ;;  %v29067_v60 = vmax.f32 %v29065_v11, %v29066_v22 }
 0x330   :  { %v23674_v57 = vrot.slane %v4516_v41, %v19011_v56  ;;  %v4546_v13 = vcombine.high %v4524_v59, %v4524_v59  ;;  %v7490_v47 = vcombine.low %v4499_v51, %v4524_v59 }
 0x331   :  { %1566 = vrot.lane.b32.xlu0 %v29044_v2, %s18671_s30  ;;  %v12822_v0 = vmax.f32 %v29067_v60, %v23670_v30  ;;  %v23688_v24 = vpop.permute.xlu1 %1160  ;;  %v7520_v16 = vcombine.low %v7498_v53, %v7505_v31  ;;  %v23703_v31 = vld [vmem:[%s28513_s0 + $0x2d0] sm:$0xff] }
 0x332   :  { %v7491_v18 = vcombine.low %v23674_v57, %v4546_v13  ;;  %v23690_v41 = vpop.permute.xlu0 %1558  ;;  %v7512_v48 = vrot.slane %v7490_v47, %v19011_v56 }
 0x333   :  { %v13023_v59 = vmax.f32 %v12821_v7, %v12822_v0  ;;  %778 = vrot.lane.b32.xlu1 %v23443_v25, %s18667_s20  ;;  %v13204_v51 = vmax.f32 %v13022_v17, %v12822_v0  ;;  %v7528_v53 = vrot.slane %v7520_v16, %v19011_v56  ;;  %v13914_v25 = vrot.slane %v13906_v62, %v19011_v56  ;;  %v29070_v17 = vld [vmem:[#allocation17_spill] sm:$0xff] }
 0x334   :  { %v7519_v45 = vrot.slane %v7491_v18, %v19011_v56  ;;  %v23721_v16 = vld [vmem:[%s28513_s0 + $0x270] sm:$0xff] }
 0x335   :  { %972 = vrot.lane.b32.xlu0 %v29044_v2, %s18668_s21  ;;  %v13205_v11 = vmax.f32 %v13023_v59, %v12823_v36  ;;  %v23698_v13 = vpop.permute.xlu1 %964  ;;  %v13907_v7 = vcombine.low %v13203_v32, %v13204_v51  ;;  %v4501_v59 = vcombine.high %v23649_v26, %v23649_v26 }
 0x336   :  { %v7521_v22 = vcombine.low %v7512_v48, %v7519_v45  ;;  %29068 = vst [vmem:[#allocation22_spill] sm:$0xff] %v23698_v13  ;;  %v23705_v47 = vpop.permute.xlu0 %966  ;;  %v23730_v45 = vld [vmem:[%s28513_s0 + $0x2d8] sm:$0xff] }
 0x337   :  { %29069 = vst [vmem:[#allocation5_spill] sm:$0xff] %v23705_v47  ;;  %988 = vrot.lane.b32.xlu1 %v29070_v17, %s18668_s21  ;;  %v13921_v60 = vrot.slane %v13907_v7, %v19011_v56  ;;  %v13928_v0 = vrot.slane %v13205_v11, %v19011_v56  ;;  %v289_v7 = vrot.slane %v23703_v31, 1 }
 0x338   :  { %v7535_v36 = vrot.slane %v7521_v22, %v19011_v56 }
 0x339   :  { %990 = vrot.lane.b32.xlu0 %v23703_v31, %s18668_s21  ;;  %v23716_v18 = vpop.permute.xlu1 %980  ;;  %v13929_v62 = vcombine.low %v13914_v25, %v13921_v60  ;;  %v13943_v11 = vrot.slane %v13928_v0, %v19011_v56  ;;  %v4515_v25 = vrot.slane %v4501_v59, %v19011_v56  ;;  %v29075_v60 = vld [vmem:[#allocation3_spill] sm:$0xff]  ;;  %v109_v59 = vld [vmem:[%s28513_s0 + $0x268] sm:$0x1] }
 0x33a   :  { %29071 = vst [vmem:[#allocation37_spill] sm:$0xff] %v23716_v18  ;;  %v7536_v32 = vcombine.low %v7528_v53, %v7535_v36  ;;  %v23725_v48 = vpop.permute.xlu0 %1180  ;;  %v23743_v53 = vrot.slane %v23730_v45, 1 }
 0x33b   :  { %29072 = vst [vmem:[#allocation30_spill] sm:$0xff] %v23725_v48  ;;  %1388 = vrot.lane.b32.xlu1 %v23103_v52, %s18670_s29  ;;  %v13936_v51 = vrot.slane %v13929_v62, %v19011_v56  ;;  %v18628_v52 = vld [vmem:[%s28513_s0 + $0x200] sm:$0xff]  ;;  %v4517_v18 = vcombine.high %v4515_v25, %v4515_v25 }
 0x33c   :  { %18393 = vmatmul.mubr.msk.f32.gmra.mrb[34].mxu0 %vm8713_vm13, %v7536_v32  ;;  %29074 = vst [vmem:[#allocation16_spill] sm:$0xff] %v23743_v53  ;;  %v2114_v0 = vsel %vm2074_vm5, %v18628_v52, %v29075_v60  ;;  %v29076_v32 = vld [vmem:[#allocation33_spill] sm:$0xff]  ;;  %v23768_v49 = vsel %vm204_vm1, %v289_v7, %v23743_v53  ;;  %v277_v52 = vrot.slane %v23721_v16, 1  ;;  %v29082_v53 = vld [vmem:[#allocation20_spill] sm:$0xff] }
 0x33d   :  { %1568 = vrot.lane.b32.xlu0 %v23721_v16, %s18671_s30  ;;  %v23739_v26 = vpop.permute.xlu1 %1364  ;;  %v13944_v22 = vcombine.low %v13936_v51, %v13943_v11  ;;  %v29077_v51 = vld [vmem:[#allocation13_spill] sm:$0xff] }
 0x33e   :  { %29073 = vst [vmem:[#allocation38_spill] sm:$0xff] %v23739_v26  ;;  %v23746_v36 = vpop.permute.xlu0 %1756  ;;  %v18376_v62 = vpop.f32.mrb[22].mxu0  ;;  %v2179_v11 = vsel %vm2139_vm6, %v2114_v0, %v29077_v51  ;;  %v18629_v60 = vld [vmem:[%s28513_s0 + $0x210] sm:$0xff]  ;;  %v23777_v0 = vrot.slane %v4515_v25, %v19011_v56  ;;  %v23821_v26 = vrot.slane %v4517_v18, %v19011_v56  ;;  %v29089_v18 = vrot.slane %v29044_v2, 2 }
 0x33f   :  { %1582 = vrot.lane.b32.xlu1 %v29070_v17, %s18671_s30  ;;  %14776 = vst.msk [vmem:[#allocation2 + $0x48] sm:$0x1f] %vm14767_vm15, %v13944_v22  ;;  %v9020_v22 = vadd.f32 %v23482_v63, %v18376_v62  ;;  %v9014_v54 = vpop.f32.mrb[23].mxu0  ;;  %v2115_v48 = vsel %vm2074_vm5, %v18629_v60, %v29079_v58  ;;  %v2244_v7 = vsel %vm2204_vm7, %v2179_v11, %v23348_v20  ;;  %v644_v60 = vrot.slane %v109_v59, 2  ;;  %v29083_v20 = vld [vmem:[#allocation25_spill] sm:$0xff] }
 0x340   :  { %v9015_v62 = vadd.f32 %v23482_v63, %v9014_v54  ;;  %v23798_v54 = vsel %vm2139_vm6, %v2115_v48, %v23401_v42  ;;  %v2309_v11 = vsel %vm2269_vm8, %v2244_v7, %v29083_v20  ;;  %v29085_v20 = vld [vmem:[#allocation18_spill] sm:$0xff] }
 0x341   :  { %1764 = vrot.lane.b32.xlu0 %v29076_v32, %s18672_s10  ;;  %v23763_v1 = vpop.permute.xlu1 %387  ;;  %v9224_v25 = vmax.f32 %v9020_v22, 0.0  ;;  %v2374_v59 = vsel %vm2334_vm9, %v2309_v11, %v23609_v23 }
 0x342   :  { %29078 = vst [vmem:[#allocation36_spill] sm:$0xff] %v23763_v1  ;;  %v23779_v51 = vpop.permute.xlu0 %1162  ;;  %v23787_v1 = vld [vmem:[%s28513_s0 + $0x288] sm:$0xff]  ;;  %v9223_v22 = vmax.f32 %v9015_v62, 0.0 }
 0x343   :  { %29080 = vst [vmem:[#allocation9_spill] sm:$0xff] %v23779_v51  ;;  %29081 = vst [vmem:[#allocation26_spill] sm:$0xff] %v23787_v1  ;;  %v23792_v58 = vsel %vm2074_vm5, %v23787_v1, %v29082_v53  ;;  %974 = vrot.lane.b32.xlu1 %v23721_v16, %s18668_s21  ;;  %v18631_v51 = vld [vmem:[%s28513_s0 + $0x228] sm:$0xff]  ;;  %v10444_v48 = vcombine.high %v9224_v25, %v9224_v25  ;;  %v10451_v7 = vrot.slane %v9224_v25, %v19011_v56 }
 0x344   :  { %v23807_v53 = vsel %vm2074_vm5, %v18631_v51, %v23531_v44  ;;  %v23818_v1 = vsel %vm204_vm1, %v277_v52, %v29085_v20  ;;  %v10395_v51 = vcombine.high %v9223_v22, %v9223_v22  ;;  %v10402_v62 = vrot.slane %v9223_v22, %v19011_v56  ;;  %v29088_v52 = vld [vmem:[#allocation21_spill] sm:$0xff] }
 0x345   :  { %1170 = vrot.lane.b32.xlu0 %v29076_v32, %s18669_s26  ;;  %v23813_v42 = vpop.permute.xlu1 %1164  ;;  %v10458_v23 = vrot.slane %v10444_v48, %v19011_v56  ;;  %v10459_v11 = vcombine.high %v10451_v7, %v10451_v7  ;;  %v23830_v25 = vrot.slane %v10451_v7, %v19011_v56  ;;  %v2439_v44 = vsel %vm2399_vm10, %v2374_v59, %v23690_v41 }
 0x346   :  { %29084 = vst [vmem:[#allocation4_spill] sm:$0xff] %v23813_v42  ;;  %v23826_v47 = vpop.permute.xlu0 %1178  ;;  %v23837_v42 = vsel %vm525_vm0, %v29089_v18, %v644_v60  ;;  %v10409_v22 = vrot.slane %v10395_v51, %v19011_v56  ;;  %v10418_v48 = vrot.slane %v10402_v62, %v19011_v56  ;;  %v29093_v59 = vmax.f32 %v23192_v40, %v23541_v10 }
 0x347   :  { %29086 = vst [vmem:[#allocation12_spill] sm:$0xff] %v23826_v47  ;;  %29087 = vst [vmem:[#allocation7_spill] sm:$0xff] %v23830_v25  ;;  %1186 = vrot.lane.b32.xlu1 %v29088_v52, %s18669_s26  ;;  %v10410_v47 = vcombine.high %v10402_v62, %v10402_v62  ;;  %v10460_v7 = vcombine.high %v10458_v23, %v10458_v23  ;;  %v23846_v20 = vrot.slane %v10458_v23, %v19011_v56 }
 0x348   :  { %v23849_v2 = vrot.slane %v10459_v11, %v19011_v56  ;;  %v23853_v60 = vcombine.high %v23830_v25, %v23830_v25  ;;  %v23861_v51 = vmax.f32 %v29093_v59, %v23830_v25  ;;  %v10411_v62 = vcombine.high %v10409_v22, %v10409_v22 }
 0x349   :  { %1188 = vrot.lane.b32.xlu0 %v23768_v49, %s18669_s26  ;;  %29090 = vst [vmem:[#allocation28_spill] sm:$0xff] %v23846_v20  ;;  %v23855_v41 = vpop.permute.xlu1 %1384  ;;  %v23864_v18 = vrot.slane %v10409_v22, %v19011_v56  ;;  %v23867_v23 = vrot.slane %v10410_v47, %v19011_v56  ;;  %v23872_v13 = vrot.slane %v10460_v7, %v19011_v56 }
 0x34a   :  { %29091 = vst [vmem:[#allocation11_spill] sm:$0xff] %v23853_v60  ;;  %29092 = vst [vmem:[#allocation8_spill] sm:$0xff] %v23855_v41  ;;  %v23869_v11 = vpop.permute.xlu0 %1560  ;;  %v23876_v41 = vcombine.high %v23846_v20, %v23846_v20  ;;  %v23880_v40 = vmax.f32 %v23559_v15, %v23849_v2  ;;  %v23884_v10 = vmax.f32 %v23567_v3, %v23853_v60 }
 0x34b   :  { %29094 = vst [vmem:[#allocation32_spill] sm:$0xff] %v23861_v51  ;;  %29095 = vst [vmem:[#allocation14_spill] sm:$0xff] %v23869_v11  ;;  %1584 = vrot.lane.b32.xlu1 %v23703_v31, %s18671_s30  ;;  %v29097_v47 = vmax.f32 %v23204_v34, %v23549_v50  ;;  %v23895_v7 = vrot.slane %v10411_v62, %v19011_v56  ;;  %v10440_v59 = vcombine.high %v10418_v48, %v10418_v48 }
 0x34c   :  { %29096 = vst [vmem:[#allocation34_spill] sm:$0xff] %v23876_v41  ;;  %v23899_v15 = vcombine.high %v23864_v18, %v23864_v18  ;;  %v23905_v3 = vmax.f32 %v23572_v29, %v23872_v13  ;;  %v23909_v34 = vmax.f32 %v23616_v39, %v23876_v41  ;;  %v13028_v50 = vmax.f32 %v23861_v51, %v23880_v40 }
 0x34d   :  { %v23892_v22 = vmax.f32 %v29097_v47, %v23846_v20  ;;  %1766 = vrot.lane.b32.xlu0 %v23818_v1, %s18672_s10  ;;  %v1961_v47 = vpop.permute.xlu1 %1960  ;;  %v10442_v25 = vcombine.high %v23867_v23, %v23867_v23  ;;  %v23919_v20 = vcombine.high %v23872_v13, %v23872_v13  ;;  %v12625_v29 = vmax.f32 %v23604_v37, %v10418_v48  ;;  %v18379_v37 = vpop.f32.mrb[24].mxu0 }
 0x34e   :  { %29098 = vst [vmem:[#allocation17_spill] sm:$0xff] %v23899_v15  ;;  %v23924_v41 = vpop.permute.xlu0 %389  ;;  %v23929_v62 = vmax.f32 %v13028_v50, %v23884_v10  ;;  %v23932_v11 = vmax.f32 %v23670_v30, %v10440_v59  ;;  %v29100_v51 = vmax.f32 %v23294_v55, %v23607_v43  ;;  %v23945_v39 = vmax.f32 %v23635_v6, %v23895_v7  ;;  %v121_v55 = vld [vmem:[%s28513_s0 + $0x2c8] sm:$0x1] }
 0x34f   :  { %29099 = vst [vmem:[#allocation3_spill] sm:$0xff] %v23924_v41  ;;  %v13032_v60 = vmax.f32 %v23892_v22, %v23905_v3  ;;  %1780 = vrot.lane.b32.xlu1 %v29088_v52, %s18672_s10  ;;  %v23941_v48 = vmax.f32 %v23599_v61, %v10442_v25  ;;  %v23949_v30 = vmax.f32 %v23646_v19, %v23899_v15  ;;  %v23959_v61 = vpop.f32.mrb[25].mxu0 }
 0x350   :  { %v12824_v5 = vmax.f32 %v29100_v51, %v23864_v18  ;;  %v23952_v59 = vmax.f32 %v12625_v29, %v23919_v20  ;;  %v4548_v43 = vcombine.high %v23674_v57, %v23674_v57  ;;  %v2504_v6 = vsel %vm2464_vm11, %v2439_v44, %v23746_v36  ;;  %v18632_v44 = vld [vmem:[%s28513_s0 + $0x218] sm:$0xff] }
 0x351   :  { %1968 = vrot.lane.b32.xlu0 %v23837_v42, %s18673_s17  ;;  %v13033_v19 = vmax.f32 %v23905_v3, %v23909_v34  ;;  %v23968_v25 = vmax.f32 %v13032_v60, %v23909_v34  ;;  %v23970_v51 = vpop.permute.xlu1 %403  ;;  %v23978_v57 = vsel %vm2529_vm12, %v2504_v6, %v1961_v47  ;;  %v2116_v60 = vsel %vm2074_vm5, %v18632_v44, %v23477_v12  ;;  %v23997_v6 = vld [vmem:[%s28513_s0 + $0x278] sm:$0xff] }
 0x352   :  { %29101 = vst [vmem:[#allocation33_spill] sm:$0xff] %v23970_v51  ;;  %v13024_v50 = vmax.f32 %v12824_v5, %v23945_v39  ;;  %v23980_v36 = vpop.permute.xlu0 %772  ;;  %v4557_v29 = vrot.slane %v23978_v57, %v19011_v56  ;;  %v664_v47 = vrot.slane %v121_v55, 2  ;;  %v2124_v41 = vsel %vm2074_vm5, %v23997_v6, %v23519_v38 }
 0x353   :  { %29102 = vst [vmem:[#allocation13_spill] sm:$0xff] %v23980_v36  ;;  %v23988_v5 = vmax.f32 %v13033_v19, %v23952_v59  ;;  %395 = vrot.lane.b32.xlu1 %v29076_v32, %s18666_s19  ;;  %v9030_v19 = vadd.f32 %v23482_v63, %v18379_v37  ;;  %v666_v32 = vrot.slane %v23703_v31, 2  ;;  %v29103_v15 = vcombine.high %v23777_v0, %v23777_v0 }
 0x354   :  { %v24003_v12 = vmax.f32 %v13024_v50, %v23949_v30  ;;  %v4565_v44 = vcombine.high %v4557_v29, %v4557_v29  ;;  %v4573_v51 = vrot.slane %v4557_v29, %v19011_v56  ;;  %v7537_v50 = vcombine.low %v4548_v43, %v23777_v0 }
 0x355   :  { %411 = vrot.lane.b32.xlu0 %v29088_v52, %s18666_s19  ;;  %v24012_v36 = vpop.permute.xlu1 %1366  ;;  %v7538_v52 = vcombine.low %v23821_v26, %v29103_v15  ;;  %v4549_v31 = vcombine.high %v23821_v26, %v23821_v26  ;;  %v9226_v55 = vmax.f32 %v9030_v19, 0.0  ;;  %v2190_v29 = vsel %vm2139_vm6, %v23792_v58, %v23578_v14 }
 0x356   :  { %v24022_v37 = vpop.permute.xlu0 %1368  ;;  %v2245_v38 = vsel %vm2204_vm7, %v23798_v54, %v23576_v27  ;;  %v24031_v43 = vrot.slane %v4565_v44, %v19011_v56  ;;  %v29105_v0 = vrot.slane %v29070_v17, 2  ;;  %v4595_v15 = vcombine.high %v4573_v51, %v4573_v51 }
 0x357   :  { %29104 = vst [vmem:[#allocation29_spill] sm:$0xff] %v24022_v37  ;;  %1172 = vrot.lane.b32.xlu1 %v23818_v1, %s18669_s26  ;;  %v7539_v19 = vcombine.low %v4549_v31, %v4573_v51  ;;  %v10491_v14 = vcombine.high %v23849_v2, %v23849_v2  ;;  %v10542_v27 = vcombine.high %v9226_v55, %v9226_v55  ;;  %v646_v44 = vrot.slane %v23721_v16, 2 }
 0x358   :  { %v24038_v26 = vsel %vm525_vm0, %v29105_v0, %v664_v47  ;;  %v24046_v58 = vsel %vm2139_vm6, %v2116_v60, %v23651_v46  ;;  %v24051_v17 = vrot.slane %v9226_v55, %v19011_v56  ;;  %v29107_v47 = vrot.slane %v23730_v45, 2 }
 0x359   :  { %1374 = vrot.lane.b32.xlu0 %v23837_v42, %s18670_s29  ;;  %v24048_v54 = vpop.permute.xlu1 %1382  ;;  %v7547_v31 = vrot.slane %v7537_v50, %v19011_v56  ;;  %v7554_v0 = vrot.slane %v7538_v52, %v19011_v56  ;;  %v7540_v37 = vcombine.low %v24031_v43, %v4595_v15  ;;  %v10556_v46 = vrot.slane %v10542_v27, %v19011_v56 }
 0x35a   :  { %29106 = vst [vmem:[#allocation20_spill] sm:$0xff] %v24048_v54  ;;  %v24056_v51 = vsel %vm525_vm0, %v666_v32, %v29107_v47  ;;  %v24063_v60 = vpop.permute.xlu0 %1580  ;;  %v24068_v55 = vsel %vm2139_vm6, %v23807_v53, %v23656_v33  ;;  %v24072_v32 = vsel %vm2139_vm6, %v2124_v41, %v23666_v8  ;;  %v7561_v16 = vrot.slane %v7539_v19, %v19011_v56  ;;  %v29110_v47 = vld [vmem:[#allocation19_spill] sm:$0xff] }
 0x35b   :  { %29108 = vst [vmem:[#allocation25_spill] sm:$0xff] %v24063_v60  ;;  %1390 = vrot.lane.b32.xlu1 %v24038_v26, %s18670_s29  ;;  %v24079_v50 = vrot.slane %v24051_v17, %v19011_v56  ;;  %v7568_v52 = vrot.slane %v7540_v37, %v19011_v56  ;;  %v10558_v15 = vcombine.high %v10556_v46, %v10556_v46 }
 0x35c   :  { %v24083_v27 = vrot.slane %v10556_v46, %v19011_v56  ;;  %v29109_v33 = vmax.f32 %v23188_v4, %v23538_v28  ;;  %v24092_v53 = vsel %vm2204_vm7, %v2190_v29, %v23676_v35  ;;  %v9025_v37 = vadd.f32 %v23482_v63, %v23959_v61 }
 0x35d   :  { %1392 = vrot.lane.b32.xlu0 %v24056_v51, %s18670_s29  ;;  %v10587_v41 = vcombine.high %v24079_v50, %v24079_v50  ;;  %v24098_v19 = vpop.permute.xlu1 %1758  ;;  %v29111_v46 = vrot.slane %v29110_v47, 2  ;;  %v7570_v28 = vcombine.low %v7561_v16, %v7568_v52  ;;  %v7569_v29 = vcombine.low %v7547_v31, %v7554_v0 }
 0x35e   :  { %v12831_v8 = vmax.f32 %v29109_v33, %v10491_v14  ;;  %v10588_v33 = vcombine.high %v24083_v27, %v24083_v27  ;;  %v24109_v60 = vpop.permute.xlu0 %405  ;;  %v24113_v61 = vsel %vm2269_vm8, %v2245_v38, %v23688_v24  ;;  %v24123_v52 = vrot.slane %v10558_v15, %v19011_v56 }
 0x35f   :  { %v24103_v4 = vsel %vm525_vm0, %v646_v44, %v29111_v46  ;;  %29112 = vst [vmem:[#allocation21_spill] sm:$0xff] %v24109_v60  ;;  %v24115_v54 = vmax.f32 %v10491_v14, %v10587_v41  ;;  %1782 = vrot.lane.b32.xlu1 %v23768_v49, %s18672_s10  ;;  %v29113_v24 = vmax.f32 %v23880_v40, %v23884_v10  ;;  %v24137_v14 = vld [vmem:[%s28513_s0 + $0x2e8] sm:$0xff]  ;;  %v9225_v41 = vmax.f32 %v9025_v37, 0.0 }
 0x360   :  { %v13030_v16 = vmax.f32 %v23884_v10, %v12831_v8  ;;  %v24126_v31 = vmax.f32 %v23919_v20, %v10588_v33  ;;  %v13031_v0 = vmax.f32 %v12831_v8, %v23892_v22  ;;  %v10443_v20 = vcombine.high %v23895_v7, %v23895_v7  ;;  %v29116_v44 = vld [vmem:[#allocation24_spill] sm:$0xff] }
 0x361   :  { %v13211_v38 = vmax.f32 %v29113_v24, %v12831_v8  ;;  %1970 = vrot.lane.b32.xlu0 %v24103_v4, %s18673_s17  ;;  %v24142_v47 = vpop.permute.xlu1 %774  ;;  %v7577_v33 = vrot.slane %v7569_v29, %v19011_v56  ;;  %v7584_v24 = vrot.slane %v7570_v28, %v19011_v56  ;;  %v10493_v37 = vcombine.high %v9225_v41, %v9225_v41 }
 0x362   :  { %v13212_v15 = vmax.f32 %v13030_v16, %v23892_v22  ;;  %29114 = vst [vmem:[#allocation19_spill] sm:$0xff] %v24142_v47  ;;  %v13213_v10 = vmax.f32 %v13031_v0, %v23905_v3  ;;  %v24149_v35 = vpop.permute.xlu0 %788  ;;  %v4550_v22 = vcombine.high %v23978_v57, %v23978_v57  ;;  %v10500_v16 = vrot.slane %v9225_v41, %v19011_v56 }
 0x363   :  { %v13947_v8 = vcombine.low %v23929_v62, %v13211_v38  ;;  %29115 = vst [vmem:[#allocation39_spill] sm:$0xff] %v24149_v35  ;;  %v29117_v47 = vmax.f32 %v23170_v21, %v29116_v44  ;;  %1984 = vrot.lane.b32.xlu1 %v24038_v26, %s18673_s17  ;;  %v10557_v3 = vcombine.high %v24051_v17, %v24051_v17 }
 0x364   :  { %v10590_v62 = vcombine.high %v24123_v52, %v24123_v52  ;;  %v13948_v28 = vcombine.low %v13212_v15, %v13213_v10  ;;  %v7585_v29 = vcombine.low %v7577_v33, %v7584_v24  ;;  %v24166_v57 = vrot.slane %v10493_v37, %v19011_v56  ;;  %v29119_v15 = vld [vmem:[#allocation32_spill] sm:$0xff]  ;;  %v29121_v24 = vld [vmem:[#allocation22_spill] sm:$0xff] }
 0x365   :  { %v12827_v46 = vmax.f32 %v29117_v47, %v10443_v20  ;;  %397 = vrot.lane.b32.xlu0 %v23818_v1, %s18666_s19  ;;  %v10508_v0 = vcombine.high %v10500_v16, %v10500_v16  ;;  %v10516_v21 = vrot.slane %v10500_v16, %v19011_v56  ;;  %v24170_v38 = vpop.permute.xlu1 %968  ;;  %v24173_v17 = vrot.slane %v13947_v8, %v19011_v56 }
 0x366   :  { %29118 = vst [vmem:[#allocation24_spill] sm:$0xff] %v24170_v38  ;;  %v24176_v41 = vrot.slane %v13948_v28, %v19011_v56  ;;  %v29120_v1 = vmax.f32 %v23945_v39, %v23949_v30  ;;  %18395 = vmatprep.mubr.msk.f32.mxu0 %vm8713_vm13, %v7585_v29  ;;  %v24183_v33 = vpop.permute.xlu0 %1562  ;;  %v24188_v37 = vsel %vm2204_vm7, %v24046_v58, %v29121_v24 }
 0x367   :  { %v13026_v44 = vmax.f32 %v23949_v30, %v12827_v46  ;;  %v13027_v47 = vmax.f32 %v12827_v46, %v29119_v15  ;;  %v24192_v8 = vrot.slane %v24166_v57, %v19011_v56  ;;  %v24195_v16 = vrot.slane %v10508_v0, %v19011_v56  ;;  %780 = vrot.lane.b32.xlu1 %v23837_v42, %s18667_s20 }
 0x368   :  { %v13207_v10 = vmax.f32 %v29120_v1, %v12827_v46  ;;  %v24197_v28 = vcombine.high %v10516_v21, %v10516_v21  ;;  %v13978_v39 = vcombine.low %v24173_v17, %v24176_v41  ;;  %v24203_v30 = vmax.f32 %v10516_v21, %v10590_v62 }
 0x369   :  { %v29122_v58 = vmax.f32 %v23612_v9, %v23867_v23  ;;  %v13208_v29 = vmax.f32 %v13026_v44, %v29119_v15  ;;  %796 = vrot.lane.b32.xlu0 %v24038_v26, %s18667_s20  ;;  %v4564_v0 = vrot.slane %v4550_v22, %v19011_v56  ;;  %v24213_v1 = vrot.slane %v10557_v3, %v19011_v56  ;;  %v24219_v17 = vpop.permute.xlu1 %1564  ;;  %v29123_v9 = vld [vmem:[#allocation5_spill] sm:$0xff]  ;;  %v29124_v44 = vld [vmem:[#allocation38_spill] sm:$0xff] }
 0x36a   :  { %v10539_v42 = vcombine.high %v24192_v8, %v24192_v8  ;;  %v24224_v23 = vsel %vm2204_vm7, %v24068_v55, %v29123_v9  ;;  %v12837_v26 = vmax.f32 %v23932_v11, %v24195_v16  ;;  %v12838_v22 = vmax.f32 %v23941_v48, %v24197_v28  ;;  %v29126_v11 = vld [vmem:[#allocation14_spill] sm:$0xff] }
 0x36b   :  { %v12836_v46 = vmax.f32 %v29122_v58, %v10516_v21  ;;  %v24231_v21 = vpop.permute.xlu0 %1578  ;;  %v2375_v41 = vsel %vm2334_vm9, %v24113_v61, %v29124_v44  ;;  %v13209_v24 = vmax.f32 %v13027_v47, %v23880_v40  ;;  %v29125_v55 = vmax.f32 %v23909_v34, %v23952_v59  ;;  %1376 = vrot.lane.b32.xlu1 %v24103_v4, %s18670_s29 }
 0x36c   :  { %v24236_v15 = vmax.f32 %v10443_v20, %v10539_v42  ;;  %v2440_v48 = vsel %vm2399_vm10, %v2375_v41, %v29126_v11  ;;  %v13945_v35 = vcombine.low %v24003_v12, %v13207_v10  ;;  %v29127_v40 = vcombine.low %v23968_v25, %v23988_v5 }
 0x36d   :  { %v13035_v3 = vmax.f32 %v23952_v59, %v12836_v46  ;;  %v13216_v58 = vmax.f32 %v29125_v55, %v12836_v46  ;;  %v13036_v9 = vmax.f32 %v12836_v46, %v12837_v26  ;;  %1570 = vrot.lane.b32.xlu0 %v23997_v6, %s18671_s30  ;;  %v4566_v34 = vcombine.high %v4564_v0, %v4564_v0  ;;  %v24255_v47 = vpop.permute.xlu1 %1778 }
 0x36e   :  { %v14002_v61 = vrot.slane %v29127_v40, %v19011_v56  ;;  %v10589_v59 = vcombine.high %v24213_v1, %v24213_v1  ;;  %v13946_v20 = vcombine.low %v13208_v29, %v13209_v24  ;;  %v13955_v46 = vrot.slane %v13945_v35, %v19011_v56  ;;  %v29128_v29 = vld [vmem:[#allocation11_spill] sm:$0xff]  ;;  %v29130_v40 = vld [vmem:[#allocation28_spill] sm:$0xff] }
 0x36f   :  { %v13217_v62 = vmax.f32 %v13035_v3, %v12837_v26  ;;  %v13218_v42 = vmax.f32 %v13036_v9, %v12838_v22  ;;  %v2505_v12 = vsel %vm2464_vm11, %v2440_v48, %v24098_v19  ;;  %v1963_v10 = vpop.permute.xlu0 %1962  ;;  %v18382_v3 = vpop.f32.mrb[26].mxu0  ;;  %1586 = vrot.lane.b32.xlu1 %v23730_v45, %s18671_s30  ;;  %v24272_v19 = vld [vmem:[%s28513_s0 + $0x2f0] sm:$0xff]  ;;  %v4597_v41 = vcombine.high %v24031_v43, %v24031_v43 }
 0x370   :  { %v13962_v44 = vrot.slane %v13946_v20, %v19011_v56  ;;  %v24264_v25 = vsel %vm2529_vm12, %v2505_v12, %v1963_v10  ;;  %v9040_v5 = vadd.f32 %v23482_v63, %v18382_v3  ;;  %v9034_v35 = vpop.f32.mrb[27].mxu0  ;;  %v29131_v20 = vld [vmem:[#allocation34_spill] sm:$0xff]  ;;  %v24296_v3 = vrot.slane %v24272_v19, 1 }
 0x371   :  { %v13995_v26 = vcombine.low %v13216_v58, %v13217_v62  ;;  %v4580_v62 = vrot.slane %v4564_v0, %v19011_v56  ;;  %v14016_v55 = vrot.slane %v13218_v42, %v19011_v56  ;;  %1588 = vrot.lane.b32.xlu0 %v24137_v14, %s18671_s30  ;;  %v124_v58 = vld [vmem:[%s28513_s0 + $0x2e0] sm:$0x1]  ;;  %v24284_v48 = vpop.permute.xlu1 %790  ;;  %v12637_v0 = vmax.f32 %v29130_v40, %v10589_v59 }
 0x372   :  { %v13977_v11 = vcombine.low %v13955_v46, %v13962_v44  ;;  %29129 = vst [vmem:[#allocation32_spill] sm:$0xff] %v24284_v48  ;;  %v9228_v9 = vmax.f32 %v9040_v5, 0.0  ;;  %v12639_v43 = vmax.f32 %v29131_v20, %v24123_v52  ;;  %v4605_v12 = vrot.slane %v24264_v25, %v19011_v56  ;;  %29133 = vst [vmem:[#allocation5_spill] sm:$0xff] %v24296_v3 }
 0x373   :  { %v14009_v24 = vrot.slane %v13995_v26, %v19011_v56  ;;  %v10509_v26 = vcombine.high %v24166_v57, %v24166_v57  ;;  %v24293_v10 = vpop.permute.xlu0 %970  ;;  %v4594_v46 = vrot.slane %v4566_v34, %v19011_v56  ;;  %v13992_v44 = vrot.slane %v13978_v39, %v19011_v56  ;;  %1986 = vrot.lane.b32.xlu1 %v24056_v51, %s18673_s17 }
 0x374   :  { %29132 = vst [vmem:[#allocation22_spill] sm:$0xff] %v24293_v10  ;;  %v13985_v59 = vrot.slane %v13977_v11, %v19011_v56  ;;  %v669_v52 = vrot.slane %v124_v58, 2  ;;  %v4596_v57 = vcombine.high %v4580_v62, %v4580_v62  ;;  %v10640_v39 = vcombine.high %v9228_v9, %v9228_v9 }
 0x375   :  { %v14017_v42 = vcombine.low %v14002_v61, %v14009_v24  ;;  %v24303_v61 = vcombine.low %v4597_v41, %v4580_v62  ;;  %v14031_v24 = vrot.slane %v14016_v55, %v19011_v56  ;;  %413 = vrot.lane.b32.xlu0 %v23768_v49, %s18666_s19  ;;  %v24309_v34 = vpop.permute.xlu1 %984  ;;  %v10647_v11 = vrot.slane %v9228_v9, %v19011_v56 }
 0x376   :  { %v13993_v40 = vcombine.low %v13985_v59, %v13992_v44  ;;  %29134 = vst [vmem:[#allocation38_spill] sm:$0xff] %v24309_v34  ;;  %v24314_v58 = vrot.slane %v10509_v26, %v19011_v56  ;;  %v4613_v41 = vcombine.high %v4605_v12, %v4605_v12  ;;  %v10654_v9 = vrot.slane %v10640_v39, %v19011_v56  ;;  %v29140_v34 = vld [vmem:[#allocation26_spill] sm:$0xff] }
 0x377   :  { %v14024_v5 = vrot.slane %v14017_v42, %v19011_v56  ;;  %v24316_v22 = vpop.permute.xlu0 %1166  ;;  %v29136_v42 = vld [vmem:[#allocation37_spill] sm:$0xff]  ;;  %782 = vrot.lane.b32.xlu1 %v24103_v4, %s18667_s20  ;;  %v10655_v26 = vcombine.high %v10647_v11, %v10647_v11  ;;  %v29137_v44 = vrot.slane %v24137_v14, 1  ;;  %v9035_v4 = vadd.f32 %v23482_v63, %v9034_v35 }
 0x378   :  { %29135 = vst [vmem:[#allocation14_spill] sm:$0xff] %v24316_v22  ;;  %v24322_v49 = vsel %vm2204_vm7, %v24072_v32, %v29136_v42  ;;  %14777 = vst.msk [vmem:[#allocation2 + $0x50] sm:$0xff] %vm14765_vm14, %v13993_v40  ;;  %v10656_v42 = vcombine.high %v10654_v9, %v10654_v9  ;;  %v10541_v63 = vcombine.high %v24314_v58, %v24314_v58 }
 0x379   :  { %v14032_v62 = vcombine.low %v14024_v5, %v14031_v24  ;;  %v24332_v59 = vsel %vm204_vm1, %v29137_v44, %v24296_v3  ;;  %v24334_v5 = vcombine.low %v4594_v46, %v4596_v57  ;;  %976 = vrot.lane.b32.xlu0 %v23997_v6, %s18668_s21  ;;  %v29138_v24 = vrot.slane %v23730_v45, 2  ;;  %v24347_v39 = vpop.permute.xlu1 %1760 }
 0x37a   :  { %v10663_v46 = vrot.slane %v10647_v11, %v19011_v56  ;;  %v10670_v57 = vrot.slane %v10654_v9, %v19011_v56  ;;  %v10677_v44 = vrot.slane %v10655_v26, %v19011_v56  ;;  %v24357_v6 = vrot.slane %v4605_v12, %v19011_v56 }
 0x37b   :  { %14778 = vst.msk [vmem:[#allocation2 + $0x58] sm:$0x1f] %vm14767_vm15, %v14032_v62  ;;  %v24345_v40 = vsel %vm525_vm0, %v29138_v24, %v669_v52  ;;  %v10540_v62 = vcombine.high %v24195_v16, %v24195_v16  ;;  %v24360_v35 = vrot.slane %v4613_v41, %v19011_v56  ;;  %v24362_v52 = vpop.permute.xlu0 %1762  ;;  %992 = vrot.lane.b32.xlu1 %v23730_v45, %s18668_s21  ;;  %v9227_v55 = vmax.f32 %v9035_v4, 0.0 }
 0x37c   :  { %v10684_v11 = vrot.slane %v10656_v42, %v19011_v56  ;;  %v10685_v9 = vcombine.high %v10663_v46, %v10663_v46  ;;  %v10686_v26 = vcombine.high %v10670_v57, %v10670_v57  ;;  %v10687_v24 = vcombine.high %v10677_v44, %v10677_v44 }
 0x37d   :  { %v29139_v32 = vmax.f32 %v29128_v29, %v24213_v1  ;;  %v24373_v12 = vmax.f32 %v24115_v54, %v10677_v44  ;;  %v12849_v41 = vmax.f32 %v12639_v43, %v10670_v57  ;;  %1572 = vrot.lane.b32.xlu0 %v29140_v34, %s18671_s30  ;;  %v29141_v45 = vmax.f32 %v23872_v13, %v24083_v27  ;;  %v24384_v1 = vpop.permute.xlu1 %1776 }
 0x37e   :  { %v12847_v10 = vmax.f32 %v12637_v0, %v10685_v9  ;;  %v12850_v48 = vmax.f32 %v24126_v31, %v10684_v11  ;;  %v24382_v60 = vmax.f32 %v24203_v30, %v10686_v26  ;;  %v10591_v29 = vcombine.high %v9227_v55, %v9227_v55  ;;  %v29142_v31 = vld [vmem:[#allocation18_spill] sm:$0xff] }
 0x37f   :  { %v24370_v20 = vmax.f32 %v29139_v32, %v10663_v46  ;;  %v12848_v42 = vmax.f32 %v29141_v45, %v10687_v24  ;;  %v10598_v43 = vrot.slane %v9227_v55, %v19011_v56  ;;  %v10688_v32 = vcombine.high %v10684_v11, %v10684_v11  ;;  %v24389_v4 = vpop.permute.xlu0 %1982  ;;  %1768 = vrot.lane.b32.xlu1 %v29142_v31, %s18672_s10  ;;  %v29143_v55 = vld [vmem:[#allocation16_spill] sm:$0xff] }
 0x380   :  { %v13044_v0 = vmax.f32 %v24373_v12, %v12847_v10  ;;  %v13047_v46 = vmax.f32 %v12849_v41, %v12850_v48  ;;  %v10605_v57 = vrot.slane %v10591_v29, %v19011_v56  ;;  %v12629_v45 = vmax.f32 %v23864_v18, %v10540_v62 }
 0x381   :  { %v13043_v54 = vmax.f32 %v24370_v20, %v24373_v12  ;;  %v13045_v13 = vmax.f32 %v12847_v10, %v12848_v42  ;;  %v13046_v27 = vmax.f32 %v12848_v42, %v12849_v41  ;;  %v10606_v44 = vcombine.high %v10598_v43, %v10598_v43  ;;  %1784 = vrot.lane.b32.xlu0 %v29143_v55, %s18672_s10  ;;  %v24403_v22 = vpop.permute.xlu1 %391 }
 0x382   :  { %v10614_v9 = vrot.slane %v10598_v43, %v19011_v56  ;;  %v24400_v11 = vmax.f32 %v13044_v0, %v12848_v42  ;;  %29144 = vst [vmem:[#allocation11_spill] sm:$0xff] %v24403_v22  ;;  %v10607_v38 = vcombine.high %v10605_v57, %v10605_v57 }
 0x383   :  { %v24394_v30 = vmax.f32 %v13043_v54, %v12847_v10  ;;  %v13227_v26 = vmax.f32 %v13045_v13, %v12849_v41  ;;  %v13228_v24 = vmax.f32 %v13046_v27, %v12850_v48  ;;  %v10621_v10 = vrot.slane %v10605_v57, %v19011_v56  ;;  %v24409_v3 = vpop.permute.xlu0 %407  ;;  %v29146_v41 = vld [vmem:[#allocation17_spill] sm:$0xff]  ;;  %v29147_v13 = vld [vmem:[#allocation7_spill] sm:$0xff]  ;;  %1786 = vrot.lane.b32.xlu1 %v24332_v59, %s18672_s10 }
 0x384   :  { %v24407_v54 = vrot.slane %v10606_v44, %v19011_v56  ;;  %v10636_v29 = vcombine.high %v10614_v9, %v10614_v9  ;;  %29145 = vst [vmem:[#allocation28_spill] sm:$0xff] %v24409_v3  ;;  %v12631_v0 = vmax.f32 %v29146_v41, %v24314_v58  ;;  %v12633_v18 = vmax.f32 %v29147_v13, %v10541_v63 }
 0x385   :  { %v14082_v42 = vcombine.low %v13227_v26, %v13228_v24  ;;  %v10635_v62 = vrot.slane %v10607_v38, %v19011_v56  ;;  %v10637_v27 = vcombine.high %v10621_v10, %v10621_v10  ;;  %v12642_v44 = vmax.f32 %v24195_v16, %v10614_v9  ;;  %798 = vrot.lane.b32.xlu0 %v24056_v51, %s18667_s20  ;;  %v24428_v41 = vpop.permute.xlu1 %409 }
 0x386   :  { %v10638_v57 = vcombine.high %v24407_v54, %v24407_v54  ;;  %v7588_v26 = vcombine.low %v24357_v6, %v24360_v35  ;;  %v18127_v58 = vcombine.high %v24357_v6, %v24360_v35  ;;  %v12839_v63 = vmax.f32 %v12629_v45, %v10636_v29 }
 0x387   :  { %v12841_v24 = vmax.f32 %v12631_v0, %v10621_v10  ;;  %v10639_v38 = vcombine.high %v10635_v62, %v10635_v62  ;;  %v29148_v13 = vmax.f32 %v23895_v7, %v24192_v8  ;;  %v12842_v16 = vmax.f32 %v24236_v15, %v10635_v62  ;;  %v24434_v3 = vpop.permute.xlu0 %986  ;;  %978 = vrot.lane.b32.xlu1 %v29140_v34, %s18668_s21 }
 0x388   :  { %v12843_v9 = vmax.f32 %v12633_v18, %v10637_v27  ;;  %v4598_v51 = vcombine.high %v24264_v25, %v24264_v25  ;;  %v24438_v22 = vmax.f32 %v12642_v44, %v10688_v32  ;;  %v13048_v6 = vmax.f32 %v12850_v48, %v24382_v60 }
 0x389   :  { %v12840_v43 = vmax.f32 %v29148_v13, %v10638_v57  ;;  %v13229_v35 = vmax.f32 %v13047_v46, %v24382_v60  ;;  %v29149_v7 = vmax.f32 %v23849_v2, %v24079_v50  ;;  %v13039_v10 = vmax.f32 %v12841_v24, %v12842_v16  ;;  %1174 = vrot.lane.b32.xlu0 %v29142_v31, %s18669_s26  ;;  %v24452_v29 = vpop.permute.xlu1 %1168 }
 0x38a   :  { %v7610_v25 = vrot.slane %v7588_v26, %v19011_v56  ;;  %v7617_v32 = vrot.slane %v18127_v58, %v19011_v56  ;;  %v13040_v48 = vmax.f32 %v12842_v16, %v12843_v9  ;;  %v13230_v46 = vmax.f32 %v13048_v6, %v24438_v22 }
 0x38b   :  { %v12844_v8 = vmax.f32 %v29149_v7, %v10639_v38  ;;  %v13037_v15 = vmax.f32 %v12839_v63, %v12840_v43  ;;  %v13038_v45 = vmax.f32 %v12840_v43, %v12841_v24  ;;  %v24455_v18 = vpop.permute.xlu0 %1182  ;;  %v24458_v43 = vrot.slane %v14082_v42, %v19011_v56  ;;  %1190 = vrot.lane.b32.xlu1 %v29143_v55, %s18669_s26  ;;  %v29150_v63 = vld [vmem:[#allocation31_spill] sm:$0xff] }
 0x38c   :  { %v13221_v31 = vmax.f32 %v13039_v10, %v12843_v9  ;;  %v14083_v27 = vcombine.low %v13229_v35, %v13230_v46  ;;  %v7603_v57 = vrot.slane %v24334_v5, %v19011_v56  ;;  %v4612_v42 = vrot.slane %v4598_v51, %v19011_v56 }
 0x38d   :  { %v13041_v34 = vmax.f32 %v12843_v9, %v12844_v8  ;;  %v13042_v0 = vmax.f32 %v12844_v8, %v24370_v20  ;;  %v13219_v2 = vmax.f32 %v13037_v15, %v12841_v24  ;;  %v13220_v50 = vmax.f32 %v13038_v45, %v12842_v16  ;;  %1770 = vrot.lane.b32.xlu0 %v29150_v63, %s18672_s10  ;;  %v24472_v16 = vpop.permute.xlu1 %1370  ;;  %v29151_v9 = vld [vmem:[#allocation30_spill] sm:$0xff]  ;;  %v29155_v45 = vld [vmem:[#allocation4_spill] sm:$0xff] }
 0x38e   :  { %v13222_v62 = vmax.f32 %v13040_v48, %v12844_v8  ;;  %v7619_v24 = vcombine.low %v7610_v25, %v7617_v32  ;;  %v24470_v13 = vrot.slane %v14083_v27, %v19011_v56  ;;  %v2320_v5 = vsel %vm2269_vm8, %v24092_v53, %v29151_v9  ;;  %v29154_v8 = vld [vmem:[#allocation9_spill] sm:$0xff]  ;;  %v29156_v32 = vld [vmem:[#allocation6_spill] sm:$0xff]  ;;  %v29157_v48 = vld [vmem:[#allocation12_spill] sm:$0xff] }
 0x38f   :  { %v13223_v44 = vmax.f32 %v13041_v34, %v24370_v20  ;;  %v13224_v26 = vmax.f32 %v13042_v0, %v24373_v12  ;;  %v14033_v58 = vcombine.low %v13219_v2, %v13220_v50  ;;  %v1965_v6 = vpop.permute.xlu0 %1964  ;;  %v29152_v35 = vrot.slane %v24272_v19, 2  ;;  %1972 = vrot.lane.b32.xlu1 %v29156_v32, %s18673_s17  ;;  %v29160_v50 = vld [vmem:[#allocation8_spill] sm:$0xff] }
 0x390   :  { %v14034_v38 = vcombine.low %v13221_v31, %v13222_v62  ;;  %v29153_v7 = vrot.slane %v24137_v14, 2  ;;  %v2311_v15 = vsel %vm2269_vm8, %v24188_v37, %v29154_v8  ;;  %v2312_v10 = vsel %vm2269_vm8, %v24224_v23, %v29155_v45 }
 0x391   :  { %v14035_v20 = vcombine.low %v13223_v44, %v13224_v26  ;;  %v14043_v12 = vrot.slane %v14033_v58, %v19011_v56  ;;  %v14105_v25 = vcombine.low %v24458_v43, %v24470_v13  ;;  %v2319_v46 = vsel %vm2269_vm8, %v24322_v49, %v29157_v48  ;;  %1988 = vrot.lane.b32.xlu0 %v24345_v40, %s18673_s17  ;;  %v1967_v44 = vpop.permute.xlu1 %1966 }
 0x392   :  { %v24483_v51 = vsel %vm525_vm0, %v29153_v7, %v29152_v35  ;;  %v14050_v53 = vrot.slane %v14034_v38, %v19011_v56  ;;  %v29158_v37 = vcombine.low %v24394_v30, %v24400_v11  ;;  %v29159_v23 = vrot.slane %v24303_v61, %v19011_v56  ;;  %v29161_v11 = vld [vmem:[#allocation29_spill] sm:$0xff]  ;;  %v29162_v38 = vld [vmem:[#allocation20_spill] sm:$0xff] }
 0x393   :  { %v14057_v0 = vrot.slane %v14035_v20, %v19011_v56  ;;  %v2385_v31 = vsel %vm2334_vm9, %v2320_v5, %v29160_v50  ;;  %v4614_v62 = vcombine.high %v4612_v42, %v4612_v42  ;;  %v7633_v49 = vrot.slane %v7619_v24, %v19011_v56  ;;  %v29163_v20 = vld [vmem:[#allocation25_spill] sm:$0xff]  ;;  %1990 = vrot.lane.b32.xlu1 %v24483_v51, %s18673_s17 }
 0x394   :  { %v14064_v34 = vrot.slane %v29158_v37, %v19011_v56  ;;  %v7618_v2 = vcombine.low %v29159_v23, %v7603_v57  ;;  %v14065_v27 = vcombine.low %v14043_v12, %v14050_v53  ;;  %v2376_v30 = vsel %vm2334_vm9, %v2311_v15, %v24012_v36  ;;  %v1981_v57 = vpop.permute.xlu0 %1980 }
 0x395   :  { %v2377_v26 = vsel %vm2334_vm9, %v2312_v10, %v29161_v11  ;;  %v2384_v9 = vsel %vm2334_vm9, %v2319_v46, %v29162_v38  ;;  %v2450_v5 = vsel %vm2399_vm10, %v2385_v31, %v29163_v20  ;;  %v2441_v24 = vsel %vm2399_vm10, %v2376_v30, %v24183_v33  ;;  %415 = vrot.lane.b32.xlu0 %v29143_v55, %s18666_s19  ;;  %v24539_v10 = vpop.permute.xlu1 %393 }
 0x396   :  { %v14066_v58 = vcombine.low %v14057_v0, %v14064_v34  ;;  %v7626_v61 = vrot.slane %v7618_v2, %v19011_v56  ;;  %v2442_v12 = vsel %vm2399_vm10, %v2377_v26, %v24219_v17  ;;  %v2449_v36 = vsel %vm2399_vm10, %v2384_v9, %v24231_v21  ;;  %v18385_v21 = vpop.f32.mrb[28].mxu0 }
 0x397   :  { %v14073_v35 = vrot.slane %v14065_v27, %v19011_v56  ;;  %v4628_v15 = vrot.slane %v4612_v42, %v19011_v56  ;;  %v4642_v33 = vrot.slane %v4614_v62, %v19011_v56  ;;  %v2506_v17 = vsel %vm2464_vm11, %v2441_v24, %v24347_v39  ;;  %v9044_v37 = vpop.f32.mrb[29].mxu0  ;;  %417 = vrot.lane.b32.xlu1 %v24332_v59, %s18666_s19 }
 0x398   :  { %v14080_v7 = vrot.slane %v14066_v58, %v19011_v56  ;;  %v7634_v8 = vcombine.low %v7626_v61, %v7633_v49  ;;  %v2507_v45 = vsel %vm2464_vm11, %v2442_v12, %v24362_v52  ;;  %v2514_v48 = vsel %vm2464_vm11, %v2449_v36, %v24384_v1  ;;  %v24546_v46 = vpop.permute.xlu0 %776 }
 0x399   :  { %v2571_v55 = vsel %vm2529_vm12, %v2506_v17, %v1965_v6  ;;  %v2572_v42 = vsel %vm2529_vm12, %v2507_v45, %v1967_v44  ;;  %v2515_v1 = vsel %vm2464_vm11, %v2450_v5, %v24255_v47  ;;  %v2579_v6 = vsel %vm2529_vm12, %v2514_v48, %v1981_v57  ;;  %994 = vrot.lane.b32.xlu0 %v24137_v14, %s18668_s21  ;;  %v24559_v62 = vpop.permute.xlu1 %792 }
 0x39a   :  { %v14081_v53 = vcombine.low %v14073_v35, %v14080_v7  ;;  %18396 = vmatmul.mubr.msk.f32.gmra.mrb[36].mxu0 %vm8713_vm13, %v7634_v8  ;;  %v4647_v39 = vcombine.high %v2571_v55, %v2571_v55  ;;  %v4654_v34 = vrot.slane %v2571_v55, %v19011_v56  ;;  %v4695_v52 = vcombine.high %v2572_v42, %v2572_v42  ;;  %v29164_v55 = vld [vmem:[#allocation35_spill] sm:$0xff] }
 0x39b   :  { %v4702_v0 = vrot.slane %v2572_v42, %v19011_v56  ;;  %v7635_v23 = vcombine.low %v4628_v15, %v4642_v33  ;;  %v18128_v2 = vcombine.high %v4628_v15, %v4642_v33  ;;  %v5035_v44 = vcombine.high %v2579_v6, %v2579_v6  ;;  %1176 = vrot.lane.b32.xlu1 %v29150_v63, %s18669_s26 }
 0x39c   :  { %14779 = vst.msk [vmem:[#allocation2 + $0x60] sm:$0xff] %vm14765_vm14, %v14081_v53  ;;  %v4661_v50 = vrot.slane %v4647_v39, %v19011_v56  ;;  %v4662_v31 = vcombine.high %v4654_v34, %v4654_v34  ;;  %v24562_v27 = vrot.slane %v4695_v52, %v19011_v56  ;;  %v24565_v30 = vpop.permute.xlu0 %794  ;;  %v4670_v26 = vrot.slane %v4654_v34, %v19011_v56  ;;  %v24608_v52 = vld [vmem:[%s28515_s2] ss:$0 sm:$0xff] }
 0x39d   :  { %v4710_v49 = vcombine.high %v4702_v0, %v4702_v0  ;;  %v4718_v47 = vrot.slane %v4702_v0, %v19011_v56  ;;  %v24574_v61 = vsel %vm2529_vm12, %v2515_v1, %v24389_v4  ;;  %v5042_v38 = vrot.slane %v2579_v6, %v19011_v56  ;;  %1378 = vrot.lane.b32.xlu0 %v29156_v32, %s18670_s29  ;;  %v24582_v36 = vpop.permute.xlu1 %1184 }
 0x39e   :  { %v4663_v11 = vcombine.high %v4661_v50, %v4661_v50  ;;  %v4677_v14 = vrot.slane %v4661_v50, %v19011_v56  ;;  %v4684_v58 = vrot.slane %v4662_v31, %v19011_v56  ;;  %v5049_v9 = vrot.slane %v5035_v44, %v19011_v56 }
 0x39f   :  { %v4732_v57 = vrot.slane %v4710_v49, %v19011_v56  ;;  %v7645_v63 = vrot.slane %v7635_v23, %v19011_v56  ;;  %v24587_v4 = vrot.slane %v24562_v27, %v19011_v56  ;;  %v4740_v35 = vcombine.high %v4718_v47, %v4718_v47  ;;  %1394 = vrot.lane.b32.xlu1 %v24345_v40, %s18670_s29 }
 0x3a0   :  { %v4691_v20 = vrot.slane %v4663_v11, %v19011_v56  ;;  %v7637_v5 = vcombine.low %v4670_v26, %v4684_v58  ;;  %v18129_v24 = vcombine.high %v4670_v26, %v4684_v58  ;;  %v4693_v12 = vcombine.high %v4677_v14, %v4677_v14  ;;  %v24589_v8 = vpop.permute.xlu0 %1372 }
 0x3a1   :  { %v4742_v7 = vcombine.high %v4732_v57, %v4732_v57  ;;  %v7652_v45 = vrot.slane %v18128_v2, %v19011_v56  ;;  %v24598_v21 = vrot.slane %v24574_v61, %v19011_v56  ;;  %v5050_v48 = vcombine.high %v5042_v38, %v5042_v38  ;;  %1974 = vrot.lane.b32.xlu0 %v29164_v55, %s18673_s17  ;;  %v24611_v1 = vpop.permute.xlu1 %1386 }
 0x3a2   :  { %v7659_v15 = vrot.slane %v7637_v5, %v19011_v56  ;;  %v7666_v32 = vrot.slane %v18129_v24, %v19011_v56  ;;  %v7684_v33 = vcombine.low %v4677_v14, %v4691_v20  ;;  %v7685_v17 = vcombine.low %v4693_v12, %v4718_v47 }
 0x3a3   :  { %v7687_v53 = vcombine.low %v4742_v7, %v24587_v4  ;;  %v5051_v34 = vcombine.high %v5049_v9, %v5049_v9  ;;  %v9045_v0 = vadd.f32 %v24608_v52, %v9044_v37  ;;  %v7686_v6 = vcombine.low %v4732_v57, %v4740_v35  ;;  %800 = vrot.lane.b32.xlu1 %v24345_v40, %s18667_s20 }
 0x3a4   :  { %v7694_v42 = vrot.slane %v7684_v33, %v19011_v56  ;;  %v7701_v39 = vrot.slane %v7685_v17, %v19011_v56  ;;  %v5058_v23 = vrot.slane %v5042_v38, %v19011_v56  ;;  %v5065_v2 = vrot.slane %v5049_v9, %v19011_v56  ;;  %v24616_v31 = vpop.permute.xlu0 %1566 }
 0x3a5   :  { %v5072_v50 = vrot.slane %v5050_v48, %v19011_v56  ;;  %v7668_v49 = vcombine.low %v7659_v15, %v7666_v32  ;;  %v7715_v47 = vrot.slane %v7687_v53, %v19011_v56  ;;  %v5079_v44 = vrot.slane %v5051_v34, %v19011_v56  ;;  %802 = vrot.lane.b32.xlu0 %v24483_v51, %s18667_s20  ;;  %v24628_v20 = vpop.permute.xlu1 %778 }
 0x3a6   :  { %v7716_v37 = vcombine.low %v7694_v42, %v7701_v39  ;;  %v5081_v11 = vcombine.high %v5065_v2, %v5065_v2  ;;  %v9229_v57 = vmax.f32 %v9045_v0, 0.0  ;;  %v12643_v38 = vmax.f32 %v24197_v28, %v24407_v54 }
 0x3a7   :  { %v8027_v26 = vcombine.low %v5058_v23, %v5072_v50  ;;  %v18135_v14 = vcombine.high %v5058_v23, %v5072_v50  ;;  %v8029_v58 = vcombine.low %v5065_v2, %v5079_v44  ;;  %v13049_v9 = vmax.f32 %v24382_v60, %v24438_v22  ;;  %1192 = vrot.lane.b32.xlu1 %v24332_v59, %s18669_s26  ;;  %v29165_v44 = vld [vmem:[#allocation5_spill] sm:$0xff] }
 0x3a8   :  { %v24632_v40 = vrot.slane %v24598_v21, %v19011_v56  ;;  %v7708_v5 = vrot.slane %v7686_v6, %v19011_v56  ;;  %v7667_v24 = vcombine.low %v7645_v63, %v7652_v45  ;;  %v24635_v12 = vpop.permute.xlu0 %972  ;;  %v10695_v35 = vrot.slane %v9229_v57, %v19011_v56 }
 0x3a9   :  { %v7682_v7 = vrot.slane %v7668_v49, %v19011_v56  ;;  %v7724_v22 = vrot.slane %v7716_v37, %v19011_v56  ;;  %1380 = vrot.lane.b32.xlu0 %v29164_v55, %s18670_s29  ;;  %v8037_v15 = vrot.slane %v8027_v26, %v19011_v56  ;;  %v8044_v32 = vrot.slane %v18135_v14, %v19011_v56  ;;  %v24650_v17 = vpop.permute.xlu1 %988  ;;  %v24659_v55 = vld [vmem:[%s28513_s0 + $0x290] sm:$0xff] }
 0x3aa   :  { %v7675_v60 = vrot.slane %v7667_v24, %v19011_v56  ;;  %v7717_v28 = vcombine.low %v7708_v5, %v7715_v47  ;;  %v8030_v54 = vcombine.low %v5081_v11, %v24632_v40  ;;  %v10702_v63 = vrot.slane %v10695_v35, %v19011_v56  ;;  %v24681_v11 = vld [vmem:[%s28513_s0 + $0x300] sm:$0xff]  ;;  %v24706_v5 = vld [vmem:[%s28513_s0 + $0x308] sm:$0xff] }
 0x3ab   :  { %v8051_v33 = vrot.slane %v8029_v58, %v19011_v56  ;;  %v8059_v39 = vcombine.low %v8037_v15, %v8044_v32  ;;  %1574 = vrot.lane.b32.xlu1 %v24659_v55, %s18671_s30  ;;  %v14112_v26 = vrot.slane %v14105_v25, %v19011_v56  ;;  %v18636_v24 = vld [vmem:[%s28513_s0 + $0x2a0] sm:$0xff]  ;;  %v29170_v15 = vld [vmem:[#allocation36_spill] sm:$0xff]  ;;  %v29171_v32 = vld [vmem:[#allocation13_spill] sm:$0xff] }
 0x3ac   :  { %v7683_v59 = vcombine.low %v7675_v60, %v7682_v7  ;;  %v7731_v45 = vrot.slane %v7717_v28, %v19011_v56  ;;  %v8058_v53 = vrot.slane %v8030_v54, %v19011_v56  ;;  %v24654_v48 = vpop.permute.xlu0 %990  ;;  %v12853_v42 = vmax.f32 %v12643_v38, %v10702_v63  ;;  %v127_v38 = vld [vmem:[%s28513_s0 + $0x2f8] sm:$0x1]  ;;  %v18637_v63 = vld [vmem:[%s28513_s0 + $0x230] sm:$0xff] }
 0x3ad   :  { %1590 = vrot.lane.b32.xlu0 %v24272_v19, %s18671_s30  ;;  %v24666_v23 = vpop.permute.xlu1 %1388  ;;  %v8067_v2 = vrot.slane %v8059_v39, %v19011_v56  ;;  %v674_v13 = vrot.slane %v127_v38, 2  ;;  %v29168_v7 = vrot.slane %v24272_v19, 2  ;;  %v295_v28 = vrot.slane %v24681_v11, 1 }
 0x3ae   :  { %18398 = vmatprep.mubr.msk.f32.mxu0 %vm8713_vm13, %v7683_v59  ;;  %v7732_v34 = vcombine.low %v7724_v22, %v7731_v45  ;;  %v8060_v0 = vcombine.low %v8051_v33, %v8058_v53  ;;  %v13231_v6 = vmax.f32 %v13049_v9, %v12853_v42  ;;  %v24723_v22 = vrot.slane %v24706_v5, 1  ;;  %v29172_v42 = vld [vmem:[#allocation24_spill] sm:$0xff] }
 0x3af   :  { %419 = vrot.lane.b32.xlu1 %v29165_v44, %s18666_s19  ;;  %v24719_v60 = vsel %vm525_vm0, %v29168_v7, %v674_v13  ;;  %v24771_v7 = vld [vmem:[#allocation2 + $0x10] ss:$2 sm:$0x7f] }
 0x3b0   :  { %18399 = vmatmul.mubr.msk.f32.gmra.mrb[38].mxu0 %vm8713_vm13, %v7732_v34  ;;  %v8074_v50 = vrot.slane %v8060_v0, %v19011_v56  ;;  %v24671_v49 = vpop.permute.xlu0 %1568  ;;  %v14104_v47 = vrot.slane %v13231_v6, %v19011_v56  ;;  %v24742_v45 = vsel %vm204_vm1, %v295_v28, %v24723_v22  ;;  %29175 = vst [vmem:[#allocation18_spill] sm:$0xff] %v24771_v7 }
 0x3b1   :  { %996 = vrot.lane.b32.xlu0 %v24272_v19, %s18668_s21  ;;  %v24688_v58 = vpop.permute.xlu1 %1582  ;;  %v2118_v19 = vsel %vm2074_vm5, %v18637_v63, %v29170_v15  ;;  %v4711_v28 = vcombine.high %v24562_v27, %v24562_v27 }
 0x3b2   :  { %v8075_v37 = vcombine.low %v8067_v2, %v8074_v50  ;;  %v14119_v14 = vrot.slane %v14104_v47, %v19011_v56  ;;  %v2183_v33 = vsel %vm2139_vm6, %v2118_v19, %v29171_v32  ;;  %v29173_v2 = vld [vmem:[#allocation14_spill] sm:$0xff]  ;;  %v5083_v19 = vcombine.high %v24574_v61, %v24574_v61 }
 0x3b3   :  { %998 = vrot.lane.b32.xlu1 %v24681_v11, %s18668_s21  ;;  %v2248_v39 = vsel %vm2204_vm7, %v2183_v33, %v29172_v42  ;;  %v18638_v42 = vld [vmem:[%s28513_s0 + $0x240] sm:$0xff] }
 0x3b4   :  { %18410 = vmatprep.mubr.msk.f32.mxu1 %vm8713_vm13, %v8075_v37  ;;  %v1765_v57 = vpop.permute.xlu0 %1764  ;;  %v14120_v9 = vcombine.low %v14112_v26, %v14119_v14  ;;  %v2313_v50 = vsel %vm2269_vm8, %v2248_v39, %v29173_v2  ;;  %v29178_v39 = vld [vmem:[#allocation3_spill] sm:$0xff] }
 0x3b5   :  { %1396 = vrot.lane.b32.xlu0 %v24483_v51, %s18670_s29  ;;  %v24699_v43 = vpop.permute.xlu1 %974  ;;  %v29167_v51 = vld [vmem:[#allocation10_spill] sm:$0xff]  ;;  %v2378_v37 = vsel %vm2334_vm9, %v2313_v50, %v24472_v16 }
 0x3b6   :  { %14780 = vst.msk [vmem:[#allocation2 + $0x68] sm:$0x1f] %vm14767_vm15, %v14120_v9  ;;  %29166 = vst [vmem:[#allocation34_spill] sm:$0xff] %v24699_v43  ;;  %v2443_v14 = vsel %vm2399_vm10, %v2378_v37, %v24616_v31  ;;  %v24764_v9 = vld [vmem:[#allocation2] ss:$2 sm:$0x7f] }
 0x3b7   :  { %1576 = vrot.lane.b32.xlu1 %v18636_v24, %s18671_s30  ;;  %29174 = vst [vmem:[#allocation26_spill] sm:$0xff] %v24764_v9  ;;  %v2508_v13 = vsel %vm2464_vm11, %v2443_v14, %v1765_v57  ;;  %v29176_v57 = vld [vmem:[#allocation23_spill] sm:$0xff]  ;;  %v29181_v37 = vld [vmem:[#allocation21_spill] sm:$0xff] }
 0x3b8   :  { %v24701_v25 = vpop.permute.xlu0 %1170  ;;  %v2127_v14 = vsel %vm2074_vm5, %v18636_v24, %v29181_v37  ;;  %v676_v24 = vrot.slane %v24681_v11, 2 }
 0x3b9   :  { %1772 = vrot.lane.b32.xlu0 %v29167_v51, %s18672_s10  ;;  %v24714_v35 = vpop.permute.xlu1 %1186 }
 0x3bb   :  { %1788 = vrot.lane.b32.xlu1 %v29165_v44, %s18672_s10  ;;  %v18388_v53 = vpop.f32.mrb[30].mxu0 }
 0x3bc   :  { %v24725_v54 = vpop.permute.xlu0 %1188  ;;  %v9059_v0 = vadd.f32 %v24608_v52, %v18388_v53  ;;  %v9053_v6 = vpop.f32.mrb[31].mxu0 }
 0x3bd   :  { %29169 = vst [vmem:[#allocation37_spill] sm:$0xff] %v24725_v54  ;;  %804 = vrot.lane.b32.xlu0 %v24719_v60, %s18667_s20  ;;  %v24738_v59 = vpop.permute.xlu1 %1584  ;;  %v9054_v47 = vadd.f32 %v24608_v52, %v9053_v6  ;;  %v29179_v6 = vld [vmem:[#allocation33_spill] sm:$0xff] }
 0x3be   :  { %v24758_v26 = vmax.f32 %v9059_v0, 0.0  ;;  %v2119_v0 = vsel %vm2074_vm5, %v18638_v42, %v29178_v39  ;;  %v2126_v2 = vsel %vm2074_vm5, %v24659_v55, %v29179_v6  ;;  %v4741_v55 = vcombine.high %v24587_v4, %v24587_v4 }
 0x3bf   :  { %1194 = vrot.lane.b32.xlu1 %v29165_v44, %s18669_s26  ;;  %v24769_v51 = vmax.f32 %v9054_v47, 0.0  ;;  %v5097_v4 = vrot.slane %v5083_v19, %v19011_v56  ;;  %v29187_v19 = vld [vmem:[#allocation22_spill] sm:$0xff] }
 0x3c0   :  { %v24746_v34 = vpop.permute.xlu0 %1766  ;;  %v10752_v44 = vcombine.high %v24758_v26, %v24758_v26 }
 0x3c1   :  { %1196 = vrot.lane.b32.xlu0 %v24742_v45, %s18669_s26  ;;  %v24762_v38 = vpop.permute.xlu1 %1780  ;;  %v24802_v50 = vrot.slane %v24769_v51, %v19011_v56 }
 0x3c2   :  { %v24779_v63 = vrot.slane %v10752_v44, %v19011_v56 }
 0x3c3   :  { %1592 = vrot.lane.b32.xlu1 %v24681_v11, %s18671_s30 }
 0x3c4   :  { %v1969_v16 = vpop.permute.xlu0 %1968  ;;  %v10768_v61 = vcombine.high %v24779_v63, %v24779_v63 }
 0x3c5   :  { %v2573_v31 = vsel %vm2529_vm12, %v2508_v13, %v1969_v16  ;;  %1774 = vrot.lane.b32.xlu0 %v29176_v57, %s18672_s10  ;;  %v24787_v27 = vpop.permute.xlu1 %395  ;;  %v29182_v13 = vld [vmem:[#allocation19_spill] sm:$0xff]  ;;  %v4739_v16 = vrot.slane %v4711_v28, %v19011_v56  ;;  %v29185_v28 = vld [vmem:[#allocation32_spill] sm:$0xff] }
 0x3c6   :  { %v4744_v32 = vcombine.high %v2573_v31, %v2573_v31  ;;  %v4751_v33 = vrot.slane %v2573_v31, %v19011_v56  ;;  %29177 = vst [vmem:[#allocation16_spill] sm:$0xff] %v24787_v27  ;;  %v2184_v44 = vsel %vm2139_vm6, %v2119_v0, %v29182_v13  ;;  %v29183_v31 = vld [vmem:[#allocation15_spill] sm:$0xff]  ;;  %v24818_v39 = vrot.slane %v10768_v61, %v19011_v56 }
 0x3c7   :  { %1976 = vrot.lane.b32.xlu1 %v29183_v31, %s18673_s17  ;;  %v29184_v57 = vld [vmem:[#allocation39_spill] sm:$0xff]  ;;  %v24826_v6 = vsel %vm2139_vm6, %v2127_v14, %v29185_v28  ;;  %v5098_v61 = vcombine.high %v24598_v21, %v24598_v21  ;;  %v24836_v31 = vrot.slane %v24802_v50, %v19011_v56  ;;  %v7733_v28 = vcombine.low %v4739_v16, %v4741_v55  ;;  %v29188_v21 = vld [vmem:[#allocation38_spill] sm:$0xff] }
 0x3c8   :  { %v24804_v47 = vpop.permute.xlu0 %411  ;;  %v2191_v42 = vsel %vm2139_vm6, %v2126_v2, %v29184_v57  ;;  %v4758_v37 = vrot.slane %v4744_v32, %v19011_v56  ;;  %v4759_v13 = vcombine.high %v4751_v33, %v4751_v33  ;;  %v10800_v11 = vcombine.high %v24818_v39, %v24818_v39  ;;  %v29190_v55 = vld [vmem:[#allocation11_spill] sm:$0xff] }
 0x3c9   :  { %29180 = vst [vmem:[#allocation17_spill] sm:$0xff] %v24804_v47  ;;  %1992 = vrot.lane.b32.xlu0 %v24719_v60, %s18673_s17  ;;  %v24830_v2 = vpop.permute.xlu1 %1172  ;;  %v4767_v14 = vrot.slane %v4751_v33, %v19011_v56  ;;  %v2249_v32 = vsel %vm2204_vm7, %v2184_v44, %v29187_v19  ;;  %v4743_v53 = vcombine.high %v4739_v16, %v4739_v16  ;;  %v29189_v33 = vrot.slane %v24706_v5, 2  ;;  %v18639_v16 = vld [vmem:[%s28513_s0 + $0x248] sm:$0xff] }
 0x3ca   :  { %29186 = vst [vmem:[#allocation7_spill] sm:$0xff] %v24830_v2  ;;  %v4781_v15 = vrot.slane %v4759_v13, %v19011_v56  ;;  %v2256_v0 = vsel %vm2204_vm7, %v2191_v42, %v29188_v21  ;;  %v24851_v7 = vmax.f32 %v24836_v31, %v10800_v11  ;;  %v24865_v13 = vsel %vm2074_vm5, %v18639_v16, %v29190_v55 }
 0x3cb   :  { %1000 = vrot.lane.b32.xlu1 %v24706_v5, %s18668_s21  ;;  %v4789_v47 = vcombine.high %v4767_v14, %v4767_v14  ;;  %v24858_v44 = vsel %vm525_vm0, %v676_v24, %v29189_v33  ;;  %v4774_v42 = vrot.slane %v4758_v37, %v19011_v56  ;;  %v7734_v19 = vcombine.low %v4743_v53, %v4767_v14 }
 0x3cc   :  { %v24841_v57 = vpop.permute.xlu0 %1374  ;;  %v4791_v11 = vcombine.high %v4781_v15, %v4781_v15  ;;  %v5113_v27 = vrot.slane %v5097_v4, %v19011_v56  ;;  %v5120_v24 = vrot.slane %v5098_v61, %v19011_v56  ;;  %v2314_v43 = vsel %vm2269_vm8, %v2249_v32, %v24452_v29 }
 0x3cd   :  { %1398 = vrot.lane.b32.xlu0 %v24719_v60, %s18670_s29  ;;  %v24868_v21 = vpop.permute.xlu1 %1390  ;;  %v5099_v60 = vcombine.high %v5097_v4, %v5097_v4  ;;  %v7735_v33 = vcombine.low %v4781_v15, %v4789_v47  ;;  %v7743_v16 = vrot.slane %v7733_v28, %v19011_v56  ;;  %v7750_v54 = vrot.slane %v7734_v19, %v19011_v56 }
 0x3ce   :  { %v7736_v55 = vcombine.low %v4791_v11, %v4774_v42  ;;  %v5128_v53 = vcombine.high %v24632_v40, %v24632_v40  ;;  %v2321_v4 = vsel %vm2269_vm8, %v2256_v0, %v24455_v18  ;;  %v2379_v15 = vsel %vm2334_vm9, %v2314_v43, %v24589_v8  ;;  %v29191_v11 = vld [vmem:[#allocation27_spill] sm:$0xff] }
 0x3cf   :  { %1400 = vrot.lane.b32.xlu1 %v24858_v44, %s18670_s29  ;;  %v4760_v47 = vcombine.high %v4758_v37, %v4758_v37  ;;  %v2444_v29 = vsel %vm2399_vm10, %v2379_v15, %v24671_v49  ;;  %v7757_v61 = vrot.slane %v7735_v33, %v19011_v56  ;;  %v7765_v32 = vcombine.low %v7743_v16, %v7750_v54 }
 0x3d0   :  { %v24872_v2 = vpop.permute.xlu0 %1392  ;;  %v7764_v14 = vrot.slane %v7736_v55, %v19011_v56  ;;  %v24895_v40 = vrot.slane %v5099_v60, %v19011_v56  ;;  %v5129_v18 = vcombine.high %v5113_v27, %v5113_v27  ;;  %v2386_v8 = vsel %vm2334_vm9, %v2321_v4, %v24611_v1 }
 0x3d1   :  { %1790 = vrot.lane.b32.xlu0 %v24742_v45, %s18672_s10  ;;  %v24892_v28 = vpop.permute.xlu1 %1782  ;;  %v2509_v43 = vsel %vm2464_vm11, %v2444_v29, %v24746_v34  ;;  %v5130_v37 = vcombine.high %v5120_v24, %v5120_v24  ;;  %v2451_v49 = vsel %vm2399_vm10, %v2386_v8, %v24688_v58  ;;  %v4788_v60 = vrot.slane %v4760_v47, %v19011_v56 }
 0x3d2   :  { %v7766_v19 = vcombine.low %v7757_v61, %v7764_v14  ;;  %v4790_v33 = vcombine.high %v4774_v42, %v4774_v42  ;;  %v8076_v34 = vcombine.low %v5120_v24, %v5128_v53  ;;  %v2516_v55 = vsel %vm2464_vm11, %v2451_v49, %v24762_v38  ;;  %v18640_v38 = vld [vmem:[%s28513_s0 + $0x2a8] sm:$0xff] }
 0x3d3   :  { %1978 = vrot.lane.b32.xlu1 %v29191_v11, %s18673_s17  ;;  %v7773_v4 = vrot.slane %v7765_v32, %v19011_v56  ;;  %v24915_v29 = vcombine.low %v24895_v40, %v5129_v18  ;;  %v29192_v24 = vld [vmem:[#allocation28_spill] sm:$0xff]  ;;  %v18641_v11 = vld [vmem:[%s28513_s0 + $0x2b8] sm:$0xff] }
 0x3d4   :  { %v1971_v0 = vpop.permute.xlu0 %1970  ;;  %v7780_v15 = vrot.slane %v7766_v19, %v19011_v56  ;;  %v2128_v53 = vsel %vm2074_vm5, %v18640_v38, %v29192_v24  ;;  %v7782_v8 = vcombine.low %v4788_v60, %v4790_v33 }
 0x3d5   :  { %v2574_v54 = vsel %vm2529_vm12, %v2509_v43, %v1971_v0  ;;  %421 = vrot.lane.b32.xlu0 %v24742_v45, %s18666_s19  ;;  %v1985_v58 = vpop.permute.xlu1 %1984  ;;  %v8077_v45 = vcombine.low %v5130_v37, %v5113_v27  ;;  %v24936_v27 = vld [vmem:[%s28513_s0 + $0x318] sm:$0xff]  ;;  %v8086_v37 = vrot.slane %v8076_v34, %v19011_v56 }
 0x3d6   :  { %v4792_v16 = vcombine.high %v2574_v54, %v2574_v54  ;;  %v4799_v1 = vrot.slane %v2574_v54, %v19011_v56  ;;  %v2581_v61 = vsel %vm2529_vm12, %v2516_v55, %v1985_v58  ;;  %v7781_v18 = vcombine.low %v7773_v4, %v7780_v15 }
 0x3d7   :  { %v5139_v32 = vrot.slane %v2581_v61, %v19011_v56  ;;  %1198 = vrot.lane.b32.xlu1 %v24723_v22, %s18669_s26  ;;  %v2129_v54 = vsel %vm2074_vm5, %v18641_v11, %v24428_v41  ;;  %v5132_v19 = vcombine.high %v2581_v61, %v2581_v61  ;;  %v8093_v4 = vrot.slane %v8077_v45, %v19011_v56 }
 0x3d8   :  { %v4806_v42 = vrot.slane %v4792_v16, %v19011_v56  ;;  %v4807_v47 = vcombine.high %v4799_v1, %v4799_v1  ;;  %v24919_v14 = vpop.permute.xlu0 %397  ;;  %v4815_v0 = vrot.slane %v4799_v1, %v19011_v56  ;;  %18401 = vmatprep.mubr.msk.f32.mxu0 %vm8713_vm13, %v7781_v18  ;;  %v130_v16 = vld [vmem:[%s28513_s0 + $0x310] sm:$0x1]  ;;  %v2257_v15 = vsel %vm2204_vm7, %v24826_v6, %v24434_v3  ;;  %v18642_v3 = vld [vmem:[%s28513_s0 + $0x258] sm:$0xff] }
 0x3d9   :  { %1594 = vrot.lane.b32.xlu0 %v24706_v5, %s18671_s30  ;;  %v24945_v60 = vrot.slane %v5139_v32, %v19011_v56  ;;  %v24948_v33 = vpop.permute.xlu1 %780  ;;  %v5147_v61 = vcombine.high %v5139_v32, %v5139_v32  ;;  %v679_v45 = vrot.slane %v130_v16, 2  ;;  %v2121_v6 = vsel %vm2074_vm5, %v18642_v3, %v24539_v10 }
 0x3da   :  { %v4808_v43 = vcombine.high %v4806_v42, %v4806_v42  ;;  %v4829_v49 = vrot.slane %v4807_v47, %v19011_v56  ;;  %29193 = vst [vmem:[#allocation31_spill] sm:$0xff] %v24948_v33  ;;  %v24954_v1 = vrot.slane %v4806_v42, %v19011_v56  ;;  %v5131_v47 = vcombine.high %v24895_v40, %v24895_v40 }
 0x3db   :  { %1596 = vrot.lane.b32.xlu1 %v24936_v27, %s18671_s30  ;;  %v7792_v42 = vrot.slane %v7782_v8, %v19011_v56  ;;  %v2185_v40 = vsel %vm2139_vm6, %v24865_v13, %v24546_v46  ;;  %v2322_v32 = vsel %vm2269_vm8, %v2257_v15, %v24582_v36  ;;  %v5146_v11 = vrot.slane %v5132_v19, %v19011_v56 }
 0x3dc   :  { %v24957_v34 = vrot.slane %v4808_v43, %v19011_v56  ;;  %v7783_v55 = vcombine.low %v4815_v0, %v4829_v49  ;;  %v18130_v41 = vcombine.high %v4815_v0, %v4829_v49  ;;  %v24959_v58 = vpop.permute.xlu0 %796  ;;  %v8079_v18 = vcombine.low %v5131_v47, %v24945_v60  ;;  %v24991_v43 = vld [vmem:[%s28513_s0 + $0x320] sm:$0xff] }
 0x3dd   :  { %29194 = vst [vmem:[#allocation30_spill] sm:$0xff] %v24959_v58  ;;  %1994 = vrot.lane.b32.xlu0 %v24858_v44, %s18673_s17  ;;  %v24986_v8 = vpop.permute.xlu1 %1376  ;;  %v5169_v36 = vrot.slane %v5147_v61, %v19011_v56  ;;  %v8100_v13 = vrot.slane %v24915_v29, %v19011_v56  ;;  %v298_v47 = vrot.slane %v24936_v27, 1  ;;  %v25013_v61 = vrot.slane %v24991_v43, 1 }
 0x3de   :  { %v7785_v38 = vcombine.low %v24954_v1, %v24957_v34  ;;  %v7799_v24 = vrot.slane %v7783_v55, %v19011_v56  ;;  %v7806_v0 = vrot.slane %v18130_v41, %v19011_v56  ;;  %v8107_v16 = vrot.slane %v8079_v18, %v19011_v56 }
 0x3df   :  { %423 = vrot.lane.b32.xlu1 %v24723_v22, %s18666_s19  ;;  %v8108_v55 = vcombine.low %v8086_v37, %v8093_v4  ;;  %v29195_v41 = vrot.slane %v24706_v5, 2  ;;  %v2193_v29 = vsel %vm2139_vm6, %v2128_v53, %v24559_v62  ;;  %v2194_v37 = vsel %vm2139_vm6, %v2129_v54, %v24565_v30  ;;  %v133_v54 = vld [vmem:[%s28513_s0 + $0x328] sm:$0x1] }
 0x3e0   :  { %v7813_v10 = vrot.slane %v7785_v38, %v19011_v56  ;;  %v7814_v49 = vcombine.low %v7792_v42, %v7799_v24  ;;  %v24996_v46 = vpop.permute.xlu0 %1570  ;;  %v2387_v4 = vsel %vm2334_vm9, %v2322_v32, %v24666_v23  ;;  %v5148_v5 = vcombine.high %v5146_v11, %v5146_v11 }
 0x3e1   :  { %806 = vrot.lane.b32.xlu0 %v24858_v44, %s18667_s20  ;;  %v25009_v19 = vsel %vm525_vm0, %v29195_v41, %v679_v45  ;;  %v8109_v44 = vcombine.low %v8100_v13, %v8107_v16  ;;  %v25021_v42 = vpop.permute.xlu1 %1586  ;;  %v681_v3 = vrot.slane %v24936_v27, 2  ;;  %v5162_v62 = vrot.slane %v5146_v11, %v19011_v56 }
 0x3e2   :  { %v7815_v15 = vcombine.low %v7806_v0, %v7813_v10  ;;  %v7822_v24 = vrot.slane %v7814_v49, %v19011_v56  ;;  %v5179_v53 = vcombine.high %v5169_v36, %v5169_v36  ;;  %v8116_v30 = vrot.slane %v8108_v55, %v19011_v56 }
 0x3e3   :  { %1402 = vrot.lane.b32.xlu1 %v25009_v19, %s18670_s29  ;;  %v8123_v23 = vrot.slane %v8109_v44, %v19011_v56  ;;  %v2452_v32 = vsel %vm2399_vm10, %v2387_v4, %v24738_v59  ;;  %v25042_v18 = vsel %vm204_vm1, %v298_v47, %v25013_v61  ;;  %v682_v10 = vrot.slane %v24991_v43, 2 }
 0x3e4   :  { %v25023_v38 = vpop.permute.xlu0 %1588  ;;  %v7829_v45 = vrot.slane %v7815_v15, %v19011_v56  ;;  %v10703_v49 = vcombine.high %v24769_v51, %v24769_v51  ;;  %v2517_v11 = vsel %vm2464_vm11, %v2452_v32, %v24892_v28  ;;  %v5177_v13 = vcombine.high %v24945_v60, %v24945_v60 }
 0x3e5   :  { %1792 = vrot.lane.b32.xlu0 %v24723_v22, %s18672_s10  ;;  %v1987_v59 = vpop.permute.xlu1 %1986  ;;  %v8124_v16 = vcombine.low %v8116_v30, %v8123_v23  ;;  %v10759_v22 = vrot.slane %v24758_v26, %v19011_v56  ;;  %v5176_v55 = vrot.slane %v5148_v5, %v19011_v56  ;;  %v684_v51 = vrot.slane %v133_v54, 2  ;;  %v25068_v26 = vld [vmem:[%s28513_s0 + $0x330] sm:$0xff] }
 0x3e6   :  { %v7830_v0 = vcombine.low %v7822_v24, %v7829_v45  ;;  %v25055_v15 = vsel %vm2529_vm12, %v2517_v11, %v1987_v59  ;;  %v5178_v47 = vcombine.high %v5162_v62, %v5162_v62  ;;  %v8126_v28 = vcombine.low %v5179_v53, %v5162_v62 }
 0x3e7   :  { %v5187_v60 = vrot.slane %v25055_v15, %v19011_v56  ;;  %18411 = vmatmul.mubr.msk.f32.vlgmr.msra.gmra.mrb[0].mxu1 %vm8713_vm13, %v8124_v16  ;;  %1794 = vrot.lane.b32.xlu1 %v25042_v18, %s18672_s10  ;;  %v25073_v44 = vsel %vm2139_vm6, %v2121_v6, %v24628_v20  ;;  %v25077_v5 = vsel %vm2204_vm7, %v2185_v40, %v24635_v12 }
 0x3e8   :  { %18402 = vmatmul.mubr.msk.f32.gmra.mrb[40].mxu0 %vm8713_vm13, %v7830_v0  ;;  %v25058_v41 = vpop.permute.xlu0 %413  ;;  %v25081_v24 = vsel %vm2204_vm7, %v2193_v29, %v24650_v17  ;;  %v25085_v45 = vsel %vm2204_vm7, %v2194_v37, %v24654_v48  ;;  %v10717_v62 = vrot.slane %v10703_v49, %v19011_v56  ;;  %v8125_v53 = vcombine.low %v5169_v36, %v5177_v13  ;;  %v25098_v17 = vld [vmem:[%s28513_s0 + $0x338] sm:$0xff] }
 0x3e9   :  { %29196 = vst [vmem:[#allocation9_spill] sm:$0xff] %v25058_v41  ;;  %808 = vrot.lane.b32.xlu0 %v25009_v19, %s18667_s20  ;;  %v5195_v20 = vcombine.high %v5187_v60, %v5187_v60  ;;  %v25090_v6 = vpop.permute.xlu1 %782  ;;  %v25093_v12 = vsel %vm525_vm0, %v681_v3, %v682_v10  ;;  %v10767_v40 = vcombine.high %v10759_v22, %v10759_v22 }
 0x3ea   :  { %29197 = vst [vmem:[#allocation4_spill] sm:$0xff] %v25090_v6  ;;  %v10718_v48 = vcombine.high %v24802_v50, %v24802_v50  ;;  %v25105_v37 = vsel %vm525_vm0, %v682_v10, %v684_v51  ;;  %v8127_v30 = vcombine.low %v5176_v55, %v5178_v47  ;;  %v8142_v3 = vrot.slane %v8126_v28, %v19011_v56  ;;  %v25120_v50 = vld [vmem:[%s28513_s0 + $0x340] sm:$0x1] }
 0x3eb   :  { %v25110_v23 = vrot.slane %v5187_v60, %v19011_v56  ;;  %v25113_v54 = vrot.slane %v5195_v20, %v19011_v56  ;;  %1002 = vrot.lane.b32.xlu1 %v24936_v27, %s18668_s21  ;;  %v25123_v32 = vrot.slane %v10759_v22, %v19011_v56  ;;  %v25129_v10 = vrot.slane %v25098_v17, 1 }
 0x3ec   :  { %v25102_v29 = vpop.permute.xlu0 %976  ;;  %v25134_v27 = vrot.slane %v24779_v63, %v19011_v56  ;;  %v10719_v11 = vcombine.high %v10717_v62, %v10717_v62  ;;  %v8135_v13 = vrot.slane %v8125_v53, %v19011_v56  ;;  %v25142_v55 = vrot.slane %v10767_v40, %v19011_v56 }
 0x3ed   :  { %29198 = vst [vmem:[#allocation6_spill] sm:$0xff] %v25102_v29  ;;  %1598 = vrot.lane.b32.xlu0 %v24991_v43, %s18671_s30  ;;  %v8128_v59 = vcombine.low %v25110_v23, %v25113_v54  ;;  %v25139_v16 = vpop.permute.xlu1 %992  ;;  %v25145_v51 = vrot.slane %v10717_v62, %v19011_v56  ;;  %v25152_v53 = vrot.slane %v10718_v48, %v19011_v56 }
 0x3ee   :  { %29199 = vst [vmem:[#allocation12_spill] sm:$0xff] %v25139_v16  ;;  %v18391_v22 = vpop.f32.mrb[32].mxu0  ;;  %29200 = vst [vmem:[#allocation8_spill] sm:$0xff] %v25142_v55  ;;  %v8149_v20 = vrot.slane %v8127_v30, %v19011_v56  ;;  %v8157_v40 = vcombine.low %v8135_v13, %v8142_v3  ;;  %v10797_v62 = vcombine.high %v25123_v32, %v25123_v32 }
 0x3ef   :  { %v9069_v47 = vadd.f32 %v24608_v52, %v18391_v22  ;;  %v9063_v28 = vpop.f32.mrb[33].mxu0  ;;  %v8156_v4 = vrot.slane %v8128_v59, %v19011_v56  ;;  %1996 = vrot.lane.b32.xlu1 %v25009_v19, %s18673_s17  ;;  %v10748_v22 = vcombine.high %v24836_v31, %v24836_v31  ;;  %v10798_v48 = vcombine.high %v25134_v27, %v25134_v27 }
 0x3f0   :  { %v25148_v63 = vpop.permute.xlu0 %1572  ;;  %v9064_v60 = vadd.f32 %v24608_v52, %v9063_v28  ;;  %v25168_v30 = vrot.slane %v10719_v11, %v19011_v56  ;;  %v5180_v19 = vcombine.high %v25055_v15, %v25055_v15  ;;  %v10799_v31 = vcombine.high %v25142_v55, %v25142_v55 }
 0x3f1   :  { %v9233_v0 = vmax.f32 %v9069_v47, 0.0  ;;  %1998 = vrot.lane.b32.xlu0 %v25093_v12, %s18673_s17  ;;  %v8158_v3 = vcombine.low %v8149_v20, %v8156_v4  ;;  %v25172_v13 = vpop.permute.xlu1 %1768  ;;  %v10749_v49 = vcombine.high %v25145_v51, %v25145_v51  ;;  %v10750_v11 = vcombine.high %v25152_v53, %v25152_v53 }
 0x3f2   :  { %v9232_v47 = vmax.f32 %v9064_v60, 0.0  ;;  %v8165_v15 = vrot.slane %v8157_v40, %v19011_v56  ;;  %v10751_v9 = vcombine.high %v25168_v30, %v25168_v30  ;;  %v25196_v16 = vrot.slane %v5180_v19, %v19011_v56 }
 0x3f3   :  { %v10850_v59 = vcombine.high %v9233_v0, %v9233_v0  ;;  %v10857_v52 = vrot.slane %v9233_v0, %v19011_v56  ;;  %1004 = vrot.lane.b32.xlu1 %v24991_v43, %s18668_s21  ;;  %v8172_v4 = vrot.slane %v8158_v3, %v19011_v56 }
 0x3f4   :  { %v25177_v28 = vpop.permute.xlu0 %1784  ;;  %v10801_v60 = vcombine.high %v9232_v47, %v9232_v47  ;;  %v10808_v43 = vrot.slane %v9232_v47, %v19011_v56 }
 0x3f5   :  { %v10864_v20 = vrot.slane %v10850_v59, %v19011_v56  ;;  %v10865_v36 = vcombine.high %v10857_v52, %v10857_v52  ;;  %v25189_v0 = vrot.slane %v10857_v52, %v19011_v56  ;;  %1200 = vrot.lane.b32.xlu0 %v25042_v18, %s18669_s26  ;;  %v25199_v40 = vpop.permute.xlu1 %1786  ;;  %v8173_v3 = vcombine.low %v8165_v15, %v8172_v4 }
 0x3f6   :  { %v10815_v58 = vrot.slane %v10801_v60, %v19011_v56  ;;  %v10816_v47 = vcombine.high %v10808_v43, %v10808_v43  ;;  %v10824_v33 = vrot.slane %v10808_v43, %v19011_v56 }
 0x3f7   :  { %29201 = vst [vmem:[#allocation29_spill] sm:$0xff] %v25189_v0  ;;  %v10866_v59 = vcombine.high %v10864_v20, %v10864_v20  ;;  %v25202_v29 = vrot.slane %v10864_v20, %v19011_v56  ;;  %v10887_v52 = vrot.slane %v10865_v36, %v19011_v56  ;;  %v10895_v6 = vcombine.high %v25189_v0, %v25189_v0 }
 0x3f8   :  { %v25207_v41 = vpop.permute.xlu0 %798  ;;  %1796 = vrot.lane.b32.xlu1 %v25013_v61, %s18672_s10  ;;  %18413 = vmatprep.mubr.msk.f32.mxu1 %vm8713_vm13, %v8173_v3  ;;  %v10817_v43 = vcombine.high %v10815_v58, %v10815_v58 }
 0x3f9   :  { %29202 = vst [vmem:[#allocation20_spill] sm:$0xff] %v25207_v41  ;;  %v10894_v15 = vrot.slane %v10866_v59, %v19011_v56  ;;  %v25218_v36 = vcombine.high %v25202_v29, %v25202_v29  ;;  %v10897_v4 = vcombine.high %v10887_v52, %v10887_v52  ;;  %v25220_v20 = vmax.f32 %v10797_v62, %v10887_v52  ;;  %v25230_v0 = vpop.permute.xlu1 %978 }
 0x3fa   :  { %v25223_v19 = vmax.f32 %v10799_v31, %v10895_v6  ;;  %v25228_v41 = vrot.slane %v10815_v58, %v19011_v56  ;;  %29204 = vst [vmem:[#allocation35_spill] sm:$0xff] %v25230_v0  ;;  %1202 = vrot.lane.b32.xlu0 %v25013_v61, %s18669_s26  ;;  %v10838_v31 = vrot.slane %v10816_v47, %v19011_v56  ;;  %v25259_v47 = vld [vmem:[%s28513_s0 + $0x348] sm:$0xff] }
 0x3fb   :  { %29203 = vst [vmem:[#allocation25_spill] sm:$0xff] %v25218_v36  ;;  %v25235_v59 = vmax.f32 %v25134_v27, %v10897_v4  ;;  %v25237_v62 = vmax.f32 %v10798_v48, %v10894_v15  ;;  %v12854_v6 = vmax.f32 %v24851_v7, %v25218_v36  ;;  %v10845_v58 = vrot.slane %v10817_v43, %v19011_v56 }
 0x3fc   :  { %v25242_v3 = vpop.permute.xlu0 %1174  ;;  %v10846_v52 = vcombine.high %v10824_v33, %v10824_v33  ;;  %v10847_v60 = vcombine.high %v25228_v41, %v25228_v41  ;;  %v25247_v0 = vcombine.high %v10894_v15, %v10894_v15  ;;  %1404 = vrot.lane.b32.xlu1 %v25093_v12, %s18670_s29  ;;  %v10848_v27 = vcombine.high %v10838_v31, %v10838_v31 }
 0x3fd   :  { %29205 = vst [vmem:[#allocation5_spill] sm:$0xff] %v25237_v62  ;;  %29206 = vst [vmem:[#allocation10_spill] sm:$0xff] %v25242_v3  ;;  %v12645_v48 = vmax.f32 %v25152_v53, %v10824_v33  ;;  %v25252_v4 = vmax.f32 %v10748_v22, %v10838_v31  ;;  %v10849_v43 = vcombine.high %v10845_v58, %v10845_v58  ;;  %v25267_v62 = vpop.permute.xlu1 %1190  ;;  %v29215_v7 = vrot.slane %v25098_v17, 2 }
 0x3fe   :  { %29207 = vst [vmem:[#allocation36_spill] sm:$0xff] %v25247_v0  ;;  %v25261_v3 = vmax.f32 %v10750_v11, %v10846_v52  ;;  %v25263_v15 = vmax.f32 %v10749_v49, %v10845_v58  ;;  %v25265_v55 = vmax.f32 %v10751_v9, %v10847_v60  ;;  %2000 = vrot.lane.b32.xlu0 %v25105_v37, %s18673_s17  ;;  %v25287_v11 = vld [vmem:[%s28513_s0 + $0x350] sm:$0xff] }
 0x3ff   :  { %v2315_v33 = vsel %vm2269_vm8, %v25077_v5, %v24701_v25  ;;  %v5196_v53 = vcombine.high %v25196_v16, %v25196_v16  ;;  %v25277_v22 = vmax.f32 %v25145_v51, %v10848_v27  ;;  %v25280_v49 = vmax.f32 %v12645_v48, %v25247_v0  ;;  %v29209_v27 = vld [vmem:[#allocation37_spill] sm:$0xff]  ;;  %v29218_v0 = vld [vmem:[#allocation7_spill] sm:$0xff] }
 0x400   :  { %v25282_v9 = vpop.permute.xlu0 %1770  ;;  %v2323_v25 = vsel %vm2269_vm8, %v25081_v24, %v24714_v35  ;;  %v2380_v5 = vsel %vm2334_vm9, %v2315_v33, %v24841_v57  ;;  %v25295_v51 = vmax.f32 %v25123_v32, %v10849_v43  ;;  %1406 = vrot.lane.b32.xlu1 %v25105_v37, %s18670_s29  ;;  %v2324_v48 = vsel %vm2269_vm8, %v25085_v45, %v29209_v27 }
 0x401   :  { %v2388_v31 = vsel %vm2334_vm9, %v2323_v25, %v24868_v21  ;;  %v2445_v58 = vsel %vm2399_vm10, %v2380_v5, %v24996_v46  ;;  %v25305_v52 = vmax.f32 %v12854_v6, %v25280_v49  ;;  %v1973_v32 = vpop.permute.xlu1 %1972  ;;  %v29208_v21 = vrot.slane %v25068_v26, 1 }
 0x402   :  { %v2453_v57 = vsel %vm2399_vm10, %v2388_v31, %v25021_v42  ;;  %v2510_v24 = vsel %vm2464_vm11, %v2445_v58, %v25172_v13  ;;  %1600 = vrot.lane.b32.xlu0 %v25068_v26, %s18671_s30  ;;  %v25325_v42 = vrot.slane %v5196_v53, %v19011_v56  ;;  %v2389_v25 = vsel %vm2334_vm9, %v2324_v48, %v24872_v2 }
 0x403   :  { %v25318_v46 = vsel %vm204_vm1, %v29208_v21, %v25129_v10  ;;  %v2518_v13 = vsel %vm2464_vm11, %v2453_v57, %v25177_v28  ;;  %v2575_v43 = vsel %vm2529_vm12, %v2510_v24, %v1973_v32  ;;  %v2454_v53 = vsel %vm2399_vm10, %v2389_v25, %v25023_v38  ;;  %v29213_v25 = vld [vmem:[#allocation34_spill] sm:$0xff] }
 0x404   :  { %v1989_v33 = vpop.permute.xlu0 %1988  ;;  %v4841_v5 = vcombine.high %v2575_v43, %v2575_v43  ;;  %v4848_v31 = vrot.slane %v2575_v43, %v19011_v56  ;;  %1602 = vrot.lane.b32.xlu1 %v25098_v17, %s18671_s30  ;;  %v25340_v28 = vrot.slane %v25196_v16, %v19011_v56  ;;  %v2519_v2 = vsel %vm2464_vm11, %v2454_v53, %v25199_v40 }
 0x405   :  { %v2583_v45 = vsel %vm2529_vm12, %v2518_v13, %v1989_v33  ;;  %v1991_v21 = vpop.permute.xlu1 %1990  ;;  %v29210_v27 = vrot.slane %v25098_v17, 2  ;;  %v29211_v38 = vrot.slane %v25068_v26, 2 }
 0x406   :  { %v5229_v58 = vcombine.high %v2583_v45, %v2583_v45  ;;  %v5236_v57 = vrot.slane %v2583_v45, %v19011_v56  ;;  %v4855_v24 = vrot.slane %v4841_v5, %v19011_v56  ;;  %v4856_v32 = vcombine.high %v4848_v31, %v4848_v31  ;;  %1798 = vrot.lane.b32.xlu0 %v25318_v46, %s18672_s10 }
 0x407   :  { %v25353_v16 = vsel %vm525_vm0, %v29211_v38, %v29210_v27  ;;  %v8175_v48 = vcombine.low %v25340_v28, %v25325_v42  ;;  %v25359_v43 = vsel %vm2529_vm12, %v2519_v2, %v1991_v21  ;;  %v2251_v5 = vsel %vm2204_vm7, %v25073_v44, %v29213_v25 }
 0x408   :  { %v5243_v13 = vrot.slane %v5229_v58, %v19011_v56  ;;  %v5244_v40 = vcombine.high %v5236_v57, %v5236_v57  ;;  %v25361_v33 = vpop.permute.xlu0 %415  ;;  %v4857_v45 = vcombine.high %v4855_v24, %v4855_v24  ;;  %v4864_v53 = vrot.slane %v4848_v31, %v19011_v56  ;;  %1800 = vrot.lane.b32.xlu1 %v25129_v10, %s18672_s10 }
 0x409   :  { %29212 = vst [vmem:[#allocation13_spill] sm:$0xff] %v25361_v33  ;;  %v4878_v27 = vrot.slane %v4856_v32, %v19011_v56  ;;  %v18136_v58 = vcombine.high %v25110_v23, %v25113_v54  ;;  %v5284_v2 = vrot.slane %v25359_v43, %v19011_v56  ;;  %v29214_v21 = vrot.slane %v25120_v50, 2  ;;  %v25386_v23 = vpop.permute.xlu1 %417 }
 0x40a   :  { %v5245_v38 = vcombine.high %v5243_v13, %v5243_v13  ;;  %v25382_v31 = vrot.slane %v4855_v24, %v19011_v56  ;;  %v4885_v32 = vrot.slane %v4857_v45, %v19011_v56  ;;  %v5266_v35 = vrot.slane %v5244_v40, %v19011_v56  ;;  %29216 = vst [vmem:[#allocation24_spill] sm:$0xff] %v25386_v23 }
 0x40b   :  { %v25379_v44 = vsel %vm525_vm0, %v29215_v7, %v29214_v21  ;;  %v7832_v25 = vcombine.low %v4864_v53, %v4878_v27  ;;  %2002 = vrot.lane.b32.xlu0 %v25353_v16, %s18673_s17  ;;  %v18131_v54 = vcombine.high %v24954_v1, %v24957_v34  ;;  %v8191_v50 = vrot.slane %v8175_v48, %v19011_v56 }
 0x40c   :  { %v5252_v7 = vrot.slane %v5236_v57, %v19011_v56  ;;  %v5259_v24 = vrot.slane %v5243_v13, %v19011_v56  ;;  %v25395_v21 = vpop.permute.xlu0 %994  ;;  %v18132_v45 = vcombine.high %v4864_v53, %v4878_v27  ;;  %v7834_v60 = vcombine.low %v25382_v31, %v4885_v32  ;;  %2004 = vrot.lane.b32.xlu1 %v25379_v44, %s18673_s17 }
 0x40d   :  { %29217 = vst [vmem:[#allocation14_spill] sm:$0xff] %v25395_v21  ;;  %v5273_v40 = vrot.slane %v5245_v38, %v19011_v56  ;;  %v5292_v6 = vcombine.high %v5284_v2, %v5284_v2  ;;  %v2316_v1 = vsel %vm2269_vm8, %v2251_v5, %v29218_v0  ;;  %v8184_v34 = vrot.slane %v18136_v58, %v19011_v56  ;;  %v25415_v33 = vpop.permute.xlu1 %1176  ;;  %v25422_v0 = vld [vmem:[%s28513_s0 + $0x358] sm:$0x1] }
 0x40e   :  { %v29219_v57 = vrot.slane %v25287_v11, 1  ;;  %v29220_v48 = vrot.slane %v25259_v47, 1  ;;  %v7848_v27 = vrot.slane %v7832_v25, %v19011_v56  ;;  %v7862_v38 = vrot.slane %v7834_v60, %v19011_v56  ;;  %29221 = vst [vmem:[#allocation23_spill] sm:$0xff] %v25415_v33 }
 0x40f   :  { %v8177_v32 = vcombine.low %v5252_v7, %v5266_v35  ;;  %v5300_v23 = vrot.slane %v5284_v2, %v19011_v56  ;;  %425 = vrot.lane.b32.xlu0 %v25042_v18, %s18666_s19  ;;  %v7841_v5 = vrot.slane %v18131_v54, %v19011_v56  ;;  %v18137_v58 = vcombine.high %v25340_v28, %v25325_v42 }
 0x410   :  { %v25409_v13 = vsel %vm204_vm1, %v29220_v48, %v29219_v57  ;;  %v8206_v25 = vcombine.low %v8184_v34, %v8191_v50  ;;  %v5275_v60 = vcombine.high %v5259_v24, %v5259_v24  ;;  %v18394_v57 = vpop.f32.mrb[34].mxu0  ;;  %v25427_v48 = vpop.permute.xlu0 %1378  ;;  %v7855_v2 = vrot.slane %v18132_v45, %v19011_v56  ;;  %810 = vrot.lane.b32.xlu1 %v25093_v12, %s18667_s20 }
 0x411   :  { %29222 = vst [vmem:[#allocation3_spill] sm:$0xff] %v25427_v48  ;;  %v8224_v53 = vcombine.low %v5259_v24, %v5273_v40  ;;  %v25431_v18 = vrot.slane %v5292_v6, %v19011_v56  ;;  %v5322_v33 = vcombine.high %v5300_v23, %v5300_v23  ;;  %v9073_v21 = vpop.f32.mrb[35].mxu0  ;;  %v2381_v54 = vsel %vm2334_vm9, %v2316_v1, %v24986_v8  ;;  %v25450_v48 = vpop.permute.xlu1 %1394 }
 0x412   :  { %v18138_v42 = vcombine.high %v5252_v7, %v5266_v35  ;;  %v29223_v28 = vrot.slane %v25287_v11, 2  ;;  %v29224_v50 = vrot.slane %v25259_v47, 2  ;;  %v2446_v6 = vsel %vm2399_vm10, %v2381_v54, %v25148_v63  ;;  %v25460_v35 = vld [vmem:[%s28515_s2] ss:$0 sm:$0xff] }
 0x413   :  { %v7863_v45 = vcombine.low %v7841_v5, %v7848_v27  ;;  %v7864_v40 = vcombine.low %v7855_v2, %v7862_v38  ;;  %v25448_v12 = vrot.slane %v8177_v32, %v19011_v56  ;;  %427 = vrot.lane.b32.xlu0 %v25013_v61, %s18666_s19  ;;  %v25455_v8 = vrot.slane %v18137_v58, %v19011_v56 }
 0x414   :  { %v25442_v34 = vsel %vm525_vm0, %v29224_v50, %v29223_v28  ;;  %29225 = vst [vmem:[#allocation33_spill] sm:$0xff] %v25460_v35  ;;  %v9079_v63 = vadd.f32 %v25460_v35, %v18394_v57  ;;  %v9074_v7 = vadd.f32 %v25460_v35, %v9073_v21  ;;  %v1975_v1 = vpop.permute.xlu0 %1974  ;;  %v25465_v27 = vrot.slane %v8206_v25, %v19011_v56  ;;  %v29260_v35 = vld [vmem:[#allocation8_spill] sm:$0xff] }
 0x415   :  { %v2511_v38 = vsel %vm2464_vm11, %v2446_v6, %v25282_v9  ;;  %v25470_v61 = vrot.slane %v8224_v53, %v19011_v56  ;;  %v8225_v32 = vcombine.low %v5275_v60, %v5300_v23  ;;  %v8226_v5 = vcombine.low %v25431_v18, %v5322_v33  ;;  %1006 = vrot.lane.b32.xlu1 %v25068_v26, %s18668_s21  ;;  %v25483_v2 = vpop.permute.xlu1 %800 }
 0x416   :  { %v25476_v58 = vrot.slane %v18138_v42, %v19011_v56  ;;  %v9235_v25 = vmax.f32 %v9079_v63, 0.0  ;;  %v9234_v57 = vmax.f32 %v9074_v7, 0.0  ;;  %v2576_v53 = vsel %vm2529_vm12, %v2511_v38, %v1975_v1 }
 0x417   :  { %v7871_v33 = vrot.slane %v7863_v45, %v19011_v56  ;;  %v7878_v23 = vrot.slane %v7864_v40, %v19011_v56  ;;  %812 = vrot.lane.b32.xlu0 %v25105_v37, %s18667_s20  ;;  %v8247_v6 = vrot.slane %v8225_v32, %v19011_v56  ;;  %v8254_v45 = vrot.slane %v8226_v5, %v19011_v56 }
 0x418   :  { %v10948_v26 = vcombine.high %v9235_v25, %v9235_v25  ;;  %v10955_v60 = vrot.slane %v9235_v25, %v19011_v56  ;;  %v10899_v54 = vcombine.high %v9234_v57, %v9234_v57  ;;  %v10906_v42 = vrot.slane %v9234_v57, %v19011_v56  ;;  %v25491_v28 = vpop.permute.xlu0 %802 }
 0x419   :  { %v7879_v63 = vcombine.low %v7871_v33, %v7878_v23  ;;  %1204 = vrot.lane.b32.xlu1 %v25318_v46, %s18669_s26  ;;  %v4887_v32 = vcombine.high %v25382_v31, %v25382_v31  ;;  %v4889_v5 = vcombine.high %v2576_v53, %v2576_v53  ;;  %v25510_v57 = vpop.permute.xlu1 %1192 }
 0x41a   :  { %v25500_v37 = vrot.slane %v10948_v26, %v19011_v56  ;;  %v10963_v40 = vcombine.high %v10955_v60, %v10955_v60  ;;  %v25503_v7 = vrot.slane %v10955_v60, %v19011_v56  ;;  %v10913_v1 = vrot.slane %v10899_v54, %v19011_v56 }
 0x41b   :  { %v10914_v38 = vcombine.high %v10906_v42, %v10906_v42  ;;  %v10922_v25 = vrot.slane %v10906_v42, %v19011_v56  ;;  %18404 = vmatprep.mubr.msk.f32.mxu0 %vm8713_vm13, %v7879_v63  ;;  %v4896_v26 = vrot.slane %v2576_v53, %v19011_v56  ;;  %1008 = vrot.lane.b32.xlu0 %v25098_v17, %s18668_s21 }
 0x41c   :  { %29226 = vst [vmem:[#allocation21_spill] sm:$0xff] %v25503_v7  ;;  %v10964_v46 = vcombine.high %v25500_v37, %v25500_v37  ;;  %v25515_v33 = vrot.slane %v10963_v40, %v19011_v56  ;;  %v25519_v23 = vcombine.high %v25503_v7, %v25503_v7  ;;  %v25524_v31 = vpop.permute.xlu0 %1380  ;;  %v25526_v60 = vcombine.low %v8247_v6, %v8254_v45 }
 0x41d   :  { %v10915_v54 = vcombine.high %v10913_v1, %v10913_v1  ;;  %v25529_v42 = vrot.slane %v10913_v1, %v19011_v56  ;;  %v25532_v63 = vrot.slane %v10914_v38, %v19011_v56  ;;  %1408 = vrot.lane.b32.xlu1 %v25353_v16, %s18670_s29  ;;  %v25541_v17 = vmax.f32 %v25220_v20, %v25503_v7  ;;  %v25561_v38 = vpop.permute.xlu1 %1574 }
 0x41e   :  { %29227 = vst [vmem:[#allocation19_spill] sm:$0xff] %v25515_v33  ;;  %29228 = vst [vmem:[#allocation15_spill] sm:$0xff] %v25519_v23  ;;  %v25537_v40 = vrot.slane %v10964_v46, %v19011_v56  ;;  %v25545_v53 = vmax.f32 %v25223_v19, %v25515_v33  ;;  %v25549_v6 = vmax.f32 %v25235_v59, %v25519_v23 }
 0x41f   :  { %29229 = vst [vmem:[#allocation39_spill] sm:$0xff] %v25529_v42  ;;  %29230 = vst [vmem:[#allocation32_spill] sm:$0xff] %v25532_v63  ;;  %v25552_v45 = vrot.slane %v10915_v54, %v19011_v56  ;;  %v25554_v1 = vcombine.high %v10922_v25, %v10922_v25  ;;  %v25558_v16 = vcombine.high %v25529_v42, %v25529_v42  ;;  %1206 = vrot.lane.b32.xlu0 %v25129_v10, %s18669_s26 }
 0x420   :  { %29231 = vst [vmem:[#allocation22_spill] sm:$0xff] %v25537_v40  ;;  %v4903_v20 = vrot.slane %v4889_v5, %v19011_v56  ;;  %v10996_v19 = vcombine.high %v25537_v40, %v25537_v40  ;;  %v13060_v46 = vmax.f32 %v25541_v17, %v25545_v53  ;;  %v4904_v54 = vcombine.high %v4896_v26, %v4896_v26  ;;  %v25571_v24 = vpop.permute.xlu0 %1590 }
 0x421   :  { %29232 = vst [vmem:[#allocation38_spill] sm:$0xff] %v25552_v45  ;;  %29233 = vst [vmem:[#allocation11_spill] sm:$0xff] %v25554_v1  ;;  %v12856_v21 = vmax.f32 %v25252_v4, %v10922_v25  ;;  %v25578_v50 = vmax.f32 %v25261_v3, %v25532_v63  ;;  %v25582_v59 = vmax.f32 %v25277_v22, %v25554_v1  ;;  %1604 = vrot.lane.b32.xlu1 %v25259_v47, %s18671_s30 }
 0x422   :  { %29234 = vst [vmem:[#allocation27_spill] sm:$0xff] %v25558_v16  ;;  %v25587_v10 = vmax.f32 %v13060_v46, %v25549_v6  ;;  %v25589_v9 = vmax.f32 %v10922_v25, %v10996_v19  ;;  %v25593_v5 = vmax.f32 %v25263_v15, %v25529_v42  ;;  %v25597_v3 = vmax.f32 %v25265_v55, %v25552_v45  ;;  %v25607_v19 = vpop.permute.xlu1 %419 }
 0x423   :  { %v25601_v4 = vmax.f32 %v25295_v51, %v25558_v16  ;;  %v13051_v22 = vmax.f32 %v25280_v49, %v12856_v21  ;;  %v13052_v47 = vmax.f32 %v12856_v21, %v25578_v50  ;;  %v13232_v46 = vmax.f32 %v25305_v52, %v12856_v21  ;;  %1410 = vrot.lane.b32.xlu0 %v25379_v44, %s18670_s29 }
 0x424   :  { %29235 = vst [vmem:[#allocation28_spill] sm:$0xff] %v25589_v9  ;;  %v13056_v15 = vmax.f32 %v25593_v5, %v25597_v3  ;;  %v4905_v55 = vcombine.high %v4903_v20, %v4903_v20  ;;  %v4912_v7 = vrot.slane %v4896_v26, %v19011_v56  ;;  %v25615_v51 = vpop.permute.xlu0 %996  ;;  %v4919_v42 = vrot.slane %v4903_v20, %v19011_v56 }
 0x425   :  { %v13233_v25 = vmax.f32 %v13051_v22, %v25578_v50  ;;  %v25621_v16 = vmax.f32 %v13052_v47, %v25582_v59  ;;  %1802 = vrot.lane.b32.xlu1 %v25409_v13, %s18672_s10  ;;  %v4926_v44 = vrot.slane %v4904_v54, %v19011_v56  ;;  %v29236_v20 = vcombine.low %v25455_v8, %v25448_v12 }
 0x426   :  { %v25627_v52 = vmax.f32 %v13056_v15, %v25601_v4  ;;  %v25631_v21 = vrot.slane %v4905_v55, %v19011_v56  ;;  %v4934_v26 = vcombine.high %v4912_v7, %v4912_v7  ;;  %v4935_v22 = vcombine.high %v4919_v42, %v4919_v42  ;;  %v25639_v9 = vpop.permute.xlu1 %998 }
 0x427   :  { %v25633_v49 = vcombine.low %v13232_v46, %v13233_v25  ;;  %v7880_v1 = vcombine.low %v4887_v32, %v4912_v7  ;;  %v8221_v47 = vrot.slane %v29236_v20, %v19011_v56  ;;  %v4936_v13 = vcombine.high %v4926_v44, %v4926_v44  ;;  %1606 = vrot.lane.b32.xlu0 %v25287_v11, %s18671_s30  ;;  %v25651_v32 = vld [vmem:[#allocation2 + $0x20] ss:$2 sm:$0x7f] }
 0x428   :  { %v7881_v15 = vcombine.low %v4926_v44, %v4934_v26  ;;  %v29237_v54 = vcombine.low %v25476_v58, %v25470_v61  ;;  %v8270_v25 = vrot.slane %v25526_v60, %v19011_v56  ;;  %v25649_v7 = vpop.permute.xlu0 %1396  ;;  %v29238_v12 = vcombine.high %v25359_v43, %v25359_v43  ;;  %v25661_v58 = vld [vmem:[#allocation2 + $0x10] ss:$2 sm:$0x7f] }
 0x429   :  { %v7883_v46 = vcombine.low %v25631_v21, %v4935_v22  ;;  %v8222_v61 = vcombine.low %v25465_v27, %v8221_v47  ;;  %2006 = vrot.lane.b32.xlu1 %v25442_v34, %s18673_s17  ;;  %v7882_v44 = vcombine.low %v4936_v13, %v4919_v42  ;;  %v7890_v26 = vrot.slane %v7880_v1, %v19011_v56  ;;  %v18645_v1 = vld [vmem:[%s28513_s0 + $0x260] sm:$0xff]  ;;  %v29241_v13 = vld [vmem:[#allocation16_spill] sm:$0xff] }
 0x42a   :  { %v8263_v55 = vrot.slane %v29237_v54, %v19011_v56  ;;  %v5291_v8 = vrot.slane %v29238_v12, %v19011_v56  ;;  %v7897_v20 = vrot.slane %v7881_v15, %v19011_v56  ;;  %v25668_v22 = vpop.permute.xlu1 %1576  ;;  %v29239_v27 = vrot.slane %v25422_v0, 2  ;;  %v18646_v0 = vld [vmem:[%s28513_s0 + $0x2c0] sm:$0xff] }
 0x42b   :  { %v7911_v43 = vrot.slane %v7883_v46, %v19011_v56  ;;  %18414 = vmatmul.mubr.msk.f32.gmra.mrb[2].mxu1 %vm8713_vm13, %v8222_v61  ;;  %v29240_v34 = vrot.slane %v25287_v11, 2  ;;  %v25676_v12 = vrot.slane %v25651_v32, 1  ;;  %v25679_v42 = vrot.slane %v25651_v32, 2 }
 0x42c   :  { %v8271_v54 = vcombine.low %v8263_v55, %v8270_v25  ;;  %v2122_v15 = vsel %vm2074_vm5, %v18645_v1, %v29241_v13  ;;  %v29242_v55 = vld [vmem:[#allocation17_spill] sm:$0xff]  ;;  %v7904_v46 = vrot.slane %v7882_v44, %v19011_v56  ;;  %v7912_v61 = vcombine.low %v7890_v26, %v7897_v20  ;;  %v29243_v13 = vld [vmem:[#allocation31_spill] sm:$0xff]  ;;  %v29245_v26 = vld [vmem:[#allocation30_spill] sm:$0xff] }
 0x42d   :  { %v1881_v47 = vsel %vm525_vm0, %v29240_v34, %v29239_v27  ;;  %v2130_v25 = vsel %vm2074_vm5, %v18646_v0, %v29242_v55  ;;  %v25693_v27 = vpop.permute.xlu0 %1772  ;;  %v18647_v34 = vld [vmem:[%s28513_s0 + $0x270] sm:$0xff]  ;;  %v2187_v60 = vsel %vm2139_vm6, %v2122_v15, %v29243_v13  ;;  %v5293_v40 = vcombine.high %v5291_v8, %v5291_v8  ;;  %v29248_v13 = vld [vmem:[#allocation6_spill] sm:$0xff] }
 0x42e   :  { %18416 = vmatprep.mubr.msk.f32.mxu1 %vm8713_vm13, %v8271_v54  ;;  %v2123_v1 = vsel %vm2074_vm5, %v18647_v34, %v24919_v14  ;;  %v5307_v0 = vrot.slane %v5291_v8, %v19011_v56  ;;  %v29244_v44 = vrot.slane %v25287_v11, 1  ;;  %v2195_v20 = vsel %vm2139_vm6, %v2130_v25, %v29245_v26  ;;  %v18648_v54 = vld [vmem:[%s28513_s0 + $0x2d0] sm:$0xff]  ;;  %2008 = vrot.lane.b32.xlu1 %v1881_v47, %s18673_s17  ;;  %v29247_v8 = vld [vmem:[#allocation4_spill] sm:$0xff]  ;;  %s18677_s17 = smov 20  }
 0x42f   :  { %v29246_v55 = vld [vmem:[#allocation9_spill] sm:$0xff]  ;;  %v25715_v15 = vrot.slane %v25500_v37, %v19011_v56  ;;  %v7913_v34 = vcombine.low %v7904_v46, %v7911_v43  ;;  %v25720_v11 = vsel %vm2139_vm6, %v2123_v1, %v29247_v8  ;;  %v2252_v25 = vsel %vm2204_vm7, %v2187_v60, %v29248_v13  ;;  %v29251_v43 = vld [vmem:[#allocation12_spill] sm:$0xff]  ;;  %v29253_v13 = vld [vmem:[#allocation26_spill] sm:$0xff] }
 0x430   :  { %1804 = vrot.lane.b32.xlu0 %v29244_v44, %s18672_s10  ;;  %v2131_v14 = vsel %vm2074_vm5, %v18648_v54, %v29246_v55  ;;  %v25724_v44 = vpop.permute.xlu1 %1788  ;;  %v25728_v26 = vcombine.high %v25515_v33, %v25515_v33  ;;  %v25732_v37 = vcombine.high %v25532_v63, %v25532_v63  ;;  %v2260_v47 = vsel %vm2204_vm7, %v2195_v20, %v29251_v43  ;;  %s18676_s10 = smov 10   ;;  %v29258_v33 = vld [vmem:[#allocation18_spill] sm:$0xff] }
 0x431   :  { %v7920_v46 = vrot.slane %v7912_v61, %v19011_v56  ;;  %v7927_v1 = vrot.slane %v7913_v34, %v19011_v56  ;;  %v25738_v54 = vpop.permute.xlu0 %804  ;;  %v25742_v60 = vcombine.high %v25552_v45, %v25552_v45  ;;  %v25745_v55 = vrot.slane %v5293_v40, %v19011_v56  ;;  %v29257_v45 = vld [vmem:[#allocation5_spill] sm:$0xff] }
 0x432   :  { %29249 = vst [vmem:[#allocation37_spill] sm:$0xff] %v25728_v26  ;;  %29250 = vst [vmem:[#allocation34_spill] sm:$0xff] %v25732_v37  ;;  %v5323_v8 = vcombine.high %v5307_v0, %v5307_v0  ;;  %v29254_v63 = vrot.slane %v29253_v13, 1  ;;  %v29255_v61 = vmax.f32 %v24818_v39, %v25202_v29  ;;  %v29256_v34 = vmax.f32 %v25168_v30, %v25228_v41  ;;  %v29261_v39 = vld [vmem:[#allocation29_spill] sm:$0xff] }
 0x433   :  { %29252 = vst [vmem:[#allocation7_spill] sm:$0xff] %v25742_v60  ;;  %v5324_v40 = vcombine.high %v25431_v18, %v25431_v18  ;;  %v12868_v36 = vmax.f32 %v29257_v45, %v25715_v15  ;;  %v7928_v23 = vcombine.low %v7920_v46, %v7927_v1  ;;  %v29262_v29 = vmax.f32 %v29260_v35, %v29261_v39  ;;  %v29264_v1 = vld [vmem:[#allocation20_spill] sm:$0xff] }
 0x434   :  { %14842 = vrot.lane.b32.xlu0 %v29254_v63, %s18676_s10  ;;  %v12867_v20 = vmax.f32 %v29255_v61, %v25728_v26  ;;  %v12859_v43 = vmax.f32 %v29256_v34, %v25732_v37  ;;  %v29259_v63 = vrot.slane %v29258_v33, 1  ;;  %v25769_v26 = vpop.permute.xlu1 %1194  ;;  %v29263_v30 = vmax.f32 %v25545_v53, %v25549_v6 }
 0x435   :  { %v12863_v61 = vmax.f32 %v29262_v29, %v25742_v60  ;;  %v2196_v34 = vsel %vm2139_vm6, %v2131_v14, %v29264_v1  ;;  %18405 = vmatmul.mubr.msk.f32.gmra.mrb[42].mxu0 %vm8713_vm13, %v7928_v23  ;;  %v29265_v29 = vmax.f32 %v25578_v50, %v25582_v59  ;;  %v29267_v60 = vrot.slane %v29253_v13, 2 }
 0x436   :  { %14844 = vrot.lane.b32.xlu1 %v29259_v63, %s18676_s10  ;;  %v13062_v41 = vmax.f32 %v25549_v6, %v12867_v20  ;;  %v13243_v18 = vmax.f32 %v29263_v30, %v12867_v20  ;;  %v13054_v45 = vmax.f32 %v25582_v59, %v12859_v43  ;;  %v13055_v46 = vmax.f32 %v12859_v43, %v25593_v5  ;;  %v25780_v63 = vpop.permute.xlu0 %1196  ;;  %v29266_v20 = vld [vmem:[#allocation10_spill] sm:$0xff] }
 0x437   :  { %v13058_v35 = vmax.f32 %v25601_v4, %v12863_v61  ;;  %v13059_v39 = vmax.f32 %v12863_v61, %v25541_v17  ;;  %v13235_v6 = vmax.f32 %v29265_v29, %v12859_v43  ;;  %v2317_v30 = vsel %vm2269_vm8, %v2252_v25, %v29266_v20 }
 0x438   :  { %14882 = vrot.lane.b32.xlu0 %v29267_v60, %s18677_s17  ;;  %v25792_v14 = vmax.f32 %v13062_v41, %v12868_v36  ;;  %v14171_v23 = vcombine.low %v25587_v10, %v13243_v18  ;;  %v13236_v1 = vmax.f32 %v13054_v45, %v25593_v5  ;;  %v29268_v37 = vrot.slane %v25661_v58, 2  ;;  %v25812_v13 = vpop.permute.xlu1 %1592  ;;  %v29270_v41 = vld [vmem:[#allocation3_spill] sm:$0xff] }
 0x439   :  { %v13237_v50 = vmax.f32 %v13055_v46, %v25597_v3  ;;  %v29269_v59 = vmax.f32 %v25597_v3, %v25601_v4  ;;  %v13240_v43 = vmax.f32 %v13058_v35, %v25541_v17  ;;  %v13241_v60 = vmax.f32 %v13059_v39, %v25545_v53 }
 0x43a   :  { %14884 = vrot.lane.b32.xlu1 %v29268_v37, %s18677_s17  ;;  %v2325_v36 = vsel %vm2269_vm8, %v2260_v47, %v25267_v62  ;;  %v25807_v10 = vcombine.low %v5324_v40, %v5307_v0  ;;  %v25810_v5 = vcombine.low %v25745_v55, %v5323_v8  ;;  %v14122_v37 = vcombine.low %v25621_v16, %v13235_v6  ;;  %v25817_v4 = vpop.permute.xlu0 %1774  ;;  %v29271_v8 = vld [vmem:[#allocation35_spill] sm:$0xff] }
 0x43b   :  { %v13239_v25 = vmax.f32 %v29269_v59, %v12863_v61  ;;  %v2382_v3 = vsel %vm2334_vm9, %v2317_v30, %v29270_v41  ;;  %v14123_v17 = vcombine.low %v13236_v1, %v13237_v50  ;;  %v14170_v61 = vcombine.low %v13240_v43, %v13241_v60  ;;  %v29272_v30 = vld [vmem:[#allocation14_spill] sm:$0xff] }
 0x43c   :  { %v14131_v62 = vrot.slane %v25633_v49, %v19011_v56  ;;  %v2390_v0 = vsel %vm2334_vm9, %v2325_v36, %v25450_v48  ;;  %v2447_v47 = vsel %vm2399_vm10, %v2382_v3, %v25561_v38  ;;  %14914 = vrot.lane.b32.xlu0 %v25661_v58, %s18678_s23  ;;  %v14138_v16 = vrot.slane %v14122_v37, %v19011_v56  ;;  %v1977_v46 = vpop.permute.xlu1 %1976 }
 0x43d   :  { %v14124_v53 = vcombine.low %v25627_v52, %v13239_v25  ;;  %v25832_v52 = vrot.slane %v14171_v23, %v19011_v56  ;;  %v25835_v49 = vrot.slane %v14123_v17, %v19011_v56  ;;  %v25841_v38 = vrot.slane %v14170_v61, %v19011_v56  ;;  %v29274_v25 = vld [vmem:[#allocation23_spill] sm:$0xff] }
 0x43e   :  { %14916 = vrot.lane.b32.xlu1 %v25651_v32, %s18678_s23  ;;  %v2253_v40 = vsel %vm2204_vm7, %v25720_v11, %v29271_v8  ;;  %v2455_v18 = vsel %vm2399_vm10, %v2390_v0, %v25571_v24  ;;  %v2512_v45 = vsel %vm2464_vm11, %v2447_v47, %v25693_v27  ;;  %v25850_v35 = vcombine.low %v14131_v62, %v14138_v16  ;;  %v1993_v6 = vpop.permute.xlu0 %1992 }
 0x43f   :  { %v25838_v48 = vrot.slane %v14124_v53, %v19011_v56  ;;  %v2520_v39 = vsel %vm2464_vm11, %v2455_v18, %v25724_v44  ;;  %v2577_v29 = vsel %vm2529_vm12, %v2512_v45, %v1977_v46  ;;  %v14193_v11 = vcombine.low %v25841_v38, %v25832_v52 }
 0x440   :  { %v2261_v24 = vsel %vm2204_vm7, %v2196_v34, %v29272_v30  ;;  %v4938_v23 = vcombine.high %v2577_v29, %v2577_v29  ;;  %v4945_v27 = vrot.slane %v2577_v29, %v19011_v56  ;;  %v29273_v1 = vrot.slane %v29258_v33, 1 }
 0x441   :  { %v14154_v20 = vcombine.low %v25835_v49, %v25838_v48  ;;  %v2585_v44 = vsel %vm2529_vm12, %v2520_v39, %v1993_v6  ;;  %v8282_v50 = vrot.slane %v25807_v10, %v19011_v56  ;;  %v8289_v59 = vrot.slane %v25810_v5, %v19011_v56  ;;  %v25879_v10 = vpop.permute.xlu1 %1000 }
 0x442   :  { %14946 = vrot.lane.b32.xlu0 %v29273_v1, %s18679_s24  ;;  %v2318_v43 = vsel %vm2269_vm8, %v2253_v40, %v29274_v25  ;;  %14948 = vrot.lane.b32.xlu1 %v25676_v12, %s18679_s24  ;;  %v5333_v34 = vrot.slane %v2585_v44, %v19011_v56  ;;  %v4952_v60 = vrot.slane %v4938_v23, %v19011_v56  ;;  %v25884_v53 = vpop.permute.xlu0 %1398  ;;  %v29275_v49 = vrot.slane %v25661_v58, 2 }
 0x443   :  { %v2383_v33 = vsel %vm2334_vm9, %v2318_v43, %v25524_v31  ;;  %v4953_v36 = vcombine.high %v4945_v27, %v4945_v27  ;;  %v4961_v37 = vrot.slane %v4945_v27, %v19011_v56  ;;  %v4937_v5 = vcombine.high %v25631_v21, %v25631_v21 }
 0x444   :  { %v5326_v41 = vcombine.high %v2585_v44, %v2585_v44  ;;  %v5341_v3 = vcombine.high %v5333_v34, %v5333_v34  ;;  %v5349_v17 = vrot.slane %v5333_v34, %v19011_v56  ;;  %v4954_v61 = vcombine.high %v4952_v60, %v4952_v60  ;;  %v14801_v34 = vld [vmem:[#allocation2 + $0x30] ss:$2 sm:$0x7f] }
 0x445   :  { %v4968_v62 = vrot.slane %v4952_v60, %v19011_v56  ;;  %v4975_v31 = vrot.slane %v4953_v36, %v19011_v56  ;;  %v4983_v0 = vcombine.high %v4961_v37, %v4961_v37  ;;  %v2326_v47 = vsel %vm2269_vm8, %v2261_v24, %v25510_v57  ;;  %v25901_v18 = vpop.permute.xlu1 %1400 }
 0x446   :  { %14846 = vrot.lane.b32.xlu0 %v25676_v12, %s18676_s10  ;;  %v2448_v21 = vsel %vm2399_vm10, %v2383_v33, %v25668_v22  ;;  %v7929_v16 = vcombine.low %v4937_v5, %v4961_v37  ;;  %v25895_v52 = vrot.slane %v5341_v3, %v19011_v56  ;;  %14978 = vrot.lane.b32.xlu1 %v29275_v49, %s18680_s25  ;;  %v1791_v46 = vpop.permute.xlu0 %1790  ;;  %vm15934_vm0 = vcmask 1041408  }
 0x447   :  { %v4982_v48 = vrot.slane %v4954_v61, %v19011_v56  ;;  %v4984_v38 = vcombine.high %v4968_v62, %v4968_v62  ;;  %v4985_v8 = vcombine.high %v4975_v31, %v4975_v31  ;;  %v7930_v40 = vcombine.low %v4975_v31, %v4983_v0  ;;  %vm18517_vm1 = vmpackc.low %vm15934_vm0, %vm18674_vm3 }
 0x448   :  { %v5325_v57 = vcombine.high %v25745_v55, %v25745_v55  ;;  %v5340_v22 = vrot.slane %v5326_v41, %v19011_v56  ;;  %v5371_v45 = vcombine.high %v5349_v17, %v5349_v17  ;;  %v14192_v39 = vrot.slane %v25792_v14, %v19011_v56 }
 0x449   :  { %v7931_v29 = vcombine.low %v4985_v8, %v4968_v62  ;;  %v7932_v58 = vcombine.low %v4982_v48, %v4984_v38  ;;  %v7946_v6 = vrot.slane %v7930_v40, %v19011_v56  ;;  %v8304_v30 = vcombine.low %v8282_v50, %v8289_v59  ;;  %v1979_v25 = vpop.permute.xlu1 %1978 }
 0x44a   :  { %14980 = vrot.lane.b32.xlu0 %v25679_v42, %s18680_s25  ;;  %v2513_v24 = vsel %vm2464_vm11, %v2448_v21, %v25817_v4  ;;  %v8274_v23 = vcombine.low %v5325_v57, %v5349_v17  ;;  %v8275_v55 = vcombine.low %v25895_v52, %v5371_v45  ;;  %14886 = vrot.lane.b32.xlu1 %v25679_v42, %s18677_s17  ;;  %v25923_v33 = vpop.permute.xlu0 %421  ;;  %v14835_v31 = vrot.slane %v14801_v34, 1 }
 0x44b   :  { %v14168_v27 = vrot.slane %v14154_v20, %v19011_v56  ;;  %v7939_v14 = vrot.slane %v7929_v16, %v19011_v56  ;;  %v7953_v1 = vrot.slane %v7931_v29, %v19011_v56  ;;  %v7960_v44 = vrot.slane %v7932_v58, %v19011_v56 }
 0x44c   :  { %v14200_v50 = vrot.slane %v14193_v11, %v19011_v56  ;;  %v5342_v59 = vcombine.high %v5340_v22, %v5340_v22  ;;  %v8296_v4 = vrot.slane %v8274_v23, %v19011_v56  ;;  %v8303_v43 = vrot.slane %v8275_v55, %v19011_v56 }
 0x44d   :  { %v14207_v60 = vrot.slane %v14192_v39, %v19011_v56  ;;  %v7961_v20 = vcombine.low %v7939_v14, %v7946_v6  ;;  %v5356_v36 = vrot.slane %v5340_v22, %v19011_v56  ;;  %v2578_v37 = vsel %vm2529_vm12, %v2513_v24, %v1979_v25  ;;  %v25936_v62 = vpop.permute.xlu1 %1198 }
 0x44e   :  { %15010 = vrot.lane.b32.xlu0 %v25651_v32, %s18681_s27  ;;  %v14161_v11 = vrot.slane %v25850_v35, %v19011_v56  ;;  %v8305_v5 = vcombine.low %v8296_v4, %v8303_v43  ;;  %v4986_v41 = vcombine.high %v2578_v37, %v2578_v37  ;;  %v4993_v3 = vrot.slane %v2578_v37, %v19011_v56  ;;  %v25940_v49 = vpop.permute.xlu0 %1594 }
 0x44f   :  { %15012 = vrot.lane.b32.xlu1 %v14801_v34, %s18681_s27  ;;  %v7962_v17 = vcombine.low %v7953_v1, %v7960_v44  ;;  %v2391_v61 = vsel %vm2334_vm9, %v2326_v47, %v25649_v7  ;;  %v14208_v21 = vcombine.low %v14200_v50, %v14207_v60  ;;  %v5370_v32 = vrot.slane %v5342_v59, %v19011_v56 }
 0x450   :  { %v14169_v0 = vcombine.low %v14161_v11, %v14168_v27  ;;  %v5000_v16 = vrot.slane %v4986_v41, %v19011_v56  ;;  %v5001_v35 = vcombine.high %v4993_v3, %v4993_v3  ;;  %v8312_v48 = vrot.slane %v8304_v30, %v19011_v56 }
 0x451   :  { %v5372_v38 = vcombine.high %v5356_v36, %v5356_v36  ;;  %v7969_v8 = vrot.slane %v7961_v20, %v19011_v56  ;;  %v7976_v7 = vrot.slane %v7962_v17, %v19011_v56  ;;  %v8319_v47 = vrot.slane %v8305_v5, %v19011_v56  ;;  %14782 = vst.msk [vmem:[#allocation2 + $0x78] sm:$0x1f] %vm14767_vm15, %v14208_v21  ;;  %v25957_v58 = vpop.permute.xlu1 %1596  ;;  %v25984_v17 = vld [vmem:[#allocation2 + $0x40] ss:$2 sm:$0x7f] }
 0x452   :  { %14848 = vrot.lane.b32.xlu0 %v14835_v31, %s18676_s10  ;;  %14781 = vst.msk [vmem:[#allocation2 + $0x70] sm:$0xff] %vm14765_vm14, %v14169_v0  ;;  %v2456_v40 = vsel %vm2399_vm10, %v2391_v61, %v25812_v13  ;;  %v5002_v57 = vcombine.high %v5000_v16, %v5000_v16  ;;  %v5009_v22 = vrot.slane %v4993_v3, %v19011_v56  ;;  %v1995_v27 = vpop.permute.xlu0 %1994  ;;  %v25972_v60 = vrot.slane %v14801_v34, 2 }
 0x453   :  { %v5023_v45 = vrot.slane %v5001_v35, %v19011_v56  ;;  %14918 = vrot.lane.b32.xlu1 %v14801_v34, %s18678_s23  ;;  %v5373_v39 = vcombine.high %v25895_v52, %v25895_v52  ;;  %v2521_v29 = vsel %vm2464_vm11, %v2456_v40, %v1791_v46  ;;  %v7977_v6 = vcombine.low %v7969_v8, %v7976_v7  ;;  %v18649_v8 = vld [vmem:[%s28513_s0 + $0x2d8] sm:$0xff]  ;;  %v29276_v7 = vld [vmem:[#allocation13_spill] sm:$0xff] }
 0x454   :  { %v8320_v30 = vcombine.low %v8312_v48, %v8319_v47  ;;  %v5016_v24 = vrot.slane %v5000_v16, %v19011_v56  ;;  %v5030_v13 = vrot.slane %v5002_v57, %v19011_v56  ;;  %v8322_v14 = vcombine.low %v5370_v32, %v5372_v38 }
 0x455   :  { %v7978_v23 = vcombine.low %v5009_v22, %v5023_v45  ;;  %v18133_v55 = vcombine.high %v5009_v22, %v5023_v45  ;;  %18407 = vmatprep.mubr.msk.f32.mxu0 %vm8713_vm13, %v7977_v6  ;;  %v2586_v52 = vsel %vm2529_vm12, %v2521_v29, %v1995_v27  ;;  %v8321_v50 = vcombine.low %v5373_v39, %v5356_v36  ;;  %v25970_v43 = vpop.permute.xlu1 %423  ;;  %v18650_v22 = vld [vmem:[%s28513_s0 + $0x2e8] sm:$0xff] }
 0x456   :  { %15042 = vrot.lane.b32.xlu0 %v25676_v12, %s18682_s28  ;;  %v7980_v46 = vcombine.low %v5016_v24, %v5030_v13  ;;  %v18134_v1 = vcombine.high %v5016_v24, %v5030_v13  ;;  %18417 = vmatmul.mubr.msk.f32.gmra.mrb[4].mxu1 %vm8713_vm13, %v8320_v30  ;;  %v5374_v59 = vcombine.high %v2586_v52, %v2586_v52  ;;  %v25976_v11 = vpop.permute.xlu0 %806  ;;  %v29277_v45 = vld [vmem:[#allocation24_spill] sm:$0xff]  ;;  %vm15125_vm3 = vcmask 244736  }
 0x457   :  { %v7988_v44 = vrot.slane %v7978_v23, %v19011_v56  ;;  %v7995_v25 = vrot.slane %v18133_v55, %v19011_v56  ;;  %15044 = vrot.lane.b32.xlu1 %v14835_v31, %s18682_s28  ;;  %v5381_v4 = vrot.slane %v2586_v52, %v19011_v56  ;;  %v10994_v36 = vcombine.high %v25715_v15, %v25715_v15  ;;  %v29278_v24 = vld [vmem:[#allocation36_spill] sm:$0xff] }
 0x458   :  { %v8002_v12 = vrot.slane %v7980_v46, %v19011_v56  ;;  %v8009_v20 = vrot.slane %v18134_v1, %v19011_v56  ;;  %v5388_v5 = vrot.slane %v5374_v59, %v19011_v56  ;;  %v8338_v3 = vrot.slane %v8322_v14, %v19011_v56 }
 0x459   :  { %v8010_v37 = vcombine.low %v7988_v44, %v7995_v25  ;;  %v5389_v41 = vcombine.high %v5381_v4, %v5381_v4  ;;  %v8331_v61 = vrot.slane %v8321_v50, %v19011_v56  ;;  %v5397_v21 = vrot.slane %v5381_v4, %v19011_v56  ;;  %v25990_v16 = vpop.permute.xlu1 %1402 }
 0x45a   :  { %14888 = vrot.lane.b32.xlu0 %v25972_v60, %s18677_s17  ;;  %v8011_v34 = vcombine.low %v8002_v12, %v8009_v20  ;;  %v5390_v0 = vcombine.high %v5388_v5, %v5388_v5  ;;  %v25992_v35 = vpop.permute.xlu0 %1792  ;;  %v2132_v47 = vsel %vm2074_vm5, %v18649_v8, %v29276_v7  ;;  %v2133_v39 = vsel %vm2074_vm5, %v18650_v22, %v29277_v45 }
 0x45b   :  { %v5411_v32 = vrot.slane %v5389_v41, %v19011_v56  ;;  %14950 = vrot.lane.b32.xlu1 %v14835_v31, %s18679_s24  ;;  %v8018_v48 = vrot.slane %v8010_v37, %v19011_v56  ;;  %v26004_v31 = vrot.slane %v25984_v17, 1  ;;  %v2197_v29 = vsel %vm2139_vm6, %v2132_v47, %v25483_v2  ;;  %v18651_v2 = vld [vmem:[%s28513_s0 + $0x2f0] sm:$0xff] }
 0x45c   :  { %v8025_v38 = vrot.slane %v8011_v34, %v19011_v56  ;;  %v5418_v6 = vrot.slane %v5390_v0, %v19011_v56  ;;  %v26015_v13 = vmax.f32 %v29278_v24, %v10994_v36  ;;  %v8353_v27 = vcombine.low %v8331_v61, %v8338_v3  ;;  %v15594_v3 = vld [vmem:[%s28516_s3 + $0x18] sm:$0xff] }
 0x45d   :  { %v8323_v40 = vcombine.low %v5397_v21, %v5411_v32  ;;  %v18139_v57 = vcombine.high %v5397_v21, %v5411_v32  ;;  %v1795_v55 = vpop.permute.xlu1 %1794  ;;  %v2198_v14 = vsel %vm2139_vm6, %v2133_v39, %v25491_v28  ;;  %v2134_v52 = vsel %vm2074_vm5, %v18651_v2, %v25607_v19  ;;  %v26040_v19 = vld [vmem:[#allocation2 + $0x50] ss:$2 sm:$0x7f]  ;;  %v18652_v21 = vld [vmem:[%s28513_s0 + $0x300] sm:$0xff] }
 0x45e   :  { %15074 = vrot.lane.b32.xlu0 %v25679_v42, %s18683_s12  ;;  %v8026_v30 = vcombine.low %v8018_v48, %v8025_v38  ;;  %v2262_v46 = vsel %vm2204_vm7, %v2197_v29, %v25615_v51  ;;  %v5404_v1 = vrot.slane %v5388_v5, %v19011_v56  ;;  %v809_v44 = vpop.permute.xlu0 %808  ;;  %v2263_v25 = vsel %vm2204_vm7, %v2198_v14, %v25639_v9  ;;  %v15591_v9 = vld [vmem:[%s28516_s3] sm:$0xff]  ;;  %v26075_v38 = vld [vmem:[#allocation2 + $0x70] ss:$2 sm:$0x7f] }
 0x45f   :  { %v8345_v42 = vrot.slane %v8323_v40, %v19011_v56  ;;  %v8352_v23 = vrot.slane %v18139_v57, %v19011_v56  ;;  %15076 = vrot.lane.b32.xlu1 %v25972_v60, %s18683_s12  ;;  %v2199_v28 = vsel %vm2139_vm6, %v2134_v52, %v25738_v54  ;;  %v2327_v50 = vsel %vm2269_vm8, %v2262_v46, %v25769_v26  ;;  %v15592_v54 = vld [vmem:[%s28516_s3 + $0x8] sm:$0xff]  ;;  %v15593_v26 = vld [vmem:[%s28516_s3 + $0x10] sm:$0xff]  ;;  %v15598_v52 = vld [vmem:[%s28516_s3 + $0x38] sm:$0xff] }
 0x460   :  { %18408 = vmatmul.mubr.msk.f32.gmra.mrb[44].mxu0 %vm8713_vm13, %v8026_v30  ;;  %v2328_v51 = vsel %vm2269_vm8, %v2263_v25, %v25780_v63  ;;  %v8370_v4 = vcombine.low %v5404_v1, %v5418_v6  ;;  %v18140_v12 = vcombine.high %v5404_v1, %v5418_v6  ;;  %v26056_v63 = vrot.slane %v25984_v17, 2  ;;  %v15597_v2 = vld [vmem:[%s28516_s3 + $0x30] sm:$0xff] }
 0x461   :  { %v8354_v59 = vcombine.low %v8345_v42, %v8352_v23  ;;  %v1003_v20 = vpop.permute.xlu1 %1002  ;;  %v8361_v37 = vrot.slane %v8353_v27, %v19011_v56  ;;  %v28681_v41 = vmov 0.0|0.0   ;;  %v18501_v36 = vpack.c.bf16 %v15592_v54, %v15591_v9  ;;  %v15596_v42 = vld [vmem:[%s28516_s3 + $0x28] sm:$0xff] }
 0x462   :  { %14850 = vrot.lane.b32.xlu0 %v26004_v31, %s18676_s10  ;;  %18500 = vmatprep.subr.bf16.mxu1 %v28681_v41  ;;  %v2264_v34 = vsel %vm2204_vm7, %v2199_v28, %v25879_v10  ;;  %v2392_v61 = vsel %vm2334_vm9, %v2327_v50, %v25884_v53  ;;  %v2393_v0 = vsel %vm2334_vm9, %v2328_v51, %v25901_v18  ;;  %v1599_v48 = vpop.permute.xlu0 %1598  ;;  %v28683_v53 = vrot.slane %v26040_v19, 1 }
 0x463   :  { %14920 = vrot.lane.b32.xlu1 %v25984_v17, %s18678_s23  ;;  %v8368_v5 = vrot.slane %v8354_v59, %v19011_v56  ;;  %v2135_v32 = vsel %vm2074_vm5, %v18652_v21, %v25923_v33  ;;  %v2329_v8 = vsel %vm2269_vm8, %v2264_v34, %v25936_v62  ;;  %18502 = vmatpush3.bf16.msra.mxu1 %v18501_v36  ;;  %v18653_v62 = vld [vmem:[%s28513_s0 + $0x308] sm:$0xff]  ;;  %v14837_v22 = vrot.slane %v26075_v38, 1 }
 0x464   :  { %v18504_v18 = vpack.c.bf16 %v15594_v3, %v15593_v26  ;;  %v2457_v7 = vsel %vm2399_vm10, %v2392_v61, %v25940_v49  ;;  %v2458_v33 = vsel %vm2399_vm10, %v2393_v0, %v25957_v58  ;;  %v26087_v47 = vrot.slane %v8370_v4, %v19011_v56  ;;  %18503 = vmatprep.subr.bf16.mxu1 %v28681_v41 }
 0x465   :  { %v8369_v10 = vcombine.low %v8361_v37, %v8368_v5  ;;  %v26090_v40 = vrot.slane %v18140_v12, %v19011_v56  ;;  %v2200_v49 = vsel %vm2139_vm6, %v2135_v32, %v25976_v11  ;;  %v2522_v58 = vsel %vm2464_vm11, %v2457_v7, %v25992_v35  ;;  %v1997_v57 = vpop.permute.xlu1 %1996 }
 0x466   :  { %14982 = vrot.lane.b32.xlu0 %v25972_v60, %s18680_s25  ;;  %v2136_v60 = vsel %vm2074_vm5, %v18653_v62, %v25970_v43  ;;  %v2394_v45 = vsel %vm2334_vm9, %v2329_v8, %v25990_v16  ;;  %v2523_v39 = vsel %vm2464_vm11, %v2458_v33, %v1795_v55  ;;  %v2587_v11 = vsel %vm2529_vm12, %v2522_v58, %v1997_v57  ;;  %v1999_v29 = vpop.permute.xlu0 %1998  ;;  %v15595_v16 = vld [vmem:[%s28516_s3 + $0x20] sm:$0xff] }
 0x467   :  { %14890 = vrot.lane.b32.xlu1 %v26056_v63, %s18677_s17  ;;  %18419 = vmatprep.mubr.msk.f32.mxu1 %vm8713_vm13, %v8369_v10  ;;  %v26110_v43 = vsel %vm2139_vm6, %v2136_v60, %v809_v44  ;;  %v5423_v35 = vcombine.high %v2587_v11, %v2587_v11  ;;  %v5430_v6 = vrot.slane %v2587_v11, %v19011_v56  ;;  %v14877_v24 = vrot.slane %v26075_v38, 2 }
 0x468   :  { %v2588_v30 = vsel %vm2529_vm12, %v2523_v39, %v1999_v29  ;;  %18505 = vmatpush3.bf16.msra.mxu1 %v18504_v18  ;;  %v8402_v27 = vcombine.low %v26087_v47, %v26090_v40  ;;  %v18507_v14 = vpack.c.bf16 %v15596_v42, %v15595_v16  ;;  %v2265_v46 = vsel %vm2204_vm7, %v2200_v49, %v1003_v20 }
 0x469   :  { %v5471_v23 = vcombine.high %v2588_v30, %v2588_v30  ;;  %v5478_v55 = vrot.slane %v2588_v30, %v19011_v56  ;;  %18506 = vmatprep.subr.bf16.mxu1 %v28681_v41  ;;  %v26136_v1 = vsel %vm2399_vm10, %v2394_v45, %v1599_v48  ;;  %v5437_v44 = vrot.slane %v5423_v35, %v19011_v56  ;;  %v1005_v28 = vpop.permute.xlu1 %1004  ;;  %v29279_v48 = vld [vmem:[#allocation33_spill] sm:$0xff] }
 0x46a   :  { %14952 = vrot.lane.b32.xlu0 %v26004_v31, %s18679_s24  ;;  %v5438_v25 = vcombine.high %v5430_v6, %v5430_v6  ;;  %v5446_v50 = vrot.slane %v5430_v6, %v19011_v56  ;;  %v1201_v12 = vpop.permute.xlu0 %1200  ;;  %v18510_v20 = vpack.c.bf16 %v15598_v52, %v15597_v2  ;;  %v26169_v45 = vrot.slane %v8402_v27, %v19011_v56 }
 0x46b   :  { %15014 = vrot.lane.b32.xlu1 %v25984_v17, %s18681_s27  ;;  %v5485_v59 = vrot.slane %v5471_v23, %v19011_v56  ;;  %v5486_v51 = vcombine.high %v5478_v55, %v5478_v55  ;;  %v5494_v4 = vrot.slane %v5478_v55, %v19011_v56  ;;  %v5439_v9 = vcombine.high %v5437_v44, %v5437_v44 }
 0x46c   :  { %v5453_v54 = vrot.slane %v5437_v44, %v19011_v56  ;;  %v5460_v26 = vrot.slane %v5438_v25, %v19011_v56  ;;  %18508 = vmatpush3.bf16.msra.mxu1 %v18507_v14  ;;  %v2266_v29 = vsel %vm2204_vm7, %v26110_v43, %v1005_v28  ;;  %v26176_v35 = vsel %vm2269_vm8, %v2265_v46, %v1201_v12 }
 0x46d   :  { %v5487_v37 = vcombine.high %v5485_v59, %v5485_v59  ;;  %v5501_v17 = vrot.slane %v5485_v59, %v19011_v56  ;;  %v5508_v5 = vrot.slane %v5486_v51, %v19011_v56  ;;  %v5516_v36 = vcombine.high %v5494_v4, %v5494_v4  ;;  %v18397_v3 = vpop.f32.mrb[36].mxu0  ;;  %v1797_v32 = vpop.permute.xlu1 %1796  ;;  %18509 = vmatprep.subr.bf16.mxu1 %v28681_v41 }
 0x46e   :  { %14852 = vrot.lane.b32.xlu0 %v14837_v22, %s18676_s10  ;;  %v5467_v34 = vrot.slane %v5439_v9, %v19011_v56  ;;  %v8372_v61 = vcombine.low %v5446_v50, %v5460_v26  ;;  %v18141_v0 = vcombine.high %v5446_v50, %v5460_v26  ;;  %v5469_v21 = vcombine.high %v5453_v54, %v5453_v54  ;;  %v9083_v10 = vpop.f32.mrb[37].mxu0  ;;  %v1203_v49 = vpop.permute.xlu0 %1202 }
 0x46f   :  { %14922 = vrot.lane.b32.xlu1 %v26040_v19, %s18678_s23  ;;  %v9089_v8 = vadd.f32 %v29279_v48, %v18397_v3  ;;  %v26154_v18 = vrot.slane %v5487_v37, %v19011_v56  ;;  %v5517_v7 = vcombine.high %v5501_v17, %v5501_v17  ;;  %v5518_v33 = vcombine.high %v5508_v5, %v5508_v5  ;;  %v29283_v3 = vld [vmem:[#allocation19_spill] sm:$0xff] }
 0x470   :  { %v9084_v47 = vadd.f32 %v29279_v48, %v9083_v10  ;;  %v26159_v40 = vrot.slane %v8372_v61, %v19011_v56  ;;  %v26162_v62 = vrot.slane %v18141_v0, %v19011_v56  ;;  %v8419_v60 = vcombine.low %v5453_v54, %v5467_v34  ;;  %18511 = vmatpush3.bf16.msra.mxu1 %v18510_v20  ;;  %v29284_v48 = vld [vmem:[#allocation15_spill] sm:$0xff]  ;;  %v29285_v10 = vld [vmem:[#allocation25_spill] sm:$0xff] }
 0x471   :  { %v9237_v58 = vmax.f32 %v9089_v8, 0.0  ;;  %v8420_v57 = vcombine.low %v5469_v21, %v5494_v4  ;;  %v26166_v22 = vcombine.low %v5508_v5, %v5516_v36  ;;  %v26171_v11 = vcombine.low %v5518_v33, %v5501_v17  ;;  %v26180_v6 = vpop.permute.xlu1 %1404  ;;  %18512 = vmatprep.subr.bf16.mxu1 %v28681_v41 }
 0x472   :  { %14984 = vrot.lane.b32.xlu0 %v26056_v63, %s18680_s25  ;;  %v9236_v39 = vmax.f32 %v9084_v47, 0.0  ;;  %v8403_v42 = vcombine.low %v26159_v40, %v26162_v62  ;;  %v8429_v23 = vrot.slane %v8419_v60, %v19011_v56  ;;  %v26190_v14 = vcombine.low %v26154_v18, %v5517_v7  ;;  %v29286_v7 = vld [vmem:[#allocation22_spill] sm:$0xff] }
 0x473   :  { %15046 = vrot.lane.b32.xlu1 %v26004_v31, %s18682_s28  ;;  %v11046_v30 = vcombine.high %v9237_v58, %v9237_v58  ;;  %v11053_v16 = vrot.slane %v9237_v58, %v19011_v56  ;;  %v8436_v27 = vrot.slane %v8420_v57, %v19011_v56  ;;  %v2001_v31 = vpop.permute.xlu0 %2000  ;;  %v8443_v44 = vrot.slane %v26166_v22, %v19011_v56  ;;  %v29288_v58 = vld [vmem:[#allocation28_spill] sm:$0xff] }
 0x474   :  { %v10997_v55 = vcombine.high %v9236_v39, %v9236_v39  ;;  %v11004_v43 = vrot.slane %v9236_v39, %v19011_v56  ;;  %v8450_v59 = vrot.slane %v26171_v11, %v19011_v56  ;;  %v2524_v12 = vsel %vm2464_vm11, %v26136_v1, %v1797_v32 }
 0x475   :  { %v11060_v2 = vrot.slane %v11046_v30, %v19011_v56  ;;  %v11061_v52 = vcombine.high %v11053_v16, %v11053_v16  ;;  %v26197_v46 = vrot.slane %v11053_v16, %v19011_v56  ;;  %v1407_v38 = vpop.permute.xlu1 %1406  ;;  %v26222_v20 = vcombine.low %v8429_v23, %v8436_v27  ;;  %v29290_v23 = vld [vmem:[#allocation32_spill] sm:$0xff] }
 0x476   :  { %14892 = vrot.lane.b32.xlu0 %v14877_v24, %s18677_s17  ;;  %v11011_v25 = vrot.slane %v10997_v55, %v19011_v56  ;;  %v11012_v28 = vcombine.high %v11004_v43, %v11004_v43  ;;  %v11020_v50 = vrot.slane %v11004_v43, %v19011_v56  ;;  %v2331_v21 = vsel %vm2269_vm8, %v2266_v29, %v1203_v49  ;;  %v29289_v29 = vld [vmem:[#allocation37_spill] sm:$0xff]  ;;  %v29291_v43 = vld [vmem:[#allocation11_spill] sm:$0xff] }
 0x477   :  { %14954 = vrot.lane.b32.xlu1 %v28683_v53, %s18679_s24  ;;  %v11062_v24 = vcombine.high %v11060_v2, %v11060_v2  ;;  %v26209_v51 = vrot.slane %v11060_v2, %v19011_v56  ;;  %v26212_v4 = vrot.slane %v11061_v52, %v19011_v56  ;;  %v1601_v37 = vpop.permute.xlu0 %1600  ;;  %v11091_v5 = vcombine.high %v26197_v46, %v26197_v46  ;;  %v29292_v2 = vld [vmem:[#allocation34_spill] sm:$0xff] }
 0x478   :  { %v11013_v9 = vcombine.high %v11011_v25, %v11011_v25  ;;  %v26217_v54 = vrot.slane %v11011_v25, %v19011_v56  ;;  %v26220_v26 = vrot.slane %v11012_v28, %v19011_v56  ;;  %v11042_v0 = vcombine.high %v11020_v50, %v11020_v50  ;;  %v29293_v25 = vld [vmem:[#allocation39_spill] sm:$0xff] }
 0x479   :  { %29280 = vst [vmem:[#allocation16_spill] sm:$0xff] %v26209_v51  ;;  %v26227_v17 = vrot.slane %v11062_v24, %v19011_v56  ;;  %v26233_v1 = vcombine.high %v26209_v51, %v26209_v51  ;;  %v11093_v36 = vcombine.high %v26212_v4, %v26212_v4  ;;  %v26245_v32 = vpop.permute.xlu1 %1602  ;;  %v12671_v8 = vmax.f32 %v29284_v48, %v26212_v4  ;;  %v29294_v24 = vld [vmem:[#allocation38_spill] sm:$0xff] }
 0x47a   :  { %15016 = vrot.lane.b32.xlu0 %v26040_v19, %s18681_s27  ;;  %v26240_v61 = vrot.slane %v11013_v9, %v19011_v56  ;;  %v29287_v33 = vmax.f32 %v29285_v10, %v29286_v7  ;;  %v11044_v49 = vcombine.high %v26220_v26, %v26220_v26  ;;  %v12662_v55 = vmax.f32 %v29290_v23, %v11020_v50 }
 0x47b   :  { %29281 = vst [vmem:[#allocation17_spill] sm:$0xff] %v26227_v17  ;;  %29282 = vst [vmem:[#allocation31_spill] sm:$0xff] %v26233_v1  ;;  %15078 = vrot.lane.b32.xlu1 %v26056_v63, %s18683_s12  ;;  %v12870_v60 = vmax.f32 %v26015_v13, %v26227_v17  ;;  %v26257_v57 = vmax.f32 %v29288_v58, %v26233_v1  ;;  %v11043_v63 = vcombine.high %v26217_v54, %v26217_v54  ;;  %v1799_v11 = vpop.permute.xlu0 %1798  ;;  %vm17224_vm0 = vcmask 785408  }
 0x47c   :  { %v12869_v47 = vmax.f32 %v29287_v33, %v26209_v51  ;;  %v11045_v22 = vcombine.high %v26240_v61, %v26240_v61  ;;  %v26267_v39 = vcombine.high %v26227_v17, %v26227_v17  ;;  %v26270_v13 = vmax.f32 %v29289_v29, %v11091_v5  ;;  %v29296_v33 = vld [vmem:[#allocation7_spill] sm:$0xff] }
 0x47d   :  { %v26273_v30 = vmax.f32 %v25715_v15, %v11093_v36  ;;  %v12663_v27 = vmax.f32 %v29291_v43, %v26220_v26  ;;  %v26279_v52 = vmax.f32 %v29292_v2, %v11042_v0  ;;  %v26282_v28 = vmax.f32 %v29293_v25, %v11044_v49  ;;  %v1801_v5 = vpop.permute.xlu1 %1800  ;;  %v29295_v15 = vld [vmem:[#allocation27_spill] sm:$0xff] }
 0x47e   :  { %v13063_v16 = vmax.f32 %v12869_v47, %v12870_v60  ;;  %v12667_v36 = vmax.f32 %v29295_v15, %v26240_v61  ;;  %v26290_v50 = vmax.f32 %v12662_v55, %v26267_v39  ;;  %v13064_v7 = vmax.f32 %v12870_v60, %v26257_v57  ;;  %v29297_v47 = vld [vmem:[#allocation21_spill] sm:$0xff] }
 0x47f   :  { %v26294_v0 = vmax.f32 %v29296_v33, %v11043_v63  ;;  %v26297_v58 = vmax.f32 %v29297_v47, %v11045_v22  ;;  %v2395_v49 = vsel %vm2334_vm9, %v26176_v35, %v26180_v6  ;;  %v2589_v29 = vsel %vm2529_vm12, %v2524_v12, %v2001_v31 }
 0x480   :  { %v13245_v10 = vmax.f32 %v13063_v16, %v26257_v57  ;;  %v2003_v16 = vpop.permute.xlu0 %2002  ;;  %v13246_v55 = vmax.f32 %v13064_v7, %v26290_v50  ;;  %v5520_v2 = vcombine.high %v2589_v29, %v2589_v29  ;;  %v5527_v60 = vrot.slane %v2589_v29, %v19011_v56 }
 0x481   :  { %v5519_v63 = vcombine.high %v26154_v18, %v26154_v18  ;;  %v8478_v22 = vrot.slane %v26190_v14, %v19011_v56  ;;  %v8417_v35 = vrot.slane %v8403_v42, %v19011_v56  ;;  %v8452_v6 = vcombine.low %v8443_v44, %v8450_v59  ;;  %v26315_v31 = vpop.permute.xlu1 %2004 }
 0x482   :  { %v14209_v12 = vcombine.low %v13245_v10, %v13246_v55  ;;  %v5534_v25 = vrot.slane %v5520_v2, %v19011_v56  ;;  %v5535_v7 = vcombine.high %v5527_v60, %v5527_v60  ;;  %v5543_v33 = vrot.slane %v5527_v60, %v19011_v56 }
 0x483   :  { %v2396_v47 = vsel %vm2334_vm9, %v2331_v21, %v1407_v38  ;;  %v8418_v18 = vcombine.low %v26169_v45, %v8417_v35  ;;  %v8459_v14 = vrot.slane %v26222_v20, %v19011_v56  ;;  %v8466_v29 = vrot.slane %v8452_v6, %v19011_v56  ;;  %v18400_v38 = vpop.f32.mrb[38].mxu0  ;;  %v26337_v6 = vld [vmem:[%s28515_s2] ss:$0 sm:$0xff] }
 0x484   :  { %v26324_v40 = vpop.permute.xlu0 %425  ;;  %v5536_v62 = vcombine.high %v5534_v25, %v5534_v25  ;;  %v5550_v42 = vrot.slane %v5534_v25, %v19011_v56  ;;  %v5557_v44 = vrot.slane %v5535_v7, %v19011_v56  ;;  %v2460_v59 = vsel %vm2399_vm10, %v2395_v49, %v1601_v37  ;;  %v9093_v49 = vpop.f32.mrb[39].mxu0 }
 0x485   :  { %v5565_v10 = vcombine.high %v5543_v33, %v5543_v33  ;;  %v8469_v55 = vcombine.low %v5519_v63, %v5543_v33  ;;  %18420 = vmatmul.mubr.msk.f32.gmra.mrb[6].mxu1 %vm8713_vm13, %v8418_v18  ;;  %v8467_v45 = vcombine.low %v8459_v14, %v8466_v29  ;;  %v2525_v21 = vsel %vm2464_vm11, %v2460_v59, %v1799_v11  ;;  %v26331_v20 = vpop.permute.xlu1 %810 }
 0x486   :  { %v5564_v2 = vrot.slane %v5536_v62, %v19011_v56  ;;  %v5566_v60 = vcombine.high %v5550_v42, %v5550_v42  ;;  %v5567_v35 = vcombine.high %v5557_v44, %v5557_v44  ;;  %v9099_v37 = vadd.f32 %v26337_v6, %v18400_v38 }
 0x487   :  { %v26340_v63 = vcombine.low %v5557_v44, %v5565_v10  ;;  %v8485_v25 = vrot.slane %v8469_v55, %v19011_v56  ;;  %18422 = vmatprep.mubr.msk.f32.mxu1 %vm8713_vm13, %v8467_v45  ;;  %v9094_v11 = vadd.f32 %v26337_v6, %v9093_v49  ;;  %v2590_v7 = vsel %vm2529_vm12, %v2525_v21, %v2003_v16 }
 0x488   :  { %v26346_v33 = vpop.permute.xlu0 %427  ;;  %v26348_v18 = vcombine.low %v5567_v35, %v5550_v42  ;;  %v2461_v14 = vsel %vm2399_vm10, %v2396_v47, %v26245_v32  ;;  %v9239_v29 = vmax.f32 %v9099_v37, 0.0  ;;  %v5568_v62 = vcombine.high %v2590_v7, %v2590_v7 }
 0x489   :  { %v26353_v44 = vrot.slane %v14209_v12, %v19011_v56  ;;  %v26356_v59 = vsel %vm2464_vm11, %v2461_v14, %v1801_v5  ;;  %v9238_v10 = vmax.f32 %v9094_v11, 0.0  ;;  %v26359_v55 = vrot.slane %v2590_v7, %v19011_v56  ;;  %v26361_v16 = vpop.permute.xlu1 %1006 }
 0x48a   :  { %v26365_v38 = vcombine.low %v5564_v2, %v5566_v60  ;;  %v11144_v32 = vcombine.high %v9239_v29, %v9239_v29  ;;  %v11151_v47 = vrot.slane %v9239_v29, %v19011_v56  ;;  %v26370_v45 = vcombine.low %v8478_v22, %v8485_v25 }
 0x48b   :  { %v11095_v5 = vcombine.high %v9238_v10, %v9238_v10  ;;  %v11102_v21 = vrot.slane %v9238_v10, %v19011_v56  ;;  %v26380_v2 = vrot.slane %v5568_v62, %v19011_v56  ;;  %v26406_v41 = vrot.slane %v26359_v55, %v19011_v56 }
 0x48c   :  { %v26373_v35 = vpop.permute.xlu0 %812  ;;  %v11158_v37 = vrot.slane %v11144_v32, %v19011_v56  ;;  %v11159_v49 = vcombine.high %v11151_v47, %v11151_v47  ;;  %v26377_v11 = vrot.slane %v11151_v47, %v19011_v56  ;;  %v29311_v26 = vmax.f32 %v29294_v24, %v26217_v54 }
 0x48d   :  { %v11109_v60 = vrot.slane %v11095_v5, %v19011_v56  ;;  %v11110_v7 = vcombine.high %v11102_v21, %v11102_v21  ;;  %v11118_v22 = vrot.slane %v11102_v21, %v19011_v56  ;;  %v26386_v14 = vpop.permute.xlu1 %1204  ;;  %v29312_v61 = vmax.f32 %v29283_v3, %v26197_v46 }
 0x48e   :  { %29298 = vst [vmem:[#allocation30_spill] sm:$0xff] %v26377_v11  ;;  %v11160_v29 = vcombine.high %v11158_v37, %v11158_v37  ;;  %v26389_v10 = vrot.slane %v11158_v37, %v19011_v56  ;;  %v26392_v32 = vrot.slane %v11159_v49, %v19011_v56  ;;  %v26396_v62 = vcombine.high %v26377_v11, %v26377_v11 }
 0x48f   :  { %v11111_v47 = vcombine.high %v11109_v60, %v11109_v60  ;;  %v26399_v5 = vrot.slane %v11109_v60, %v19011_v56  ;;  %v26402_v21 = vrot.slane %v11110_v7, %v19011_v56  ;;  %v12881_v60 = vmax.f32 %v12671_v8, %v26377_v11 }
 0x490   :  { %29299 = vst [vmem:[#allocation9_spill] sm:$0xff] %v26389_v10  ;;  %29300 = vst [vmem:[#allocation4_spill] sm:$0xff] %v26396_v62  ;;  %v26409_v37 = vrot.slane %v11160_v29, %v19011_v56  ;;  %v11190_v49 = vcombine.high %v26389_v10, %v26389_v10  ;;  %v26419_v7 = vpop.permute.xlu0 %1008  ;;  %v12882_v42 = vmax.f32 %v26270_v13, %v26392_v32 }
 0x491   :  { %29301 = vst [vmem:[#allocation6_spill] sm:$0xff] %v26399_v5  ;;  %29302 = vst [vmem:[#allocation12_spill] sm:$0xff] %v26402_v21  ;;  %v12883_v29 = vmax.f32 %v26273_v30, %v26396_v62  ;;  %v26426_v12 = vrot.slane %v11111_v47, %v19011_v56  ;;  %v26428_v25 = vcombine.high %v11118_v22, %v11118_v22  ;;  %v26430_v23 = vpop.permute.xlu1 %1408 }
 0x492   :  { %29303 = vst [vmem:[#allocation26_spill] sm:$0xff] %v26409_v37  ;;  %v11192_v53 = vcombine.high %v26409_v37, %v26409_v37  ;;  %v26437_v48 = vmax.f32 %v26267_v39, %v11190_v49  ;;  %v26441_v8 = vcombine.high %v26399_v5, %v26399_v5  ;;  %v13075_v13 = vmax.f32 %v12881_v60, %v12882_v42 }
 0x493   :  { %29304 = vst [vmem:[#allocation5_spill] sm:$0xff] %v26426_v12  ;;  %29305 = vst [vmem:[#allocation18_spill] sm:$0xff] %v26428_v25  ;;  %v26445_v30 = vcombine.high %v26402_v21, %v26402_v21  ;;  %v26449_v47 = vcombine.high %v26426_v12, %v26426_v12  ;;  %v12873_v4 = vmax.f32 %v12663_v27, %v11118_v22 }
 0x494   :  { %29306 = vst [vmem:[#allocation8_spill] sm:$0xff] %v26437_v48  ;;  %29307 = vst [vmem:[#allocation29_spill] sm:$0xff] %v26441_v8  ;;  %v26454_v34 = vmax.f32 %v11118_v22, %v11192_v53  ;;  %v12874_v39 = vmax.f32 %v26279_v52, %v26402_v21  ;;  %v12875_v49 = vmax.f32 %v26282_v28, %v26428_v25  ;;  %v26464_v11 = vpop.permute.xlu0 %1206 }
 0x495   :  { %29308 = vst [vmem:[#allocation20_spill] sm:$0xff] %v26445_v30  ;;  %29309 = vst [vmem:[#allocation10_spill] sm:$0xff] %v26449_v47  ;;  %v12877_v9 = vmax.f32 %v12667_v36, %v26399_v5  ;;  %v13257_v10 = vmax.f32 %v13075_v13, %v12883_v29  ;;  %v12876_v53 = vmax.f32 %v29311_v26, %v26445_v30  ;;  %v26474_v52 = vpop.permute.xlu1 %1604 }
 0x496   :  { %29310 = vst [vmem:[#allocation3_spill] sm:$0xff] %v26454_v34  ;;  %v12878_v43 = vmax.f32 %v26294_v0, %v26426_v12  ;;  %v12879_v27 = vmax.f32 %v26297_v58, %v26441_v8  ;;  %v12880_v28 = vmax.f32 %v29312_v61, %v26449_v47  ;;  %v13066_v15 = vmax.f32 %v26290_v50, %v12873_v4 }
 0x497   :  { %v13067_v36 = vmax.f32 %v12873_v4, %v12874_v39  ;;  %v13068_v22 = vmax.f32 %v12874_v39, %v12875_v49  ;;  %v13069_v29 = vmax.f32 %v12875_v49, %v12876_v53  ;;  %v13070_v54 = vmax.f32 %v12876_v53, %v12877_v9 }
 0x498   :  { %v13071_v24 = vmax.f32 %v12877_v9, %v12878_v43  ;;  %v5584_v0 = vcombine.high %v26380_v2, %v26380_v2  ;;  %v13072_v13 = vmax.f32 %v12878_v43, %v12879_v27  ;;  %v13073_v26 = vmax.f32 %v12879_v27, %v12880_v28  ;;  %v26486_v30 = vpop.permute.xlu0 %1410 }
 0x499   :  { %v13074_v58 = vmax.f32 %v12880_v28, %v12881_v60  ;;  %v29313_v5 = vmax.f32 %v26257_v57, %v26290_v50  ;;  %v14280_v46 = vrot.slane %v13257_v10, %v19011_v56  ;;  %v13248_v3 = vmax.f32 %v13066_v15, %v12874_v39  ;;  %v26489_v25 = vpop.permute.xlu1 %1802 }
 0x49a   :  { %v13249_v61 = vmax.f32 %v13067_v36, %v12875_v49  ;;  %v13250_v47 = vmax.f32 %v13068_v22, %v12876_v53  ;;  %v13251_v12 = vmax.f32 %v13069_v29, %v12877_v9  ;;  %v13252_v21 = vmax.f32 %v13070_v54, %v12878_v43 }
 0x49b   :  { %v13247_v8 = vmax.f32 %v29313_v5, %v12873_v4  ;;  %v13253_v17 = vmax.f32 %v13071_v24, %v12879_v27  ;;  %v13254_v34 = vmax.f32 %v13072_v13, %v12880_v28  ;;  %v13255_v48 = vmax.f32 %v13073_v26, %v12881_v60 }
 0x49c   :  { %v13256_v37 = vmax.f32 %v13074_v58, %v12882_v42  ;;  %v14211_v62 = vcombine.low %v13249_v61, %v13250_v47  ;;  %v14212_v51 = vcombine.low %v13251_v12, %v13252_v21  ;;  %v5598_v50 = vrot.slane %v26380_v2, %v19011_v56  ;;  %v26497_v4 = vpop.permute.xlu0 %1606 }
 0x49d   :  { %v14210_v1 = vcombine.low %v13247_v8, %v13248_v3  ;;  %v14258_v57 = vcombine.low %v13253_v17, %v13254_v34  ;;  %v29314_v10 = vcombine.high %v26359_v55, %v26359_v55  ;;  %v5612_v42 = vrot.slane %v5584_v0, %v19011_v56  ;;  %v26502_v8 = vpop.permute.xlu1 %2006 }
 0x49e   :  { %v14233_v39 = vrot.slane %v14211_v62, %v19011_v56  ;;  %v14259_v60 = vcombine.low %v13255_v48, %v13256_v37  ;;  %v14240_v17 = vrot.slane %v14212_v51, %v19011_v56  ;;  %v8527_v37 = vrot.slane %v26365_v38, %v19011_v56 }
 0x49f   :  { %v5605_v5 = vrot.slane %v29314_v10, %v19011_v56  ;;  %v14226_v9 = vrot.slane %v14210_v1, %v19011_v56  ;;  %v14266_v34 = vrot.slane %v14258_v57, %v19011_v56  ;;  %v8520_v1 = vcombine.low %v5598_v50, %v5612_v42 }
 0x4a0   :  { %v14273_v21 = vrot.slane %v14259_v60, %v19011_v56  ;;  %v18143_v47 = vcombine.high %v5598_v50, %v5612_v42  ;;  %v14242_v62 = vcombine.low %v14233_v39, %v14240_v17  ;;  %v2591_v51 = vsel %vm2529_vm12, %v26356_v59, %v26315_v31  ;;  %v18655_v59 = vld [vmem:[%s28513_s0 + $0x318] sm:$0xff]  ;;  %v18656_v60 = vld [vmem:[%s28513_s0 + $0x320] sm:$0xff] }
 0x4a1   :  { %v8518_v12 = vcombine.low %v26406_v41, %v5605_v5  ;;  %v18142_v55 = vcombine.high %v26406_v41, %v5605_v5  ;;  %v14241_v2 = vcombine.low %v26353_v44, %v14226_v9  ;;  %v14295_v49 = vrot.slane %v14280_v46, %v19011_v56  ;;  %v2009_v36 = vpop.permute.xlu1 %2008 }
 0x4a2   :  { %v14281_v53 = vcombine.low %v14266_v34, %v14273_v21  ;;  %v8548_v44 = vrot.slane %v8520_v1, %v19011_v56  ;;  %v1805_v43 = vpop.permute.xlu0 %1804  ;;  %v14256_v28 = vrot.slane %v14242_v62, %v19011_v56  ;;  %v5617_v15 = vcombine.high %v2591_v51, %v2591_v51 }
 0x4a3   :  { %v8534_v48 = vrot.slane %v8518_v12, %v19011_v56  ;;  %v8541_v41 = vrot.slane %v18142_v55, %v19011_v56  ;;  %v14249_v27 = vrot.slane %v14241_v2, %v19011_v56  ;;  %v5624_v38 = vrot.slane %v2591_v51, %v19011_v56 }
 0x4a4   :  { %v14288_v22 = vrot.slane %v14281_v53, %v19011_v56  ;;  %v8576_v31 = vrot.slane %v18143_v47, %v19011_v56  ;;  %v2137_v29 = vsel %vm2074_vm5, %v18655_v59, %v26324_v40  ;;  %v29315_v54 = vrot.slane %v26348_v18, %v19011_v56 }
 0x4a5   :  { %v29316_v24 = vrot.slane %v26340_v63, %v19011_v56  ;;  %v14257_v13 = vcombine.low %v14249_v27, %v14256_v28  ;;  %v8549_v26 = vcombine.low %v8527_v37, %v8534_v48  ;;  %v5631_v58 = vrot.slane %v5617_v15, %v19011_v56 }
 0x4a6   :  { %v5632_v46 = vcombine.high %v5624_v38, %v5624_v38  ;;  %v14296_v3 = vcombine.low %v14288_v22, %v14295_v49  ;;  %v8550_v61 = vcombine.low %v8541_v41, %v8548_v44  ;;  %v8508_v57 = vrot.slane %v26370_v45, %v19011_v56  ;;  %v26539_v40 = vpop.permute.xlu0 %14842 }
 0x4a7   :  { %v8501_v0 = vcombine.low %v29316_v24, %v29315_v54  ;;  %14783 = vst.msk [vmem:[#allocation2 + $0x80] sm:$0xff] %vm14765_vm14, %v14257_v13  ;;  %v5633_v18 = vcombine.high %v5631_v58, %v5631_v58  ;;  %v5640_v63 = vrot.slane %v5624_v38, %v19011_v56  ;;  %v2202_v5 = vsel %vm2139_vm6, %v2137_v29, %v26331_v20 }
 0x4a8   :  { %v5654_v10 = vrot.slane %v5632_v46, %v19011_v56  ;;  %v26546_v9 = vpop.permute.xlu1 %14844  ;;  %14784 = vst.msk [vmem:[#allocation2 + $0x88] sm:$0x1f] %vm14767_vm15, %v14296_v3  ;;  %v5647_v45 = vrot.slane %v5631_v58, %v19011_v56  ;;  %v2138_v42 = vsel %vm2074_vm5, %v18656_v60, %v26346_v33  ;;  %v2267_v17 = vsel %vm2204_vm7, %v2202_v5, %v26361_v16 }
 0x4a9   :  { %v8515_v50 = vrot.slane %v8501_v0, %v19011_v56  ;;  %v5661_v34 = vrot.slane %v5633_v18, %v19011_v56  ;;  %v2203_v55 = vsel %vm2139_vm6, %v2138_v42, %v26373_v35  ;;  %v2332_v2 = vsel %vm2269_vm8, %v2267_v17, %v26386_v14 }
 0x4aa   :  { %v8567_v20 = vcombine.low %v5640_v63, %v5654_v10  ;;  %v18144_v12 = vcombine.high %v5640_v63, %v5654_v10  ;;  %v2268_v21 = vsel %vm2204_vm7, %v2203_v55, %v26419_v7  ;;  %v8557_v33 = vrot.slane %v8549_v26, %v19011_v56  ;;  %v26567_v16 = vpop.permute.xlu0 %14882 }
 0x4ab   :  { %v8516_v39 = vcombine.low %v8508_v57, %v8515_v50  ;;  %v8564_v1 = vrot.slane %v8550_v61, %v19011_v56  ;;  %v8569_v47 = vcombine.low %v5647_v45, %v5661_v34  ;;  %v2397_v35 = vsel %vm2334_vm9, %v2332_v2, %v26430_v23 }
 0x4ac   :  { %v8583_v62 = vrot.slane %v8567_v20, %v19011_v56  ;;  %v2333_v37 = vsel %vm2269_vm8, %v2268_v21, %v26464_v11  ;;  %v26574_v48 = vpop.permute.xlu1 %14884  ;;  %v8590_v14 = vrot.slane %v18144_v12, %v19011_v56  ;;  %v2462_v51 = vsel %vm2399_vm10, %v2397_v35, %v26474_v52 }
 0x4ad   :  { %18423 = vmatmul.mubr.msk.f32.gmra.mrb[8].mxu1 %vm8713_vm13, %v8516_v39  ;;  %v8565_v7 = vcombine.low %v8557_v33, %v8564_v1  ;;  %v2398_v49 = vsel %vm2334_vm9, %v2333_v37, %v26486_v30  ;;  %v8597_v53 = vrot.slane %v8569_v47, %v19011_v56  ;;  %v2527_v23 = vsel %vm2464_vm11, %v2462_v51, %v26489_v25 }
 0x4ae   :  { %v8598_v41 = vcombine.low %v8576_v31, %v8583_v62  ;;  %v2463_v11 = vsel %vm2399_vm10, %v2398_v49, %v26497_v4  ;;  %v2592_v44 = vsel %vm2529_vm12, %v2527_v23, %v26502_v8  ;;  %v26590_v52 = vpop.permute.xlu0 %14914  ;;  %v5663_v24 = vcombine.high %v5647_v45, %v5647_v45 }
 0x4af   :  { %18425 = vmatprep.mubr.msk.f32.mxu1 %vm8713_vm13, %v8565_v7  ;;  %v2528_v27 = vsel %vm2464_vm11, %v2463_v11, %v1805_v43  ;;  %v8599_v28 = vcombine.low %v8590_v14, %v8597_v53  ;;  %v5665_v15 = vcombine.high %v2592_v44, %v2592_v44  ;;  %v5672_v38 = vrot.slane %v2592_v44, %v19011_v56  ;;  %v26594_v22 = vld [vmem:[#allocation2 + $0x80] ss:$2 sm:$0x7f] }
 0x4b0   :  { %v8606_v30 = vrot.slane %v8598_v41, %v19011_v56  ;;  %29317 = vst [vmem:[#allocation35_spill] sm:$0xff] %v26594_v22  ;;  %v26596_v25 = vpop.permute.xlu1 %14916  ;;  %v2593_v4 = vsel %vm2529_vm12, %v2528_v27, %v2009_v36  ;;  %14924 = vrot.lane.b32.xlu1 %v26594_v22, %s18678_s23  ;;  %v14838_v8 = vrot.slane %v26594_v22, 1  ;;  %v14976_v43 = vrot.slane %v26040_v19, 2 }
 0x4b1   :  { %v8613_v31 = vrot.slane %v8599_v28, %v19011_v56  ;;  %v5679_v59 = vrot.slane %v5665_v15, %v19011_v56  ;;  %v5680_v29 = vcombine.high %v5672_v38, %v5672_v38  ;;  %v5688_v54 = vrot.slane %v5672_v38, %v19011_v56  ;;  %v15599_v15 = vld [vmem:[%s28516_s3 + $0x40] sm:$0xff]  ;;  %v15600_v38 = vld [vmem:[%s28516_s3 + $0x48] sm:$0xff] }
 0x4b2   :  { %v5714_v0 = vcombine.high %v2593_v4, %v2593_v4  ;;  %v5721_v13 = vrot.slane %v2593_v4, %v19011_v56  ;;  %14854 = vrot.lane.b32.xlu0 %v14838_v8, %s18676_s10  ;;  %v28702_v36 = vrot.slane %v26594_v22, 2  ;;  %v29318_v5 = vrot.slane %v26040_v19, 1 }
 0x4b3   :  { %v8614_v58 = vcombine.low %v8606_v30, %v8613_v31  ;;  %v5681_v46 = vcombine.high %v5679_v59, %v5679_v59  ;;  %v5695_v3 = vrot.slane %v5679_v59, %v19011_v56  ;;  %v5702_v61 = vrot.slane %v5680_v29, %v19011_v56 }
 0x4b4   :  { %v26609_v26 = vpop.permute.xlu0 %14946  ;;  %v26613_v57 = vpop.permute.xlu1 %14948  ;;  %v5710_v50 = vcombine.high %v5688_v54, %v5688_v54  ;;  %v8615_v18 = vcombine.low %v5663_v24, %v5688_v54  ;;  %v5728_v63 = vrot.slane %v5714_v0, %v19011_v56  ;;  %v5729_v10 = vcombine.high %v5721_v13, %v5721_v13  ;;  %15048 = vrot.lane.b32.xlu1 %v29318_v5, %s18682_s28  ;;  %v26655_v54 = vld [vmem:[#allocation2 + $0x60] ss:$2 sm:$0x7f]  ;;  %v15601_v24 = vld [vmem:[%s28516_s3 + $0x50] sm:$0xff]  ;;  %v15602_v0 = vld [vmem:[%s28516_s3 + $0x58] sm:$0x3] }
 0x4b5   :  { %18426 = vmatmul.mubr.msk.f32.gmra.mrb[10].mxu1 %vm8713_vm13, %v8614_v58  ;;  %v5709_v45 = vrot.slane %v5681_v46, %v19011_v56  ;;  %v5711_v39 = vcombine.high %v5695_v3, %v5695_v3  ;;  %v5712_v60 = vcombine.high %v5702_v61, %v5702_v61  ;;  %v5737_v42 = vrot.slane %v5721_v13, %v19011_v56 }
 0x4b6   :  { %v8616_v17 = vcombine.low %v5702_v61, %v5710_v50  ;;  %v8625_v34 = vrot.slane %v8615_v18, %v19011_v56  ;;  %v5730_v20 = vcombine.high %v5728_v63, %v5728_v63  ;;  %v5744_v12 = vrot.slane %v5728_v63, %v19011_v56  ;;  %14986 = vrot.lane.b32.xlu0 %v14976_v43, %s18680_s25 }
 0x4b7   :  { %v8617_v19 = vcombine.low %v5712_v60, %v5695_v3  ;;  %v8618_v2 = vcombine.low %v5709_v45, %v5711_v39  ;;  %v5713_v21 = vcombine.high %v5709_v45, %v5709_v45  ;;  %v5751_v33 = vrot.slane %v5729_v10, %v19011_v56  ;;  %29319 = vst [vmem:[#allocation14_spill] sm:$0xff] %v26655_v54 }
 0x4b8   :  { %v26625_v55 = vpop.permute.xlu0 %14846  ;;  %v26628_v1 = vpop.permute.xlu1 %14978  ;;  %v8632_v47 = vrot.slane %v8616_v17, %v19011_v56  ;;  %v5758_v62 = vrot.slane %v5730_v20, %v19011_v56  ;;  %v5759_v35 = vcombine.high %v5737_v42, %v5737_v42  ;;  %v5760_v37 = vcombine.high %v5744_v12, %v5744_v12  ;;  %14956 = vrot.lane.b32.xlu1 %v14838_v8, %s18679_s24 }
 0x4b9   :  { %v8639_v14 = vrot.slane %v8617_v19, %v19011_v56  ;;  %v8646_v7 = vrot.slane %v8618_v2, %v19011_v56  ;;  %v5761_v51 = vcombine.high %v5751_v33, %v5751_v33  ;;  %v8664_v49 = vcombine.low %v5713_v21, %v5737_v42 }
 0x4ba   :  { %v8647_v53 = vcombine.low %v8625_v34, %v8632_v47  ;;  %v8665_v41 = vcombine.low %v5751_v33, %v5759_v35  ;;  %v8667_v23 = vcombine.low %v5758_v62, %v5760_v37  ;;  %14894 = vrot.lane.b32.xlu0 %v28702_v36, %s18677_s17  ;;  %v18513_v46 = vpack.c.bf16 %v15600_v38, %v15599_v15  ;;  %v18412_v50 = vpop.f32.mrb[0].mxu1  ;;  %v18658_v15 = vld [vmem:[#allocation2 + $0x10] ss:$2 sm:$0x7f] }
 0x4bb   :  { %v8666_v44 = vcombine.low %v5761_v51, %v5744_v12  ;;  %v8674_v27 = vrot.slane %v8664_v49, %v19011_v56  ;;  %v8648_v28 = vcombine.low %v8639_v14, %v8646_v7  ;;  %v18403_v58 = vpop.f32.mrb[40].mxu0  ;;  %v9139_v10 = vadd.f32 %v26337_v6, %v18412_v50  ;;  %v9133_v5 = vpop.f32.mrb[1].mxu1 }
 0x4bc   :  { %v26638_v11 = vpop.permute.xlu0 %14980  ;;  %v26641_v30 = vpop.permute.xlu1 %14886  ;;  %v8681_v4 = vrot.slane %v8665_v41, %v19011_v56  ;;  %v8695_v8 = vrot.slane %v8667_v23, %v19011_v56  ;;  %15080 = vrot.lane.b32.xlu1 %v14976_v43, %s18683_s12  ;;  %v8655_v59 = vrot.slane %v8647_v53, %v19011_v56  ;;  %v9109_v63 = vadd.f32 %v26337_v6, %v18403_v58  ;;  %v18657_v41 = vld [vmem:[#allocation2] ss:$2 sm:$0x7f] }
 0x4bd   :  { %v8688_v31 = vrot.slane %v8666_v44, %v19011_v56  ;;  %v8662_v29 = vrot.slane %v8648_v28, %v19011_v56  ;;  %v9103_v45 = vpop.f32.mrb[41].mxu0  ;;  %18514 = vmatpush3.bf16.msra.mxu1 %v18513_v46  ;;  %v18516_v39 = vpack.c.bf16 %v15602_v0, %v15601_v24  ;;  %v9134_v17 = vadd.f32 %v26337_v6, %v9133_v5 }
 0x4be   :  { %v8696_v13 = vcombine.low %v8674_v27, %v8681_v4  ;;  %15018 = vrot.lane.b32.xlu0 %v26655_v54, %s18681_s27  ;;  %v9241_v34 = vmax.f32 %v9109_v63, 0.0  ;;  %v29320_v20 = vmov 0.0|0.0   ;;  %v26678_v12 = vmax.f32 %v9139_v10, 0.0  ;;  %v29339_v63 = vld [vmem:[#allocation10_spill] sm:$0xff] }
 0x4bf   :  { %v8663_v3 = vcombine.low %v8655_v59, %v8662_v29  ;;  %v8697_v61 = vcombine.low %v8688_v31, %v8695_v8  ;;  %18515 = vmatprep.subr.bf16.mxu1 %v29320_v20  ;;  %v26682_v21 = vmax.f32 %v9134_v17, 0.0  ;;  %v11191_v14 = vcombine.high %v26392_v32, %v26392_v32 }
 0x4c0   :  { %v26665_v43 = vpop.permute.xlu0 %15010  ;;  %v8704_v60 = vrot.slane %v8696_v13, %v19011_v56  ;;  %v11242_v33 = vcombine.high %v9241_v34, %v9241_v34  ;;  %v11249_v47 = vrot.slane %v9241_v34, %v19011_v56  ;;  %v11536_v35 = vcombine.high %v26678_v12, %v26678_v12 }
 0x4c1   :  { %v26667_v18 = vpop.permute.xlu1 %15012  ;;  %18428 = vmatprep.mubr.msk.f32.mxu1 %vm8713_vm13, %v8663_v3  ;;  %v8711_v42 = vrot.slane %v8697_v61, %v19011_v56  ;;  %18518 = vmatpush3.bf16.msk.msra.mxu1 %vm18517_vm1, %v18516_v39  ;;  %v9104_v51 = vadd.f32 %v26337_v6, %v9103_v45  ;;  %v28703_v53 = vmov 0.0   ;;  %v15104_v23 = vsel %vm14765_vm14, %v18657_v41, %v26539_v40  ;;  %v29325_v45 = vld [vmem:[#allocation4_spill] sm:$0xff] }
 0x4c2   :  { %v11256_v37 = vrot.slane %v11242_v33, %v19011_v56  ;;  %v26694_v7 = vrot.slane %v11536_v35, %v19011_v56  ;;  %v26705_v44 = vrot.slane %v26682_v21, %v19011_v56  ;;  %v11257_v27 = vcombine.high %v11249_v47, %v11249_v47  ;;  %18519 = vmatprep.subr.bf16.mxu1 %v29320_v20 }
 0x4c3   :  { %v8712_v2 = vcombine.low %v8704_v60, %v8711_v42  ;;  %v15105_v38 = vsel %vm14765_vm14, %v18658_v15, %v26546_v9  ;;  %v15115_v4 = vsel %vm15114_vm2, %v15104_v23, %v26567_v16  ;;  %v26715_v40 = vrot.slane %v11249_v47, %v19011_v56  ;;  %v29326_v60 = vld [vmem:[#allocation31_spill] sm:$0xff]  ;;  %v29327_v42 = vld [vmem:[#allocation26_spill] sm:$0xff] }
 0x4c4   :  { %v26680_v19 = vpop.permute.xlu0 %14848  ;;  %v11258_v28 = vcombine.high %v11256_v37, %v11256_v37  ;;  %v11552_v8 = vcombine.high %v26694_v7, %v26694_v7  ;;  %v15116_v59 = vsel %vm15114_vm2, %v15105_v38, %v26574_v48  ;;  %v15126_v29 = vsel %vm15125_vm3, %v15115_v4, %v26590_v52 }
 0x4c5   :  { %v26685_v62 = vpop.permute.xlu1 %14918  ;;  %18429 = vmatmul.mubr.msk.f32.gmra.mrb[12].mxu1 %vm8713_vm13, %v8712_v2  ;;  %vm15136_vm5 = vcmask 326656   ;;  %vm15147_vm6 = vcmask 408576   ;;  %v15127_v9 = vsel %vm15125_vm3, %v15116_v59, %v26596_v25  ;;  %v26729_v24 = vrot.slane %v11256_v37, %v19011_v56  ;;  %v29323_v25 = vld [vmem:[#allocation16_spill] sm:$0xff]  ;;  %v29330_v37 = vld [vmem:[#allocation3_spill] sm:$0xff] }
 0x4c6   :  { %18455 = vmatprep.mubr.msk.f32.mxu1 %vm18685_vm4, %v28703_v53  ;;  %v26726_v16 = vrot.slane %v11552_v8, %v19011_v56  ;;  %v9240_v0 = vmax.f32 %v9104_v51, 0.0  ;;  %vm15158_vm8 = vcmask 490496   ;;  %v26735_v48 = vrot.slane %v26705_v44, %v19011_v56  ;;  %v29329_v2 = vld [vmem:[#allocation8_spill] sm:$0xff] }
 0x4c7   :  { %v26738_v52 = vrot.slane %v11257_v27, %v19011_v56  ;;  %v26741_v58 = vrot.slane %v11258_v28, %v19011_v56  ;;  %v12674_v46 = vmax.f32 %v29323_v25, %v11191_v14  ;;  %v26748_v61 = vcombine.high %v26715_v40, %v26715_v40  ;;  %v29331_v27 = vld [vmem:[#allocation17_spill] sm:$0xff] }
 0x4c8   :  { %v26697_v49 = vpop.permute.xlu0 %15042  ;;  %29321 = vst [vmem:[#allocation23_spill] sm:$0xff] %v26726_v16  ;;  %29322 = vst [vmem:[#allocation13_spill] sm:$0xff] %v26735_v48  ;;  %v11584_v3 = vcombine.high %v26726_v16, %v26726_v16  ;;  %v26752_v50 = vcombine.high %v26729_v24, %v26729_v24  ;;  %vm15169_vm9 = vcmask 572416   ;;  %v29328_v17 = vmax.f32 %v29326_v60, %v29327_v42  ;;  %v29332_v28 = vld [vmem:[#allocation9_spill] sm:$0xff] }
 0x4c9   :  { %v26717_v31 = vpop.permute.xlu1 %15044  ;;  %v26760_v5 = vcombine.high %v26738_v52, %v26738_v52  ;;  %v12887_v33 = vmax.f32 %v29329_v2, %v26741_v58  ;;  %vm15180_vm10 = vcmask 654336   ;;  %v12884_v35 = vmax.f32 %v12674_v46, %v26748_v61 }
 0x4ca   :  { %29324 = vst [vmem:[#allocation24_spill] sm:$0xff] %v26752_v50  ;;  %v12886_v34 = vmax.f32 %v29328_v17, %v26729_v24  ;;  %v26771_v47 = vmax.f32 %v26735_v48, %v11584_v3  ;;  %v26776_v14 = vmax.f32 %v29330_v37, %v26752_v50  ;;  %v11193_v51 = vcombine.high %v9240_v0, %v9240_v0 }
 0x4cb   :  { %v15137_v23 = vsel %vm15136_vm5, %v15126_v29, %v26609_v26  ;;  %v29333_v15 = vmax.f32 %v29331_v27, %v29332_v28  ;;  %v11200_v8 = vrot.slane %v9240_v0, %v19011_v56  ;;  %v15138_v59 = vsel %vm15136_vm5, %v15127_v9, %v26613_v57 }
 0x4cc   :  { %v26731_v13 = vpop.permute.xlu0 %14888  ;;  %v13078_v4 = vmax.f32 %v12886_v34, %v12887_v33  ;;  %v15148_v25 = vsel %vm15147_vm6, %v15137_v23, %v26628_v1  ;;  %v11207_v46 = vrot.slane %v11193_v51, %v19011_v56  ;;  %v13079_v3 = vmax.f32 %v12887_v33, %v26776_v14 }
 0x4cd   :  { %v26756_v10 = vpop.permute.xlu1 %14950  ;;  %v12885_v38 = vmax.f32 %v29333_v15, %v26760_v5  ;;  %v11208_v42 = vcombine.high %v11200_v8, %v11200_v8  ;;  %v11216_v17 = vrot.slane %v11200_v8, %v19011_v56  ;;  %v26797_v57 = vcombine.high %v26741_v58, %v26741_v58  ;;  %v29334_v15 = vld [vmem:[#allocation12_spill] sm:$0xff]  ;;  %v29335_v8 = vld [vmem:[#allocation5_spill] sm:$0xff] }
 0x4ce   :  { %v11209_v2 = vcombine.high %v11207_v46, %v11207_v46  ;;  %v26793_v37 = vrot.slane %v11207_v46, %v19011_v56  ;;  %v13260_v1 = vmax.f32 %v13078_v4, %v26776_v14  ;;  %v15159_v36 = vsel %vm15158_vm8, %v15148_v25, %v26665_v43 }
 0x4cf   :  { %v13076_v26 = vmax.f32 %v12884_v35, %v12885_v38  ;;  %v13077_v29 = vmax.f32 %v12885_v38, %v12886_v34  ;;  %v26803_v35 = vrot.slane %v11208_v42, %v19011_v56  ;;  %v11238_v23 = vcombine.high %v11216_v17, %v11216_v17  ;;  %v29337_v42 = vld [vmem:[#allocation20_spill] sm:$0xff] }
 0x4d0   :  { %v15075_v41 = vpop.permute.xlu0 %15074  ;;  %v26806_v27 = vrot.slane %v11209_v2, %v19011_v56  ;;  %v11239_v28 = vcombine.high %v26793_v37, %v26793_v37  ;;  %v12679_v38 = vmax.f32 %v29334_v15, %v11216_v17  ;;  %v29338_v17 = vld [vmem:[#allocation29_spill] sm:$0xff]  ;;  %vm15919_vm11 = vcmask 736256  }
 0x4d1   :  { %v15077_v60 = vpop.permute.xlu1 %15076  ;;  %v13258_v0 = vmax.f32 %v13076_v26, %v12886_v34  ;;  %v13259_v51 = vmax.f32 %v13077_v29, %v12887_v33  ;;  %v15149_v34 = vsel %vm15147_vm6, %v15138_v59, %v26638_v11  ;;  %v29336_v26 = vld [vmem:[#allocation18_spill] sm:$0xff]  ;;  %v26820_v2 = vmax.f32 %v29337_v42, %v11238_v23 }
 0x4d2   :  { %v26827_v46 = vmax.f32 %v29339_v63, %v11239_v28  ;;  %v26830_v39 = vmax.f32 %v12679_v38, %v26797_v57  ;;  %v15160_v59 = vsel %vm15158_vm8, %v15149_v34, %v26667_v18  ;;  %vm17190_vm12 = vcmask 130048  }
 0x4d3   :  { %v14297_v33 = vcombine.low %v13258_v0, %v13259_v51  ;;  %v15170_v0 = vsel %vm15169_vm9, %v15159_v36, %v26697_v49  ;;  %v15171_v63 = vsel %vm15169_vm9, %v15160_v59, %v26717_v31  ;;  %vm17197_vm13 = vcmask 261120  }
 0x4d4   :  { %v26800_v9 = vpop.permute.xlu0 %14850  ;;  %v13261_v25 = vmax.f32 %v13079_v3, %v26830_v39  ;;  %v15181_v51 = vsel %vm15180_vm10, %v15170_v0, %v15075_v41  ;;  %v15182_v42 = vsel %vm15180_vm10, %v15171_v63, %v15077_v60  ;;  %vm17231_vm1 = vcmask 916480  }
 0x4d5   :  { %v26813_v4 = vpop.permute.xlu1 %14920  ;;  %v15201_v28 = vcombine.high %v15181_v51, %v15181_v51  ;;  %v15208_v38 = vrot.slane %v15181_v51, %v19011_v56  ;;  %v14307_v18 = vrot.slane %v14297_v33, %v19011_v56  ;;  %v15240_v36 = vcombine.high %v15182_v42, %v15182_v42 }
 0x4d6   :  { %v14298_v34 = vcombine.low %v13260_v1, %v13261_v25  ;;  %v15247_v49 = vrot.slane %v15182_v42, %v19011_v56 }
 0x4d7   :  { %v15215_v3 = vrot.slane %v15201_v28, %v19011_v56  ;;  %v15216_v15 = vcombine.high %v15208_v38, %v15208_v38  ;;  %v15254_v41 = vrot.slane %v15240_v36, %v19011_v56  ;;  %v15223_v60 = vrot.slane %v15208_v38, %v19011_v56 }
 0x4d8   :  { %v26832_v11 = vpop.permute.xlu0 %14982  ;;  %v14314_v31 = vrot.slane %v14298_v34, %v19011_v56  ;;  %v15255_v59 = vcombine.high %v15247_v49, %v15247_v49  ;;  %v15262_v0 = vrot.slane %v15247_v49, %v19011_v56 }
 0x4d9   :  { %v14891_v23 = vpop.permute.xlu1 %14890  ;;  %v15230_v1 = vrot.slane %v15215_v3, %v19011_v56  ;;  %v15237_v33 = vrot.slane %v15216_v15, %v19011_v56  ;;  %v15269_v53 = vrot.slane %v15254_v41, %v19011_v56 }
 0x4da   :  { %v26859_v25 = vcombine.low %v14307_v18, %v14314_v31  ;;  %v15276_v63 = vrot.slane %v15255_v59, %v19011_v56  ;;  %v15277_v28 = vcombine.high %v15262_v0, %v15262_v0 }
 0x4db   :  { %v15610_v34 = vcombine.low %v15223_v60, %v15237_v33  ;;  %v18207_v29 = vcombine.high %v15223_v60, %v15237_v33  ;;  %v15612_v36 = vcombine.low %v15230_v1, %v15262_v0  ;;  %v18659_v33 = vld [vmem:[#allocation2 + $0x40] ss:$2 sm:$0x7f] }
 0x4dc   :  { %v26848_v43 = vpop.permute.xlu0 %14952  ;;  %v15278_v49 = vcombine.high %v15276_v63, %v15276_v63  ;;  %v15613_v20 = vcombine.low %v15276_v63, %v15277_v28  ;;  %v18660_v63 = vld [vmem:[#allocation2 + $0x70] ss:$2 sm:$0x7f] }
 0x4dd   :  { %v26854_v51 = vpop.permute.xlu1 %15014  ;;  %v15620_v38 = vrot.slane %v15610_v34, %v19011_v56  ;;  %v15627_v3 = vrot.slane %v18207_v29, %v19011_v56  ;;  %v15634_v15 = vrot.slane %v15612_v36, %v19011_v56  ;;  %v15108_v29 = vsel %vm14765_vm14, %v18659_v33, %v26800_v9  ;;  %v18661_v33 = vld [vmem:[#allocation2 + $0x20] ss:$2 sm:$0x7f] }
 0x4de   :  { %v15641_v18 = vrot.slane %v15613_v20, %v19011_v56  ;;  %v26867_v31 = vcombine.low %v15278_v49, %v15269_v53  ;;  %v15119_v53 = vsel %vm15114_vm2, %v15108_v29, %v14891_v23  ;;  %v29341_v9 = vmov 0.0  }
 0x4df   :  { %v15642_v22 = vcombine.low %v15620_v38, %v15627_v3 }
 0x4e0   :  { %v14853_v42 = vpop.permute.xlu0 %14852  ;;  %v15643_v60 = vcombine.low %v15634_v15, %v15641_v18  ;;  %v26894_v15 = vrot.slane %v26678_v12, %v19011_v56 }
 0x4e1   :  { %v14923_v16 = vpop.permute.xlu1 %14922  ;;  %v15650_v41 = vrot.slane %v15642_v22, %v19011_v56  ;;  %v15109_v28 = vsel %vm14765_vm14, %v18660_v63, %v14853_v42  ;;  %v11487_v42 = vcombine.high %v26682_v21, %v26682_v21  ;;  %v15106_v21 = vsel %vm14765_vm14, %v18661_v33, %v26625_v55 }
 0x4e2   :  { %v15657_v1 = vrot.slane %v15643_v60, %v19011_v56  ;;  %v15130_v49 = vsel %vm15125_vm3, %v15119_v53, %v14923_v16  ;;  %v11502_v16 = vcombine.high %v26705_v44, %v26705_v44  ;;  %v15117_v44 = vsel %vm15114_vm2, %v15106_v21, %v26641_v30 }
 0x4e3   :  { %v11501_v23 = vrot.slane %v11487_v42, %v19011_v56  ;;  %v26926_v30 = vcombine.high %v26735_v48, %v26735_v48 }
 0x4e4   :  { %v26869_v59 = vpop.permute.xlu0 %14984  ;;  %v15658_v36 = vcombine.low %v15650_v41, %v15657_v1  ;;  %v26913_v53 = vrot.slane %v11502_v16, %v19011_v56  ;;  %v15128_v16 = vsel %vm15125_vm3, %v15117_v44, %v26685_v62 }
 0x4e5   :  { %v26871_v0 = vpop.permute.xlu1 %15046  ;;  %v11503_v41 = vcombine.high %v11501_v23, %v11501_v23  ;;  %v26903_v29 = vrot.slane %v11501_v23, %v19011_v56  ;;  %v15139_v21 = vsel %vm15136_vm5, %v15128_v16, %v26756_v10 }
 0x4e6   :  { %18456 = vmatmul.mubr.msk.f32.vlgmr.msra.gmra.mrb[14].mxu1 %vm15919_vm11, %v15658_v36  ;;  %29343 = vst [vmem:[#allocation19_spill] sm:$0xff] %v26913_v53  ;;  %v18662_v36 = vld [vmem:[#allocation2 + $0x30] ss:$2 sm:$0x7f]  ;;  %v26949_v62 = vcombine.high %v26913_v53, %v26913_v53 }
 0x4e7   :  { %18458 = vmatprep.mubr.msk.f32.mxu1 %vm18685_vm4, %v29341_v9  ;;  %29342 = vst [vmem:[#allocation33_spill] sm:$0xff] %v26903_v29  ;;  %v26917_v55 = vsel %vm14765_vm14, %v18662_v36, %v26680_v19  ;;  %v11240_v19 = vcombine.high %v26803_v35, %v26803_v35 }
 0x4e8   :  { %v14893_v20 = vpop.permute.xlu0 %14892  ;;  %29346 = vst [vmem:[#allocation22_spill] sm:$0xff] %v26949_v62 }
 0x4e9   :  { %v26880_v34 = vsel %vm15114_vm2, %v15109_v28, %v14893_v20  ;;  %v14955_v22 = vpop.permute.xlu1 %14954  ;;  %v11551_v20 = vcombine.high %v26894_v15, %v26894_v15 }
 0x4ea   :  { %v26884_v38 = vsel %vm15136_vm5, %v15130_v49, %v14955_v22  ;;  %v26922_v22 = vrot.slane %v11503_v41, %v19011_v56 }
 0x4eb   :  { %29340 = vst [vmem:[#allocation36_spill] sm:$0xff] %v26884_v38 }
 0x4ec   :  { %29344 = vst [vmem:[#allocation15_spill] sm:$0xff] %v26922_v22 }
 0x4ed   :  { %v15079_v54 = vpop.permute.xlu1 %15078 }
 0x4fe   :  { %v18415_v3 = vpop.f32.mrb[2].mxu1 }
 0x4ff   :  { %v9149_v18 = vadd.f32 %v26337_v6, %v18415_v3  ;;  %v9143_v60 = vpop.f32.mrb[3].mxu1  ;;  %v26931_v3 = vcombine.high %v26903_v29, %v26903_v29 }
 0x500   :  { %v9144_v1 = vadd.f32 %v26337_v6, %v9143_v60  ;;  %v11241_v60 = vcombine.high %v26806_v27, %v26806_v27 }
 0x501   :  { %v26905_v63 = vmax.f32 %v9149_v18, 0.0 }
 0x502   :  { %v9248_v28 = vmax.f32 %v9144_v1, 0.0 }
 0x503   :  { %v11634_v49 = vcombine.high %v26905_v63, %v26905_v63 }
 0x504   :  { %v11585_v42 = vcombine.high %v9248_v28, %v9248_v28  ;;  %v11592_v23 = vrot.slane %v9248_v28, %v19011_v56 }
 0x505   :  { %v11648_v18 = vrot.slane %v11634_v49, %v19011_v56 }
 0x506   :  { %v11599_v41 = vrot.slane %v11585_v42, %v19011_v56  ;;  %v11600_v1 = vcombine.high %v11592_v23, %v11592_v23  ;;  %v11608_v33 = vrot.slane %v11592_v23, %v19011_v56 }
 0x507   :  { %v11650_v28 = vcombine.high %v11648_v18, %v11648_v18  ;;  %v26945_v36 = vrot.slane %v11648_v18, %v19011_v56 }
 0x508   :  { %v18406_v44 = vpop.f32.mrb[42].mxu0  ;;  %v11601_v49 = vcombine.high %v11599_v41, %v11599_v41  ;;  %v26952_v12 = vrot.slane %v11599_v41, %v19011_v56  ;;  %v26955_v42 = vrot.slane %v11600_v1, %v19011_v56  ;;  %v11630_v23 = vcombine.high %v11608_v33, %v11608_v33 }
 0x509   :  { %29345 = vst [vmem:[#allocation25_spill] sm:$0xff] %v26945_v36  ;;  %v9113_v38 = vpop.f32.mrb[43].mxu0  ;;  %v26958_v10 = vrot.slane %v11650_v28, %v19011_v56  ;;  %v26962_v16 = vcombine.high %v26945_v36, %v26945_v36  ;;  %v12713_v18 = vmax.f32 %v26913_v53, %v11608_v33  ;;  %v9119_v48 = vadd.f32 %v26337_v6, %v18406_v44 }
 0x50a   :  { %v15150_v41 = vsel %vm15147_vm6, %v15139_v21, %v26832_v11  ;;  %v26969_v9 = vrot.slane %v11601_v49, %v19011_v56  ;;  %v11632_v1 = vcombine.high %v26955_v42, %v26955_v42  ;;  %v26984_v11 = vmax.f32 %v26949_v62, %v11630_v23 }
 0x50b   :  { %29347 = vst [vmem:[#allocation28_spill] sm:$0xff] %v26958_v10  ;;  %v26977_v36 = vmax.f32 %v26771_v47, %v26962_v16  ;;  %v26981_v33 = vcombine.high %v26958_v10, %v26958_v10  ;;  %v15161_v44 = vsel %vm15158_vm8, %v15150_v41, %v26854_v51  ;;  %v9243_v28 = vmax.f32 %v9119_v48, 0.0  ;;  %v29349_v47 = vld [vmem:[#allocation6_spill] sm:$0xff] }
 0x50c   :  { %v26991_v49 = vmax.f32 %v26903_v29, %v11632_v1  ;;  %v26997_v53 = vrot.slane %v26894_v15, %v19011_v56  ;;  %v15172_v23 = vsel %vm15169_vm9, %v15161_v44, %v26871_v0  ;;  %v9114_v21 = vadd.f32 %v26337_v6, %v9113_v38  ;;  %v29350_v6 = vld [vmem:[#allocation30_spill] sm:$0xff] }
 0x50d   :  { %v27002_v62 = vmax.f32 %v12713_v18, %v26981_v33  ;;  %v27007_v51 = vrot.slane %v26694_v7, %v19011_v56  ;;  %v27010_v41 = vsel %vm15180_vm10, %v15172_v23, %v15079_v54  ;;  %v11340_v48 = vcombine.high %v9243_v28, %v9243_v28 }
 0x50e   :  { %v11347_v1 = vrot.slane %v9243_v28, %v19011_v56  ;;  %v27014_v15 = vrot.slane %v11551_v20, %v19011_v56  ;;  %v12682_v0 = vmax.f32 %v29349_v47, %v11240_v19  ;;  %v9242_v44 = vmax.f32 %v9114_v21, 0.0 }
 0x50f   :  { %v12686_v38 = vmax.f32 %v29350_v6, %v11241_v60  ;;  %v11354_v7 = vrot.slane %v11340_v48, %v19011_v56  ;;  %v15286_v20 = vrot.slane %v27010_v41, %v19011_v56 }
 0x510   :  { %29348 = vst [vmem:[#allocation37_spill] sm:$0xff] %v27014_v15  ;;  %v11355_v29 = vcombine.high %v11347_v1, %v11347_v1  ;;  %v27022_v54 = vrot.slane %v11347_v1, %v19011_v56  ;;  %v11291_v23 = vcombine.high %v9242_v44, %v9242_v44  ;;  %v11298_v19 = vrot.slane %v9242_v44, %v19011_v56 }
 0x511   :  { %v11356_v47 = vcombine.high %v11354_v7, %v11354_v7  ;;  %v27030_v21 = vrot.slane %v11354_v7, %v19011_v56  ;;  %v29352_v1 = vmax.f32 %v29325_v45, %v26738_v52 }
 0x512   :  { %29351 = vst [vmem:[#allocation32_spill] sm:$0xff] %v27022_v54  ;;  %v27033_v60 = vrot.slane %v11355_v29, %v19011_v56  ;;  %v11385_v48 = vcombine.high %v27022_v54, %v27022_v54  ;;  %v11305_v18 = vrot.slane %v11291_v23, %v19011_v56  ;;  %v11306_v28 = vcombine.high %v11298_v19, %v11298_v19 }
 0x513   :  { %v12898_v6 = vmax.f32 %v29352_v1, %v27022_v54  ;;  %v11314_v44 = vrot.slane %v11298_v19, %v19011_v56  ;;  %v27044_v22 = vrot.slane %v11356_v47, %v19011_v56  ;;  %v11386_v29 = vcombine.high %v27030_v21, %v27030_v21 }
 0x514   :  { %v11387_v7 = vcombine.high %v27033_v60, %v27033_v60  ;;  %v27053_v52 = vmax.f32 %v26760_v5, %v11385_v48  ;;  %v11307_v23 = vcombine.high %v11305_v18, %v11305_v18  ;;  %v27058_v19 = vrot.slane %v11305_v18, %v19011_v56 }
 0x515   :  { %29353 = vst [vmem:[#allocation11_spill] sm:$0xff] %v27044_v22  ;;  %v11388_v47 = vcombine.high %v27044_v22, %v27044_v22  ;;  %v27068_v15 = vmax.f32 %v26797_v57, %v11386_v29  ;;  %v27071_v5 = vrot.slane %v11306_v28, %v19011_v56  ;;  %v27076_v18 = vcombine.high %v11314_v44, %v11314_v44 }
 0x516   :  { %29354 = vst [vmem:[#allocation34_spill] sm:$0xff] %v27058_v19  ;;  %v27063_v1 = vmax.f32 %v26729_v24, %v11387_v7  ;;  %v27074_v48 = vrot.slane %v11307_v23, %v19011_v56  ;;  %v27080_v45 = vcombine.high %v27058_v19, %v27058_v19  ;;  %v15294_v24 = vcombine.high %v15286_v20, %v15286_v20 }
 0x517   :  { %29355 = vst [vmem:[#allocation39_spill] sm:$0xff] %v27068_v15  ;;  %29356 = vst [vmem:[#allocation38_spill] sm:$0xff] %v27071_v5  ;;  %v27082_v7 = vmax.f32 %v11314_v44, %v11388_v47  ;;  %v29361_v54 = vmax.f32 %v29336_v26, %v26803_v35  ;;  %v29362_v28 = vmax.f32 %v29338_v17, %v26806_v27 }
 0x518   :  { %29357 = vst [vmem:[#allocation27_spill] sm:$0xff] %v27074_v48  ;;  %29358 = vst [vmem:[#allocation7_spill] sm:$0xff] %v27076_v18  ;;  %v27093_v23 = vcombine.high %v27071_v5, %v27071_v5  ;;  %v27097_v15 = vcombine.high %v27074_v48, %v27074_v48  ;;  %v12891_v47 = vmax.f32 %v26820_v2, %v27071_v5  ;;  %v15017_v5 = vpop.permute.xlu0 %15016 }
 0x519   :  { %29359 = vst [vmem:[#allocation21_spill] sm:$0xff] %v27080_v45  ;;  %29360 = vst [vmem:[#allocation16_spill] sm:$0xff] %v27082_v7  ;;  %v12890_v57 = vmax.f32 %v29361_v54, %v11314_v44  ;;  %v12894_v29 = vmax.f32 %v29362_v28, %v27058_v19  ;;  %v12892_v7 = vmax.f32 %v12682_v0, %v27076_v18 }
 0x51a   :  { %29363 = vst [vmem:[#allocation4_spill] sm:$0xff] %v27093_v23  ;;  %29364 = vst [vmem:[#allocation31_spill] sm:$0xff] %v27097_v15  ;;  %v12895_v35 = vmax.f32 %v26827_v46, %v27074_v48  ;;  %v12896_v26 = vmax.f32 %v12686_v38, %v27080_v45  ;;  %v29365_v17 = vmax.f32 %v26776_v14, %v26830_v39 }
 0x51b   :  { %v13081_v27 = vmax.f32 %v26830_v39, %v12890_v57  ;;  %v29366_v44 = vmax.f32 %v29335_v8, %v26793_v37  ;;  %v29367_v2 = vmax.f32 %v26392_v32, %v26715_v40  ;;  %v13082_v19 = vmax.f32 %v12890_v57, %v12891_v47 }
 0x51c   :  { %v13262_v54 = vmax.f32 %v29365_v17, %v12890_v57  ;;  %v13083_v46 = vmax.f32 %v12891_v47, %v12892_v7  ;;  %v15315_v38 = vrot.slane %v15294_v24, %v19011_v56  ;;  %v13086_v45 = vmax.f32 %v12894_v29, %v12895_v35 }
 0x51d   :  { %v12893_v28 = vmax.f32 %v29366_v44, %v27093_v23  ;;  %v12897_v0 = vmax.f32 %v29367_v2, %v27097_v15  ;;  %v13087_v48 = vmax.f32 %v12895_v35, %v12896_v26  ;;  %v13263_v18 = vmax.f32 %v13081_v27, %v12891_v47 }
 0x51e   :  { %v13264_v22 = vmax.f32 %v13082_v19, %v12892_v7  ;;  %v13268_v37 = vmax.f32 %v13086_v45, %v12896_v26  ;;  %v15118_v32 = vsel %vm15114_vm2, %v26917_v55, %v26731_v13  ;;  %v15301_v15 = vrot.slane %v15286_v20, %v19011_v56 }
 0x51f   :  { %v13084_v39 = vmax.f32 %v12892_v7, %v12893_v28  ;;  %v13085_v14 = vmax.f32 %v12893_v28, %v12894_v29  ;;  %v13088_v17 = vmax.f32 %v12896_v26, %v12897_v0  ;;  %v13265_v50 = vmax.f32 %v13083_v46, %v12893_v28 }
 0x520   :  { %v13269_v8 = vmax.f32 %v13087_v48, %v12897_v0  ;;  %v14299_v44 = vcombine.low %v13262_v54, %v13263_v18  ;;  %v15129_v45 = vsel %vm15125_vm3, %v15118_v32, %v26813_v4  ;;  %v29368_v19 = vcombine.high %v27010_v41, %v27010_v41 }
 0x521   :  { %v13266_v40 = vmax.f32 %v13084_v39, %v12894_v29  ;;  %v13267_v57 = vmax.f32 %v13085_v14, %v12895_v35  ;;  %v13270_v2 = vmax.f32 %v13088_v17, %v12898_v6  ;;  %v14300_v47 = vcombine.low %v13264_v22, %v13265_v50 }
 0x522   :  { %v14925_v24 = vpop.permute.xlu1 %14924  ;;  %v14347_v27 = vcombine.low %v13268_v37, %v13269_v8  ;;  %v27130_v48 = vrot.slane %v29368_v19, %v19011_v56  ;;  %v11641_v13 = vrot.slane %v26905_v63, %v19011_v56  ;;  %v15660_v20 = vcombine.low %v15301_v15, %v15315_v38 }
 0x523   :  { %v15131_v23 = vsel %vm15125_vm3, %v26880_v34, %v14925_v24  ;;  %v14346_v55 = vcombine.low %v13266_v40, %v13267_v57  ;;  %v14321_v50 = vrot.slane %v14299_v44, %v19011_v56  ;;  %v14328_v22 = vrot.slane %v14300_v47, %v19011_v56 }
 0x524   :  { %v14855_v6 = vpop.permute.xlu0 %14854  ;;  %v14361_v34 = vrot.slane %v14347_v27, %v19011_v56  ;;  %v15140_v41 = vsel %vm15136_vm5, %v15129_v45, %v26848_v43  ;;  %v14368_v7 = vrot.slane %v13270_v2, %v19011_v56  ;;  %v14337_v29 = vrot.slane %v26859_v25, %v19011_v56  ;;  %v29372_v45 = vld [vmem:[#allocation35_spill] sm:$0xff] }
 0x525   :  { %v14354_v18 = vrot.slane %v14346_v55, %v19011_v56  ;;  %v15151_v35 = vsel %vm15147_vm6, %v15140_v41, %v26869_v59  ;;  %v18208_v26 = vcombine.high %v15301_v15, %v15315_v38  ;;  %v14330_v54 = vcombine.low %v14321_v50, %v14328_v22  ;;  %v27159_v59 = vld [vmem:[%s28515_s2] ss:$0 sm:$0xff] }
 0x526   :  { %v15049_v63 = vpop.permute.xlu1 %15048  ;;  %v15669_v28 = vrot.slane %v26867_v31, %v19011_v56  ;;  %v15162_v0 = vsel %vm15158_vm8, %v15151_v35, %v15017_v5  ;;  %v11649_v46 = vcombine.high %v11641_v13, %v11641_v13  ;;  %v15308_v17 = vrot.slane %v27130_v48, %v19011_v56 }
 0x527   :  { %v14369_v43 = vcombine.low %v14354_v18, %v14361_v34  ;;  %v15676_v25 = vrot.slane %v15660_v20, %v19011_v56  ;;  %v14344_v37 = vrot.slane %v14330_v54, %v19011_v56  ;;  %v27163_v5 = vrot.slane %v11641_v13, %v19011_v56 }
 0x528   :  { %v27150_v39 = vpop.permute.xlu0 %14986  ;;  %v14383_v8 = vrot.slane %v14368_v7, %v19011_v56  ;;  %v27169_v40 = vrot.slane %v18208_v26, %v19011_v56  ;;  %v27175_v47 = vrot.slane %v11649_v46, %v19011_v56  ;;  %v15110_v19 = vsel %vm14765_vm14, %v29372_v45, %v14855_v6 }
 0x529   :  { %29369 = vst [vmem:[#allocation26_spill] sm:$0xff] %v27150_v39  ;;  %v18418_v14 = vpop.f32.mrb[4].mxu1  ;;  %v14376_v38 = vrot.slane %v14369_v43, %v19011_v56  ;;  %v14345_v57 = vcombine.low %v14337_v29, %v14344_v37  ;;  %v27179_v55 = vcombine.low %v15669_v28, %v15676_v25  ;;  %v27188_v22 = vcombine.high %v27163_v5, %v27163_v5 }
 0x52a   :  { %v9159_v31 = vadd.f32 %v27159_v59, %v18418_v14  ;;  %v9153_v15 = vpop.f32.mrb[5].mxu1  ;;  %v14957_v44 = vpop.permute.xlu1 %14956  ;;  %29371 = vst [vmem:[#allocation3_spill] sm:$0xff] %v27175_v47  ;;  %v15173_v6 = vsel %vm15169_vm9, %v15162_v0, %v15049_v63  ;;  %v27201_v46 = vcombine.high %v27175_v47, %v27175_v47 }
 0x52b   :  { %v9154_v32 = vadd.f32 %v27159_v59, %v9153_v15  ;;  %v27172_v2 = vsel %vm15136_vm5, %v15131_v23, %v14957_v44  ;;  %v14384_v27 = vcombine.low %v14376_v38, %v14383_v8  ;;  %14785 = vst.msk [vmem:[#allocation2 + $0x90] sm:$0xff] %vm14765_vm14, %v14345_v57 }
 0x52c   :  { %29370 = vst [vmem:[#allocation8_spill] sm:$0xff] %v27172_v2  ;;  %v9251_v24 = vmax.f32 %v9159_v31, 0.0  ;;  %v14895_v48 = vpop.permute.xlu0 %14894 }
 0x52d   :  { %v9250_v13 = vmax.f32 %v9154_v32, 0.0  ;;  %v27183_v20 = vsel %vm15114_vm2, %v15110_v19, %v14895_v48  ;;  %14786 = vst.msk [vmem:[#allocation2 + $0x98] sm:$0x1f] %vm14767_vm15, %v14384_v27 }
 0x52e   :  { %29373 = vst [vmem:[#allocation17_spill] sm:$0xff] %v27183_v20  ;;  %v11732_v50 = vcombine.high %v9251_v24, %v9251_v24  ;;  %v11739_v23 = vrot.slane %v9251_v24, %v19011_v56  ;;  %v15081_v34 = vpop.permute.xlu1 %15080 }
 0x52f   :  { %v11683_v41 = vcombine.high %v9250_v13, %v9250_v13  ;;  %v11690_v18 = vrot.slane %v9250_v13, %v19011_v56  ;;  %v15184_v7 = vsel %vm15180_vm10, %v15173_v6, %v15081_v34 }
 0x530   :  { %v11746_v29 = vrot.slane %v11732_v50, %v19011_v56  ;;  %v11747_v35 = vcombine.high %v11739_v23, %v11739_v23  ;;  %v27196_v26 = vrot.slane %v11739_v23, %v19011_v56  ;;  %v15318_v54 = vcombine.high %v15184_v7, %v15184_v7 }
 0x531   :  { %v15325_v28 = vrot.slane %v15184_v7, %v19011_v56  ;;  %v11697_v63 = vrot.slane %v11683_v41, %v19011_v56  ;;  %v11698_v25 = vcombine.high %v11690_v18, %v11690_v18  ;;  %v29376_v7 = vld [vmem:[#allocation25_spill] sm:$0xff] }
 0x532   :  { %29374 = vst [vmem:[#allocation9_spill] sm:$0xff] %v27196_v26  ;;  %v11748_v0 = vcombine.high %v11746_v29, %v11746_v29  ;;  %v27205_v43 = vrot.slane %v11746_v29, %v19011_v56  ;;  %v27208_v14 = vrot.slane %v11747_v35, %v19011_v56  ;;  %v15332_v37 = vrot.slane %v15318_v54, %v19011_v56 }
 0x533   :  { %v15333_v31 = vcombine.high %v15325_v28, %v15325_v28  ;;  %v15340_v15 = vrot.slane %v15325_v28, %v19011_v56  ;;  %v11777_v38 = vcombine.high %v27196_v26, %v27196_v26  ;;  %v18409_v8 = vpop.f32.mrb[44].mxu0 }
 0x534   :  { %29375 = vst [vmem:[#allocation12_spill] sm:$0xff] %v27205_v43  ;;  %v27215_v44 = vrot.slane %v11748_v0, %v19011_v56  ;;  %v11778_v32 = vcombine.high %v27205_v43, %v27205_v43  ;;  %v11779_v57 = vcombine.high %v27208_v14, %v27208_v14  ;;  %v9123_v27 = vpop.f32.mrb[45].mxu0  ;;  %v15347_v19 = vrot.slane %v15332_v37, %v19011_v56  ;;  %v27225_v23 = vld [vmem:[#allocation2 + $0x90] ss:$2 sm:$0x7f] }
 0x535   :  { %v15354_v48 = vrot.slane %v15333_v31, %v19011_v56  ;;  %v15355_v13 = vcombine.high %v15340_v15, %v15340_v15  ;;  %v15662_v50 = vcombine.low %v15308_v17, %v15340_v15  ;;  %v27232_v41 = vmax.f32 %v27201_v46, %v11777_v38  ;;  %14926 = vrot.lane.b32.xlu1 %v27225_v23, %s18678_s23 }
 0x536   :  { %v11780_v6 = vcombine.high %v27215_v44, %v27215_v44  ;;  %v27235_v29 = vmax.f32 %v29376_v7, %v11779_v57  ;;  %v27247_v37 = vmax.f32 %v26981_v33, %v11778_v32  ;;  %v11699_v31 = vcombine.high %v11697_v63, %v11697_v63 }
 0x537   :  { %v15356_v35 = vcombine.high %v15354_v48, %v15354_v48  ;;  %v15690_v54 = vrot.slane %v15662_v50, %v19011_v56  ;;  %v27238_v28 = vcombine.low %v15354_v48, %v15355_v13  ;;  %v11706_v15 = vrot.slane %v11690_v18, %v19011_v56 }
 0x538   :  { %v27252_v38 = vcombine.high %v26952_v12, %v26952_v12  ;;  %v27256_v57 = vcombine.high %v26969_v9, %v26969_v9  ;;  %v27261_v13 = vrot.slane %v11697_v63, %v19011_v56  ;;  %v27264_v50 = vrot.slane %v11698_v25, %v19011_v56 }
 0x539   :  { %29377 = vst [vmem:[#allocation5_spill] sm:$0xff] %v27238_v28  ;;  %v27258_v48 = vcombine.low %v15356_v35, %v15347_v19  ;;  %v27267_v33 = vrot.slane %v11699_v31, %v19011_v56  ;;  %v27269_v18 = vcombine.high %v11706_v15, %v11706_v15  ;;  %v27271_v32 = vmax.f32 %v11706_v15, %v11780_v6  ;;  %v29383_v31 = vld [vmem:[#allocation14_spill] sm:$0xff] }
 0x53a   :  { %29379 = vst [vmem:[#allocation20_spill] sm:$0xff] %v27261_v13  ;;  %v15692_v24 = vcombine.low %v27169_v40, %v15690_v54  ;;  %v11729_v17 = vcombine.high %v27261_v13, %v27261_v13  ;;  %v29381_v19 = vmax.f32 %v26926_v30, %v26955_v42  ;;  %v29382_v25 = vmax.f32 %v26931_v3, %v26969_v9 }
 0x53b   :  { %29378 = vst [vmem:[#allocation18_spill] sm:$0xff] %v27258_v48  ;;  %29380 = vst [vmem:[#allocation29_spill] sm:$0xff] %v27267_v33  ;;  %v29384_v0 = vrot.slane %v29383_v31, 1  ;;  %v11731_v6 = vcombine.high %v27267_v33, %v27267_v33  ;;  %v12925_v54 = vmax.f32 %v26984_v11, %v27264_v50  ;;  %v12926_v42 = vmax.f32 %v26991_v49, %v27269_v18 }
 0x53c   :  { %v12924_v63 = vmax.f32 %v29381_v19, %v11706_v15  ;;  %v12928_v35 = vmax.f32 %v29382_v25, %v27261_v13  ;;  %v27295_v15 = vmax.f32 %v27256_v57, %v11729_v17  ;;  %v27302_v25 = vrot.slane %v27225_v23, 1 }
 0x53d   :  { %15050 = vrot.lane.b32.xlu1 %v29384_v0, %s18682_s28  ;;  %v29386_v0 = vmax.f32 %v26977_v36, %v27002_v62  ;;  %v27307_v11 = vmax.f32 %v27163_v5, %v11731_v6  ;;  %v13113_v49 = vmax.f32 %v12925_v54, %v12926_v42  ;;  %v15072_v17 = vrot.slane %v29383_v31, 2 }
 0x53e   :  { %29385 = vst [vmem:[#allocation10_spill] sm:$0xff] %v27295_v15  ;;  %v13111_v9 = vmax.f32 %v27002_v62, %v12924_v63  ;;  %29387 = vst [vmem:[#allocation6_spill] sm:$0xff] %v27302_v25  ;;  %v13112_v34 = vmax.f32 %v12924_v63, %v12925_v54  ;;  %14856 = vrot.lane.b32.xlu0 %v27302_v25, %s18676_s10  ;;  %v9124_v2 = vadd.f32 %v27159_v59, %v9123_v27  ;;  %v29390_v27 = vld [vmem:[#allocation15_spill] sm:$0xff] }
 0x53f   :  { %v13292_v19 = vmax.f32 %v29386_v0, %v12924_v63  ;;  %29388 = vst [vmem:[#allocation30_spill] sm:$0xff] %v27307_v11  ;;  %v9129_v0 = vadd.f32 %v27159_v59, %v18409_v8  ;;  %v15699_v6 = vrot.slane %v27179_v55, %v19011_v56  ;;  %v15706_v63 = vrot.slane %v15692_v24, %v19011_v56 }
 0x540   :  { %v13293_v4 = vmax.f32 %v13111_v9, %v12925_v54  ;;  %v27316_v39 = vmax.f32 %v13112_v34, %v12926_v42  ;;  %v27323_v31 = vcombine.high %v27264_v50, %v27264_v50  ;;  %v29389_v54 = vld [vmem:[#allocation37_spill] sm:$0xff]  ;;  %v9244_v26 = vmax.f32 %v9124_v2, 0.0 }
 0x541   :  { %14958 = vrot.lane.b32.xlu1 %v27302_v25, %s18679_s24  ;;  %v11583_v9 = vcombine.high %v29389_v54, %v29389_v54  ;;  %v9245_v20 = vmax.f32 %v9129_v0, 0.0  ;;  %v11535_v34 = vcombine.high %v29390_v27, %v29390_v27  ;;  %v15707_v25 = vcombine.low %v15699_v6, %v15706_v63 }
 0x542   :  { %v14522_v40 = vcombine.low %v13292_v19, %v13293_v4  ;;  %v29391_v55 = vmax.f32 %v29390_v27, %v26952_v12  ;;  %v29392_v4 = vrot.slane %v29372_v45, 2  ;;  %v27341_v2 = vrot.slane %v27225_v23, 2 }
 0x543   :  { %v11438_v19 = vcombine.high %v9245_v20, %v9245_v20  ;;  %v11445_v0 = vrot.slane %v9245_v20, %v19011_v56  ;;  %v11389_v6 = vcombine.high %v9244_v26, %v9244_v26  ;;  %v27346_v63 = vrot.slane %v9244_v26, %v19011_v56  ;;  %18459 = vmatmul.mubr.msk.f32.gmra.mrb[16].mxu1 %vm15919_vm11, %v15707_v25 }
 0x544   :  { %v12927_v24 = vmax.f32 %v29391_v55, %v27323_v31  ;;  %14988 = vrot.lane.b32.xlu0 %v29392_v4, %s18680_s25  ;;  %29393 = vst [vmem:[#allocation35_spill] sm:$0xff] %v27341_v2  ;;  %v27352_v45 = vrot.slane %v14522_v40, %v19011_v56  ;;  %v29395_v20 = vmov 0.0  }
 0x545   :  { %15082 = vrot.lane.b32.xlu1 %v15072_v17, %s18683_s12  ;;  %v11452_v4 = vrot.slane %v11438_v19, %v19011_v56  ;;  %v11453_v8 = vcombine.high %v11445_v0, %v11445_v0  ;;  %v11461_v43 = vrot.slane %v11445_v0, %v19011_v56  ;;  %18461 = vmatprep.mubr.msk.f32.mxu1 %vm18685_vm4, %v29395_v20 }
 0x546   :  { %v13114_v12 = vmax.f32 %v12926_v42, %v12927_v24  ;;  %v27349_v55 = vmax.f32 %v13113_v49, %v12927_v24  ;;  %29394 = vst [vmem:[#allocation25_spill] sm:$0xff] %v27352_v45  ;;  %v11403_v17 = vrot.slane %v11389_v6, %v19011_v56  ;;  %v11404_v26 = vcombine.high %v27346_v63, %v27346_v63 }
 0x547   :  { %v27363_v42 = vrot.slane %v27346_v63, %v19011_v56  ;;  %v11454_v40 = vcombine.high %v11452_v4, %v11452_v4  ;;  %v11468_v49 = vrot.slane %v11452_v4, %v19011_v56  ;;  %v11475_v24 = vrot.slane %v11453_v8, %v19011_v56 }
 0x548   :  { %v27365_v25 = vmax.f32 %v13114_v12, %v12928_v35  ;;  %14896 = vrot.lane.b32.xlu0 %v27341_v2, %s18677_s17  ;;  %v11483_v19 = vcombine.high %v11461_v43, %v11461_v43  ;;  %v12704_v0 = vmax.f32 %v11461_v43, %v11535_v34  ;;  %v29396_v6 = vmax.f32 %v26748_v61, %v27033_v60 }
 0x549   :  { %v11405_v28 = vcombine.high %v11403_v17, %v11403_v17  ;;  %v27375_v63 = vrot.slane %v11403_v17, %v19011_v56  ;;  %14990 = vrot.lane.b32.xlu1 %v27341_v2, %s18680_s25  ;;  %v11482_v35 = vrot.slane %v11454_v40, %v19011_v56  ;;  %v11484_v12 = vcombine.high %v11468_v49, %v11468_v49 }
 0x54a   :  { %v12899_v20 = vmax.f32 %v29396_v6, %v11461_v43  ;;  %v11485_v48 = vcombine.high %v11475_v24, %v11475_v24  ;;  %v12705_v4 = vmax.f32 %v11475_v24, %v26997_v53  ;;  %v12706_v8 = vmax.f32 %v11483_v19, %v29389_v54  ;;  %v29398_v6 = vld [vmem:[#allocation23_spill] sm:$0xff]  ;;  %v29400_v54 = vld [vmem:[#allocation24_spill] sm:$0xff] }
 0x54b   :  { %v12708_v34 = vmax.f32 %v11468_v49, %v11583_v9  ;;  %v12900_v45 = vmax.f32 %v27053_v52, %v11475_v24  ;;  %v12901_v61 = vmax.f32 %v27063_v1, %v11483_v19  ;;  %v29397_v60 = vcombine.high %v26997_v53, %v26997_v53  ;;  %v29401_v9 = vld [vmem:[#allocation11_spill] sm:$0xff]  ;;  %v29404_v53 = vld [vmem:[#allocation16_spill] sm:$0xff] }
 0x54c   :  { %v12709_v17 = vmax.f32 %v11482_v35, %v27007_v51  ;;  %v12710_v2 = vmax.f32 %v11484_v12, %v29398_v6  ;;  %v29399_v40 = vmax.f32 %v26741_v58, %v27030_v21  ;;  %15020 = vrot.lane.b32.xlu0 %v27225_v23, %s18681_s27  ;;  %v29402_v52 = vmax.f32 %v29400_v54, %v29401_v9  ;;  %v29403_v1 = vld [vmem:[#allocation39_spill] sm:$0xff] }
 0x54d   :  { %v12707_v43 = vmax.f32 %v11485_v48, %v29397_v60  ;;  %v27400_v19 = vmax.f32 %v29403_v1, %v11482_v35  ;;  %v27403_v60 = vmax.f32 %v29404_v53, %v11484_v12  ;;  %v12914_v6 = vmax.f32 %v12704_v0, %v27252_v38 }
 0x54e   :  { %v12902_v13 = vmax.f32 %v29399_v40, %v11485_v48  ;;  %v27397_v24 = vmax.f32 %v29402_v52, %v11468_v49  ;;  %v12915_v11 = vmax.f32 %v12705_v4, %v27256_v57  ;;  %v12916_v58 = vmax.f32 %v12706_v8, %v27163_v5 }
 0x54f   :  { %v12917_v21 = vmax.f32 %v12707_v43, %v27175_v47  ;;  %v12918_v23 = vmax.f32 %v12708_v34, %v27188_v22  ;;  %v27411_v48 = vmax.f32 %v12709_v17, %v27201_v46  ;;  %v27414_v49 = vmax.f32 %v12710_v2, %v29376_v7 }
 0x550   :  { %v13089_v40 = vmax.f32 %v12899_v20, %v12900_v45  ;;  %v13090_v54 = vmax.f32 %v12900_v45, %v12901_v61  ;;  %v13091_v12 = vmax.f32 %v12901_v61, %v12902_v13  ;;  %v13092_v9 = vmax.f32 %v12902_v13, %v27397_v24 }
 0x551   :  { %v13102_v0 = vmax.f32 %v12914_v6, %v12915_v11  ;;  %v13103_v5 = vmax.f32 %v12915_v11, %v12916_v58  ;;  %v13104_v4 = vmax.f32 %v12916_v58, %v12917_v21  ;;  %v13105_v8 = vmax.f32 %v12917_v21, %v12918_v23 }
 0x552   :  { %v13106_v34 = vmax.f32 %v12918_v23, %v27411_v48  ;;  %v13107_v46 = vmax.f32 %v27411_v48, %v27414_v49  ;;  %v13271_v43 = vmax.f32 %v13089_v40, %v12901_v61  ;;  %v13272_v7 = vmax.f32 %v13090_v54, %v12902_v13 }
 0x553   :  { %v13273_v2 = vmax.f32 %v13091_v12, %v27397_v24  ;;  %v13274_v45 = vmax.f32 %v13092_v9, %v27400_v19  ;;  %v13284_v20 = vmax.f32 %v13102_v0, %v12916_v58  ;;  %v13285_v17 = vmax.f32 %v13103_v5, %v12917_v21 }
 0x554   :  { %v13286_v52 = vmax.f32 %v13104_v4, %v12918_v23  ;;  %v13287_v1 = vmax.f32 %v13105_v8, %v27411_v48  ;;  %v27426_v11 = vmax.f32 %v13106_v34, %v27414_v49  ;;  %v14385_v53 = vcombine.low %v13271_v43, %v13272_v7  ;;  %v29406_v4 = vld [vmem:[#allocation7_spill] sm:$0xff]  ;;  %v29407_v34 = vld [vmem:[#allocation4_spill] sm:$0xff] }
 0x555   :  { %v11426_v6 = vrot.slane %v11404_v26, %v19011_v56  ;;  %v14386_v57 = vcombine.low %v13273_v2, %v13274_v45  ;;  %v14473_v47 = vcombine.low %v13284_v20, %v13285_v17  ;;  %v11433_v61 = vrot.slane %v11405_v28, %v19011_v56  ;;  %v29405_v28 = vld [vmem:[#allocation38_spill] sm:$0xff]  ;;  %v29409_v20 = vld [vmem:[#allocation27_spill] sm:$0xff] }
 0x556   :  { %v11434_v13 = vcombine.high %v27363_v42, %v27363_v42  ;;  %v14395_v40 = vrot.slane %v14385_v53, %v19011_v56  ;;  %v14474_v58 = vcombine.low %v13286_v52, %v13287_v1  ;;  %v11435_v21 = vcombine.high %v27375_v63, %v27375_v63  ;;  %v29408_v2 = vld [vmem:[#allocation34_spill] sm:$0xff]  ;;  %v29412_v53 = vld [vmem:[#allocation32_spill] sm:$0xff] }
 0x557   :  { %v11436_v23 = vcombine.high %v11426_v6, %v11426_v6  ;;  %v14402_v54 = vrot.slane %v14386_v57, %v19011_v56  ;;  %v14483_v12 = vrot.slane %v14473_v47, %v19011_v56  ;;  %v11437_v9 = vcombine.high %v11433_v61, %v11433_v61  ;;  %v29410_v57 = vld [vmem:[#allocation21_spill] sm:$0xff] }
 0x558   :  { %v11486_v26 = vcombine.high %v11482_v35, %v11482_v35  ;;  %v14490_v0 = vrot.slane %v14474_v58, %v19011_v56  ;;  %v12696_v5 = vmax.f32 %v29405_v28, %v27363_v42  ;;  %v12697_v8 = vmax.f32 %v29406_v4, %v11426_v6  ;;  %v29411_v35 = vld [vmem:[#allocation31_spill] sm:$0xff]  ;;  %v18421_v4 = vpop.f32.mrb[6].mxu1 }
 0x559   :  { %v12698_v43 = vmax.f32 %v29407_v34, %v11434_v13  ;;  %v14417_v7 = vcombine.low %v14395_v40, %v14402_v54  ;;  %v12699_v45 = vmax.f32 %v29408_v2, %v11436_v23  ;;  %v12700_v17 = vmax.f32 %v29409_v20, %v27375_v63  ;;  %v29414_v23 = vld [vmem:[#allocation13_spill] sm:$0xff]  ;;  %v29415_v28 = vld [vmem:[#allocation19_spill] sm:$0xff] }
 0x55a   :  { %v12701_v52 = vmax.f32 %v29410_v57, %v11433_v61  ;;  %v27446_v47 = vcombine.low %v14483_v12, %v14490_v0  ;;  %v12702_v1 = vmax.f32 %v29411_v35, %v11435_v21  ;;  %v12703_v58 = vmax.f32 %v29412_v53, %v11437_v9  ;;  %v29416_v12 = vld [vmem:[#allocation22_spill] sm:$0xff]  ;;  %v29417_v0 = vld [vmem:[#allocation33_spill] sm:$0xff] }
 0x55b   :  { %v29413_v42 = vcombine.high %v27007_v51, %v27007_v51  ;;  %v27454_v13 = vrot.slane %v14417_v7, %v19011_v56  ;;  %v12906_v40 = vmax.f32 %v12696_v5, %v11486_v26  ;;  %v12907_v54 = vmax.f32 %v12697_v8, %v29414_v23  ;;  %v9163_v51 = vpop.f32.mrb[7].mxu1 }
 0x55c   :  { %v12908_v63 = vmax.f32 %v12698_v43, %v29415_v28  ;;  %v12909_v21 = vmax.f32 %v12699_v45, %v26926_v30  ;;  %v12910_v9 = vmax.f32 %v12700_v17, %v29416_v12  ;;  %v12911_v34 = vmax.f32 %v12701_v52, %v29417_v0 }
 0x55d   :  { %v12711_v6 = vmax.f32 %v11486_v26, %v29413_v42  ;;  %v12912_v2 = vmax.f32 %v12702_v1, %v29390_v27  ;;  %v12913_v7 = vmax.f32 %v12703_v58, %v26931_v3  ;;  %v13094_v5 = vmax.f32 %v27400_v19, %v27403_v60 }
 0x55e   :  { %v13095_v8 = vmax.f32 %v27403_v60, %v12906_v40  ;;  %v13096_v43 = vmax.f32 %v12906_v40, %v12907_v54  ;;  %v13097_v20 = vmax.f32 %v12907_v54, %v12908_v63  ;;  %v13098_v57 = vmax.f32 %v12908_v63, %v12909_v21 }
 0x55f   :  { %v12921_v26 = vmax.f32 %v12711_v6, %v26958_v10  ;;  %v13099_v30 = vmax.f32 %v12909_v21, %v12910_v9  ;;  %v13100_v45 = vmax.f32 %v12910_v9, %v12911_v34  ;;  %v13101_v17 = vmax.f32 %v12911_v34, %v12912_v2 }
 0x560   :  { %v29418_v3 = vmax.f32 %v27397_v24, %v27400_v19  ;;  %v13276_v1 = vmax.f32 %v13094_v5, %v12906_v40  ;;  %v13277_v53 = vmax.f32 %v13095_v8, %v12907_v54  ;;  %v13278_v58 = vmax.f32 %v13096_v43, %v12908_v63 }
 0x561   :  { %v13108_v52 = vmax.f32 %v27414_v49, %v12921_v26  ;;  %v13109_v35 = vmax.f32 %v12921_v26, %v26977_v36  ;;  %v13279_v42 = vmax.f32 %v13097_v20, %v12909_v21  ;;  %v13280_v6 = vmax.f32 %v13098_v57, %v12910_v9 }
 0x562   :  { %v13275_v27 = vmax.f32 %v29418_v3, %v27403_v60  ;;  %v13281_v23 = vmax.f32 %v13099_v30, %v12911_v34  ;;  %v13282_v28 = vmax.f32 %v13100_v45, %v12912_v2  ;;  %v13283_v12 = vmax.f32 %v13101_v17, %v12913_v7 }
 0x563   :  { %v13289_v0 = vmax.f32 %v13107_v46, %v12921_v26  ;;  %v13290_v61 = vmax.f32 %v13108_v52, %v26977_v36  ;;  %v13291_v10 = vmax.f32 %v13109_v35, %v27002_v62  ;;  %v14388_v33 = vcombine.low %v13277_v53, %v13278_v58 }
 0x564   :  { %v14387_v15 = vcombine.low %v13275_v27, %v13276_v1  ;;  %v14434_v24 = vcombine.low %v13279_v42, %v13280_v6  ;;  %v14435_v19 = vcombine.low %v13281_v23, %v13282_v28  ;;  %v14456_v60 = vrot.slane %v13283_v12, %v19011_v56 }
 0x565   :  { %v14475_v40 = vcombine.low %v27426_v11, %v13289_v0  ;;  %v9169_v54 = vadd.f32 %v27159_v59, %v18421_v4  ;;  %v14416_v21 = vrot.slane %v14388_v33, %v19011_v56  ;;  %v14476_v49 = vcombine.low %v13290_v61, %v13291_v10 }
 0x566   :  { %v14409_v63 = vrot.slane %v14387_v15, %v19011_v56  ;;  %v14442_v48 = vrot.slane %v14434_v24, %v19011_v56  ;;  %v14449_v36 = vrot.slane %v14435_v19, %v19011_v56  ;;  %v14471_v62 = vrot.slane %v14456_v60, %v19011_v56 }
 0x567   :  { %v14497_v46 = vrot.slane %v14475_v40, %v19011_v56  ;;  %v9253_v9 = vmax.f32 %v9169_v54, 0.0  ;;  %v14504_v2 = vrot.slane %v14476_v49, %v19011_v56  ;;  %v9164_v11 = vadd.f32 %v27159_v59, %v9163_v51 }
 0x568   :  { %v14418_v34 = vcombine.low %v14409_v63, %v14416_v21  ;;  %v14523_v15 = vcombine.low %v27316_v39, %v27349_v55  ;;  %v14457_v4 = vcombine.low %v14442_v48, %v14449_v36  ;;  %v14544_v10 = vrot.slane %v27365_v25, %v19011_v56 }
 0x569   :  { %v11830_v33 = vcombine.high %v9253_v9, %v9253_v9  ;;  %v11837_v7 = vrot.slane %v9253_v9, %v19011_v56  ;;  %v14506_v26 = vcombine.low %v14497_v46, %v14504_v2  ;;  %v9252_v5 = vmax.f32 %v9164_v11, 0.0  ;;  %v29425_v11 = vld [vmem:[#allocation30_spill] sm:$0xff] }
 0x56a   :  { %v14432_v61 = vrot.slane %v14418_v34, %v19011_v56  ;;  %v14537_v8 = vrot.slane %v14523_v15, %v19011_v56  ;;  %v14464_v43 = vrot.slane %v14457_v4, %v19011_v56  ;;  %v29419_v3 = vrot.slane %v27446_v47, %v19011_v56  ;;  %v29424_v34 = vld [vmem:[#allocation10_spill] sm:$0xff] }
 0x56b   :  { %v11844_v51 = vrot.slane %v11830_v33, %v19011_v56  ;;  %v11845_v20 = vcombine.high %v11837_v7, %v11837_v7  ;;  %v27501_v39 = vrot.slane %v11837_v7, %v19011_v56  ;;  %v14520_v57 = vrot.slane %v14506_v26, %v19011_v56 }
 0x56c   :  { %v14433_v55 = vcombine.low %v27454_v13, %v14432_v61  ;;  %v11781_v30 = vcombine.high %v9252_v5, %v9252_v5  ;;  %v11788_v25 = vrot.slane %v9252_v5, %v19011_v56  ;;  %v14472_v45 = vcombine.low %v14464_v43, %v14471_v62  ;;  %v29422_v62 = vld [vmem:[#allocation29_spill] sm:$0xff] }
 0x56d   :  { %v11846_v17 = vcombine.high %v11844_v51, %v11844_v51  ;;  %v27507_v52 = vrot.slane %v11844_v51, %v19011_v56  ;;  %v27510_v35 = vrot.slane %v11845_v20, %v19011_v56  ;;  %v14521_v27 = vcombine.low %v29419_v3, %v14520_v57  ;;  %v29427_v61 = vld [vmem:[#allocation25_spill] sm:$0xff] }
 0x56e   :  { %14787 = vst.msk [vmem:[#allocation2 + $0xa0] sm:$0xff] %vm14765_vm14, %v14433_v55  ;;  %v27518_v13 = vcombine.high %v27501_v39, %v27501_v39  ;;  %v29420_v1 = vmax.f32 %v27188_v22, %v27208_v14  ;;  %v11795_v58 = vrot.slane %v11781_v30, %v19011_v56  ;;  %v29421_v22 = vmax.f32 %v26962_v16, %v27215_v44  ;;  %v29430_v3 = vld [vmem:[#allocation5_spill] sm:$0xff] }
 0x56f   :  { %14788 = vst.msk [vmem:[#allocation2 + $0xa8] sm:$0x1f] %vm14767_vm15, %v14472_v45  ;;  %v27529_v42 = vrot.slane %v11846_v17, %v19011_v56  ;;  %v27533_v47 = vcombine.high %v27507_v52, %v27507_v52  ;;  %v12934_v6 = vmax.f32 %v27232_v41, %v27510_v35  ;;  %v11796_v28 = vcombine.high %v11788_v25, %v11788_v25  ;;  %v29428_v45 = vld [vmem:[#allocation18_spill] sm:$0xff] }
 0x570   :  { %v27524_v53 = vmax.f32 %v29420_v1, %v27501_v39  ;;  %v12937_v14 = vmax.f32 %v29421_v22, %v27507_v52  ;;  %14789 = vst.msk [vmem:[#allocation2 + $0xb0] sm:$0xff] %vm14765_vm14, %v14521_v27  ;;  %v12935_v23 = vmax.f32 %v27235_v29, %v27518_v13  ;;  %v11797_v12 = vcombine.high %v11795_v58, %v11795_v58 }
 0x571   :  { %v11804_v0 = vrot.slane %v11788_v25, %v19011_v56  ;;  %v12938_v24 = vmax.f32 %v27247_v37, %v27529_v42  ;;  %v27549_v41 = vmax.f32 %v27271_v32, %v27533_v47  ;;  %v27553_v16 = vrot.slane %v11795_v58, %v19011_v56 }
 0x572   :  { %v13119_v19 = vmax.f32 %v27524_v53, %v12934_v6  ;;  %v13120_v44 = vmax.f32 %v12934_v6, %v12935_v23  ;;  %v27556_v60 = vrot.slane %v11796_v28, %v19011_v56  ;;  %v27559_v29 = vrot.slane %v11797_v12, %v19011_v56  ;;  %v29432_v28 = vld [vmem:[#allocation28_spill] sm:$0xff] }
 0x573   :  { %v11826_v40 = vcombine.high %v11804_v0, %v11804_v0  ;;  %v13123_v54 = vmax.f32 %v12937_v14, %v12938_v24  ;;  %v27563_v37 = vcombine.high %v27553_v16, %v27553_v16  ;;  %v27567_v32 = vcombine.high %v27529_v42, %v27529_v42  ;;  %v29433_v12 = vld [vmem:[#allocation12_spill] sm:$0xff] }
 0x574   :  { %v13301_v63 = vmax.f32 %v13119_v19, %v12935_v23  ;;  %v11828_v21 = vcombine.high %v27556_v60, %v27556_v60  ;;  %v12730_v48 = vmax.f32 %v27264_v50, %v11804_v0  ;;  %v12731_v49 = vmax.f32 %v27269_v18, %v27556_v60  ;;  %v29426_v50 = vld [vmem:[#allocation20_spill] sm:$0xff] }
 0x575   :  { %v27575_v36 = vmax.f32 %v27323_v31, %v11826_v40  ;;  %v29423_v46 = vmax.f32 %v27252_v38, %v29422_v62  ;;  %v12930_v2 = vmax.f32 %v29424_v34, %v27559_v29  ;;  %v12931_v15 = vmax.f32 %v29425_v11, %v27563_v37  ;;  %v29435_v40 = vld [vmem:[#allocation6_spill] sm:$0xff] }
 0x576   :  { %v13124_v4 = vmax.f32 %v12938_v24, %v27549_v41  ;;  %v27587_v33 = vmax.f32 %v29426_v50, %v11828_v21  ;;  %v27590_v7 = vmax.f32 %v12730_v48, %v27567_v32  ;;  %v27593_v31 = vmax.f32 %v13123_v54, %v27549_v41  ;;  %v27596_v26 = vld [vmem:[#allocation2 + $0xa0] ss:$2 sm:$0x7f]  ;;  %v29437_v21 = vld [vmem:[#allocation9_spill] sm:$0xff] }
 0x577   :  { %v12929_v9 = vmax.f32 %v29423_v46, %v27553_v16  ;;  %v14545_v38 = vcombine.low %v29427_v61, %v14537_v8  ;;  %v13116_v43 = vmax.f32 %v12930_v2, %v12931_v15  ;;  %v14559_v51 = vrot.slane %v14544_v10, %v19011_v56  ;;  %14928 = vrot.lane.b32.xlu0 %v27596_v26, %s18678_s23  ;;  %v29436_v54 = vld [vmem:[#allocation3_spill] sm:$0xff] }
 0x578   :  { %v27602_v20 = vrot.slane %v27596_v26, 1  ;;  %v13125_v55 = vmax.f32 %v27549_v41, %v27590_v7  ;;  %v27607_v57 = vmax.f32 %v13124_v4, %v27590_v7  ;;  %v27612_v30 = vcombine.high %v27510_v35, %v27510_v35  ;;  %v29439_v50 = vld [vmem:[#allocation35_spill] sm:$0xff] }
 0x579   :  { %v13115_v5 = vmax.f32 %v12929_v9, %v12930_v2  ;;  %v14552_v8 = vrot.slane %v14545_v38, %v19011_v56  ;;  %v27618_v10 = vcombine.high %v27559_v29, %v27559_v29  ;;  %v29429_v17 = vrot.slane %v29428_v45, %v19011_v56 }
 0x57a   :  { %14960 = vrot.lane.b32.xlu1 %v27602_v20, %s18679_s24  ;;  %v29431_v27 = vrot.slane %v29430_v3, %v19011_v56  ;;  %v14610_v22 = vcombine.low %v27593_v31, %v27607_v57  ;;  %v29434_v0 = vmax.f32 %v29432_v28, %v29433_v12  ;;  %v29438_v48 = vmax.f32 %v29436_v54, %v29437_v21 }
 0x57b   :  { %v13297_v25 = vmax.f32 %v13115_v5, %v12931_v15  ;;  %v14560_v58 = vcombine.low %v14552_v8, %v14559_v51  ;;  %15052 = vrot.lane.b32.xlu0 %v29435_v40, %s18682_s28 }
 0x57c   :  { %v27626_v1 = vcombine.low %v29431_v27, %v29429_v17  ;;  %v12936_v19 = vmax.f32 %v29434_v0, %v27612_v30  ;;  %v12932_v62 = vmax.f32 %v29438_v48, %v27618_v10 }
 0x57d   :  { %14790 = vst.msk [vmem:[#allocation2 + $0xb8] sm:$0x1f] %vm14767_vm15, %v14560_v58 }
 0x57e   :  { %v13121_v46 = vmax.f32 %v12935_v23, %v12936_v19  ;;  %v13122_v9 = vmax.f32 %v12936_v19, %v12937_v14  ;;  %v13302_v34 = vmax.f32 %v13120_v44, %v12936_v19  ;;  %v13117_v2 = vmax.f32 %v12931_v15, %v12932_v62  ;;  %15084 = vrot.lane.b32.xlu1 %v29439_v50, %s18683_s12 }
 0x57f   :  { %v13118_v11 = vmax.f32 %v12932_v62, %v27524_v53  ;;  %v13298_v4 = vmax.f32 %v13116_v43, %v12932_v62  ;;  %15022 = vrot.lane.b32.xlu0 %v27596_v26, %s18681_s27 }
 0x580   :  { %v13303_v61 = vmax.f32 %v13121_v46, %v12937_v14  ;;  %v13304_v38 = vmax.f32 %v13122_v9, %v12938_v24  ;;  %v14563_v5 = vcombine.low %v13301_v63, %v13302_v34  ;;  %v13299_v51 = vmax.f32 %v13117_v2, %v27524_v53  ;;  %v18424_v23 = vpop.f32.mrb[8].mxu1 }
 0x581   :  { %v13300_v8 = vmax.f32 %v13118_v11, %v12934_v6  ;;  %v14561_v45 = vcombine.low %v13297_v25, %v13298_v4  ;;  %v9179_v44 = vadd.f32 %v27159_v59, %v18424_v23  ;;  %v9173_v15 = vpop.f32.mrb[9].mxu1  ;;  %v14880_v14 = vrot.slane %v27596_v26, 2 }
 0x582   :  { %v14564_v17 = vcombine.low %v13303_v61, %v13304_v38  ;;  %15054 = vrot.lane.b32.xlu1 %v27602_v20, %s18682_s28  ;;  %v14585_v24 = vrot.slane %v14563_v5, %v19011_v56  ;;  %v9174_v6 = vadd.f32 %v27159_v59, %v9173_v15 }
 0x583   :  { %v14562_v3 = vcombine.low %v13299_v51, %v13300_v8  ;;  %v9255_v63 = vmax.f32 %v9179_v44, 0.0  ;;  %v14571_v43 = vrot.slane %v14561_v45, %v19011_v56  ;;  %14992 = vrot.lane.b32.xlu0 %v14880_v14, %s18680_s25 }
 0x584   :  { %v14592_v53 = vrot.slane %v14564_v17, %v19011_v56  ;;  %v27657_v27 = vld [vmem:[#allocation2 + $0xb0] ss:$2 sm:$0x7f]  ;;  %v9254_v28 = vmax.f32 %v9174_v6, 0.0 }
 0x585   :  { %v14578_v25 = vrot.slane %v14562_v3, %v19011_v56  ;;  %v11928_v12 = vcombine.high %v9255_v63, %v9255_v63  ;;  %v11935_v0 = vrot.slane %v9255_v63, %v19011_v56  ;;  %v27663_v21 = vrot.slane %v27657_v27, 1 }
 0x586   :  { %v14594_v58 = vcombine.low %v14585_v24, %v14592_v53  ;;  %15086 = vrot.lane.b32.xlu1 %v14880_v14, %s18683_s12  ;;  %v11879_v40 = vcombine.high %v9254_v28, %v9254_v28  ;;  %v11886_v54 = vrot.slane %v9254_v28, %v19011_v56  ;;  %v27666_v48 = vrot.slane %v27657_v27, 2 }
 0x587   :  { %v14593_v19 = vcombine.low %v14571_v43, %v14578_v25  ;;  %v11942_v62 = vrot.slane %v11928_v12, %v19011_v56  ;;  %v11943_v46 = vcombine.high %v11935_v0, %v11935_v0  ;;  %v27670_v9 = vrot.slane %v11935_v0, %v19011_v56  ;;  %15024 = vrot.lane.b32.xlu0 %v27657_v27, %s18681_s27 }
 0x588   :  { %v14608_v34 = vrot.slane %v14594_v58, %v19011_v56  ;;  %v11893_v2 = vrot.slane %v11879_v40, %v19011_v56  ;;  %v11894_v11 = vcombine.high %v11886_v54, %v11886_v54  ;;  %v11902_v4 = vrot.slane %v11886_v54, %v19011_v56  ;;  %v18427_v53 = vpop.f32.mrb[10].mxu1 }
 0x589   :  { %v14601_v50 = vrot.slane %v14593_v19, %v19011_v56  ;;  %v11944_v61 = vcombine.high %v11942_v62, %v11942_v62  ;;  %v27679_v38 = vrot.slane %v11942_v62, %v19011_v56  ;;  %v27682_v5 = vrot.slane %v11943_v46, %v19011_v56  ;;  %v9183_v58 = vpop.f32.mrb[11].mxu1 }
 0x58a   :  { %v11973_v51 = vcombine.high %v27670_v9, %v27670_v9  ;;  %14860 = vrot.lane.b32.xlu1 %v27663_v21, %s18676_s10  ;;  %v12739_v8 = vmax.f32 %v27510_v35, %v27670_v9  ;;  %v11895_v45 = vcombine.high %v11893_v2, %v11893_v2  ;;  %v27691_v23 = vrot.slane %v11893_v2, %v19011_v56 }
 0x58b   :  { %v27694_v17 = vrot.slane %v11894_v11, %v19011_v56  ;;  %v27697_v44 = vrot.slane %v11944_v61, %v19011_v56  ;;  %v11974_v15 = vcombine.high %v27679_v38, %v27679_v38  ;;  %v11975_v3 = vcombine.high %v27682_v5, %v27682_v5  ;;  %14858 = vrot.lane.b32.xlu0 %v27602_v20, %s18676_s10 }
 0x58c   :  { %v27704_v24 = vmax.f32 %v27612_v30, %v11973_v51  ;;  %v12743_v6 = vmax.f32 %v27529_v42, %v27679_v38  ;;  %v27711_v63 = vrot.slane %v11895_v45, %v19011_v56  ;;  %v27713_v43 = vcombine.high %v11902_v4, %v11902_v4 }
 0x58d   :  { %v11925_v25 = vcombine.high %v27691_v23, %v27691_v23  ;;  %v11976_v30 = vcombine.high %v27697_v44, %v27697_v44  ;;  %v12745_v28 = vmax.f32 %v27567_v32, %v11974_v15  ;;  %v11926_v20 = vcombine.high %v27694_v17, %v27694_v17 }
 0x58e   :  { %v12735_v12 = vmax.f32 %v27559_v29, %v27691_v23  ;;  %14898 = vrot.lane.b32.xlu1 %v14880_v14, %s18677_s17  ;;  %v11927_v0 = vcombine.high %v27711_v63, %v27711_v63  ;;  %v12941_v40 = vmax.f32 %v12731_v49, %v11902_v4  ;;  %v12942_v32 = vmax.f32 %v27575_v36, %v27694_v17 }
 0x58f   :  { %v27728_v19 = vmax.f32 %v27618_v10, %v11925_v25  ;;  %v12746_v54 = vmax.f32 %v11902_v4, %v11976_v30  ;;  %v12943_v62 = vmax.f32 %v27587_v33, %v27713_v43  ;;  %v14609_v46 = vcombine.low %v14601_v50, %v14608_v34  ;;  %15056 = vrot.lane.b32.xlu0 %v27663_v21, %s18682_s28 }
 0x590   :  { %v9189_v14 = vadd.f32 %v27159_v59, %v18427_v53  ;;  %v13126_v10 = vmax.f32 %v27590_v7, %v12941_v40  ;;  %v13127_v2 = vmax.f32 %v12941_v40, %v12942_v32  ;;  %v13307_v18 = vmax.f32 %v13125_v55, %v12941_v40 }
 0x591   :  { %v12740_v60 = vmax.f32 %v27518_v13, %v27682_v5  ;;  %14791 = vst.msk [vmem:[#allocation2 + $0xc0] sm:$0xff] %vm14765_vm14, %v14609_v46  ;;  %v12742_v36 = vmax.f32 %v27507_v52, %v11975_v3  ;;  %v12744_v33 = vmax.f32 %v27533_v47, %v27697_v44  ;;  %v9184_v34 = vadd.f32 %v27159_v59, %v9183_v58 }
 0x592   :  { %v9257_v49 = vmax.f32 %v9189_v14, 0.0  ;;  %15088 = vrot.lane.b32.xlu1 %v27666_v48, %s18683_s12  ;;  %v13308_v11 = vmax.f32 %v13126_v10, %v12942_v32  ;;  %v13309_v4 = vmax.f32 %v13127_v2, %v12943_v62  ;;  %v27754_v41 = vmax.f32 %v27553_v16, %v11926_v20 }
 0x593   :  { %v12736_v13 = vmax.f32 %v27563_v37, %v27711_v63  ;;  %v9256_v52 = vmax.f32 %v9184_v34, 0.0  ;;  %v27760_v50 = vmax.f32 %v27501_v39, %v11927_v0  ;;  %14900 = vrot.lane.b32.xlu0 %v27666_v48, %s18677_s17  ;;  %v14618_v45 = vrot.slane %v14610_v22, %v19011_v56 }
 0x594   :  { %v12026_v7 = vcombine.high %v9257_v49, %v9257_v49  ;;  %v12033_v55 = vrot.slane %v9257_v49, %v19011_v56  ;;  %v14611_v59 = vcombine.low %v13307_v18, %v13308_v11  ;;  %v14632_v47 = vrot.slane %v13309_v4, %v19011_v56 }
 0x595   :  { %v11977_v51 = vcombine.high %v9256_v52, %v9256_v52  ;;  %v11984_v15 = vrot.slane %v9256_v52, %v19011_v56 }
 0x596   :  { %v12040_v61 = vrot.slane %v12026_v7, %v19011_v56  ;;  %v12041_v16 = vcombine.high %v12033_v55, %v12033_v55  ;;  %v12049_v5 = vrot.slane %v12033_v55, %v19011_v56  ;;  %v14625_v39 = vrot.slane %v14611_v59, %v19011_v56 }
 0x597   :  { %v14647_v44 = vrot.slane %v14632_v47, %v19011_v56  ;;  %14930 = vrot.lane.b32.xlu0 %v27657_v27, %s18678_s23  ;;  %v11991_v31 = vrot.slane %v11977_v51, %v19011_v56  ;;  %v11992_v57 = vcombine.high %v11984_v15, %v11984_v15  ;;  %v12000_v4 = vrot.slane %v11984_v15, %v19011_v56 }
 0x598   :  { %v12042_v3 = vcombine.high %v12040_v61, %v12040_v61  ;;  %v12056_v53 = vrot.slane %v12040_v61, %v19011_v56  ;;  %v12063_v25 = vrot.slane %v12041_v16, %v19011_v56  ;;  %v12071_v58 = vcombine.high %v12049_v5, %v12049_v5  ;;  %v18430_v34 = vpop.f32.mrb[12].mxu1 }
 0x599   :  { %v14633_v30 = vcombine.low %v14618_v45, %v14625_v39  ;;  %v27778_v20 = vmax.f32 %v12740_v60, %v12049_v5  ;;  %v11993_v10 = vcombine.high %v11991_v31, %v11991_v31  ;;  %v12747_v45 = vmax.f32 %v27694_v17, %v12000_v4 }
 0x59a   :  { %v12070_v22 = vrot.slane %v12042_v3, %v19011_v56  ;;  %v12072_v0 = vcombine.high %v12056_v53, %v12056_v53  ;;  %v12073_v40 = vcombine.high %v12063_v25, %v12063_v25  ;;  %v12951_v32 = vmax.f32 %v27704_v24, %v12063_v25 }
 0x59b   :  { %v14640_v62 = vrot.slane %v14633_v30, %v19011_v56  ;;  %v12952_v46 = vmax.f32 %v12742_v36, %v12071_v58  ;;  %v12954_v14 = vmax.f32 %v12744_v33, %v12056_v53  ;;  %14962 = vrot.lane.b32.xlu0 %v27663_v21, %s18679_s24  ;;  %v12007_v36 = vrot.slane %v11991_v31, %v19011_v56  ;;  %v9193_v33 = vpop.f32.mrb[13].mxu1 }
 0x59c   :  { %v12953_v2 = vmax.f32 %v12743_v6, %v12073_v40  ;;  %v12955_v18 = vmax.f32 %v12745_v28, %v12070_v22  ;;  %v27787_v60 = vmax.f32 %v12746_v54, %v12072_v0  ;;  %v13134_v49 = vmax.f32 %v27778_v20, %v12951_v32 }
 0x59d   :  { %v14648_v11 = vcombine.low %v14640_v62, %v14647_v44  ;;  %v13135_v24 = vmax.f32 %v12951_v32, %v12952_v46  ;;  %v27796_v28 = vrot.slane %v11992_v57, %v19011_v56  ;;  %v12021_v21 = vrot.slane %v11993_v10, %v19011_v56 }
 0x59e   :  { %v13136_v7 = vmax.f32 %v12952_v46, %v12953_v2  ;;  %v13137_v55 = vmax.f32 %v12953_v2, %v12954_v14  ;;  %v13138_v42 = vmax.f32 %v12954_v14, %v12955_v18  ;;  %v13316_v38 = vmax.f32 %v13134_v49, %v12952_v46 }
 0x59f   :  { %14792 = vst.msk [vmem:[#allocation2 + $0xc8] sm:$0x1f] %vm14767_vm15, %v14648_v11  ;;  %v13317_v6 = vmax.f32 %v13135_v24, %v12953_v2  ;;  %v12022_v54 = vcombine.high %v12000_v4, %v12000_v4  ;;  %v12023_v47 = vcombine.high %v12007_v36, %v12007_v36  ;;  %v12074_v61 = vcombine.high %v12070_v22, %v12070_v22 }
 0x5a0   :  { %v13318_v52 = vmax.f32 %v13136_v7, %v12954_v14  ;;  %v13319_v59 = vmax.f32 %v13137_v55, %v12955_v18  ;;  %14994 = vrot.lane.b32.xlu0 %v27666_v48, %s18680_s25  ;;  %v12024_v5 = vcombine.high %v27796_v28, %v27796_v28  ;;  %v12025_v51 = vcombine.high %v12021_v21, %v12021_v21  ;;  %v18664_v14 = vld [vmem:[%s28515_s2] ss:$0 sm:$0xff] }
 0x5a1   :  { %v14652_v16 = vcombine.low %v13316_v38, %v13317_v6  ;;  %v12944_v44 = vmax.f32 %v27754_v41, %v12022_v54  ;;  %v12946_v15 = vmax.f32 %v12736_v13, %v12007_v36  ;;  %v12947_v3 = vmax.f32 %v27728_v19, %v12021_v21 }
 0x5a2   :  { %v14698_v39 = vcombine.low %v13318_v52, %v13319_v59  ;;  %v12945_v48 = vmax.f32 %v12735_v12, %v12024_v5  ;;  %v12948_v53 = vmax.f32 %v27760_v50, %v12023_v47  ;;  %v12949_v25 = vmax.f32 %v12739_v8, %v12025_v51 }
 0x5a3   :  { %v12957_v17 = vmax.f32 %v12747_v45, %v12074_v61  ;;  %v13130_v58 = vmax.f32 %v12946_v15, %v12947_v3  ;;  %v13139_v41 = vmax.f32 %v12955_v18, %v27787_v60  ;;  %v13320_v29 = vmax.f32 %v13138_v42, %v27787_v60  ;;  %v15019_v61 = vpop.permute.xlu0 %15018  ;;  %v29441_v45 = vld [vmem:[#allocation26_spill] sm:$0xff] }
 0x5a4   :  { %v13128_v30 = vmax.f32 %v12944_v44, %v12945_v48  ;;  %v13129_v31 = vmax.f32 %v12945_v48, %v12946_v15  ;;  %v13131_v37 = vmax.f32 %v12947_v3, %v12948_v53  ;;  %v13132_v63 = vmax.f32 %v12948_v53, %v12949_v25 }
 0x5a5   :  { %v13133_v19 = vmax.f32 %v12949_v25, %v27778_v20  ;;  %v13312_v13 = vmax.f32 %v13130_v58, %v12948_v53  ;;  %v13321_v23 = vmax.f32 %v13139_v41, %v12957_v17  ;;  %v14706_v9 = vrot.slane %v14698_v39, %v19011_v56  ;;  %v29442_v39 = vld [vmem:[#allocation36_spill] sm:$0xff] }
 0x5a6   :  { %v14819_v12 = vld [vmem:[#allocation2 + $0xc0] ss:$2 sm:$0x7f]  ;;  %v13310_v50 = vmax.f32 %v13128_v30, %v12946_v15  ;;  %v13311_v57 = vmax.f32 %v13129_v31, %v12947_v3  ;;  %v13313_v22 = vmax.f32 %v13131_v37, %v12949_v25  ;;  %v13314_v35 = vmax.f32 %v13132_v63, %v27778_v20 }
 0x5a7   :  { %14932 = vrot.lane.b32.xlu1 %v14819_v12, %s18678_s23  ;;  %v13315_v8 = vmax.f32 %v13133_v19, %v12951_v32  ;;  %v14699_v0 = vcombine.low %v13320_v29, %v13321_v23  ;;  %v14945_v40 = vrot.slane %v14819_v12, 1  ;;  %15026 = vrot.lane.b32.xlu0 %v14819_v12, %s18681_s27  ;;  %v9194_v10 = vadd.f32 %v18664_v14, %v9193_v33  ;;  %v27867_v63 = vld [vmem:[%s28517_s4] ss:$0 sm:$0xff]  ;;  %s18687_s4 = smov 16  }
 0x5a8   :  { %v14649_v62 = vcombine.low %v13310_v50, %v13311_v57  ;;  %v14650_v46 = vcombine.low %v13312_v13, %v13313_v22  ;;  %v12748_v2 = vmax.f32 %v27713_v43, %v27796_v28  ;;  %v13140_v49 = vmax.f32 %v27787_v60, %v12957_v17  ;;  %v14927_v43 = vpop.permute.xlu1 %14926  ;;  %v29440_v60 = vld [vmem:[#allocation17_spill] sm:$0xff] }
 0x5a9   :  { %v14651_v20 = vcombine.low %v13314_v35, %v13315_v8  ;;  %v14713_v18 = vrot.slane %v14699_v0, %v19011_v56  ;;  %v9258_v11 = vmax.f32 %v9194_v10, 0.0  ;;  %v14680_v24 = vrot.slane %v14652_v16, %v19011_v56 }
 0x5aa   :  { %v14659_v32 = vrot.slane %v14649_v62, %v19011_v56  ;;  %v14666_v34 = vrot.slane %v14650_v46, %v19011_v56  ;;  %v14977_v7 = vrot.slane %v14819_v12, 2  ;;  %v15132_v42 = vsel %vm15125_vm3, %v29440_v60, %v14927_v43 }
 0x5ab   :  { %14964 = vrot.lane.b32.xlu1 %v14945_v40, %s18679_s24  ;;  %v14673_v4 = vrot.slane %v14651_v20, %v19011_v56  ;;  %v14721_v36 = vcombine.low %v14706_v9, %v14713_v18  ;;  %15058 = vrot.lane.b32.xlu0 %v14945_v40, %s18682_s28  ;;  %v12081_v55 = vrot.slane %v9258_v11, %v19011_v56  ;;  %s18688_s24 = smov 32  }
 0x5ac   :  { %v14681_v33 = vcombine.low %v14659_v32, %v14666_v34  ;;  %v15152_v44 = vsel %vm15147_vm6, %v29442_v39, %v29441_v45  ;;  %v15748_v62 = vrot.slane %v27626_v1, %v19011_v56  ;;  %v29443_v34 = vmov 0.0   ;;  %v29444_v39 = vld [vmem:[#allocation8_spill] sm:$0xff] }
 0x5ad   :  { %v14682_v38 = vcombine.low %v14673_v4, %v14680_v24  ;;  %v12088_v6 = vrot.slane %v12081_v55, %v19011_v56  ;;  %v15163_v15 = vsel %vm15158_vm8, %v15152_v44, %v15019_v61  ;;  %v14728_v3 = vrot.slane %v14721_v36, %v19011_v56 }
 0x5ae   :  { %v14689_v28 = vrot.slane %v14681_v33, %v19011_v56 }
 0x5af   :  { %14996 = vrot.lane.b32.xlu1 %v14977_v7, %s18680_s25  ;;  %v14696_v21 = vrot.slane %v14682_v38, %v19011_v56  ;;  %15090 = vrot.lane.b32.xlu0 %v14977_v7, %s18683_s12  ;;  %v15051_v54 = vpop.permute.xlu1 %15050  ;;  %v12958_v52 = vmax.f32 %v12748_v2, %v12088_v6  ;;  %s18689_s25 = smov 48  }
 0x5b0   :  { %v15174_v53 = vsel %vm15169_vm9, %v15163_v15, %v15051_v54 }
 0x5b1   :  { %v14697_v59 = vcombine.low %v14689_v28, %v14696_v21  ;;  %v13322_v47 = vmax.f32 %v13140_v49, %v12958_v52  ;;  %v14857_v21 = vpop.permute.xlu0 %14856 }
 0x5b3   :  { %14793 = vst.msk [vmem:[#allocation2 + $0xd0] sm:$0xff] %vm14765_vm14, %v14697_v59  ;;  %v14959_v16 = vpop.permute.xlu1 %14958  ;;  %v14720_v5 = vrot.slane %v13322_v47, %v19011_v56 }
 0x5b4   :  { %v27847_v51 = vsel %vm15136_vm5, %v15132_v42, %v14959_v16 }
 0x5b5   :  { %v14735_v48 = vrot.slane %v14720_v5, %v19011_v56 }
 0x5b6   :  { %v14989_v52 = vpop.permute.xlu0 %14988 }
 0x5b7   :  { %v15083_v25 = vpop.permute.xlu1 %15082  ;;  %v14736_v17 = vcombine.low %v14728_v3, %v14735_v48  ;;  %v15153_v44 = vsel %vm15147_vm6, %v29444_v39, %v14989_v52 }
 0x5b8   :  { %v27857_v58 = vsel %vm15180_vm10, %v15174_v53, %v15083_v25 }
 0x5b9   :  { %v15364_v41 = vrot.slane %v27857_v58, %v19011_v56  ;;  %14794 = vst.msk [vmem:[#allocation2 + $0xd8] sm:$0x1f] %vm14767_vm15, %v14736_v17  ;;  %v16004_v29 = vpop.f32.mrb[14].mxu1  ;;  %v15357_v5 = vcombine.high %v27857_v58, %v27857_v58  ;;  %vm17211_vm15 = vcmask 523264  }
 0x5ba   :  { %v16005_v57 = vadd.f32 %v27867_v63, %v16004_v29  ;;  %v18457_v22 = vpop.f32.mrb[15].mxu1  ;;  %v14897_v59 = vpop.permute.xlu0 %14896 }
 0x5bb   :  { %v15372_v30 = vcombine.high %v15364_v41, %v15364_v41  ;;  %v15379_v31 = vrot.slane %v15364_v41, %v19011_v56  ;;  %v14991_v61 = vpop.permute.xlu1 %14990  ;;  %v15371_v48 = vrot.slane %v15357_v5, %v19011_v56 }
 0x5bc   :  { %v16038_v9 = vmax.f32 %v16005_v57, 0.0  ;;  %v15154_v58 = vsel %vm15147_vm6, %v27847_v51, %v14991_v61 }
 0x5bd   :  { %v15393_v37 = vrot.slane %v15372_v30, %v19011_v56 }
 0x5be   :  { %v16052_v0 = vcombine.high %v16038_v9, %v16038_v9  ;;  %v16059_v40 = vrot.slane %v16038_v9, %v19011_v56  ;;  %v15021_v47 = vpop.permute.xlu0 %15020 }
 0x5bf   :  { %v15710_v19 = vcombine.low %v15379_v31, %v15393_v37  ;;  %v18209_v13 = vcombine.high %v15379_v31, %v15393_v37  ;;  %v15164_v15 = vsel %vm15158_vm8, %v15153_v44, %v15021_v47  ;;  %v15386_v31 = vrot.slane %v15371_v48, %v19011_v56 }
 0x5c0   :  { %v14821_v50 = vld [vmem:[#allocation2 + $0xd0] ss:$2 sm:$0x7f]  ;;  %v27879_v14 = vrot.slane %v16052_v0, %v19011_v56  ;;  %v16067_v10 = vcombine.high %v16059_v40, %v16059_v40  ;;  %v16075_v2 = vrot.slane %v16059_v40, %v19011_v56 }
 0x5c1   :  { %v15732_v23 = vrot.slane %v15710_v19, %v19011_v56  ;;  %v15739_v12 = vrot.slane %v18209_v13, %v19011_v56  ;;  %15028 = vrot.lane.b32.xlu1 %v14821_v50, %s18681_s27  ;;  %v15041_v8 = vrot.slane %v14821_v50, 1  ;;  %v15073_v18 = vrot.slane %v14821_v50, 2  ;;  %s18690_s27 = smov 64  }
 0x5c2   :  { %v16089_v49 = vrot.slane %v16067_v10, %v19011_v56  ;;  %v16097_v32 = vcombine.high %v16075_v2, %v16075_v2  ;;  %v27887_v1 = vrot.slane %v27879_v14, %v19011_v56 }
 0x5c3   :  { %v15741_v35 = vcombine.low %v15732_v23, %v15739_v12 }
 0x5c4   :  { %v16368_v11 = vcombine.low %v16075_v2, %v16089_v49  ;;  %v16512_v24 = vcombine.low %v16089_v49, %v16097_v32  ;;  %v18224_v4 = vcombine.high %v16075_v2, %v16089_v49  ;;  %v16099_v36 = vcombine.high %v16089_v49, %v16089_v49 }
 0x5c5   :  { %v15755_v46 = vrot.slane %v15741_v35, %v19011_v56  ;;  %15060 = vrot.lane.b32.xlu1 %v15041_v8, %s18682_s28  ;;  %v16682_v55 = vrot.slane %v27887_v1, %v19011_v56  ;;  %v16382_v28 = vrot.slane %v16097_v32, %v19011_v56  ;;  %s18691_s28 = smov 96  }
 0x5c6   :  { %v16519_v43 = vrot.slane %v16512_v24, %v19011_v56  ;;  %v16526_v33 = vrot.slane %v16099_v36, %v19011_v56  ;;  %v16675_v7 = vrot.slane %v18224_v4, %v19011_v56  ;;  %v16375_v6 = vrot.slane %v16368_v11, %v19011_v56 }
 0x5c7   :  { %v15756_v20 = vcombine.low %v15748_v62, %v15755_v46 }
 0x5c8   :  { %v16527_v60 = vcombine.low %v16519_v43, %v16526_v33  ;;  %v27896_v42 = vcombine.low %v16675_v7, %v16682_v55  ;;  %v27902_v54 = vcombine.low %v16375_v6, %v16382_v28 }
 0x5c9   :  { %18462 = vmatmul.mubr.msk.f32.gmra.mrb[18].mxu1 %vm15919_vm11, %v15756_v20  ;;  %15092 = vrot.lane.b32.xlu1 %v15073_v18, %s18683_s12  ;;  %v18665_v20 = vld [vmem:[#allocation2 + $0x90] ss:$2 sm:$0x7f] }
 0x5ca   :  { %18464 = vmatprep.mubr.msk.f32.mxu1 %vm18685_vm4, %v29443_v34  ;;  %v16534_v38 = vrot.slane %v16527_v60, %v19011_v56  ;;  %v15111_v18 = vsel %vm14765_vm14, %v18665_v20, %v14857_v21  ;;  %v16068_v20 = vcombine.high %v27879_v14, %v27879_v14 }
 0x5cb   :  { %v15122_v49 = vsel %vm15114_vm2, %v15111_v18, %v14897_v59 }
 0x5cc   :  { %16650 = vrot.lane.b32.xlu0 %v16534_v38, %s18687_s4 }
 0x5e9   :  { %v14929_v16 = vpop.permute.xlu0 %14928 }
 0x5ea   :  { %v15133_v36 = vsel %vm15125_vm3, %v15122_v49, %v14929_v16 }
 0x5ec   :  { %v14961_v45 = vpop.permute.xlu1 %14960 }
 0x5ed   :  { %v15053_v3 = vpop.permute.xlu0 %15052  ;;  %v15144_v38 = vsel %vm15136_vm5, %v15133_v36, %v14961_v45 }
 0x5ee   :  { %v15175_v53 = vsel %vm15169_vm9, %v15164_v15, %v15053_v3 }
 0x5f0   :  { %v15085_v25 = vpop.permute.xlu1 %15084 }
 0x5f1   :  { %v15186_v17 = vsel %vm15180_vm10, %v15175_v53, %v15085_v25  ;;  %v15023_v30 = vpop.permute.xlu0 %15022 }
 0x5f2   :  { %v15403_v41 = vrot.slane %v15186_v17, %v19011_v56  ;;  %v15396_v37 = vcombine.high %v15186_v17, %v15186_v17  ;;  %v15165_v23 = vsel %vm15158_vm8, %v15154_v58, %v15023_v30 }
 0x5f4   :  { %v15411_v19 = vcombine.high %v15403_v41, %v15403_v41  ;;  %v15418_v13 = vrot.slane %v15403_v41, %v19011_v56  ;;  %v15055_v29 = vpop.permute.xlu1 %15054  ;;  %v15410_v35 = vrot.slane %v15396_v37, %v19011_v56 }
 0x5f5   :  { %v14993_v22 = vpop.permute.xlu0 %14992  ;;  %v15176_v8 = vsel %vm15169_vm9, %v15165_v23, %v15055_v29 }
 0x5f6   :  { %v15432_v12 = vrot.slane %v15411_v19, %v19011_v56  ;;  %v15433_v50 = vcombine.high %v15418_v13, %v15418_v13  ;;  %v15757_v57 = vcombine.low %v15386_v31, %v15418_v13  ;;  %v15425_v32 = vrot.slane %v15410_v35, %v19011_v56 }
 0x5f7   :  { %v15155_v21 = vsel %vm15147_vm6, %v15144_v38, %v14993_v22 }
 0x5f8   :  { %v15758_v9 = vcombine.low %v15432_v12, %v15433_v50  ;;  %v15087_v0 = vpop.permute.xlu1 %15086  ;;  %v15434_v40 = vcombine.high %v15432_v12, %v15432_v12  ;;  %v15767_v62 = vrot.slane %v15757_v57, %v19011_v56 }
 0x5f9   :  { %v15187_v51 = vsel %vm15180_vm10, %v15176_v8, %v15087_v0  ;;  %v15025_v2 = vpop.permute.xlu0 %15024 }
 0x5fa   :  { %v15774_v46 = vrot.slane %v15758_v9, %v19011_v56  ;;  %v15442_v10 = vrot.slane %v15187_v51, %v19011_v56  ;;  %v15759_v43 = vcombine.low %v15434_v40, %v15425_v32  ;;  %v15435_v60 = vcombine.high %v15187_v51, %v15187_v51 }
 0x5fb   :  { %v15166_v47 = vsel %vm15158_vm8, %v15155_v21, %v15025_v2 }
 0x5fc   :  { %v15789_v11 = vcombine.low %v15767_v62, %v15774_v46  ;;  %v15450_v24 = vcombine.high %v15442_v10, %v15442_v10  ;;  %v27928_v4 = vpop.permute.xlu1 %14860  ;;  %v15457_v33 = vrot.slane %v15442_v10, %v19011_v56  ;;  %v15781_v52 = vrot.slane %v15759_v43, %v19011_v56 }
 0x5fd   :  { %v27933_v55 = vpop.permute.xlu0 %14858  ;;  %v15449_v16 = vrot.slane %v15435_v60, %v19011_v56 }
 0x5fe   :  { %v15471_v7 = vrot.slane %v15450_v24, %v19011_v56  ;;  %v15797_v48 = vrot.slane %v15789_v11, %v19011_v56  ;;  %v16096_v24 = vrot.slane %v16068_v20, %v19011_v56 }
 0x5ff   :  { %v15464_v25 = vrot.slane %v15449_v16, %v19011_v56 }
 0x600   :  { %v15760_v6 = vcombine.low %v15457_v33, %v15471_v7  ;;  %v27936_v28 = vpop.permute.xlu1 %14898  ;;  %v18210_v37 = vcombine.high %v15457_v33, %v15471_v7  ;;  %v18222_v7 = vcombine.high %v27887_v1, %v16096_v24  ;;  %v16100_v21 = vcombine.high %v16096_v24, %v16096_v24 }
 0x601   :  { %v15057_v61 = vpop.permute.xlu0 %15056 }
 0x602   :  { %v15788_v59 = vrot.slane %v15760_v6, %v19011_v56  ;;  %v15177_v5 = vsel %vm15169_vm9, %v15166_v47, %v15057_v61  ;;  %v15816_v22 = vrot.slane %v18210_v37, %v19011_v56 }
 0x604   :  { %v15790_v39 = vcombine.low %v15781_v52, %v15788_v59  ;;  %v15089_v44 = vpop.permute.xlu1 %15088  ;;  %v16098_v52 = vcombine.high %v27887_v1, %v27887_v1 }
 0x605   :  { %v15188_v45 = vsel %vm15180_vm10, %v15177_v5, %v15089_v44  ;;  %v27951_v31 = vpop.permute.xlu0 %14900  ;;  %v15112_v44 = vsel %vm14765_vm14, %v27596_v26, %v27933_v55 }
 0x606   :  { %v15474_v15 = vcombine.high %v15188_v45, %v15188_v45  ;;  %v15481_v3 = vrot.slane %v15188_v45, %v19011_v56  ;;  %v15804_v53 = vrot.slane %v15790_v39, %v19011_v56  ;;  %v16542_v39 = vrot.slane %v18222_v7, %v19011_v56 }
 0x608   :  { %v15488_v17 = vrot.slane %v15474_v15, %v19011_v56  ;;  %v15489_v41 = vcombine.high %v15481_v3, %v15481_v3  ;;  %v15496_v30 = vrot.slane %v15481_v3, %v19011_v56  ;;  %v15805_v58 = vcombine.low %v15797_v48, %v15804_v53 }
 0x609   :  { %v14931_v9 = vpop.permute.xlu0 %14930 }
 0x60a   :  { %v15510_v19 = vrot.slane %v15489_v41, %v19011_v56  ;;  %v15511_v13 = vcombine.high %v15496_v30, %v15496_v30  ;;  %v15807_v29 = vcombine.low %v15464_v25, %v15496_v30  ;;  %18465 = vmatmul.mubr.msk.f32.gmra.mrb[20].mxu1 %vm15919_vm11, %v15805_v58  ;;  %v15503_v23 = vrot.slane %v15488_v17, %v19011_v56 }
 0x60b   :  { %18467 = vmatprep.mubr.msk.f32.mxu1 %vm18685_vm4, %v29443_v34  ;;  %v16391_v41 = vcombine.low %v16096_v24, %v16098_v52  ;;  %v15123_v30 = vsel %vm15114_vm2, %v15112_v44, %v27936_v28 }
 0x60c   :  { %v15512_v12 = vcombine.high %v15510_v19, %v15510_v19  ;;  %v15808_v50 = vcombine.low %v15510_v19, %v15511_v13  ;;  %v15823_v57 = vrot.slane %v15807_v29, %v19011_v56 }
 0x60d   :  { %v14963_v62 = vpop.permute.xlu0 %14962 }
 0x60e   :  { %v15809_v35 = vcombine.low %v15512_v12, %v15503_v23  ;;  %v15830_v8 = vrot.slane %v15808_v50, %v19011_v56  ;;  %v15838_v51 = vcombine.low %v15816_v22, %v15823_v57  ;;  %v15134_v23 = vsel %vm15125_vm3, %v15123_v30, %v14931_v9 }
 0x60f   :  { %v15145_v12 = vsel %vm15136_vm5, %v15134_v23, %v14963_v62  ;;  %v16405_v62 = vrot.slane %v16100_v21, %v19011_v56 }
 0x610   :  { %v15837_v0 = vrot.slane %v15809_v35, %v19011_v56  ;;  %v15846_v46 = vrot.slane %v15838_v51, %v19011_v56 }
 0x612   :  { %v15839_v40 = vcombine.low %v15830_v8, %v15837_v0  ;;  %v14995_v18 = vpop.permute.xlu0 %14994  ;;  %v16690_v0 = vrot.slane %v27896_v42, %v19011_v56 }
 0x613   :  { %v15156_v35 = vsel %vm15147_vm6, %v15145_v12, %v14995_v18 }
 0x614   :  { %v15853_v10 = vrot.slane %v15839_v40, %v19011_v56 }
 0x616   :  { %v15854_v2 = vcombine.low %v15846_v46, %v15853_v10  ;;  %v16009_v49 = vpop.f32.mrb[16].mxu1  ;;  %v16398_v10 = vrot.slane %v16391_v41, %v19011_v56 }
 0x617   :  { %v16010_v32 = vadd.f32 %v27867_v63, %v16009_v49  ;;  %v18460_v11 = vpop.f32.mrb[17].mxu1 }
 0x618   :  { %18468 = vmatmul.mubr.msk.f32.gmra.mrb[22].mxu1 %vm15919_vm11, %v15854_v2  ;;  %v16406_v24 = vcombine.low %v16398_v10, %v16405_v62 }
 0x619   :  { %18470 = vmatprep.mubr.msk.f32.mxu1 %vm18685_vm4, %v29443_v34  ;;  %v16039_v36 = vmax.f32 %v16010_v32, 0.0  ;;  %v15027_v60 = vpop.permute.xlu0 %15026  ;;  %v14933_v45 = vpop.permute.xlu1 %14932 }
 0x61a   :  { %v15167_v9 = vsel %vm15158_vm8, %v15156_v35, %v15027_v60  ;;  %v28032_v7 = vrot.slane %v16406_v24, %v19011_v56 }
 0x61b   :  { %v16101_v43 = vcombine.high %v16039_v36, %v16039_v36  ;;  %v16108_v33 = vrot.slane %v16039_v36, %v19011_v56 }
 0x61d   :  { %v16115_v14 = vrot.slane %v16101_v43, %v19011_v56  ;;  %v16116_v38 = vcombine.high %v16108_v33, %v16108_v33  ;;  %v16124_v6 = vrot.slane %v16108_v33, %v19011_v56  ;;  %v15059_v1 = vpop.permute.xlu0 %15058  ;;  %v14965_v50 = vpop.permute.xlu1 %14964 }
 0x61e   :  { %v15178_v2 = vsel %vm15169_vm9, %v15167_v9, %v15059_v1 }
 0x61f   :  { %v16117_v59 = vcombine.high %v16115_v14, %v16115_v14  ;;  %v16131_v47 = vrot.slane %v16115_v14, %v19011_v56  ;;  %v16138_v61 = vrot.slane %v16116_v38, %v19011_v56  ;;  %v16549_v16 = vrot.slane %v16124_v6, %v19011_v56 }
 0x620   :  { %v16691_v5 = vcombine.low %v16100_v21, %v16124_v6  ;;  %v15113_v14 = vsel %vm14765_vm14, %v27657_v27, %v27928_v4  ;;  %vm17204_vm14 = vcmask 392192  }
 0x621   :  { %v27985_v15 = vrot.slane %v16117_v59, %v19011_v56  ;;  %v16148_v3 = vcombine.high %v16138_v61, %v16138_v61  ;;  %v16550_v48 = vcombine.low %v16542_v39, %v16549_v16  ;;  %v16147_v53 = vcombine.high %v16131_v47, %v16131_v47  ;;  %v15091_v8 = vpop.permute.xlu0 %15090  ;;  %v14997_v32 = vpop.permute.xlu1 %14996 }
 0x622   :  { %v18220_v58 = vcombine.high %v16124_v6, %v16138_v61  ;;  %v16698_v26 = vrot.slane %v16691_v5, %v19011_v56  ;;  %v16705_v29 = vrot.slane %v16138_v61, %v19011_v56  ;;  %v16428_v20 = vrot.slane %v16131_v47, %v19011_v56 }
 0x623   :  { %v16558_v25 = vcombine.low %v16148_v3, %v16131_v47  ;;  %v16714_v17 = vcombine.low %v16131_v47, %v27985_v15  ;;  %v16557_v37 = vrot.slane %v16550_v48, %v19011_v56  ;;  %v16572_v19 = vrot.slane %v27985_v15, %v19011_v56 }
 0x624   :  { %v16728_v28 = vrot.slane %v16147_v53, %v19011_v56  ;;  %v16706_v22 = vcombine.low %v16698_v26, %v16705_v29  ;;  %v16421_v40 = vrot.slane %v18220_v58, %v19011_v56  ;;  %v15189_v42 = vsel %vm15180_vm10, %v15178_v2, %v15091_v8 }
 0x625   :  { %v16565_v55 = vrot.slane %v16558_v25, %v19011_v56  ;;  %v16721_v13 = vrot.slane %v16714_v17, %v19011_v56  ;;  %16652 = vrot.lane.b32.xlu1 %v16557_v37, %s18687_s4  ;;  %v15520_v36 = vrot.slane %v15189_v42, %v19011_v56  ;;  %v15124_v38 = vsel %vm15114_vm2, %v15113_v14, %v27951_v31  ;;  %vm28471_vm2 = vmpackc.low %vm17197_vm13, %vm17197_vm13 }
 0x626   :  { %v16429_v49 = vcombine.low %v16421_v40, %v16428_v20  ;;  %v28021_v11 = vrot.slane %v16706_v22, %v19011_v56  ;;  %v15135_v6 = vsel %vm15125_vm3, %v15124_v38, %v14933_v45  ;;  %v15513_v21 = vcombine.high %v15189_v42, %v15189_v42 }
 0x627   :  { %v16573_v57 = vcombine.low %v16565_v55, %v16572_v19  ;;  %v16729_v51 = vcombine.low %v16721_v13, %v16728_v28  ;;  %v15528_v60 = vcombine.high %v15520_v36, %v15520_v36  ;;  %v15146_v59 = vsel %vm15136_vm5, %v15135_v6, %v14965_v50 }
 0x628   :  { %v28029_v43 = vrot.slane %v16429_v49, %v19011_v56  ;;  %v15157_v61 = vsel %vm15147_vm6, %v15146_v59, %v14997_v32  ;;  %v15535_v27 = vrot.slane %v15520_v36, %v19011_v56  ;;  %v15527_v16 = vrot.slane %v15513_v21, %v19011_v56 }
 0x629   :  { %v28007_v46 = vrot.slane %v16573_v57, %v19011_v56  ;;  %16806 = vrot.lane.b32.xlu1 %v16690_v0, %s18688_s24  ;;  %v28018_v18 = vrot.slane %v16729_v51, %v19011_v56  ;;  %v15549_v47 = vrot.slane %v15528_v60, %v19011_v56  ;;  %vm18088_vm3 = vcmask 71680  }
 0x62a   :  { %v15542_v48 = vrot.slane %v15527_v16, %v19011_v56 }
 0x62b   :  { %16654 = vrot.lane.b32.xlu0 %v28007_v46, %s18687_s4  ;;  %v15855_v39 = vcombine.low %v15535_v27, %v15549_v47  ;;  %v18211_v44 = vcombine.high %v15535_v27, %v15549_v47 }
 0x62d   :  { %16810 = vrot.lane.b32.xlu1 %v28018_v18, %s18688_s24  ;;  %v15865_v17 = vrot.slane %v15855_v39, %v19011_v56  ;;  %v15872_v41 = vrot.slane %v18211_v44, %v19011_v56 }
 0x62f   :  { %16808 = vrot.lane.b32.xlu0 %v28021_v11, %s18688_s24  ;;  %v15887_v13 = vcombine.low %v15865_v17, %v15872_v41 }
 0x631   :  { %16872 = vrot.lane.b32.xlu1 %v28029_v43, %s18689_s25  ;;  %v15895_v57 = vrot.slane %v15887_v13, %v19011_v56 }
 0x633   :  { %v15029_v33 = vpop.permute.xlu1 %15028  ;;  %16870 = vrot.lane.b32.xlu0 %v28032_v7, %s18689_s25 }
 0x634   :  { %v15168_v4 = vsel %vm15158_vm8, %v15157_v61, %v15029_v33 }
 0x635   :  { %16934 = vrot.lane.b32.xlu1 %v16557_v37, %s18690_s27 }
 0x637   :  { %v15061_v52 = vpop.permute.xlu1 %15060 }
 0x638   :  { %v15179_v31 = vsel %vm15169_vm9, %v15168_v4, %v15061_v52 }
 0x63b   :  { %v15093_v5 = vpop.permute.xlu1 %15092 }
 0x63c   :  { %v15190_v45 = vsel %vm15180_vm10, %v15179_v31, %v15093_v5 }
 0x63d   :  { %v15552_v3 = vcombine.high %v15190_v45, %v15190_v45  ;;  %v15559_v1 = vrot.slane %v15190_v45, %v19011_v56 }
 0x63f   :  { %v15567_v53 = vcombine.high %v15559_v1, %v15559_v1  ;;  %v15574_v25 = vrot.slane %v15559_v1, %v19011_v56  ;;  %v15566_v30 = vrot.slane %v15552_v3, %v19011_v56 }
 0x641   :  { %v15588_v58 = vrot.slane %v15567_v53, %v19011_v56  ;;  %v15589_v37 = vcombine.high %v15574_v25, %v15574_v25  ;;  %v15857_v26 = vcombine.low %v15542_v48, %v15574_v25  ;;  %v15581_v29 = vrot.slane %v15566_v30, %v19011_v56 }
 0x643   :  { %v15590_v55 = vcombine.high %v15588_v58, %v15588_v58  ;;  %v15858_v19 = vcombine.low %v15588_v58, %v15589_v37  ;;  %v15879_v23 = vrot.slane %v15857_v26, %v19011_v56 }
 0x645   :  { %v15886_v28 = vrot.slane %v15858_v19, %v19011_v56  ;;  %v15904_v50 = vcombine.low %v15590_v55, %v15581_v29  ;;  %v17388_v29 = vld [vmem:[%s28518_s5] sm:$0xff] }
 0x647   :  { %v15888_v12 = vcombine.low %v15879_v23, %v15886_v28  ;;  %v15911_v8 = vrot.slane %v15904_v50, %v19011_v56  ;;  %v17389_v23 = vld [vmem:[%s28518_s5 + $0x8] sm:$0xff] }
 0x648   :  { %v18520_v28 = vpack.c.bf16 %v17389_v23, %v17388_v29 }
 0x649   :  { %v15902_v22 = vrot.slane %v15888_v12, %v19011_v56  ;;  %v15918_v0 = vrot.slane %v15911_v8, %v19011_v56 }
 0x64a   :  { %18521 = vmatpush1.bf16.msra.mxu1 %v18520_v28 }
 0x64b   :  { %v15903_v35 = vcombine.low %v15895_v57, %v15902_v22 }
 0x64d   :  { %18471 = vmatmul.mubr.msk.f32.gmra.mrb[24].mxu1 %vm15919_vm11, %v15903_v35 }
 0x64e   :  { %18473 = vmatprep.mubr.msk.f32.mxu1 %vm18685_vm4, %v29443_v34  ;;  %v16149_v34 = vcombine.high %v27985_v15, %v27985_v15 }
 0x651   :  { %18474 = vmatmul.mubr.msk.f32.gmra.mrb[26].mxu1 %vm15919_vm11, %v15918_v0  ;;  %v29445_v0 = vmov 0.0|0.0  }
 0x652   :  { %18522 = vmatprep.subr.bf16.mxu1 %v29445_v0 }
 0x69c   :  { %v16014_v51 = vpop.f32.mrb[18].mxu1 }
 0x69d   :  { %v16015_v40 = vadd.f32 %v27867_v63, %v16014_v51  ;;  %v18463_v9 = vpop.f32.mrb[19].mxu1 }
 0x69f   :  { %v16040_v10 = vmax.f32 %v16015_v40, 0.0 }
 0x6a1   :  { %v16150_v62 = vcombine.high %v16040_v10, %v16040_v10  ;;  %v16157_v2 = vrot.slane %v16040_v10, %v19011_v56 }
 0x6a3   :  { %v16164_v20 = vrot.slane %v16150_v62, %v19011_v56  ;;  %v16165_v42 = vcombine.high %v16157_v2, %v16157_v2  ;;  %v16173_v49 = vrot.slane %v16157_v2, %v19011_v56 }
 0x6a5   :  { %v16166_v32 = vcombine.high %v16164_v20, %v16164_v20  ;;  %v16187_v24 = vrot.slane %v16165_v42, %v19011_v56  ;;  %v16195_v36 = vcombine.high %v16173_v49, %v16173_v49  ;;  %v16824_v33 = vcombine.low %v16149_v34, %v16173_v49 }
 0x6a6   :  { %v28086_v15 = vrot.slane %v16164_v20, %v19011_v56 }
 0x6a7   :  { %v16888_v60 = vcombine.low %v16173_v49, %v16187_v24  ;;  %v16831_v14 = vrot.slane %v16824_v33, %v19011_v56  ;;  %v16838_v38 = vrot.slane %v16187_v24, %v19011_v56  ;;  %v28081_v6 = vrot.slane %v16166_v32, %v19011_v56 }
 0x6a8   :  { %v16902_v52 = vrot.slane %v16195_v36, %v19011_v56  ;;  %v16952_v61 = vcombine.low %v16187_v24, %v16195_v36  ;;  %v16197_v4 = vcombine.high %v16187_v24, %v16187_v24  ;;  %v16196_v5 = vcombine.high %v28086_v15, %v28086_v15 }
 0x6a9   :  { %v16895_v21 = vrot.slane %v16888_v60, %v19011_v56  ;;  %v16839_v59 = vcombine.low %v16831_v14, %v16838_v38  ;;  %v17016_v16 = vcombine.low %v28086_v15, %v28081_v6  ;;  %v18227_v17 = vcombine.high %v28086_v15, %v28081_v6 }
 0x6aa   :  { %v16959_v39 = vrot.slane %v16952_v61, %v19011_v56  ;;  %v16966_v44 = vrot.slane %v16197_v4, %v19011_v56  ;;  %v17030_v3 = vrot.slane %v16196_v5, %v19011_v56  ;;  %v16198_v40 = vcombine.high %v28081_v6, %v28081_v6  ;;  %v17391_v4 = vld [vmem:[%s28518_s5 + $0x18] sm:$0xff] }
 0x6ab   :  { %v16903_v47 = vcombine.low %v16895_v21, %v16902_v52  ;;  %v16846_v27 = vrot.slane %v16839_v59, %v19011_v56  ;;  %v17023_v45 = vrot.slane %v17016_v16, %v19011_v56  ;;  %v17080_v9 = vcombine.low %v28081_v6, %v16196_v5 }
 0x6ac   :  { %v16967_v1 = vcombine.low %v16959_v39, %v16966_v44  ;;  %v17094_v33 = vrot.slane %v16198_v40, %v19011_v56  ;;  %v17151_v44 = vrot.slane %v18227_v17, %v19011_v56 }
 0x6ad   :  { %v28092_v31 = vrot.slane %v16903_v47, %v19011_v56  ;;  %16874 = vrot.lane.b32.xlu0 %v16846_v27, %s18689_s25  ;;  %v17031_v48 = vcombine.low %v17023_v45, %v17030_v3  ;;  %v17087_v36 = vrot.slane %v17080_v9, %v19011_v56 }
 0x6ae   :  { %v28112_v53 = vrot.slane %v16967_v1, %v19011_v56 }
 0x6af   :  { %16938 = vrot.lane.b32.xlu1 %v28092_v31, %s18690_s27  ;;  %v17038_v25 = vrot.slane %v17031_v48, %v19011_v56  ;;  %v17095_v59 = vcombine.low %v17087_v36, %v17094_v33 }
 0x6b1   :  { %16936 = vrot.lane.b32.xlu0 %v28007_v46, %s18690_s27 }
 0x6b3   :  { %17000 = vrot.lane.b32.xlu1 %v28018_v18, %s18683_s12 }
 0x6b5   :  { %16998 = vrot.lane.b32.xlu0 %v28021_v11, %s18683_s12 }
 0x6b7   :  { %17062 = vrot.lane.b32.xlu1 %v28029_v43, %s18691_s28 }
 0x6b9   :  { %17002 = vrot.lane.b32.xlu0 %v28112_v53, %s18683_s12 }
 0x6bb   :  { %17066 = vrot.lane.b32.xlu1 %v17038_v25, %s18691_s28 }
 0x6bd   :  { %17064 = vrot.lane.b32.xlu0 %v16846_v27, %s18691_s28  ;;  %v17390_v27 = vld [vmem:[%s28518_s5 + $0x10] sm:$0xff] }
 0x6be   :  { %v18523_v39 = vpack.c.bf16 %v17391_v4, %v17390_v27  ;;  %v17399_v27 = vld [vmem:[%s28518_s5 + $0x58] sm:$0xff] }
 0x6c0   :  { %18524 = vmatpush1.bf16.msra.mxu1 %v18523_v39 }
 0x6c1   :  { %18525 = vmatprep.subr.bf16.mxu1 %v29445_v0 }
 0x6dd   :  { %v16019_v11 = vpop.f32.mrb[20].mxu1 }
 0x6de   :  { %v16020_v41 = vadd.f32 %v27867_v63, %v16019_v11  ;;  %v18466_v30 = vpop.f32.mrb[21].mxu1 }
 0x6e0   :  { %v16041_v58 = vmax.f32 %v16020_v41, 0.0 }
 0x6e2   :  { %v16199_v37 = vcombine.high %v16041_v58, %v16041_v58  ;;  %v16206_v26 = vrot.slane %v16041_v58, %v19011_v56 }
 0x6e4   :  { %v16213_v55 = vrot.slane %v16199_v37, %v19011_v56  ;;  %v16214_v19 = vcombine.high %v16206_v26, %v16206_v26  ;;  %v16222_v13 = vrot.slane %v16206_v26, %v19011_v56  ;;  %v17102_v26 = vrot.slane %v17095_v59, %v19011_v56 }
 0x6e6   :  { %v28132_v12 = vrot.slane %v16213_v55, %v19011_v56  ;;  %v16236_v50 = vrot.slane %v16214_v19, %v19011_v56  ;;  %v16244_v57 = vcombine.high %v16222_v13, %v16222_v13  ;;  %v16215_v51 = vcombine.high %v16213_v55, %v16213_v55 }
 0x6e7   :  { %v17158_v16 = vrot.slane %v16222_v13, %v19011_v56 }
 0x6e8   :  { %v28135_v22 = vcombine.high %v16236_v50, %v16236_v50  ;;  %v16437_v35 = vcombine.low %v16236_v50, %v16244_v57  ;;  %v18223_v8 = vcombine.high %v16222_v13, %v16236_v50  ;;  %v16595_v62 = vrot.slane %v28132_v12, %v19011_v56 }
 0x6e9   :  { %v28149_v24 = vrot.slane %v16215_v51, %v19011_v56  ;;  %v28178_v30 = vcombine.low %v17151_v44, %v17158_v16 }
 0x6ea   :  { %v16588_v10 = vrot.slane %v18223_v8, %v19011_v56  ;;  %v16444_v20 = vrot.slane %v16437_v35, %v19011_v56  ;;  %v16451_v42 = vrot.slane %v28135_v22, %v19011_v56  ;;  %v16737_v55 = vcombine.low %v28135_v22, %v28132_v12  ;;  %v17392_v35 = vld [vmem:[%s28518_s5 + $0x20] sm:$0xff] }
 0x6eb   :  { %v16024_v2 = vpop.f32.mrb[22].mxu1  ;;  %v18221_v52 = vcombine.high %v28132_v12, %v28149_v24  ;;  %v16247_v5 = vcombine.high %v28149_v24, %v28149_v24  ;;  %v17393_v12 = vld [vmem:[%s28518_s5 + $0x28] sm:$0xff] }
 0x6ec   :  { %v16025_v49 = vadd.f32 %v27867_v63, %v16024_v2  ;;  %v18469_v34 = vpop.f32.mrb[23].mxu1  ;;  %v16596_v32 = vcombine.low %v16588_v10, %v16595_v62  ;;  %v28153_v60 = vcombine.low %v16444_v20, %v16451_v42  ;;  %v16744_v9 = vrot.slane %v16737_v55, %v19011_v56  ;;  %v17394_v10 = vld [vmem:[%s28518_s5 + $0x30] sm:$0xff]  ;;  %v17395_v62 = vld [vmem:[%s28518_s5 + $0x38] sm:$0xff] }
 0x6ed   :  { %v16467_v11 = vrot.slane %v18221_v52, %v19011_v56  ;;  %v16751_v34 = vrot.slane %v28149_v24, %v19011_v56  ;;  %v17396_v24 = vld [vmem:[%s28518_s5 + $0x40] sm:$0xff]  ;;  %v17397_v52 = vld [vmem:[%s28518_s5 + $0x48] sm:$0xff] }
 0x6ee   :  { %v16042_v14 = vmax.f32 %v16025_v49, 0.0  ;;  %v16603_v38 = vrot.slane %v16596_v32, %v19011_v56  ;;  %v18526_v49 = vpack.c.bf16 %v17393_v12, %v17392_v35  ;;  %v18529_v32 = vpack.c.bf16 %v17395_v62, %v17394_v10 }
 0x6ef   :  { %v16752_v33 = vcombine.low %v16744_v9, %v16751_v34  ;;  %v18532_v59 = vpack.c.bf16 %v17397_v52, %v17396_v24  ;;  %v16651_v24 = vpop.permute.xlu0 %16650 }
 0x6f0   :  { %v16248_v6 = vcombine.high %v16042_v14, %v16042_v14  ;;  %v16255_v21 = vrot.slane %v16042_v14, %v19011_v56  ;;  %16656 = vrot.lane.b32.xlu0 %v16603_v38, %s18687_s4  ;;  %18527 = vmatpush1.bf16.msra.mxu1 %v18526_v49 }
 0x6f1   :  { %18528 = vmatprep.subr.bf16.mxu1 %v29445_v0 }
 0x6f2   :  { %v16262_v15 = vrot.slane %v16248_v6, %v19011_v56  ;;  %v16263_v47 = vcombine.high %v16255_v21, %v16255_v21  ;;  %v16271_v61 = vrot.slane %v16255_v21, %v19011_v56 }
 0x6f4   :  { %v16264_v45 = vcombine.high %v16262_v15, %v16262_v15  ;;  %v16278_v3 = vrot.slane %v16262_v15, %v19011_v56  ;;  %v16285_v1 = vrot.slane %v16263_v47, %v19011_v56  ;;  %v16293_v48 = vcombine.high %v16271_v61, %v16271_v61  ;;  %17126 = vrot.lane.b32.xlu0 %v28007_v46, %s18692_s16 }
 0x6f5   :  { %v16604_v25 = vcombine.low %v16247_v5, %v16271_v61  ;;  %v16474_v41 = vrot.slane %v16271_v61, %v19011_v56  ;;  %18530 = vmatpush1.bf16.msra.mxu1 %v18529_v32  ;;  %v16759_v15 = vrot.slane %v16752_v33, %v19011_v56 }
 0x6f6   :  { %v16292_v17 = vrot.slane %v16264_v45, %v19011_v56  ;;  %v16294_v58 = vcombine.high %v16278_v3, %v16278_v3  ;;  %v16760_v37 = vcombine.low %v16271_v61, %v16285_v1  ;;  %v16618_v19 = vrot.slane %v16285_v1, %v19011_v56  ;;  %18531 = vmatprep.subr.bf16.mxu1 %v29445_v0  ;;  %v17398_v61 = vld [vmem:[%s28518_s5 + $0x50] sm:$0xff]  ;;  %v17400_v45 = vld [vmem:[%s28518_s5 + $0x60] sm:$0xff] }
 0x6f7   :  { %v16611_v46 = vrot.slane %v16604_v25, %v19011_v56  ;;  %v16475_v13 = vcombine.low %v16467_v11, %v16474_v41  ;;  %v16774_v23 = vrot.slane %v16293_v48, %v19011_v56  ;;  %v16295_v8 = vcombine.high %v16285_v1, %v16285_v1  ;;  %v17402_v25 = vld [vmem:[%s28518_s5 + $0x70] sm:$0xff]  ;;  %v17403_v11 = vld [vmem:[%s28518_s5 + $0x78] sm:$0xff] }
 0x6f8   :  { %17130 = vrot.lane.b32.xlu0 %v17102_v26, %s18692_s16  ;;  %v16767_v29 = vrot.slane %v16760_v37, %v19011_v56  ;;  %v16296_v28 = vcombine.high %v16292_v17, %v16292_v17  ;;  %v16783_v57 = vcombine.low %v16292_v17, %v16294_v58  ;;  %v16627_v51 = vcombine.low %v16278_v3, %v16292_v17 }
 0x6f9   :  { %v16619_v50 = vcombine.low %v16611_v46, %v16618_v19  ;;  %v16483_v36 = vcombine.low %v16295_v8, %v16278_v3  ;;  %v28214_v38 = vrot.slane %v16475_v13, %v19011_v56  ;;  %v16641_v21 = vrot.slane %v16294_v58, %v19011_v56  ;;  %18533 = vmatpush1.bf16.msra.mxu1 %v18532_v59  ;;  %v17401_v3 = vld [vmem:[%s28518_s5 + $0x68] sm:$0xff] }
 0x6fa   :  { %v16775_v22 = vcombine.low %v16767_v29, %v16774_v23  ;;  %v16790_v20 = vrot.slane %v16783_v57, %v19011_v56  ;;  %v16797_v42 = vrot.slane %v16296_v28, %v19011_v56  ;;  %v16634_v14 = vrot.slane %v16627_v51, %v19011_v56  ;;  %18534 = vmatprep.subr.bf16.mxu1 %v29445_v0  ;;  %v17405_v58 = vld [vmem:[%s28518_s5 + $0x88] sm:$0xff] }
 0x6fb   :  { %v16626_v40 = vrot.slane %v16619_v50, %v19011_v56  ;;  %v16497_v16 = vrot.slane %v16292_v17, %v19011_v56  ;;  %v18535_v5 = vpack.c.bf16 %v17399_v27, %v17398_v61  ;;  %v18538_v1 = vpack.c.bf16 %v17401_v3, %v17400_v45  ;;  %v17404_v17 = vld [vmem:[%s28518_s5 + $0x80] sm:$0xff]  ;;  %v16655_v27 = vpop.permute.xlu0 %16654  ;;  %v16653_v3 = vpop.permute.xlu1 %16652 }
 0x6fc   :  { %v16782_v2 = vrot.slane %v16775_v22, %v19011_v56  ;;  %v16798_v6 = vcombine.low %v16790_v20, %v16797_v42  ;;  %v16642_v47 = vcombine.low %v16634_v14, %v16641_v21  ;;  %v18541_v41 = vpack.c.bf16 %v17403_v11, %v17402_v25 }
 0x6fd   :  { %16658 = vrot.lane.b32.xlu1 %v16626_v40, %s18687_s4  ;;  %18536 = vmatpush1.bf16.msra.mxu1 %v18535_v5  ;;  %v18544_v37 = vpack.c.bf16 %v17405_v58, %v17404_v17 }
 0x6fe   :  { %16814 = vrot.lane.b32.xlu0 %v16782_v2, %s18688_s24  ;;  %v28237_v4 = vrot.slane %v16798_v6, %v19011_v56  ;;  %v28244_v39 = vrot.slane %v16642_v47, %v19011_v56  ;;  %18537 = vmatprep.subr.bf16.mxu1 %v29445_v0 }
 0x6ff   :  { %v16809_v17 = vpop.permute.xlu0 %16808 }
 0x701   :  { %17128 = vrot.lane.b32.xlu1 %v28092_v31, %s18692_s16  ;;  %v16490_v31 = vrot.slane %v16483_v36, %v19011_v56  ;;  %18539 = vmatpush1.bf16.msra.mxu1 %v18538_v1 }
 0x702   :  { %16876 = vrot.lane.b32.xlu0 %v28214_v38, %s18689_s25  ;;  %18540 = vmatprep.subr.bf16.mxu1 %v29445_v0 }
 0x703   :  { %v16498_v44 = vcombine.low %v16490_v31, %v16497_v16 }
 0x705   :  { %16812 = vrot.lane.b32.xlu1 %v16759_v15, %s18688_s24  ;;  %v28258_v48 = vrot.slane %v16498_v44, %v19011_v56  ;;  %18542 = vmatpush1.bf16.msra.mxu1 %v18541_v41 }
 0x706   :  { %16816 = vrot.lane.b32.xlu0 %v28237_v4, %s18688_s24  ;;  %18543 = vmatprep.subr.bf16.mxu1 %v29445_v0 }
 0x709   :  { %16660 = vrot.lane.b32.xlu1 %v28244_v39, %s18687_s4  ;;  %18545 = vmatpush1.bf16.msra.mxu1 %v18544_v37 }
 0x70a   :  { %16942 = vrot.lane.b32.xlu0 %v28244_v39, %s18690_s27 }
 0x70d   :  { %16878 = vrot.lane.b32.xlu1 %v28258_v48, %s18689_s25 }
 0x70e   :  { %17004 = vrot.lane.b32.xlu0 %v16782_v2, %s18683_s12 }
 0x711   :  { %16940 = vrot.lane.b32.xlu1 %v16626_v40, %s18690_s27 }
 0x720   :  { %v16029_v26 = vpop.f32.mrb[24].mxu1 }
 0x721   :  { %v16030_v55 = vadd.f32 %v27867_v63, %v16029_v26  ;;  %v18472_v46 = vpop.f32.mrb[25].mxu1  ;;  %v16807_v26 = vpop.permute.xlu1 %16806 }
 0x723   :  { %v16043_v19 = vmax.f32 %v16030_v55, 0.0 }
 0x724   :  { %v16034_v13 = vpop.f32.mrb[26].mxu1 }
 0x725   :  { %v16297_v29 = vcombine.high %v16043_v19, %v16043_v19  ;;  %v16304_v23 = vrot.slane %v16043_v19, %v19011_v56  ;;  %v16035_v28 = vadd.f32 %v27867_v63, %v16034_v13  ;;  %v18475_v50 = vpop.f32.mrb[27].mxu1  ;;  %v16871_v13 = vpop.permute.xlu0 %16870 }
 0x727   :  { %v16311_v57 = vrot.slane %v16297_v29, %v19011_v56  ;;  %v16312_v35 = vcombine.high %v16304_v23, %v16304_v23  ;;  %v16320_v12 = vrot.slane %v16304_v23, %v19011_v56  ;;  %v16044_v22 = vmax.f32 %v16035_v28, 0.0  ;;  %v16811_v28 = vpop.permute.xlu1 %16810 }
 0x729   :  { %v16313_v0 = vcombine.high %v16311_v57, %v16311_v57  ;;  %v16334_v8 = vrot.slane %v16312_v35, %v19011_v56  ;;  %v16342_v51 = vcombine.high %v16320_v12, %v16320_v12  ;;  %v16352_v40 = vrot.slane %v16044_v22, %v19011_v56  ;;  %v16875_v50 = vpop.permute.xlu0 %16874 }
 0x72a   :  { %v16327_v9 = vrot.slane %v16311_v57, %v19011_v56 }
 0x72b   :  { %v16341_v10 = vrot.slane %v16313_v0, %v19011_v56  ;;  %v16847_v62 = vcombine.low %v16320_v12, %v16334_v8  ;;  %v16911_v2 = vcombine.low %v16334_v8, %v16342_v51  ;;  %v16360_v63 = vrot.slane %v16352_v40, %v19011_v56  ;;  %v16873_v57 = vpop.permute.xlu1 %16872 }
 0x72c   :  { %v16861_v20 = vrot.slane %v16342_v51, %v19011_v56  ;;  %v16344_v32 = vcombine.high %v16334_v8, %v16334_v8  ;;  %v16343_v52 = vcombine.high %v16327_v9, %v16327_v9  ;;  %v18225_v15 = vcombine.high %v16320_v12, %v16334_v8 }
 0x72d   :  { %v18226_v42 = vcombine.high %v16327_v9, %v16341_v10  ;;  %v16345_v49 = vcombine.high %v16341_v10, %v16341_v10  ;;  %v16854_v34 = vrot.slane %v16847_v62, %v19011_v56  ;;  %v16918_v36 = vrot.slane %v16911_v2, %v19011_v56  ;;  %v16937_v35 = vpop.permute.xlu0 %16936 }
 0x72e   :  { %v17117_v14 = vrot.slane %v16360_v63, %v19011_v56  ;;  %v16925_v59 = vrot.slane %v16344_v32, %v19011_v56  ;;  %v17039_v5 = vcombine.low %v16341_v10, %v16343_v52  ;;  %v16982_v44 = vrot.slane %v18225_v15, %v19011_v56 }
 0x72f   :  { %v17110_v33 = vrot.slane %v18226_v42, %v19011_v56  ;;  %v17167_v6 = vcombine.low %v16345_v49, %v16360_v63  ;;  %v16862_v21 = vcombine.low %v16854_v34, %v16861_v20  ;;  %v16353_v45 = vcombine.high %v16352_v40, %v16352_v40  ;;  %v16935_v12 = vpop.permute.xlu1 %16934 }
 0x730   :  { %v16926_v61 = vcombine.low %v16918_v36, %v16925_v59  ;;  %v16989_v1 = vrot.slane %v16327_v9, %v19011_v56  ;;  %v17053_v25 = vrot.slane %v16345_v49, %v19011_v56  ;;  %v17046_v11 = vrot.slane %v17039_v5, %v19011_v56 }
 0x731   :  { %v17118_v47 = vcombine.low %v17110_v33, %v17117_v14  ;;  %v16869_v31 = vrot.slane %v16862_v21, %v19011_v56  ;;  %v16367_v58 = vrot.slane %v16353_v45, %v19011_v56  ;;  %v17174_v46 = vrot.slane %v17167_v6, %v19011_v56  ;;  %v16999_v22 = vpop.permute.xlu0 %16998 }
 0x732   :  { %v16933_v16 = vrot.slane %v16926_v61, %v19011_v56  ;;  %v16990_v41 = vcombine.low %v16982_v44, %v16989_v1  ;;  %v17054_v37 = vcombine.low %v17046_v11, %v17053_v25  ;;  %v16390_v51 = vrot.slane %v27902_v54, %v19011_v56 }
 0x733   :  { %16880 = vrot.lane.b32.xlu1 %v16869_v31, %s18689_s25  ;;  %v17181_v19 = vrot.slane %v16367_v58, %v19011_v56  ;;  %v16939_v0 = vpop.permute.xlu1 %16938  ;;  %v17193_v2 = vsel %vm17190_vm12, %v28029_v43, %v16655_v27  ;;  %v16459_v42 = vrot.slane %v28153_v60, %v19011_v56  ;;  %v17192_v59 = vsel %vm17190_vm12, %v28032_v7, %v16653_v3 }
 0x734   :  { %16944 = vrot.lane.b32.xlu0 %v16933_v16, %s18690_s27  ;;  %v28310_v55 = vrot.slane %v16990_v41, %v19011_v56  ;;  %v17061_v29 = vrot.slane %v17054_v37, %v19011_v56  ;;  %v17191_v9 = vsel %vm17190_vm12, %v16390_v51, %v16651_v24  ;;  %v17200_v54 = vsel %vm17197_vm13, %v17193_v2, %v16811_v28 }
 0x735   :  { %v28319_v23 = vcombine.low %v17174_v46, %v17181_v19  ;;  %v17003_v8 = vpop.permute.xlu0 %17002  ;;  %v17198_v10 = vsel %vm17197_vm13, %v17191_v9, %v16807_v26  ;;  %v17207_v32 = vsel %vm17204_vm14, %v17200_v54, %v16875_v50  ;;  %v17199_v61 = vsel %vm17197_vm13, %v17192_v59, %v16809_v17 }
 0x736   :  { %v17205_v63 = vsel %vm17204_vm14, %v17198_v10, %v16871_v13  ;;  %v17214_v43 = vsel %vm17211_vm15, %v17207_v32, %v16939_v0  ;;  %v17206_v44 = vsel %vm17204_vm14, %v17199_v61, %v16873_v57 }
 0x737   :  { %17006 = vrot.lane.b32.xlu1 %v28237_v4, %s18683_s12  ;;  %v17001_v40 = vpop.permute.xlu1 %17000  ;;  %v17212_v49 = vsel %vm17211_vm15, %v17205_v63, %v16935_v12  ;;  %v17220_v60 = vsel %vm15180_vm10, %v17214_v43, %v17003_v8 }
 0x738   :  { %17070 = vrot.lane.b32.xlu0 %v16869_v31, %s18691_s28  ;;  %v17218_v36 = vsel %vm15180_vm10, %v17212_v49, %v16999_v22 }
 0x739   :  { %v17065_v62 = vpop.permute.xlu0 %17064 }
 0x73b   :  { %17068 = vrot.lane.b32.xlu1 %v28258_v48, %s18691_s28  ;;  %v17063_v20 = vpop.permute.xlu1 %17062 }
 0x73c   :  { %17132 = vrot.lane.b32.xlu0 %v28244_v39, %s18692_s16  ;;  %v17125_v39 = vrot.slane %v17118_v47, %v19011_v56  ;;  %v17225_v14 = vsel %vm17224_vm0, %v17218_v36, %v17063_v20  ;;  %v17166_v47 = vrot.slane %v28178_v30, %v19011_v56 }
 0x73f   :  { %17008 = vrot.lane.b32.xlu1 %v28310_v55, %s18683_s12  ;;  %v17067_v21 = vpop.permute.xlu1 %17066 }
 0x740   :  { %17072 = vrot.lane.b32.xlu0 %v17061_v29, %s18691_s28  ;;  %v17227_v15 = vsel %vm17224_vm0, %v17220_v60, %v17067_v21 }
 0x743   :  { %17134 = vrot.lane.b32.xlu1 %v16933_v16, %s18692_s16 }
 0x747   :  { %17136 = vrot.lane.b32.xlu1 %v17125_v39, %s18692_s16 }
 0x762   :  { %v16657_v34 = vpop.permute.xlu0 %16656 }
 0x763   :  { %v28339_v33 = vsel %vm17190_vm12, %v16459_v42, %v16657_v34 }
 0x766   :  { %v17127_v6 = vpop.permute.xlu0 %17126 }
 0x767   :  { %v17232_v24 = vsel %vm17231_vm1, %v17225_v14, %v17127_v6 }
 0x768   :  { %v17244_v52 = vcombine.low %v17232_v24, %v28018_v18  ;;  %v17213_v18 = vsel %vm17211_vm15, %v17206_v44, %v16937_v35 }
 0x769   :  { %v17219_v1 = vsel %vm15180_vm10, %v17213_v18, %v17001_v40 }
 0x76a   :  { %v17131_v31 = vpop.permute.xlu0 %17130  ;;  %v17251_v5 = vrot.slane %v17244_v52, %v19011_v56  ;;  %v17226_v30 = vsel %vm17224_vm0, %v17219_v1, %v17065_v62 }
 0x76b   :  { %v17234_v27 = vsel %vm17231_vm1, %v17227_v15, %v17131_v31 }
 0x76c   :  { %v17292_v16 = vcombine.low %v17234_v27, %v17166_v47  ;;  %v17252_v3 = vcombine.high %v17251_v5, %v17251_v5  ;;  %v17259_v41 = vrot.slane %v17251_v5, %v19011_v56 }
 0x76e   :  { %v17299_v45 = vrot.slane %v17292_v16, %v19011_v56  ;;  %v17266_v58 = vrot.slane %v17252_v3, %v19011_v56  ;;  %v17267_v19 = vcombine.high %v17259_v41, %v17259_v41 }
 0x76f   :  { %v16659_v7 = vpop.permute.xlu1 %16658 }
 0x770   :  { %v17300_v25 = vcombine.high %v17299_v45, %v17299_v45  ;;  %v17413_v13 = vcombine.low %v17259_v41, %v17266_v58  ;;  %v28366_v29 = vrot.slane %v17299_v45, %v19011_v56  ;;  %v16815_v34 = vpop.permute.xlu0 %16814  ;;  %v17195_v61 = vsel %vm17190_vm12, %v28214_v38, %v16659_v7 }
 0x771   :  { %v17202_v5 = vsel %vm17197_vm13, %v17195_v61, %v16815_v34 }
 0x772   :  { %v17314_v26 = vrot.slane %v17300_v25, %v19011_v56  ;;  %v17315_v58 = vcombine.high %v28366_v29, %v28366_v29 }
 0x773   :  { %v17129_v11 = vpop.permute.xlu1 %17128 }
 0x774   :  { %v17233_v17 = vsel %vm17231_vm1, %v17226_v30, %v17129_v11  ;;  %v17416_v39 = vcombine.low %v28366_v29, %v17314_v26  ;;  %v16877_v36 = vpop.permute.xlu0 %16876 }
 0x775   :  { %v17268_v37 = vcombine.low %v17233_v17, %v28112_v53  ;;  %v17423_v53 = vrot.slane %v17413_v13, %v19011_v56 }
 0x776   :  { %v17444_v8 = vrot.slane %v17416_v39, %v19011_v56 }
 0x777   :  { %v17275_v46 = vrot.slane %v17268_v37, %v19011_v56  ;;  %v16813_v32 = vpop.permute.xlu1 %16812 }
 0x778   :  { %v16817_v14 = vpop.permute.xlu0 %16816  ;;  %v17201_v59 = vsel %vm17197_vm13, %v28339_v33, %v16813_v32 }
 0x779   :  { %v17276_v28 = vcombine.high %v17275_v46, %v17275_v46  ;;  %v17283_v50 = vrot.slane %v17275_v46, %v19011_v56  ;;  %v17208_v47 = vsel %vm17204_vm14, %v17201_v59, %v16877_v36 }
 0x77b   :  { %v17290_v57 = vrot.slane %v17276_v28, %v19011_v56  ;;  %v17291_v35 = vcombine.high %v17283_v50, %v17283_v50  ;;  %v17414_v12 = vcombine.low %v17267_v19, %v17283_v50  ;;  %v16661_v43 = vpop.permute.xlu1 %16660 }
 0x77c   :  { %v16943_v60 = vpop.permute.xlu0 %16942  ;;  %v17196_v45 = vsel %vm17190_vm12, %v28258_v48, %v16661_v43 }
 0x77d   :  { %v17415_v22 = vcombine.low %v17290_v57, %v17291_v35  ;;  %v17430_v0 = vrot.slane %v17414_v12, %v19011_v56  ;;  %v17203_v30 = vsel %vm17197_vm13, %v17196_v45, %v16817_v14  ;;  %v18693_v45 = vmov 0  }
 0x77e   :  { %18591 = vset.pattern.permute.xlu1 %v18693_v45  ;;  %18590 = vset.pattern.permute.xlu0 %v18693_v45 }
 0x77f   :  { %v17437_v51 = vrot.slane %v17415_v22, %v19011_v56  ;;  %v17445_v40 = vcombine.low %v17423_v53, %v17430_v0  ;;  %v17446_v9 = vcombine.high %v17423_v53, %v17430_v0  ;;  %v16879_v6 = vpop.permute.xlu1 %16878  ;;  %v17189_v0 = vrot.slane %v28319_v23, %v19011_v56 }
 0x780   :  { %v17005_v24 = vpop.permute.xlu0 %17004  ;;  %v17209_v33 = vsel %vm17204_vm14, %v17202_v5, %v16879_v6 }
 0x781   :  { %v17447_v10 = vcombine.low %v17437_v51, %v17444_v8  ;;  %v17448_v62 = vcombine.high %v17437_v51, %v17444_v8  ;;  %v17462_v2 = vrot.slane %v17446_v9, %v19011_v56  ;;  %v17455_v20 = vrot.slane %v17445_v40, %v19011_v56 }
 0x782   :  { %v17216_v38 = vsel %vm17211_vm15, %v17209_v33, %v16943_v60  ;;  %v17785_v33 = vld [vmem:[%s28520_s8] sm:$0xff] }
 0x783   :  { %v17476_v63 = vrot.slane %v17448_v62, %v19011_v56  ;;  %v17469_v42 = vrot.slane %v17447_v10, %v19011_v56  ;;  %v16941_v21 = vpop.permute.xlu1 %16940  ;;  %17789 = vperm.xlu0 %18590, %v17785_v33  }
 0x784   :  { %v17215_v27 = vsel %vm17211_vm15, %v17208_v47, %v16941_v21 }
 0x785   :  { %v17478_v54 = vcombine.low %v17462_v2, %v17476_v63  ;;  %v17477_v49 = vcombine.low %v17455_v20, %v17469_v42  ;;  %v17221_v18 = vsel %vm15180_vm10, %v17215_v27, %v17005_v24 }
 0x787   :  { %18229 = vmatprep.mubr.msk.f32.mxu1 %vm17190_vm12, %v17478_v54 }
 0x788   :  { %17642 = vmatmul.mubr.f32.vlgmr.msra.gmra.mrb[28].mxu1 %v17477_v49 }
 0x7a5   :  { %v16881_v52 = vpop.permute.xlu1 %16880 }
 0x7a6   :  { %v16945_v15 = vpop.permute.xlu0 %16944  ;;  %v17210_v11 = vsel %vm17204_vm14, %v17203_v30, %v16881_v52 }
 0x7a7   :  { %v17217_v37 = vsel %vm17211_vm15, %v17210_v11, %v16945_v15 }
 0x7a9   :  { %v17007_v31 = vpop.permute.xlu1 %17006 }
 0x7aa   :  { %v17071_v16 = vpop.permute.xlu0 %17070  ;;  %v17222_v41 = vsel %vm15180_vm10, %v17216_v38, %v17007_v31  ;;  %v18228_v38 = vld [vmem:[%s28521_s6] ss:$0 sm:$0xff] }
 0x7ab   :  { %v17229_v26 = vsel %vm17224_vm0, %v17222_v41, %v17071_v16 }
 0x7ad   :  { %v17069_v44 = vpop.permute.xlu1 %17068 }
 0x7ae   :  { %v17228_v3 = vsel %vm17224_vm0, %v17221_v18, %v17069_v44  ;;  %v17133_v1 = vpop.permute.xlu0 %17132  ;;  %v28434_v18 = vld [vmem:[%s28519_s7] sm:$0xff] }
 0x7af   :  { %v17235_v7 = vsel %vm17231_vm1, %v17228_v3, %v17133_v1  ;;  %v17786_v3 = vld [vmem:[%s28520_s8 + $0x8] sm:$0x7f] }
 0x7b0   :  { %v17316_v17 = vcombine.low %v17235_v7, %v28237_v4  ;;  %17794 = vperm.xlu1 %18591, %v17786_v3  }
 0x7b1   :  { %v17009_v25 = vpop.permute.xlu1 %17008 }
 0x7b2   :  { %v17323_v48 = vrot.slane %v17316_v17, %v19011_v56  ;;  %v17223_v28 = vsel %vm15180_vm10, %v17217_v37, %v17009_v25  ;;  %v17073_v50 = vpop.permute.xlu0 %17072 }
 0x7b3   :  { %v17230_v29 = vsel %vm17224_vm0, %v17223_v28, %v17073_v50 }
 0x7b4   :  { %v17324_v19 = vcombine.high %v17323_v48, %v17323_v48  ;;  %v17331_v13 = vrot.slane %v17323_v48, %v19011_v56 }
 0x7b5   :  { %v17135_v46 = vpop.permute.xlu1 %17134 }
 0x7b6   :  { %v17236_v39 = vsel %vm17231_vm1, %v17229_v26, %v17135_v46  ;;  %v17338_v57 = vrot.slane %v17324_v19, %v19011_v56  ;;  %v17339_v35 = vcombine.high %v17331_v13, %v17331_v13  ;;  %v17479_v12 = vcombine.low %v17315_v58, %v17331_v13 }
 0x7b7   :  { %v17340_v4 = vcombine.low %v17236_v39, %v28310_v55 }
 0x7b8   :  { %v17480_v8 = vcombine.low %v17338_v57, %v17339_v35  ;;  %v17489_v55 = vrot.slane %v17479_v12, %v19011_v56 }
 0x7b9   :  { %v17347_v53 = vrot.slane %v17340_v4, %v19011_v56  ;;  %v17137_v22 = vpop.permute.xlu1 %17136 }
 0x7ba   :  { %v17237_v51 = vsel %vm17231_vm1, %v17230_v29, %v17137_v22  ;;  %v17496_v62 = vrot.slane %v17480_v8, %v19011_v56 }
 0x7bb   :  { %v17348_v40 = vcombine.high %v17347_v53, %v17347_v53  ;;  %v17355_v9 = vrot.slane %v17347_v53, %v19011_v56  ;;  %v17364_v10 = vcombine.low %v17237_v51, %v17189_v0 }
 0x7bc   :  { %v17512_v20 = vcombine.high %v17489_v55, %v17496_v62  ;;  %v17511_v42 = vcombine.low %v17489_v55, %v17496_v62 }
 0x7bd   :  { %v17362_v2 = vrot.slane %v17348_v40, %v19011_v56  ;;  %v17371_v63 = vrot.slane %v17364_v10, %v19011_v56  ;;  %v17363_v54 = vcombine.high %v17355_v9, %v17355_v9 }
 0x7be   :  { %v17528_v59 = vrot.slane %v17512_v20, %v19011_v56  ;;  %v17521_v47 = vrot.slane %v17511_v42, %v19011_v56 }
 0x7bf   :  { %v17481_v49 = vcombine.low %v17355_v9, %v17362_v2  ;;  %v17372_v23 = vcombine.high %v17371_v63, %v17371_v63  ;;  %v17379_v34 = vrot.slane %v17371_v63, %v19011_v56 }
 0x7c1   :  { %v17386_v32 = vrot.slane %v17372_v23, %v19011_v56  ;;  %v17387_v36 = vcombine.high %v17379_v34, %v17379_v34  ;;  %v17482_v43 = vcombine.low %v17363_v54, %v17379_v34  ;;  %v17503_v14 = vrot.slane %v17481_v49, %v19011_v56 }
 0x7c3   :  { %v17510_v6 = vrot.slane %v17482_v43, %v19011_v56  ;;  %v17545_v60 = vcombine.low %v17386_v32, %v17387_v36 }
 0x7c5   :  { %v17514_v21 = vcombine.high %v17503_v14, %v17510_v6  ;;  %v17513_v24 = vcombine.low %v17503_v14, %v17510_v6  ;;  %v17552_v52 = vrot.slane %v17545_v60, %v19011_v56 }
 0x7c7   :  { %v17542_v15 = vrot.slane %v17514_v21, %v19011_v56  ;;  %v17535_v31 = vrot.slane %v17513_v24, %v19011_v56  ;;  %v17553_v61 = vcombine.high %v17552_v52, %v17552_v52  ;;  %v17560_v44 = vrot.slane %v17552_v52, %v19011_v56 }
 0x7c9   :  { %v17544_v27 = vcombine.low %v17528_v59, %v17542_v15  ;;  %v17543_v16 = vcombine.low %v17521_v47, %v17535_v31  ;;  %v17567_v5 = vrot.slane %v17553_v61, %v19011_v56 }
 0x7cb   :  { %18230 = vmatprep.mubr.msk.f32.mxu1 %vm17190_vm12, %v17544_v27 }
 0x7cc   :  { %17647 = vmatmul.mubr.f32.gmra.mrb[30].mxu1 %v17543_v16 }
 0x7cd   :  { %18231 = vmatprep.mubr.msk.f32.mxu1 %vm17190_vm12, %v17567_v5 }
 0x7d0   :  { %17652 = vmatmul.mubr.f32.gmra.mrb[32].mxu1 %v17560_v44 }
 0x7d1   :  { %18480 = vmatprep.mubr.msk.f32.mxu1 %vm17197_vm13, %v28434_v18 }
 0x85b   :  { %v17643_v1 = vpop.f32.mrb[28].mxu1 }
 0x85c   :  { %v17645_v30 = vpop.f32.mrb[29].mxu1  ;;  %v17644_v7 = vadd.f32 %v18228_v38, %v17643_v1 }
 0x85e   :  { %v17657_v25 = vmax.f32 %v17644_v7, 0.0 }
 0x860   :  { %v17663_v11 = vcombine.high %v17657_v25, %v17657_v25  ;;  %v17670_v17 = vrot.slane %v17657_v25, %v19011_v56 }
 0x862   :  { %v17677_v41 = vrot.slane %v17663_v11, %v19011_v56  ;;  %v17678_v58 = vcombine.high %v17670_v17, %v17670_v17  ;;  %v17686_v19 = vrot.slane %v17670_v17, %v19011_v56  ;;  %v17784_v11 = vld [vmem:[%s28519_s7 + $0x8] sm:$0x7f] }
 0x864   :  { %v17679_v48 = vcombine.high %v17677_v41, %v17677_v41  ;;  %v17693_v26 = vrot.slane %v17677_v41, %v19011_v56  ;;  %v17700_v46 = vrot.slane %v17678_v58, %v19011_v56 }
 0x866   :  { %v17707_v37 = vrot.slane %v17679_v48, %v19011_v56  ;;  %v17797_v50 = vcombine.low %v17686_v19, %v17700_v46  ;;  %v18232_v39 = vcombine.high %v17686_v19, %v17700_v46  ;;  %v17790_v46 = vpop.permute.xlu0 %17789 }
 0x868   :  { %v17799_v13 = vcombine.low %v17693_v26, %v17707_v37  ;;  %v18233_v28 = vcombine.high %v17693_v26, %v17707_v37  ;;  %v17807_v53 = vrot.slane %v17797_v50, %v19011_v56  ;;  %v17814_v22 = vrot.slane %v18232_v39, %v19011_v56  ;;  %v17795_v26 = vpop.permute.xlu1 %17794 }
 0x86a   :  { %v17821_v4 = vrot.slane %v17799_v13, %v19011_v56  ;;  %v17828_v57 = vrot.slane %v18233_v28, %v19011_v56  ;;  %v17829_v62 = vcombine.low %v17807_v53, %v17814_v22 }
 0x86c   :  { %v17830_v8 = vcombine.low %v17821_v4, %v17828_v57  ;;  %v17837_v14 = vrot.slane %v17829_v62, %v19011_v56 }
 0x86e   :  { %v17844_v54 = vrot.slane %v17830_v8, %v19011_v56 }
 0x870   :  { %v17845_v15 = vcombine.low %v17837_v14, %v17844_v54 }
 0x89f   :  { %v17648_v35 = vpop.f32.mrb[30].mxu1 }
 0x8a0   :  { %v17649_v12 = vadd.f32 %v18228_v38, %v17648_v35  ;;  %v17650_v29 = vpop.f32.mrb[31].mxu1 }
 0x8a2   :  { %v17658_v0 = vmax.f32 %v17649_v12, 0.0 }
 0x8a3   :  { %v17653_v51 = vpop.f32.mrb[32].mxu1 }
 0x8a4   :  { %v17712_v40 = vcombine.high %v17658_v0, %v17658_v0  ;;  %v17719_v9 = vrot.slane %v17658_v0, %v19011_v56  ;;  %v17654_v10 = vadd.f32 %v18228_v38, %v17653_v51  ;;  %v17655_v55 = vpop.f32.mrb[33].mxu1 }
 0x8a6   :  { %v17726_v2 = vrot.slane %v17712_v40, %v19011_v56  ;;  %v17727_v63 = vcombine.high %v17719_v9, %v17719_v9  ;;  %v17735_v20 = vrot.slane %v17719_v9, %v19011_v56  ;;  %v17659_v42 = vmax.f32 %v17654_v10, 0.0 }
 0x8a8   :  { %v17728_v49 = vcombine.high %v17726_v2, %v17726_v2  ;;  %v17742_v23 = vrot.slane %v17726_v2, %v19011_v56  ;;  %v17749_v34 = vrot.slane %v17727_v63, %v19011_v56  ;;  %v17757_v32 = vcombine.high %v17735_v20, %v17735_v20 }
 0x8a9   :  { %v17852_v36 = vrot.slane %v17735_v20, %v19011_v56  ;;  %v17767_v43 = vrot.slane %v17659_v42, %v19011_v56 }
 0x8aa   :  { %v17756_v6 = vrot.slane %v17728_v49, %v19011_v56  ;;  %v17758_v60 = vcombine.high %v17742_v23, %v17742_v23  ;;  %v17759_v21 = vcombine.high %v17749_v34, %v17749_v34  ;;  %v17945_v24 = vcombine.low %v17749_v34, %v17757_v32 }
 0x8ab   :  { %v17859_v52 = vrot.slane %v17852_v36, %v19011_v56  ;;  %v17768_v59 = vcombine.high %v17767_v43, %v17767_v43  ;;  %v17775_v27 = vrot.slane %v17767_v43, %v19011_v56 }
 0x8ac   :  { %v17946_v47 = vcombine.low %v17759_v21, %v17742_v23  ;;  %v17947_v31 = vcombine.low %v17756_v6, %v17758_v60  ;;  %v17760_v61 = vcombine.high %v17756_v6, %v17756_v6  ;;  %v17955_v44 = vrot.slane %v17945_v24, %v19011_v56 }
 0x8ad   :  { %v18546_v5 = vpack.c.bf16 %v17859_v52, %v17845_v15  ;;  %v17782_v33 = vrot.slane %v17768_v59, %v19011_v56 }
 0x8ae   :  { %v17962_v45 = vrot.slane %v17946_v47, %v19011_v56  ;;  %v17948_v3 = vcombine.low %v17760_v61, %v17775_v27  ;;  %v17969_v30 = vrot.slane %v17947_v31, %v19011_v56 }
 0x8af   :  { %18548 = vmatprep.subr.msk.bf16.mxu1 %vm28471_vm2, %v18546_v5  ;;  %v18000_v25 = vrot.slane %v17782_v33, %v19011_v56 }
 0x8b0   :  { %v17977_v1 = vcombine.low %v17955_v44, %v17962_v45  ;;  %v17976_v38 = vrot.slane %v17948_v3, %v19011_v56  ;;  %18551 = vmatpush3.bf16.xpose.msk.msra.mxu1 %vm28471_vm2, %v18546_v5 }
 0x8b1   :  { %v18007_v58 = vrot.slane %v18000_v25, %v19011_v56 }
 0x8b2   :  { %v17978_v7 = vcombine.low %v17969_v30, %v17976_v38  ;;  %v17985_v41 = vrot.slane %v17977_v1, %v19011_v56 }
 0x8b4   :  { %v17992_v17 = vrot.slane %v17978_v7, %v19011_v56 }
 0x8b6   :  { %v17993_v48 = vcombine.low %v17985_v41, %v17992_v17 }
 0x8b7   :  { %18481 = vmatmul.mubr.msk.f32.vlgmr.msra.gmra.mrb[34].mxu1 %vm17197_vm13, %v17784_v11 }
 0x8b8   :  { %v18552_v37 = vpack.c.bf16 %v18007_v58, %v17993_v48  ;;  %18487 = vmatprep.mubr.msk.f32.mxu1 %vm17197_vm13, %v28434_v18 }
 0x8ba   :  { %18554 = vmatprep.subr.msk.bf16.mxu1 %vm28471_vm2, %v18552_v37 }
 0x8bb   :  { %18557 = vmatpush3.bf16.xpose.msk.msra.mxu1 %vm28471_vm2, %v18552_v37 }
 0x8c2   :  { %18488 = vmatmul.mubr.msk.f32.vlgmr.msra.gmra.mrb[36].mxu1 %vm17197_vm13, %v17784_v11 }
 0x98a   :  { %v18482_v19 = vpop.f32.mrb[34].mxu1 }
 0x98b   :  { %v17942_v13 = vadd.f32 %v18482_v19, %v17795_v26  ;;  %v17936_v56 = vpop.f32.mrb[35].mxu1 }
 0x98c   :  { %v17937_v28 = vadd.f32 %v17936_v56, %v17790_v46 }
 0x98d   :  { %18089 = vst.msk [vmem:[%s28522_s9 + $0x8] sm:$0x7f] %vm18088_vm3, %v17942_v13 }
 0x98e   :  { %18087 = vst.msk [vmem:[%s28522_s9] sm:$0xff] %vm2204_vm7, %v17937_v28 }
 0x995   :  { %v18489_v18 = vpop.f32.mrb[36].mxu1 }
 0x996   :  { %v18084_v50 = vadd.f32 %v18489_v18, %v17795_v26  ;;  %v18078_v39 = vpop.f32.mrb[37].mxu1 }
 0x997   :  { %v18079_v4 = vadd.f32 %v18078_v39, %v17790_v46 }
 0x998   :  { %18091 = vst.msk [vmem:[%s28522_s9 + $0x18] sm:$0x7f] %vm18088_vm3, %v18084_v50 }
 0x999   :  { %18090 = vst.msk [vmem:[%s28522_s9 + $0x10] sm:$0xff] %vm2204_vm7, %v18079_v4 }

</bundles_post_ra>
